<compile_context>
chip_gen: v6e
topology: v6e:2x2x1
jax: 0.10.0
libtpu: 0.0.40
codegen_flags: <defaults>
</compile_context>

<pallas_src>
import jax
import jax.numpy as jnp
from jax.experimental import pallas as pl
from jax.experimental.pallas import tpu as pltpu

# ---------------------------------------------------------------------------
# Flat-layout constants: input is 32x32 with row stride S1=32 (no padding).
# Valid positions:
#   conv1 out : j = oh*32 + ow          (oh,ow < 28)
#   pool1 out : p = ph*64 + pw*2        (ph,pw < 14)   row stride 64, col 2
#   conv2 out : q = oh2*64 + ow2*2      (oh2,ow2 < 10)
#   pool2 out : r = ph2*128 + pw2*4     (ph2,pw2 < 5)  row stride 128, col 4
# Slab lengths are sized so every (including garbage) position reads in-bounds.
# ---------------------------------------------------------------------------
S1 = 32
L_O1 = 27 * S1 + 28   # 892  conv1 output slab
L_M1 = 26 * S1 + 27   # 859  pool1 output slab
L_O2 = 18 * S1 + 19   # 595  conv2 output slab
L_M2 = 16 * S1 + 17   # 529  pool2 output slab


def _lenet_kernel(x_ref, w1_ref, b1_ref, w2_ref, b2_ref,
                  wf1_ref, bf1_ref, wf2_ref, bf2_ref, wf3_ref, bf3_ref,
                  o_ref):
    f32 = jnp.float32
    x = x_ref[0]                                   # [3, 1024]

    # ---- conv1 + bias + ReLU: 25 shifted [6,3]x[3,L] dots --------------------
    acc1 = jnp.zeros((6, L_O1), f32)
    for kh in range(5):
        for kw in range(5):
            t = kh * 5 + kw
            off = kh * S1 + kw
            rhs = x[:, off:off + L_O1]             # [3, L_O1]
            acc1 = acc1 + jnp.dot(w1_ref[t], rhs, preferred_element_type=f32)
    h1 = jnp.maximum(acc1 + b1_ref[...], 0.0)      # [6, 892]

    # ---- maxpool 2x2/2 (fused, stays on the flat layout) ---------------------
    m1 = jnp.maximum(
        jnp.maximum(h1[:, 0:L_M1], h1[:, 1:1 + L_M1]),
        jnp.maximum(h1[:, S1:S1 + L_M1], h1[:, S1 + 1:S1 + 1 + L_M1]))

    # ---- conv2 + bias + ReLU: 25 shifted [16,6]x[6,L] dots -------------------
    acc2 = jnp.zeros((16, L_O2), f32)
    for kh in range(5):
        for kw in range(5):
            t = kh * 5 + kw
            off = kh * (2 * S1) + kw * 2
            rhs = m1[:, off:off + L_O2]            # [6, L_O2]
            acc2 = acc2 + jnp.dot(w2_ref[t], rhs, preferred_element_type=f32)
    h2 = jnp.maximum(acc2 + b2_ref[...], 0.0)      # [16, 595]

    # ---- maxpool 2x2/2 on the stride-(64,2) layout ---------------------------
    m2 = jnp.maximum(
        jnp.maximum(h2[:, 0:L_M2], h2[:, 2:2 + L_M2]),
        jnp.maximum(h2[:, 2 * S1:2 * S1 + L_M2],
                    h2[:, 2 * S1 + 2:2 * S1 + 2 + L_M2]))   # [16, 529]

    # ---- fc1 = 5x5x16 -> 120 "conv" at a single position + ReLU --------------
    y = jnp.zeros((120, 1), f32)
    for kh in range(5):
        for kw in range(5):
            t = kh * 5 + kw
            pos = kh * (4 * S1) + kw * 4
            col = m2[:, pos:pos + 1]               # [16, 1]
            y = y + jnp.dot(wf1_ref[t], col, preferred_element_type=f32)
    y = jnp.maximum(y + bf1_ref[...], 0.0)         # [120, 1]

    # ---- fc2 + ReLU, fc3 -----------------------------------------------------
    y = jnp.maximum(
        jnp.dot(wf2_ref[...], y, preferred_element_type=f32) + bf2_ref[...], 0.0)
    y = jnp.dot(wf3_ref[...], y, preferred_element_type=f32) + bf3_ref[...]
    o_ref[0] = y                                   # [10, 1]


# ---------------------------------------------------------------------------
# Host wrapper: fold masks, re-pack weights tap-major, single pallas_call.
# ---------------------------------------------------------------------------
def net_forward(x_nchw, p):
    f32 = jnp.float32
    B = x_nchw.shape[0]

    # MaskedConv / MaskedDense: fold weight*mask once (hoisted out of kernel).
    w1 = (p["conv1"]["w"] * p["conv1"]["m"]).astype(f32)
    w2 = (p["conv2"]["w"] * p["conv2"]["m"]).astype(f32)
    wf1 = (p["fc1"]["w"] * p["fc1"]["m"]).astype(f32)
    wf2 = (p["fc2"]["w"] * p["fc2"]["m"]).astype(f32)
    wf3 = (p["fc3"]["w"] * p["fc3"]["m"]).astype(f32)

    # Tap-major packing: [25, OC, IC]; fc1 as [25, 120, 16] (PyTorch flatten is
    # c*25 + h*5 + w, so reshape(120,16,5,5) then move (h,w) in front).
    w1_t = w1.transpose(2, 3, 0, 1).reshape(25, 6, 3)
    w2_t = w2.transpose(2, 3, 0, 1).reshape(25, 16, 6)
    wf1_t = wf1.reshape(120, 16, 5, 5).transpose(2, 3, 0, 1).reshape(25, 120, 16)

    b1 = p["conv1"]["b"].reshape(6, 1).astype(f32)
    b2 = p["conv2"]["b"].reshape(16, 1).astype(f32)
    bf1 = p["fc1"]["b"].reshape(120, 1).astype(f32)
    bf2 = p["fc2"]["b"].reshape(84, 1).astype(f32)
    bf3 = p["fc3"]["b"].reshape(10, 1).astype(f32)

    x_flat = x_nchw.astype(f32).reshape(B, 3, 32 * 32)   # metadata-only reshape

    def full(shape):
        return pl.BlockSpec(shape, lambda b, _s=shape: (0,) * len(_s))

    out = pl.pallas_call(
        _lenet_kernel,
        grid=(B,),
        in_specs=[
            pl.BlockSpec((1, 3, 1024), lambda b: (b, 0, 0)),   # per-image input
            full((25, 6, 3)),   full((6, 1)),
            full((25, 16, 6)),  full((16, 1)),
            full((25, 120, 16)), full((120, 1)),
            full((84, 120)),    full((84, 1)),
            full((10, 84)),     full((10, 1)),
        ],
        out_specs=pl.BlockSpec((1, 10, 1), lambda b: (b, 0, 0)),
        out_shape=jax.ShapeDtypeStruct((B, 10, 1), f32),
        compiler_params=pltpu.CompilerParams(
            dimension_semantics=("parallel",)),   # shard batch across TCs (v7x)
    )(x_flat, w1_t, b1, w2_t, b2, wf1_t, bf1, wf2, bf2, wf3, bf3)
    return out[:, :, 0]


# ---------------------------------------------------------------------------
# Pure-JAX reference (same semantics as the PyTorch module) for self-check.
# ---------------------------------------------------------------------------
def _reference_forward(x, p):
    def conv(x, w, m, b):
        y = jax.lax.conv_general_dilated(
            x, w * m, window_strides=(1, 1), padding="VALID",
            dimension_numbers=("NCHW", "OIHW", "NCHW"))
        return jax.nn.relu(y + b.reshape(1, -1, 1, 1))

    def pool(x):
        return jax.lax.reduce_window(x, -jnp.inf, jax.lax.max,
                                     (1, 1, 2, 2), (1, 1, 2, 2), "VALID")

    x = pool(conv(x, p["conv1"]["w"], p["conv1"]["m"], p["conv1"]["b"]))
    x = pool(conv(x, p["conv2"]["w"], p["conv2"]["m"], p["conv2"]["b"]))
    x = x.reshape(x.shape[0], -1)                          # NCHW flatten = torch .view
    x = jax.nn.relu(x @ (p["fc1"]["w"] * p["fc1"]["m"]).T + p["fc1"]["b"])
    x = jax.nn.relu(x @ (p["fc2"]["w"] * p["fc2"]["m"]).T + p["fc2"]["b"])
    return x @ (p["fc3"]["w"] * p["fc3"]["m"]).T + p["fc3"]["b"]


# ---------------------------------------------------------------------------
# Deterministic synthetic params (MaskedConv/MaskedDense = weight * mask).
# ---------------------------------------------------------------------------
def init_params(key):
    keys = jax.random.split(key, 15)

    def conv_p(kw, km, kb, oc, ic, K):
        fan_in = ic * K * K
        return dict(
            w=jax.random.normal(kw, (oc, ic, K, K), jnp.float32) / jnp.sqrt(fan_in),
            m=jax.random.bernoulli(km, 0.8, (oc, ic, K, K)).astype(jnp.float32),
            b=0.01 * jax.random.normal(kb, (oc,), jnp.float32),
        )

    def dense_p(kw, km, kb, out_f, in_f):
        return dict(
            w=jax.random.normal(kw, (out_f, in_f), jnp.float32) / jnp.sqrt(in_f),
            m=jax.random.bernoulli(km, 0.8, (out_f, in_f)).astype(jnp.float32),
            b=0.01 * jax.random.normal(kb, (out_f,), jnp.float32),
        )

    return dict(
        conv1=conv_p(keys[0], keys[1], keys[2], 6, 3, 5),
        conv2=conv_p(keys[3], keys[4], keys[5], 16, 6, 5),
        fc1=dense_p(keys[6], keys[7], keys[8], 120, 16 * 5 * 5),
        fc2=dense_p(keys[9], keys[10], keys[11], 84, 120),
        fc3=dense_p(keys[12], keys[13], keys[14], 10, 84),
    )


if __name__ == "__main__":
    key = jax.random.PRNGKey(0)
    k_x, k_p = jax.random.split(key)
    # CIFAR-sized input implied by the 16*5*5 flatten: [B, 3, 32, 32] NCHW
    x = jax.random.normal(k_x, (2, 3, 32, 32), jnp.float32)
    params = init_params(k_p)

    out = jax.jit(net_forward)(x, params)
    out = jax.block_until_ready(out)
    assert out.shape == (2, 10), out.shape
    assert bool(jnp.all(jnp.isfinite(out)))

    ref = _reference_forward(x, params)
    assert bool(jnp.allclose(out, ref, rtol=2e-3, atol=2e-3)), \
        float(jnp.max(jnp.abs(out - ref)))
    print("KERNEL_OK")
</pallas_src>

<mosaic_0001>
module attributes {stable_mosaic.version = 11 : i64} {
  func.func @_lenet_kernel(%arg0: i32, %arg1: memref<1x3x1024xf32, #tpu.memory_space<vmem>>, %arg2: memref<25x6x3xf32, #tpu.memory_space<vmem>>, %arg3: memref<6x1xf32, #tpu.memory_space<vmem>>, %arg4: memref<25x16x6xf32, #tpu.memory_space<vmem>>, %arg5: memref<16x1xf32, #tpu.memory_space<vmem>>, %arg6: memref<25x120x16xf32, #tpu.memory_space<vmem>>, %arg7: memref<120x1xf32, #tpu.memory_space<vmem>>, %arg8: memref<84x120xf32, #tpu.memory_space<vmem>>, %arg9: memref<84x1xf32, #tpu.memory_space<vmem>>, %arg10: memref<10x84xf32, #tpu.memory_space<vmem>>, %arg11: memref<10x1xf32, #tpu.memory_space<vmem>>, %arg12: memref<1x10x1xf32, #tpu.memory_space<vmem>>) attributes {dimension_semantics = [#tpu.dimension_semantics<parallel>], iteration_bounds = array<i64: 2>, scalar_prefetch = 0 : i64, scratch_operands = 0 : i64, tpu.core_type = #tpu.core_type<tc>, window_params = [{transform_indices = @transform_0, window_bounds = array<i64: 1, 3, 1024>}, {pipeline_mode = #tpu.pipeline_mode<synchronous>, transform_indices = @transform_1, window_bounds = array<i64: 25, 6, 3>}, {pipeline_mode = #tpu.pipeline_mode<synchronous>, transform_indices = @transform_2, window_bounds = array<i64: 6, 1>}, {pipeline_mode = #tpu.pipeline_mode<synchronous>, transform_indices = @transform_3, window_bounds = array<i64: 25, 16, 6>}, {pipeline_mode = #tpu.pipeline_mode<synchronous>, transform_indices = @transform_4, window_bounds = array<i64: 16, 1>}, {pipeline_mode = #tpu.pipeline_mode<synchronous>, transform_indices = @transform_5, window_bounds = array<i64: 25, 120, 16>}, {pipeline_mode = #tpu.pipeline_mode<synchronous>, transform_indices = @transform_6, window_bounds = array<i64: 120, 1>}, {pipeline_mode = #tpu.pipeline_mode<synchronous>, transform_indices = @transform_7, window_bounds = array<i64: 84, 120>}, {pipeline_mode = #tpu.pipeline_mode<synchronous>, transform_indices = @transform_8, window_bounds = array<i64: 84, 1>}, {pipeline_mode = #tpu.pipeline_mode<synchronous>, transform_indices = @transform_9, window_bounds = array<i64: 10, 84>}, {pipeline_mode = #tpu.pipeline_mode<synchronous>, transform_indices = @transform_10, window_bounds = array<i64: 10, 1>}, {transform_indices = @transform_11, window_bounds = array<i64: 1, 10, 1>}]} {
    %c0 = arith.constant 0 : index
    %c0_0 = arith.constant 0 : index
    %c0_1 = arith.constant 0 : index
    %0 = vector.load %arg1[%c0, %c0_0, %c0_1] : memref<1x3x1024xf32, #tpu.memory_space<vmem>>, vector<1x3x1024xf32>
    %1 = vector.shape_cast %0 : vector<1x3x1024xf32> to vector<3x1024xf32>
    %cst = arith.constant 0.000000e+00 : f32
    %2 = vector.broadcast %cst : f32 to vector<6x892xf32>
    %3 = vector.extract_strided_slice %1 {offsets = [0, 0], sizes = [3, 892], strides = [1, 1]} : vector<3x1024xf32> to vector<3x892xf32>
    %c0_2 = arith.constant 0 : index
    %c0_3 = arith.constant 0 : index
    %c0_4 = arith.constant 0 : index
    %4 = vector.load %arg2[%c0_2, %c0_3, %c0_4] : memref<25x6x3xf32, #tpu.memory_space<vmem>>, vector<1x6x3xf32>
    %5 = vector.shape_cast %4 : vector<1x6x3xf32> to vector<6x3xf32>
    %cst_5 = arith.constant dense<0.000000e+00> : vector<6x892xf32>
    %6 = tpu.matmul %5, %3, %cst_5 {dimension_numbers = #tpu.dot_dimension_numbers<[1], [0], [0], [1], [0, 0, 1, 1], [], []>} : vector<6x3xf32>, vector<3x892xf32>, vector<6x892xf32> -> vector<6x892xf32>
    %7 = arith.addf %2, %6 : vector<6x892xf32>
    %8 = vector.extract_strided_slice %1 {offsets = [0, 1], sizes = [3, 892], strides = [1, 1]} : vector<3x1024xf32> to vector<3x892xf32>
    %c1 = arith.constant 1 : index
    %c0_6 = arith.constant 0 : index
    %c0_7 = arith.constant 0 : index
    %9 = vector.load %arg2[%c1, %c0_6, %c0_7] : memref<25x6x3xf32, #tpu.memory_space<vmem>>, vector<1x6x3xf32>
    %10 = vector.shape_cast %9 : vector<1x6x3xf32> to vector<6x3xf32>
    %cst_8 = arith.constant dense<0.000000e+00> : vector<6x892xf32>
    %11 = tpu.matmul %10, %8, %cst_8 {dimension_numbers = #tpu.dot_dimension_numbers<[1], [0], [0], [1], [0, 0, 1, 1], [], []>} : vector<6x3xf32>, vector<3x892xf32>, vector<6x892xf32> -> vector<6x892xf32>
    %12 = arith.addf %7, %11 : vector<6x892xf32>
    %13 = vector.extract_strided_slice %1 {offsets = [0, 2], sizes = [3, 892], strides = [1, 1]} : vector<3x1024xf32> to vector<3x892xf32>
    %c2 = arith.constant 2 : index
    %c0_9 = arith.constant 0 : index
    %c0_10 = arith.constant 0 : index
    %14 = vector.load %arg2[%c2, %c0_9, %c0_10] : memref<25x6x3xf32, #tpu.memory_space<vmem>>, vector<1x6x3xf32>
    %15 = vector.shape_cast %14 : vector<1x6x3xf32> to vector<6x3xf32>
    %cst_11 = arith.constant dense<0.000000e+00> : vector<6x892xf32>
    %16 = tpu.matmul %15, %13, %cst_11 {dimension_numbers = #tpu.dot_dimension_numbers<[1], [0], [0], [1], [0, 0, 1, 1], [], []>} : vector<6x3xf32>, vector<3x892xf32>, vector<6x892xf32> -> vector<6x892xf32>
    %17 = arith.addf %12, %16 : vector<6x892xf32>
    %18 = vector.extract_strided_slice %1 {offsets = [0, 3], sizes = [3, 892], strides = [1, 1]} : vector<3x1024xf32> to vector<3x892xf32>
    %c3 = arith.constant 3 : index
    %c0_12 = arith.constant 0 : index
    %c0_13 = arith.constant 0 : index
    %19 = vector.load %arg2[%c3, %c0_12, %c0_13] : memref<25x6x3xf32, #tpu.memory_space<vmem>>, vector<1x6x3xf32>
    %20 = vector.shape_cast %19 : vector<1x6x3xf32> to vector<6x3xf32>
    %cst_14 = arith.constant dense<0.000000e+00> : vector<6x892xf32>
    %21 = tpu.matmul %20, %18, %cst_14 {dimension_numbers = #tpu.dot_dimension_numbers<[1], [0], [0], [1], [0, 0, 1, 1], [], []>} : vector<6x3xf32>, vector<3x892xf32>, vector<6x892xf32> -> vector<6x892xf32>
    %22 = arith.addf %17, %21 : vector<6x892xf32>
    %23 = vector.extract_strided_slice %1 {offsets = [0, 4], sizes = [3, 892], strides = [1, 1]} : vector<3x1024xf32> to vector<3x892xf32>
    %c4 = arith.constant 4 : index
    %c0_15 = arith.constant 0 : index
    %c0_16 = arith.constant 0 : index
    %24 = vector.load %arg2[%c4, %c0_15, %c0_16] : memref<25x6x3xf32, #tpu.memory_space<vmem>>, vector<1x6x3xf32>
    %25 = vector.shape_cast %24 : vector<1x6x3xf32> to vector<6x3xf32>
    %cst_17 = arith.constant dense<0.000000e+00> : vector<6x892xf32>
    %26 = tpu.matmul %25, %23, %cst_17 {dimension_numbers = #tpu.dot_dimension_numbers<[1], [0], [0], [1], [0, 0, 1, 1], [], []>} : vector<6x3xf32>, vector<3x892xf32>, vector<6x892xf32> -> vector<6x892xf32>
    %27 = arith.addf %22, %26 : vector<6x892xf32>
    %28 = vector.extract_strided_slice %1 {offsets = [0, 32], sizes = [3, 892], strides = [1, 1]} : vector<3x1024xf32> to vector<3x892xf32>
    %c5 = arith.constant 5 : index
    %c0_18 = arith.constant 0 : index
    %c0_19 = arith.constant 0 : index
    %29 = vector.load %arg2[%c5, %c0_18, %c0_19] : memref<25x6x3xf32, #tpu.memory_space<vmem>>, vector<1x6x3xf32>
    %30 = vector.shape_cast %29 : vector<1x6x3xf32> to vector<6x3xf32>
    %cst_20 = arith.constant dense<0.000000e+00> : vector<6x892xf32>
    %31 = tpu.matmul %30, %28, %cst_20 {dimension_numbers = #tpu.dot_dimension_numbers<[1], [0], [0], [1], [0, 0, 1, 1], [], []>} : vector<6x3xf32>, vector<3x892xf32>, vector<6x892xf32> -> vector<6x892xf32>
    %32 = arith.addf %27, %31 : vector<6x892xf32>
    %33 = vector.extract_strided_slice %1 {offsets = [0, 33], sizes = [3, 892], strides = [1, 1]} : vector<3x1024xf32> to vector<3x892xf32>
    %c6 = arith.constant 6 : index
    %c0_21 = arith.constant 0 : index
    %c0_22 = arith.constant 0 : index
    %34 = vector.load %arg2[%c6, %c0_21, %c0_22] : memref<25x6x3xf32, #tpu.memory_space<vmem>>, vector<1x6x3xf32>
    %35 = vector.shape_cast %34 : vector<1x6x3xf32> to vector<6x3xf32>
    %cst_23 = arith.constant dense<0.000000e+00> : vector<6x892xf32>
    %36 = tpu.matmul %35, %33, %cst_23 {dimension_numbers = #tpu.dot_dimension_numbers<[1], [0], [0], [1], [0, 0, 1, 1], [], []>} : vector<6x3xf32>, vector<3x892xf32>, vector<6x892xf32> -> vector<6x892xf32>
    %37 = arith.addf %32, %36 : vector<6x892xf32>
    %38 = vector.extract_strided_slice %1 {offsets = [0, 34], sizes = [3, 892], strides = [1, 1]} : vector<3x1024xf32> to vector<3x892xf32>
    %c7 = arith.constant 7 : index
    %c0_24 = arith.constant 0 : index
    %c0_25 = arith.constant 0 : index
    %39 = vector.load %arg2[%c7, %c0_24, %c0_25] : memref<25x6x3xf32, #tpu.memory_space<vmem>>, vector<1x6x3xf32>
    %40 = vector.shape_cast %39 : vector<1x6x3xf32> to vector<6x3xf32>
    %cst_26 = arith.constant dense<0.000000e+00> : vector<6x892xf32>
    %41 = tpu.matmul %40, %38, %cst_26 {dimension_numbers = #tpu.dot_dimension_numbers<[1], [0], [0], [1], [0, 0, 1, 1], [], []>} : vector<6x3xf32>, vector<3x892xf32>, vector<6x892xf32> -> vector<6x892xf32>
    %42 = arith.addf %37, %41 : vector<6x892xf32>
    %43 = vector.extract_strided_slice %1 {offsets = [0, 35], sizes = [3, 892], strides = [1, 1]} : vector<3x1024xf32> to vector<3x892xf32>
    %c8 = arith.constant 8 : index
    %c0_27 = arith.constant 0 : index
    %c0_28 = arith.constant 0 : index
    %44 = vector.load %arg2[%c8, %c0_27, %c0_28] : memref<25x6x3xf32, #tpu.memory_space<vmem>>, vector<1x6x3xf32>
    %45 = vector.shape_cast %44 : vector<1x6x3xf32> to vector<6x3xf32>
    %cst_29 = arith.constant dense<0.000000e+00> : vector<6x892xf32>
    %46 = tpu.matmul %45, %43, %cst_29 {dimension_numbers = #tpu.dot_dimension_numbers<[1], [0], [0], [1], [0, 0, 1, 1], [], []>} : vector<6x3xf32>, vector<3x892xf32>, vector<6x892xf32> -> vector<6x892xf32>
    %47 = arith.addf %42, %46 : vector<6x892xf32>
    %48 = vector.extract_strided_slice %1 {offsets = [0, 36], sizes = [3, 892], strides = [1, 1]} : vector<3x1024xf32> to vector<3x892xf32>
    %c9 = arith.constant 9 : index
    %c0_30 = arith.constant 0 : index
    %c0_31 = arith.constant 0 : index
    %49 = vector.load %arg2[%c9, %c0_30, %c0_31] : memref<25x6x3xf32, #tpu.memory_space<vmem>>, vector<1x6x3xf32>
    %50 = vector.shape_cast %49 : vector<1x6x3xf32> to vector<6x3xf32>
    %cst_32 = arith.constant dense<0.000000e+00> : vector<6x892xf32>
    %51 = tpu.matmul %50, %48, %cst_32 {dimension_numbers = #tpu.dot_dimension_numbers<[1], [0], [0], [1], [0, 0, 1, 1], [], []>} : vector<6x3xf32>, vector<3x892xf32>, vector<6x892xf32> -> vector<6x892xf32>
    %52 = arith.addf %47, %51 : vector<6x892xf32>
    %53 = vector.extract_strided_slice %1 {offsets = [0, 64], sizes = [3, 892], strides = [1, 1]} : vector<3x1024xf32> to vector<3x892xf32>
    %c10 = arith.constant 10 : index
    %c0_33 = arith.constant 0 : index
    %c0_34 = arith.constant 0 : index
    %54 = vector.load %arg2[%c10, %c0_33, %c0_34] : memref<25x6x3xf32, #tpu.memory_space<vmem>>, vector<1x6x3xf32>
    %55 = vector.shape_cast %54 : vector<1x6x3xf32> to vector<6x3xf32>
    %cst_35 = arith.constant dense<0.000000e+00> : vector<6x892xf32>
    %56 = tpu.matmul %55, %53, %cst_35 {dimension_numbers = #tpu.dot_dimension_numbers<[1], [0], [0], [1], [0, 0, 1, 1], [], []>} : vector<6x3xf32>, vector<3x892xf32>, vector<6x892xf32> -> vector<6x892xf32>
    %57 = arith.addf %52, %56 : vector<6x892xf32>
    %58 = vector.extract_strided_slice %1 {offsets = [0, 65], sizes = [3, 892], strides = [1, 1]} : vector<3x1024xf32> to vector<3x892xf32>
    %c11 = arith.constant 11 : index
    %c0_36 = arith.constant 0 : index
    %c0_37 = arith.constant 0 : index
    %59 = vector.load %arg2[%c11, %c0_36, %c0_37] : memref<25x6x3xf32, #tpu.memory_space<vmem>>, vector<1x6x3xf32>
    %60 = vector.shape_cast %59 : vector<1x6x3xf32> to vector<6x3xf32>
    %cst_38 = arith.constant dense<0.000000e+00> : vector<6x892xf32>
    %61 = tpu.matmul %60, %58, %cst_38 {dimension_numbers = #tpu.dot_dimension_numbers<[1], [0], [0], [1], [0, 0, 1, 1], [], []>} : vector<6x3xf32>, vector<3x892xf32>, vector<6x892xf32> -> vector<6x892xf32>
    %62 = arith.addf %57, %61 : vector<6x892xf32>
    %63 = vector.extract_strided_slice %1 {offsets = [0, 66], sizes = [3, 892], strides = [1, 1]} : vector<3x1024xf32> to vector<3x892xf32>
    %c12 = arith.constant 12 : index
    %c0_39 = arith.constant 0 : index
    %c0_40 = arith.constant 0 : index
    %64 = vector.load %arg2[%c12, %c0_39, %c0_40] : memref<25x6x3xf32, #tpu.memory_space<vmem>>, vector<1x6x3xf32>
    %65 = vector.shape_cast %64 : vector<1x6x3xf32> to vector<6x3xf32>
    %cst_41 = arith.constant dense<0.000000e+00> : vector<6x892xf32>
    %66 = tpu.matmul %65, %63, %cst_41 {dimension_numbers = #tpu.dot_dimension_numbers<[1], [0], [0], [1], [0, 0, 1, 1], [], []>} : vector<6x3xf32>, vector<3x892xf32>, vector<6x892xf32> -> vector<6x892xf32>
    %67 = arith.addf %62, %66 : vector<6x892xf32>
    %68 = vector.extract_strided_slice %1 {offsets = [0, 67], sizes = [3, 892], strides = [1, 1]} : vector<3x1024xf32> to vector<3x892xf32>
    %c13 = arith.constant 13 : index
    %c0_42 = arith.constant 0 : index
    %c0_43 = arith.constant 0 : index
    %69 = vector.load %arg2[%c13, %c0_42, %c0_43] : memref<25x6x3xf32, #tpu.memory_space<vmem>>, vector<1x6x3xf32>
    %70 = vector.shape_cast %69 : vector<1x6x3xf32> to vector<6x3xf32>
    %cst_44 = arith.constant dense<0.000000e+00> : vector<6x892xf32>
    %71 = tpu.matmul %70, %68, %cst_44 {dimension_numbers = #tpu.dot_dimension_numbers<[1], [0], [0], [1], [0, 0, 1, 1], [], []>} : vector<6x3xf32>, vector<3x892xf32>, vector<6x892xf32> -> vector<6x892xf32>
    %72 = arith.addf %67, %71 : vector<6x892xf32>
    %73 = vector.extract_strided_slice %1 {offsets = [0, 68], sizes = [3, 892], strides = [1, 1]} : vector<3x1024xf32> to vector<3x892xf32>
    %c14 = arith.constant 14 : index
    %c0_45 = arith.constant 0 : index
    %c0_46 = arith.constant 0 : index
    %74 = vector.load %arg2[%c14, %c0_45, %c0_46] : memref<25x6x3xf32, #tpu.memory_space<vmem>>, vector<1x6x3xf32>
    %75 = vector.shape_cast %74 : vector<1x6x3xf32> to vector<6x3xf32>
    %cst_47 = arith.constant dense<0.000000e+00> : vector<6x892xf32>
    %76 = tpu.matmul %75, %73, %cst_47 {dimension_numbers = #tpu.dot_dimension_numbers<[1], [0], [0], [1], [0, 0, 1, 1], [], []>} : vector<6x3xf32>, vector<3x892xf32>, vector<6x892xf32> -> vector<6x892xf32>
    %77 = arith.addf %72, %76 : vector<6x892xf32>
    %78 = vector.extract_strided_slice %1 {offsets = [0, 96], sizes = [3, 892], strides = [1, 1]} : vector<3x1024xf32> to vector<3x892xf32>
    %c15 = arith.constant 15 : index
    %c0_48 = arith.constant 0 : index
    %c0_49 = arith.constant 0 : index
    %79 = vector.load %arg2[%c15, %c0_48, %c0_49] : memref<25x6x3xf32, #tpu.memory_space<vmem>>, vector<1x6x3xf32>
    %80 = vector.shape_cast %79 : vector<1x6x3xf32> to vector<6x3xf32>
    %cst_50 = arith.constant dense<0.000000e+00> : vector<6x892xf32>
    %81 = tpu.matmul %80, %78, %cst_50 {dimension_numbers = #tpu.dot_dimension_numbers<[1], [0], [0], [1], [0, 0, 1, 1], [], []>} : vector<6x3xf32>, vector<3x892xf32>, vector<6x892xf32> -> vector<6x892xf32>
    %82 = arith.addf %77, %81 : vector<6x892xf32>
    %83 = vector.extract_strided_slice %1 {offsets = [0, 97], sizes = [3, 892], strides = [1, 1]} : vector<3x1024xf32> to vector<3x892xf32>
    %c16 = arith.constant 16 : index
    %c0_51 = arith.constant 0 : index
    %c0_52 = arith.constant 0 : index
    %84 = vector.load %arg2[%c16, %c0_51, %c0_52] : memref<25x6x3xf32, #tpu.memory_space<vmem>>, vector<1x6x3xf32>
    %85 = vector.shape_cast %84 : vector<1x6x3xf32> to vector<6x3xf32>
    %cst_53 = arith.constant dense<0.000000e+00> : vector<6x892xf32>
    %86 = tpu.matmul %85, %83, %cst_53 {dimension_numbers = #tpu.dot_dimension_numbers<[1], [0], [0], [1], [0, 0, 1, 1], [], []>} : vector<6x3xf32>, vector<3x892xf32>, vector<6x892xf32> -> vector<6x892xf32>
    %87 = arith.addf %82, %86 : vector<6x892xf32>
    %88 = vector.extract_strided_slice %1 {offsets = [0, 98], sizes = [3, 892], strides = [1, 1]} : vector<3x1024xf32> to vector<3x892xf32>
    %c17 = arith.constant 17 : index
    %c0_54 = arith.constant 0 : index
    %c0_55 = arith.constant 0 : index
    %89 = vector.load %arg2[%c17, %c0_54, %c0_55] : memref<25x6x3xf32, #tpu.memory_space<vmem>>, vector<1x6x3xf32>
    %90 = vector.shape_cast %89 : vector<1x6x3xf32> to vector<6x3xf32>
    %cst_56 = arith.constant dense<0.000000e+00> : vector<6x892xf32>
    %91 = tpu.matmul %90, %88, %cst_56 {dimension_numbers = #tpu.dot_dimension_numbers<[1], [0], [0], [1], [0, 0, 1, 1], [], []>} : vector<6x3xf32>, vector<3x892xf32>, vector<6x892xf32> -> vector<6x892xf32>
    %92 = arith.addf %87, %91 : vector<6x892xf32>
    %93 = vector.extract_strided_slice %1 {offsets = [0, 99], sizes = [3, 892], strides = [1, 1]} : vector<3x1024xf32> to vector<3x892xf32>
    %c18 = arith.constant 18 : index
    %c0_57 = arith.constant 0 : index
    %c0_58 = arith.constant 0 : index
    %94 = vector.load %arg2[%c18, %c0_57, %c0_58] : memref<25x6x3xf32, #tpu.memory_space<vmem>>, vector<1x6x3xf32>
    %95 = vector.shape_cast %94 : vector<1x6x3xf32> to vector<6x3xf32>
    %cst_59 = arith.constant dense<0.000000e+00> : vector<6x892xf32>
    %96 = tpu.matmul %95, %93, %cst_59 {dimension_numbers = #tpu.dot_dimension_numbers<[1], [0], [0], [1], [0, 0, 1, 1], [], []>} : vector<6x3xf32>, vector<3x892xf32>, vector<6x892xf32> -> vector<6x892xf32>
    %97 = arith.addf %92, %96 : vector<6x892xf32>
    %98 = vector.extract_strided_slice %1 {offsets = [0, 100], sizes = [3, 892], strides = [1, 1]} : vector<3x1024xf32> to vector<3x892xf32>
    %c19 = arith.constant 19 : index
    %c0_60 = arith.constant 0 : index
    %c0_61 = arith.constant 0 : index
    %99 = vector.load %arg2[%c19, %c0_60, %c0_61] : memref<25x6x3xf32, #tpu.memory_space<vmem>>, vector<1x6x3xf32>
    %100 = vector.shape_cast %99 : vector<1x6x3xf32> to vector<6x3xf32>
    %cst_62 = arith.constant dense<0.000000e+00> : vector<6x892xf32>
    %101 = tpu.matmul %100, %98, %cst_62 {dimension_numbers = #tpu.dot_dimension_numbers<[1], [0], [0], [1], [0, 0, 1, 1], [], []>} : vector<6x3xf32>, vector<3x892xf32>, vector<6x892xf32> -> vector<6x892xf32>
    %102 = arith.addf %97, %101 : vector<6x892xf32>
    %103 = vector.extract_strided_slice %1 {offsets = [0, 128], sizes = [3, 892], strides = [1, 1]} : vector<3x1024xf32> to vector<3x892xf32>
    %c20 = arith.constant 20 : index
    %c0_63 = arith.constant 0 : index
    %c0_64 = arith.constant 0 : index
    %104 = vector.load %arg2[%c20, %c0_63, %c0_64] : memref<25x6x3xf32, #tpu.memory_space<vmem>>, vector<1x6x3xf32>
    %105 = vector.shape_cast %104 : vector<1x6x3xf32> to vector<6x3xf32>
    %cst_65 = arith.constant dense<0.000000e+00> : vector<6x892xf32>
    %106 = tpu.matmul %105, %103, %cst_65 {dimension_numbers = #tpu.dot_dimension_numbers<[1], [0], [0], [1], [0, 0, 1, 1], [], []>} : vector<6x3xf32>, vector<3x892xf32>, vector<6x892xf32> -> vector<6x892xf32>
    %107 = arith.addf %102, %106 : vector<6x892xf32>
    %108 = vector.extract_strided_slice %1 {offsets = [0, 129], sizes = [3, 892], strides = [1, 1]} : vector<3x1024xf32> to vector<3x892xf32>
    %c21 = arith.constant 21 : index
    %c0_66 = arith.constant 0 : index
    %c0_67 = arith.constant 0 : index
    %109 = vector.load %arg2[%c21, %c0_66, %c0_67] : memref<25x6x3xf32, #tpu.memory_space<vmem>>, vector<1x6x3xf32>
    %110 = vector.shape_cast %109 : vector<1x6x3xf32> to vector<6x3xf32>
    %cst_68 = arith.constant dense<0.000000e+00> : vector<6x892xf32>
    %111 = tpu.matmul %110, %108, %cst_68 {dimension_numbers = #tpu.dot_dimension_numbers<[1], [0], [0], [1], [0, 0, 1, 1], [], []>} : vector<6x3xf32>, vector<3x892xf32>, vector<6x892xf32> -> vector<6x892xf32>
    %112 = arith.addf %107, %111 : vector<6x892xf32>
    %113 = vector.extract_strided_slice %1 {offsets = [0, 130], sizes = [3, 892], strides = [1, 1]} : vector<3x1024xf32> to vector<3x892xf32>
    %c22 = arith.constant 22 : index
    %c0_69 = arith.constant 0 : index
    %c0_70 = arith.constant 0 : index
    %114 = vector.load %arg2[%c22, %c0_69, %c0_70] : memref<25x6x3xf32, #tpu.memory_space<vmem>>, vector<1x6x3xf32>
    %115 = vector.shape_cast %114 : vector<1x6x3xf32> to vector<6x3xf32>
    %cst_71 = arith.constant dense<0.000000e+00> : vector<6x892xf32>
    %116 = tpu.matmul %115, %113, %cst_71 {dimension_numbers = #tpu.dot_dimension_numbers<[1], [0], [0], [1], [0, 0, 1, 1], [], []>} : vector<6x3xf32>, vector<3x892xf32>, vector<6x892xf32> -> vector<6x892xf32>
    %117 = arith.addf %112, %116 : vector<6x892xf32>
    %118 = vector.extract_strided_slice %1 {offsets = [0, 131], sizes = [3, 892], strides = [1, 1]} : vector<3x1024xf32> to vector<3x892xf32>
    %c23 = arith.constant 23 : index
    %c0_72 = arith.constant 0 : index
    %c0_73 = arith.constant 0 : index
    %119 = vector.load %arg2[%c23, %c0_72, %c0_73] : memref<25x6x3xf32, #tpu.memory_space<vmem>>, vector<1x6x3xf32>
    %120 = vector.shape_cast %119 : vector<1x6x3xf32> to vector<6x3xf32>
    %cst_74 = arith.constant dense<0.000000e+00> : vector<6x892xf32>
    %121 = tpu.matmul %120, %118, %cst_74 {dimension_numbers = #tpu.dot_dimension_numbers<[1], [0], [0], [1], [0, 0, 1, 1], [], []>} : vector<6x3xf32>, vector<3x892xf32>, vector<6x892xf32> -> vector<6x892xf32>
    %122 = arith.addf %117, %121 : vector<6x892xf32>
    %123 = vector.extract_strided_slice %1 {offsets = [0, 132], sizes = [3, 892], strides = [1, 1]} : vector<3x1024xf32> to vector<3x892xf32>
    %c24 = arith.constant 24 : index
    %c0_75 = arith.constant 0 : index
    %c0_76 = arith.constant 0 : index
    %124 = vector.load %arg2[%c24, %c0_75, %c0_76] : memref<25x6x3xf32, #tpu.memory_space<vmem>>, vector<1x6x3xf32>
    %125 = vector.shape_cast %124 : vector<1x6x3xf32> to vector<6x3xf32>
    %cst_77 = arith.constant dense<0.000000e+00> : vector<6x892xf32>
    %126 = tpu.matmul %125, %123, %cst_77 {dimension_numbers = #tpu.dot_dimension_numbers<[1], [0], [0], [1], [0, 0, 1, 1], [], []>} : vector<6x3xf32>, vector<3x892xf32>, vector<6x892xf32> -> vector<6x892xf32>
    %127 = arith.addf %122, %126 : vector<6x892xf32>
    %c0_78 = arith.constant 0 : index
    %c0_79 = arith.constant 0 : index
    %128 = vector.load %arg3[%c0_78, %c0_79] : memref<6x1xf32, #tpu.memory_space<vmem>>, vector<6x1xf32>
    %129 = vector.broadcast %128 : vector<6x1xf32> to vector<6x892xf32>
    %130 = arith.addf %127, %129 : vector<6x892xf32>
    %cst_80 = arith.constant 0.000000e+00 : f32
    %131 = vector.broadcast %cst_80 : f32 to vector<6x892xf32>
    %132 = arith.maximumf %130, %131 : vector<6x892xf32>
    %133 = vector.extract_strided_slice %132 {offsets = [0, 0], sizes = [6, 859], strides = [1, 1]} : vector<6x892xf32> to vector<6x859xf32>
    %134 = vector.extract_strided_slice %132 {offsets = [0, 1], sizes = [6, 859], strides = [1, 1]} : vector<6x892xf32> to vector<6x859xf32>
    %135 = arith.maximumf %133, %134 : vector<6x859xf32>
    %136 = vector.extract_strided_slice %132 {offsets = [0, 32], sizes = [6, 859], strides = [1, 1]} : vector<6x892xf32> to vector<6x859xf32>
    %137 = vector.extract_strided_slice %132 {offsets = [0, 33], sizes = [6, 859], strides = [1, 1]} : vector<6x892xf32> to vector<6x859xf32>
    %138 = arith.maximumf %136, %137 : vector<6x859xf32>
    %139 = arith.maximumf %135, %138 : vector<6x859xf32>
    %cst_81 = arith.constant 0.000000e+00 : f32
    %140 = vector.broadcast %cst_81 : f32 to vector<16x595xf32>
    %141 = vector.extract_strided_slice %139 {offsets = [0, 0], sizes = [6, 595], strides = [1, 1]} : vector<6x859xf32> to vector<6x595xf32>
    %c0_82 = arith.constant 0 : index
    %c0_83 = arith.constant 0 : index
    %c0_84 = arith.constant 0 : index
    %142 = vector.load %arg4[%c0_82, %c0_83, %c0_84] : memref<25x16x6xf32, #tpu.memory_space<vmem>>, vector<1x16x6xf32>
    %143 = vector.shape_cast %142 : vector<1x16x6xf32> to vector<16x6xf32>
    %cst_85 = arith.constant dense<0.000000e+00> : vector<16x595xf32>
    %144 = tpu.matmul %143, %141, %cst_85 {dimension_numbers = #tpu.dot_dimension_numbers<[1], [0], [0], [1], [0, 0, 1, 1], [], []>} : vector<16x6xf32>, vector<6x595xf32>, vector<16x595xf32> -> vector<16x595xf32>
    %145 = arith.addf %140, %144 : vector<16x595xf32>
    %146 = vector.extract_strided_slice %139 {offsets = [0, 2], sizes = [6, 595], strides = [1, 1]} : vector<6x859xf32> to vector<6x595xf32>
    %c1_86 = arith.constant 1 : index
    %c0_87 = arith.constant 0 : index
    %c0_88 = arith.constant 0 : index
    %147 = vector.load %arg4[%c1_86, %c0_87, %c0_88] : memref<25x16x6xf32, #tpu.memory_space<vmem>>, vector<1x16x6xf32>
    %148 = vector.shape_cast %147 : vector<1x16x6xf32> to vector<16x6xf32>
    %cst_89 = arith.constant dense<0.000000e+00> : vector<16x595xf32>
    %149 = tpu.matmul %148, %146, %cst_89 {dimension_numbers = #tpu.dot_dimension_numbers<[1], [0], [0], [1], [0, 0, 1, 1], [], []>} : vector<16x6xf32>, vector<6x595xf32>, vector<16x595xf32> -> vector<16x595xf32>
    %150 = arith.addf %145, %149 : vector<16x595xf32>
    %151 = vector.extract_strided_slice %139 {offsets = [0, 4], sizes = [6, 595], strides = [1, 1]} : vector<6x859xf32> to vector<6x595xf32>
    %c2_90 = arith.constant 2 : index
    %c0_91 = arith.constant 0 : index
    %c0_92 = arith.constant 0 : index
    %152 = vector.load %arg4[%c2_90, %c0_91, %c0_92] : memref<25x16x6xf32, #tpu.memory_space<vmem>>, vector<1x16x6xf32>
    %153 = vector.shape_cast %152 : vector<1x16x6xf32> to vector<16x6xf32>
    %cst_93 = arith.constant dense<0.000000e+00> : vector<16x595xf32>
    %154 = tpu.matmul %153, %151, %cst_93 {dimension_numbers = #tpu.dot_dimension_numbers<[1], [0], [0], [1], [0, 0, 1, 1], [], []>} : vector<16x6xf32>, vector<6x595xf32>, vector<16x595xf32> -> vector<16x595xf32>
    %155 = arith.addf %150, %154 : vector<16x595xf32>
    %156 = vector.extract_strided_slice %139 {offsets = [0, 6], sizes = [6, 595], strides = [1, 1]} : vector<6x859xf32> to vector<6x595xf32>
    %c3_94 = arith.constant 3 : index
    %c0_95 = arith.constant 0 : index
    %c0_96 = arith.constant 0 : index
    %157 = vector.load %arg4[%c3_94, %c0_95, %c0_96] : memref<25x16x6xf32, #tpu.memory_space<vmem>>, vector<1x16x6xf32>
    %158 = vector.shape_cast %157 : vector<1x16x6xf32> to vector<16x6xf32>
    %cst_97 = arith.constant dense<0.000000e+00> : vector<16x595xf32>
    %159 = tpu.matmul %158, %156, %cst_97 {dimension_numbers = #tpu.dot_dimension_numbers<[1], [0], [0], [1], [0, 0, 1, 1], [], []>} : vector<16x6xf32>, vector<6x595xf32>, vector<16x595xf32> -> vector<16x595xf32>
    %160 = arith.addf %155, %159 : vector<16x595xf32>
    %161 = vector.extract_strided_slice %139 {offsets = [0, 8], sizes = [6, 595], strides = [1, 1]} : vector<6x859xf32> to vector<6x595xf32>
    %c4_98 = arith.constant 4 : index
    %c0_99 = arith.constant 0 : index
    %c0_100 = arith.constant 0 : index
    %162 = vector.load %arg4[%c4_98, %c0_99, %c0_100] : memref<25x16x6xf32, #tpu.memory_space<vmem>>, vector<1x16x6xf32>
    %163 = vector.shape_cast %162 : vector<1x16x6xf32> to vector<16x6xf32>
    %cst_101 = arith.constant dense<0.000000e+00> : vector<16x595xf32>
    %164 = tpu.matmul %163, %161, %cst_101 {dimension_numbers = #tpu.dot_dimension_numbers<[1], [0], [0], [1], [0, 0, 1, 1], [], []>} : vector<16x6xf32>, vector<6x595xf32>, vector<16x595xf32> -> vector<16x595xf32>
    %165 = arith.addf %160, %164 : vector<16x595xf32>
    %166 = vector.extract_strided_slice %139 {offsets = [0, 64], sizes = [6, 595], strides = [1, 1]} : vector<6x859xf32> to vector<6x595xf32>
    %c5_102 = arith.constant 5 : index
    %c0_103 = arith.constant 0 : index
    %c0_104 = arith.constant 0 : index
    %167 = vector.load %arg4[%c5_102, %c0_103, %c0_104] : memref<25x16x6xf32, #tpu.memory_space<vmem>>, vector<1x16x6xf32>
    %168 = vector.shape_cast %167 : vector<1x16x6xf32> to vector<16x6xf32>
    %cst_105 = arith.constant dense<0.000000e+00> : vector<16x595xf32>
    %169 = tpu.matmul %168, %166, %cst_105 {dimension_numbers = #tpu.dot_dimension_numbers<[1], [0], [0], [1], [0, 0, 1, 1], [], []>} : vector<16x6xf32>, vector<6x595xf32>, vector<16x595xf32> -> vector<16x595xf32>
    %170 = arith.addf %165, %169 : vector<16x595xf32>
    %171 = vector.extract_strided_slice %139 {offsets = [0, 66], sizes = [6, 595], strides = [1, 1]} : vector<6x859xf32> to vector<6x595xf32>
    %c6_106 = arith.constant 6 : index
    %c0_107 = arith.constant 0 : index
    %c0_108 = arith.constant 0 : index
    %172 = vector.load %arg4[%c6_106, %c0_107, %c0_108] : memref<25x16x6xf32, #tpu.memory_space<vmem>>, vector<1x16x6xf32>
    %173 = vector.shape_cast %172 : vector<1x16x6xf32> to vector<16x6xf32>
    %cst_109 = arith.constant dense<0.000000e+00> : vector<16x595xf32>
    %174 = tpu.matmul %173, %171, %cst_109 {dimension_numbers = #tpu.dot_dimension_numbers<[1], [0], [0], [1], [0, 0, 1, 1], [], []>} : vector<16x6xf32>, vector<6x595xf32>, vector<16x595xf32> -> vector<16x595xf32>
    %175 = arith.addf %170, %174 : vector<16x595xf32>
    %176 = vector.extract_strided_slice %139 {offsets = [0, 68], sizes = [6, 595], strides = [1, 1]} : vector<6x859xf32> to vector<6x595xf32>
    %c7_110 = arith.constant 7 : index
    %c0_111 = arith.constant 0 : index
    %c0_112 = arith.constant 0 : index
    %177 = vector.load %arg4[%c7_110, %c0_111, %c0_112] : memref<25x16x6xf32, #tpu.memory_space<vmem>>, vector<1x16x6xf32>
    %178 = vector.shape_cast %177 : vector<1x16x6xf32> to vector<16x6xf32>
    %cst_113 = arith.constant dense<0.000000e+00> : vector<16x595xf32>
    %179 = tpu.matmul %178, %176, %cst_113 {dimension_numbers = #tpu.dot_dimension_numbers<[1], [0], [0], [1], [0, 0, 1, 1], [], []>} : vector<16x6xf32>, vector<6x595xf32>, vector<16x595xf32> -> vector<16x595xf32>
    %180 = arith.addf %175, %179 : vector<16x595xf32>
    %181 = vector.extract_strided_slice %139 {offsets = [0, 70], sizes = [6, 595], strides = [1, 1]} : vector<6x859xf32> to vector<6x595xf32>
    %c8_114 = arith.constant 8 : index
    %c0_115 = arith.constant 0 : index
    %c0_116 = arith.constant 0 : index
    %182 = vector.load %arg4[%c8_114, %c0_115, %c0_116] : memref<25x16x6xf32, #tpu.memory_space<vmem>>, vector<1x16x6xf32>
    %183 = vector.shape_cast %182 : vector<1x16x6xf32> to vector<16x6xf32>
    %cst_117 = arith.constant dense<0.000000e+00> : vector<16x595xf32>
    %184 = tpu.matmul %183, %181, %cst_117 {dimension_numbers = #tpu.dot_dimension_numbers<[1], [0], [0], [1], [0, 0, 1, 1], [], []>} : vector<16x6xf32>, vector<6x595xf32>, vector<16x595xf32> -> vector<16x595xf32>
    %185 = arith.addf %180, %184 : vector<16x595xf32>
    %186 = vector.extract_strided_slice %139 {offsets = [0, 72], sizes = [6, 595], strides = [1, 1]} : vector<6x859xf32> to vector<6x595xf32>
    %c9_118 = arith.constant 9 : index
    %c0_119 = arith.constant 0 : index
    %c0_120 = arith.constant 0 : index
    %187 = vector.load %arg4[%c9_118, %c0_119, %c0_120] : memref<25x16x6xf32, #tpu.memory_space<vmem>>, vector<1x16x6xf32>
    %188 = vector.shape_cast %187 : vector<1x16x6xf32> to vector<16x6xf32>
    %cst_121 = arith.constant dense<0.000000e+00> : vector<16x595xf32>
    %189 = tpu.matmul %188, %186, %cst_121 {dimension_numbers = #tpu.dot_dimension_numbers<[1], [0], [0], [1], [0, 0, 1, 1], [], []>} : vector<16x6xf32>, vector<6x595xf32>, vector<16x595xf32> -> vector<16x595xf32>
    %190 = arith.addf %185, %189 : vector<16x595xf32>
    %191 = vector.extract_strided_slice %139 {offsets = [0, 128], sizes = [6, 595], strides = [1, 1]} : vector<6x859xf32> to vector<6x595xf32>
    %c10_122 = arith.constant 10 : index
    %c0_123 = arith.constant 0 : index
    %c0_124 = arith.constant 0 : index
    %192 = vector.load %arg4[%c10_122, %c0_123, %c0_124] : memref<25x16x6xf32, #tpu.memory_space<vmem>>, vector<1x16x6xf32>
    %193 = vector.shape_cast %192 : vector<1x16x6xf32> to vector<16x6xf32>
    %cst_125 = arith.constant dense<0.000000e+00> : vector<16x595xf32>
    %194 = tpu.matmul %193, %191, %cst_125 {dimension_numbers = #tpu.dot_dimension_numbers<[1], [0], [0], [1], [0, 0, 1, 1], [], []>} : vector<16x6xf32>, vector<6x595xf32>, vector<16x595xf32> -> vector<16x595xf32>
    %195 = arith.addf %190, %194 : vector<16x595xf32>
    %196 = vector.extract_strided_slice %139 {offsets = [0, 130], sizes = [6, 595], strides = [1, 1]} : vector<6x859xf32> to vector<6x595xf32>
    %c11_126 = arith.constant 11 : index
    %c0_127 = arith.constant 0 : index
    %c0_128 = arith.constant 0 : index
    %197 = vector.load %arg4[%c11_126, %c0_127, %c0_128] : memref<25x16x6xf32, #tpu.memory_space<vmem>>, vector<1x16x6xf32>
    %198 = vector.shape_cast %197 : vector<1x16x6xf32> to vector<16x6xf32>
    %cst_129 = arith.constant dense<0.000000e+00> : vector<16x595xf32>
    %199 = tpu.matmul %198, %196, %cst_129 {dimension_numbers = #tpu.dot_dimension_numbers<[1], [0], [0], [1], [0, 0, 1, 1], [], []>} : vector<16x6xf32>, vector<6x595xf32>, vector<16x595xf32> -> vector<16x595xf32>
    %200 = arith.addf %195, %199 : vector<16x595xf32>
    %201 = vector.extract_strided_slice %139 {offsets = [0, 132], sizes = [6, 595], strides = [1, 1]} : vector<6x859xf32> to vector<6x595xf32>
    %c12_130 = arith.constant 12 : index
    %c0_131 = arith.constant 0 : index
    %c0_132 = arith.constant 0 : index
    %202 = vector.load %arg4[%c12_130, %c0_131, %c0_132] : memref<25x16x6xf32, #tpu.memory_space<vmem>>, vector<1x16x6xf32>
    %203 = vector.shape_cast %202 : vector<1x16x6xf32> to vector<16x6xf32>
    %cst_133 = arith.constant dense<0.000000e+00> : vector<16x595xf32>
    %204 = tpu.matmul %203, %201, %cst_133 {dimension_numbers = #tpu.dot_dimension_numbers<[1], [0], [0], [1], [0, 0, 1, 1], [], []>} : vector<16x6xf32>, vector<6x595xf32>, vector<16x595xf32> -> vector<16x595xf32>
    %205 = arith.addf %200, %204 : vector<16x595xf32>
    %206 = vector.extract_strided_slice %139 {offsets = [0, 134], sizes = [6, 595], strides = [1, 1]} : vector<6x859xf32> to vector<6x595xf32>
    %c13_134 = arith.constant 13 : index
    %c0_135 = arith.constant 0 : index
    %c0_136 = arith.constant 0 : index
    %207 = vector.load %arg4[%c13_134, %c0_135, %c0_136] : memref<25x16x6xf32, #tpu.memory_space<vmem>>, vector<1x16x6xf32>
    %208 = vector.shape_cast %207 : vector<1x16x6xf32> to vector<16x6xf32>
    %cst_137 = arith.constant dense<0.000000e+00> : vector<16x595xf32>
    %209 = tpu.matmul %208, %206, %cst_137 {dimension_numbers = #tpu.dot_dimension_numbers<[1], [0], [0], [1], [0, 0, 1, 1], [], []>} : vector<16x6xf32>, vector<6x595xf32>, vector<16x595xf32> -> vector<16x595xf32>
    %210 = arith.addf %205, %209 : vector<16x595xf32>
    %211 = vector.extract_strided_slice %139 {offsets = [0, 136], sizes = [6, 595], strides = [1, 1]} : vector<6x859xf32> to vector<6x595xf32>
    %c14_138 = arith.constant 14 : index
    %c0_139 = arith.constant 0 : index
    %c0_140 = arith.constant 0 : index
    %212 = vector.load %arg4[%c14_138, %c0_139, %c0_140] : memref<25x16x6xf32, #tpu.memory_space<vmem>>, vector<1x16x6xf32>
    %213 = vector.shape_cast %212 : vector<1x16x6xf32> to vector<16x6xf32>
    %cst_141 = arith.constant dense<0.000000e+00> : vector<16x595xf32>
    %214 = tpu.matmul %213, %211, %cst_141 {dimension_numbers = #tpu.dot_dimension_numbers<[1], [0], [0], [1], [0, 0, 1, 1], [], []>} : vector<16x6xf32>, vector<6x595xf32>, vector<16x595xf32> -> vector<16x595xf32>
    %215 = arith.addf %210, %214 : vector<16x595xf32>
    %216 = vector.extract_strided_slice %139 {offsets = [0, 192], sizes = [6, 595], strides = [1, 1]} : vector<6x859xf32> to vector<6x595xf32>
    %c15_142 = arith.constant 15 : index
    %c0_143 = arith.constant 0 : index
    %c0_144 = arith.constant 0 : index
    %217 = vector.load %arg4[%c15_142, %c0_143, %c0_144] : memref<25x16x6xf32, #tpu.memory_space<vmem>>, vector<1x16x6xf32>
    %218 = vector.shape_cast %217 : vector<1x16x6xf32> to vector<16x6xf32>
    %cst_145 = arith.constant dense<0.000000e+00> : vector<16x595xf32>
    %219 = tpu.matmul %218, %216, %cst_145 {dimension_numbers = #tpu.dot_dimension_numbers<[1], [0], [0], [1], [0, 0, 1, 1], [], []>} : vector<16x6xf32>, vector<6x595xf32>, vector<16x595xf32> -> vector<16x595xf32>
    %220 = arith.addf %215, %219 : vector<16x595xf32>
    %221 = vector.extract_strided_slice %139 {offsets = [0, 194], sizes = [6, 595], strides = [1, 1]} : vector<6x859xf32> to vector<6x595xf32>
    %c16_146 = arith.constant 16 : index
    %c0_147 = arith.constant 0 : index
    %c0_148 = arith.constant 0 : index
    %222 = vector.load %arg4[%c16_146, %c0_147, %c0_148] : memref<25x16x6xf32, #tpu.memory_space<vmem>>, vector<1x16x6xf32>
    %223 = vector.shape_cast %222 : vector<1x16x6xf32> to vector<16x6xf32>
    %cst_149 = arith.constant dense<0.000000e+00> : vector<16x595xf32>
    %224 = tpu.matmul %223, %221, %cst_149 {dimension_numbers = #tpu.dot_dimension_numbers<[1], [0], [0], [1], [0, 0, 1, 1], [], []>} : vector<16x6xf32>, vector<6x595xf32>, vector<16x595xf32> -> vector<16x595xf32>
    %225 = arith.addf %220, %224 : vector<16x595xf32>
    %226 = vector.extract_strided_slice %139 {offsets = [0, 196], sizes = [6, 595], strides = [1, 1]} : vector<6x859xf32> to vector<6x595xf32>
    %c17_150 = arith.constant 17 : index
    %c0_151 = arith.constant 0 : index
    %c0_152 = arith.constant 0 : index
    %227 = vector.load %arg4[%c17_150, %c0_151, %c0_152] : memref<25x16x6xf32, #tpu.memory_space<vmem>>, vector<1x16x6xf32>
    %228 = vector.shape_cast %227 : vector<1x16x6xf32> to vector<16x6xf32>
    %cst_153 = arith.constant dense<0.000000e+00> : vector<16x595xf32>
    %229 = tpu.matmul %228, %226, %cst_153 {dimension_numbers = #tpu.dot_dimension_numbers<[1], [0], [0], [1], [0, 0, 1, 1], [], []>} : vector<16x6xf32>, vector<6x595xf32>, vector<16x595xf32> -> vector<16x595xf32>
    %230 = arith.addf %225, %229 : vector<16x595xf32>
    %231 = vector.extract_strided_slice %139 {offsets = [0, 198], sizes = [6, 595], strides = [1, 1]} : vector<6x859xf32> to vector<6x595xf32>
    %c18_154 = arith.constant 18 : index
    %c0_155 = arith.constant 0 : index
    %c0_156 = arith.constant 0 : index
    %232 = vector.load %arg4[%c18_154, %c0_155, %c0_156] : memref<25x16x6xf32, #tpu.memory_space<vmem>>, vector<1x16x6xf32>
    %233 = vector.shape_cast %232 : vector<1x16x6xf32> to vector<16x6xf32>
    %cst_157 = arith.constant dense<0.000000e+00> : vector<16x595xf32>
    %234 = tpu.matmul %233, %231, %cst_157 {dimension_numbers = #tpu.dot_dimension_numbers<[1], [0], [0], [1], [0, 0, 1, 1], [], []>} : vector<16x6xf32>, vector<6x595xf32>, vector<16x595xf32> -> vector<16x595xf32>
    %235 = arith.addf %230, %234 : vector<16x595xf32>
    %236 = vector.extract_strided_slice %139 {offsets = [0, 200], sizes = [6, 595], strides = [1, 1]} : vector<6x859xf32> to vector<6x595xf32>
    %c19_158 = arith.constant 19 : index
    %c0_159 = arith.constant 0 : index
    %c0_160 = arith.constant 0 : index
    %237 = vector.load %arg4[%c19_158, %c0_159, %c0_160] : memref<25x16x6xf32, #tpu.memory_space<vmem>>, vector<1x16x6xf32>
    %238 = vector.shape_cast %237 : vector<1x16x6xf32> to vector<16x6xf32>
    %cst_161 = arith.constant dense<0.000000e+00> : vector<16x595xf32>
    %239 = tpu.matmul %238, %236, %cst_161 {dimension_numbers = #tpu.dot_dimension_numbers<[1], [0], [0], [1], [0, 0, 1, 1], [], []>} : vector<16x6xf32>, vector<6x595xf32>, vector<16x595xf32> -> vector<16x595xf32>
    %240 = arith.addf %235, %239 : vector<16x595xf32>
    %241 = vector.extract_strided_slice %139 {offsets = [0, 256], sizes = [6, 595], strides = [1, 1]} : vector<6x859xf32> to vector<6x595xf32>
    %c20_162 = arith.constant 20 : index
    %c0_163 = arith.constant 0 : index
    %c0_164 = arith.constant 0 : index
    %242 = vector.load %arg4[%c20_162, %c0_163, %c0_164] : memref<25x16x6xf32, #tpu.memory_space<vmem>>, vector<1x16x6xf32>
    %243 = vector.shape_cast %242 : vector<1x16x6xf32> to vector<16x6xf32>
    %cst_165 = arith.constant dense<0.000000e+00> : vector<16x595xf32>
    %244 = tpu.matmul %243, %241, %cst_165 {dimension_numbers = #tpu.dot_dimension_numbers<[1], [0], [0], [1], [0, 0, 1, 1], [], []>} : vector<16x6xf32>, vector<6x595xf32>, vector<16x595xf32> -> vector<16x595xf32>
    %245 = arith.addf %240, %244 : vector<16x595xf32>
    %246 = vector.extract_strided_slice %139 {offsets = [0, 258], sizes = [6, 595], strides = [1, 1]} : vector<6x859xf32> to vector<6x595xf32>
    %c21_166 = arith.constant 21 : index
    %c0_167 = arith.constant 0 : index
    %c0_168 = arith.constant 0 : index
    %247 = vector.load %arg4[%c21_166, %c0_167, %c0_168] : memref<25x16x6xf32, #tpu.memory_space<vmem>>, vector<1x16x6xf32>
    %248 = vector.shape_cast %247 : vector<1x16x6xf32> to vector<16x6xf32>
    %cst_169 = arith.constant dense<0.000000e+00> : vector<16x595xf32>
    %249 = tpu.matmul %248, %246, %cst_169 {dimension_numbers = #tpu.dot_dimension_numbers<[1], [0], [0], [1], [0, 0, 1, 1], [], []>} : vector<16x6xf32>, vector<6x595xf32>, vector<16x595xf32> -> vector<16x595xf32>
    %250 = arith.addf %245, %249 : vector<16x595xf32>
    %251 = vector.extract_strided_slice %139 {offsets = [0, 260], sizes = [6, 595], strides = [1, 1]} : vector<6x859xf32> to vector<6x595xf32>
    %c22_170 = arith.constant 22 : index
    %c0_171 = arith.constant 0 : index
    %c0_172 = arith.constant 0 : index
    %252 = vector.load %arg4[%c22_170, %c0_171, %c0_172] : memref<25x16x6xf32, #tpu.memory_space<vmem>>, vector<1x16x6xf32>
    %253 = vector.shape_cast %252 : vector<1x16x6xf32> to vector<16x6xf32>
    %cst_173 = arith.constant dense<0.000000e+00> : vector<16x595xf32>
    %254 = tpu.matmul %253, %251, %cst_173 {dimension_numbers = #tpu.dot_dimension_numbers<[1], [0], [0], [1], [0, 0, 1, 1], [], []>} : vector<16x6xf32>, vector<6x595xf32>, vector<16x595xf32> -> vector<16x595xf32>
    %255 = arith.addf %250, %254 : vector<16x595xf32>
    %256 = vector.extract_strided_slice %139 {offsets = [0, 262], sizes = [6, 595], strides = [1, 1]} : vector<6x859xf32> to vector<6x595xf32>
    %c23_174 = arith.constant 23 : index
    %c0_175 = arith.constant 0 : index
    %c0_176 = arith.constant 0 : index
    %257 = vector.load %arg4[%c23_174, %c0_175, %c0_176] : memref<25x16x6xf32, #tpu.memory_space<vmem>>, vector<1x16x6xf32>
    %258 = vector.shape_cast %257 : vector<1x16x6xf32> to vector<16x6xf32>
    %cst_177 = arith.constant dense<0.000000e+00> : vector<16x595xf32>
    %259 = tpu.matmul %258, %256, %cst_177 {dimension_numbers = #tpu.dot_dimension_numbers<[1], [0], [0], [1], [0, 0, 1, 1], [], []>} : vector<16x6xf32>, vector<6x595xf32>, vector<16x595xf32> -> vector<16x595xf32>
    %260 = arith.addf %255, %259 : vector<16x595xf32>
    %261 = vector.extract_strided_slice %139 {offsets = [0, 264], sizes = [6, 595], strides = [1, 1]} : vector<6x859xf32> to vector<6x595xf32>
    %c24_178 = arith.constant 24 : index
    %c0_179 = arith.constant 0 : index
    %c0_180 = arith.constant 0 : index
    %262 = vector.load %arg4[%c24_178, %c0_179, %c0_180] : memref<25x16x6xf32, #tpu.memory_space<vmem>>, vector<1x16x6xf32>
    %263 = vector.shape_cast %262 : vector<1x16x6xf32> to vector<16x6xf32>
    %cst_181 = arith.constant dense<0.000000e+00> : vector<16x595xf32>
    %264 = tpu.matmul %263, %261, %cst_181 {dimension_numbers = #tpu.dot_dimension_numbers<[1], [0], [0], [1], [0, 0, 1, 1], [], []>} : vector<16x6xf32>, vector<6x595xf32>, vector<16x595xf32> -> vector<16x595xf32>
    %265 = arith.addf %260, %264 : vector<16x595xf32>
    %c0_182 = arith.constant 0 : index
    %c0_183 = arith.constant 0 : index
    %266 = vector.load %arg5[%c0_182, %c0_183] : memref<16x1xf32, #tpu.memory_space<vmem>>, vector<16x1xf32>
    %267 = vector.broadcast %266 : vector<16x1xf32> to vector<16x595xf32>
    %268 = arith.addf %265, %267 : vector<16x595xf32>
    %cst_184 = arith.constant 0.000000e+00 : f32
    %269 = vector.broadcast %cst_184 : f32 to vector<16x595xf32>
    %270 = arith.maximumf %268, %269 : vector<16x595xf32>
    %271 = vector.extract_strided_slice %270 {offsets = [0, 0], sizes = [16, 529], strides = [1, 1]} : vector<16x595xf32> to vector<16x529xf32>
    %272 = vector.extract_strided_slice %270 {offsets = [0, 2], sizes = [16, 529], strides = [1, 1]} : vector<16x595xf32> to vector<16x529xf32>
    %273 = arith.maximumf %271, %272 : vector<16x529xf32>
    %274 = vector.extract_strided_slice %270 {offsets = [0, 64], sizes = [16, 529], strides = [1, 1]} : vector<16x595xf32> to vector<16x529xf32>
    %275 = vector.extract_strided_slice %270 {offsets = [0, 66], sizes = [16, 529], strides = [1, 1]} : vector<16x595xf32> to vector<16x529xf32>
    %276 = arith.maximumf %274, %275 : vector<16x529xf32>
    %277 = arith.maximumf %273, %276 : vector<16x529xf32>
    %cst_185 = arith.constant 0.000000e+00 : f32
    %278 = vector.broadcast %cst_185 : f32 to vector<120x1xf32>
    %279 = vector.extract_strided_slice %277 {offsets = [0, 0], sizes = [16, 1], strides = [1, 1]} : vector<16x529xf32> to vector<16x1xf32>
    %c0_186 = arith.constant 0 : index
    %c0_187 = arith.constant 0 : index
    %c0_188 = arith.constant 0 : index
    %280 = vector.load %arg6[%c0_186, %c0_187, %c0_188] : memref<25x120x16xf32, #tpu.memory_space<vmem>>, vector<1x120x16xf32>
    %281 = vector.shape_cast %280 : vector<1x120x16xf32> to vector<120x16xf32>
    %cst_189 = arith.constant dense<0.000000e+00> : vector<120x1xf32>
    %282 = tpu.matmul %281, %279, %cst_189 {dimension_numbers = #tpu.dot_dimension_numbers<[1], [0], [0], [1], [0, 0, 1, 1], [], []>} : vector<120x16xf32>, vector<16x1xf32>, vector<120x1xf32> -> vector<120x1xf32>
    %283 = arith.addf %278, %282 : vector<120x1xf32>
    %284 = vector.extract_strided_slice %277 {offsets = [0, 4], sizes = [16, 1], strides = [1, 1]} : vector<16x529xf32> to vector<16x1xf32>
    %c1_190 = arith.constant 1 : index
    %c0_191 = arith.constant 0 : index
    %c0_192 = arith.constant 0 : index
    %285 = vector.load %arg6[%c1_190, %c0_191, %c0_192] : memref<25x120x16xf32, #tpu.memory_space<vmem>>, vector<1x120x16xf32>
    %286 = vector.shape_cast %285 : vector<1x120x16xf32> to vector<120x16xf32>
    %cst_193 = arith.constant dense<0.000000e+00> : vector<120x1xf32>
    %287 = tpu.matmul %286, %284, %cst_193 {dimension_numbers = #tpu.dot_dimension_numbers<[1], [0], [0], [1], [0, 0, 1, 1], [], []>} : vector<120x16xf32>, vector<16x1xf32>, vector<120x1xf32> -> vector<120x1xf32>
    %288 = arith.addf %283, %287 : vector<120x1xf32>
    %289 = vector.extract_strided_slice %277 {offsets = [0, 8], sizes = [16, 1], strides = [1, 1]} : vector<16x529xf32> to vector<16x1xf32>
    %c2_194 = arith.constant 2 : index
    %c0_195 = arith.constant 0 : index
    %c0_196 = arith.constant 0 : index
    %290 = vector.load %arg6[%c2_194, %c0_195, %c0_196] : memref<25x120x16xf32, #tpu.memory_space<vmem>>, vector<1x120x16xf32>
    %291 = vector.shape_cast %290 : vector<1x120x16xf32> to vector<120x16xf32>
    %cst_197 = arith.constant dense<0.000000e+00> : vector<120x1xf32>
    %292 = tpu.matmul %291, %289, %cst_197 {dimension_numbers = #tpu.dot_dimension_numbers<[1], [0], [0], [1], [0, 0, 1, 1], [], []>} : vector<120x16xf32>, vector<16x1xf32>, vector<120x1xf32> -> vector<120x1xf32>
    %293 = arith.addf %288, %292 : vector<120x1xf32>
    %294 = vector.extract_strided_slice %277 {offsets = [0, 12], sizes = [16, 1], strides = [1, 1]} : vector<16x529xf32> to vector<16x1xf32>
    %c3_198 = arith.constant 3 : index
    %c0_199 = arith.constant 0 : index
    %c0_200 = arith.constant 0 : index
    %295 = vector.load %arg6[%c3_198, %c0_199, %c0_200] : memref<25x120x16xf32, #tpu.memory_space<vmem>>, vector<1x120x16xf32>
    %296 = vector.shape_cast %295 : vector<1x120x16xf32> to vector<120x16xf32>
    %cst_201 = arith.constant dense<0.000000e+00> : vector<120x1xf32>
    %297 = tpu.matmul %296, %294, %cst_201 {dimension_numbers = #tpu.dot_dimension_numbers<[1], [0], [0], [1], [0, 0, 1, 1], [], []>} : vector<120x16xf32>, vector<16x1xf32>, vector<120x1xf32> -> vector<120x1xf32>
    %298 = arith.addf %293, %297 : vector<120x1xf32>
    %299 = vector.extract_strided_slice %277 {offsets = [0, 16], sizes = [16, 1], strides = [1, 1]} : vector<16x529xf32> to vector<16x1xf32>
    %c4_202 = arith.constant 4 : index
    %c0_203 = arith.constant 0 : index
    %c0_204 = arith.constant 0 : index
    %300 = vector.load %arg6[%c4_202, %c0_203, %c0_204] : memref<25x120x16xf32, #tpu.memory_space<vmem>>, vector<1x120x16xf32>
    %301 = vector.shape_cast %300 : vector<1x120x16xf32> to vector<120x16xf32>
    %cst_205 = arith.constant dense<0.000000e+00> : vector<120x1xf32>
    %302 = tpu.matmul %301, %299, %cst_205 {dimension_numbers = #tpu.dot_dimension_numbers<[1], [0], [0], [1], [0, 0, 1, 1], [], []>} : vector<120x16xf32>, vector<16x1xf32>, vector<120x1xf32> -> vector<120x1xf32>
    %303 = arith.addf %298, %302 : vector<120x1xf32>
    %304 = vector.extract_strided_slice %277 {offsets = [0, 128], sizes = [16, 1], strides = [1, 1]} : vector<16x529xf32> to vector<16x1xf32>
    %c5_206 = arith.constant 5 : index
    %c0_207 = arith.constant 0 : index
    %c0_208 = arith.constant 0 : index
    %305 = vector.load %arg6[%c5_206, %c0_207, %c0_208] : memref<25x120x16xf32, #tpu.memory_space<vmem>>, vector<1x120x16xf32>
    %306 = vector.shape_cast %305 : vector<1x120x16xf32> to vector<120x16xf32>
    %cst_209 = arith.constant dense<0.000000e+00> : vector<120x1xf32>
    %307 = tpu.matmul %306, %304, %cst_209 {dimension_numbers = #tpu.dot_dimension_numbers<[1], [0], [0], [1], [0, 0, 1, 1], [], []>} : vector<120x16xf32>, vector<16x1xf32>, vector<120x1xf32> -> vector<120x1xf32>
    %308 = arith.addf %303, %307 : vector<120x1xf32>
    %309 = vector.extract_strided_slice %277 {offsets = [0, 132], sizes = [16, 1], strides = [1, 1]} : vector<16x529xf32> to vector<16x1xf32>
    %c6_210 = arith.constant 6 : index
    %c0_211 = arith.constant 0 : index
    %c0_212 = arith.constant 0 : index
    %310 = vector.load %arg6[%c6_210, %c0_211, %c0_212] : memref<25x120x16xf32, #tpu.memory_space<vmem>>, vector<1x120x16xf32>
    %311 = vector.shape_cast %310 : vector<1x120x16xf32> to vector<120x16xf32>
    %cst_213 = arith.constant dense<0.000000e+00> : vector<120x1xf32>
    %312 = tpu.matmul %311, %309, %cst_213 {dimension_numbers = #tpu.dot_dimension_numbers<[1], [0], [0], [1], [0, 0, 1, 1], [], []>} : vector<120x16xf32>, vector<16x1xf32>, vector<120x1xf32> -> vector<120x1xf32>
    %313 = arith.addf %308, %312 : vector<120x1xf32>
    %314 = vector.extract_strided_slice %277 {offsets = [0, 136], sizes = [16, 1], strides = [1, 1]} : vector<16x529xf32> to vector<16x1xf32>
    %c7_214 = arith.constant 7 : index
    %c0_215 = arith.constant 0 : index
    %c0_216 = arith.constant 0 : index
    %315 = vector.load %arg6[%c7_214, %c0_215, %c0_216] : memref<25x120x16xf32, #tpu.memory_space<vmem>>, vector<1x120x16xf32>
    %316 = vector.shape_cast %315 : vector<1x120x16xf32> to vector<120x16xf32>
    %cst_217 = arith.constant dense<0.000000e+00> : vector<120x1xf32>
    %317 = tpu.matmul %316, %314, %cst_217 {dimension_numbers = #tpu.dot_dimension_numbers<[1], [0], [0], [1], [0, 0, 1, 1], [], []>} : vector<120x16xf32>, vector<16x1xf32>, vector<120x1xf32> -> vector<120x1xf32>
    %318 = arith.addf %313, %317 : vector<120x1xf32>
    %319 = vector.extract_strided_slice %277 {offsets = [0, 140], sizes = [16, 1], strides = [1, 1]} : vector<16x529xf32> to vector<16x1xf32>
    %c8_218 = arith.constant 8 : index
    %c0_219 = arith.constant 0 : index
    %c0_220 = arith.constant 0 : index
    %320 = vector.load %arg6[%c8_218, %c0_219, %c0_220] : memref<25x120x16xf32, #tpu.memory_space<vmem>>, vector<1x120x16xf32>
    %321 = vector.shape_cast %320 : vector<1x120x16xf32> to vector<120x16xf32>
    %cst_221 = arith.constant dense<0.000000e+00> : vector<120x1xf32>
    %322 = tpu.matmul %321, %319, %cst_221 {dimension_numbers = #tpu.dot_dimension_numbers<[1], [0], [0], [1], [0, 0, 1, 1], [], []>} : vector<120x16xf32>, vector<16x1xf32>, vector<120x1xf32> -> vector<120x1xf32>
    %323 = arith.addf %318, %322 : vector<120x1xf32>
    %324 = vector.extract_strided_slice %277 {offsets = [0, 144], sizes = [16, 1], strides = [1, 1]} : vector<16x529xf32> to vector<16x1xf32>
    %c9_222 = arith.constant 9 : index
    %c0_223 = arith.constant 0 : index
    %c0_224 = arith.constant 0 : index
    %325 = vector.load %arg6[%c9_222, %c0_223, %c0_224] : memref<25x120x16xf32, #tpu.memory_space<vmem>>, vector<1x120x16xf32>
    %326 = vector.shape_cast %325 : vector<1x120x16xf32> to vector<120x16xf32>
    %cst_225 = arith.constant dense<0.000000e+00> : vector<120x1xf32>
    %327 = tpu.matmul %326, %324, %cst_225 {dimension_numbers = #tpu.dot_dimension_numbers<[1], [0], [0], [1], [0, 0, 1, 1], [], []>} : vector<120x16xf32>, vector<16x1xf32>, vector<120x1xf32> -> vector<120x1xf32>
    %328 = arith.addf %323, %327 : vector<120x1xf32>
    %329 = vector.extract_strided_slice %277 {offsets = [0, 256], sizes = [16, 1], strides = [1, 1]} : vector<16x529xf32> to vector<16x1xf32>
    %c10_226 = arith.constant 10 : index
    %c0_227 = arith.constant 0 : index
    %c0_228 = arith.constant 0 : index
    %330 = vector.load %arg6[%c10_226, %c0_227, %c0_228] : memref<25x120x16xf32, #tpu.memory_space<vmem>>, vector<1x120x16xf32>
    %331 = vector.shape_cast %330 : vector<1x120x16xf32> to vector<120x16xf32>
    %cst_229 = arith.constant dense<0.000000e+00> : vector<120x1xf32>
    %332 = tpu.matmul %331, %329, %cst_229 {dimension_numbers = #tpu.dot_dimension_numbers<[1], [0], [0], [1], [0, 0, 1, 1], [], []>} : vector<120x16xf32>, vector<16x1xf32>, vector<120x1xf32> -> vector<120x1xf32>
    %333 = arith.addf %328, %332 : vector<120x1xf32>
    %334 = vector.extract_strided_slice %277 {offsets = [0, 260], sizes = [16, 1], strides = [1, 1]} : vector<16x529xf32> to vector<16x1xf32>
    %c11_230 = arith.constant 11 : index
    %c0_231 = arith.constant 0 : index
    %c0_232 = arith.constant 0 : index
    %335 = vector.load %arg6[%c11_230, %c0_231, %c0_232] : memref<25x120x16xf32, #tpu.memory_space<vmem>>, vector<1x120x16xf32>
    %336 = vector.shape_cast %335 : vector<1x120x16xf32> to vector<120x16xf32>
    %cst_233 = arith.constant dense<0.000000e+00> : vector<120x1xf32>
    %337 = tpu.matmul %336, %334, %cst_233 {dimension_numbers = #tpu.dot_dimension_numbers<[1], [0], [0], [1], [0, 0, 1, 1], [], []>} : vector<120x16xf32>, vector<16x1xf32>, vector<120x1xf32> -> vector<120x1xf32>
    %338 = arith.addf %333, %337 : vector<120x1xf32>
    %339 = vector.extract_strided_slice %277 {offsets = [0, 264], sizes = [16, 1], strides = [1, 1]} : vector<16x529xf32> to vector<16x1xf32>
    %c12_234 = arith.constant 12 : index
    %c0_235 = arith.constant 0 : index
    %c0_236 = arith.constant 0 : index
    %340 = vector.load %arg6[%c12_234, %c0_235, %c0_236] : memref<25x120x16xf32, #tpu.memory_space<vmem>>, vector<1x120x16xf32>
    %341 = vector.shape_cast %340 : vector<1x120x16xf32> to vector<120x16xf32>
    %cst_237 = arith.constant dense<0.000000e+00> : vector<120x1xf32>
    %342 = tpu.matmul %341, %339, %cst_237 {dimension_numbers = #tpu.dot_dimension_numbers<[1], [0], [0], [1], [0, 0, 1, 1], [], []>} : vector<120x16xf32>, vector<16x1xf32>, vector<120x1xf32> -> vector<120x1xf32>
    %343 = arith.addf %338, %342 : vector<120x1xf32>
    %344 = vector.extract_strided_slice %277 {offsets = [0, 268], sizes = [16, 1], strides = [1, 1]} : vector<16x529xf32> to vector<16x1xf32>
    %c13_238 = arith.constant 13 : index
    %c0_239 = arith.constant 0 : index
    %c0_240 = arith.constant 0 : index
    %345 = vector.load %arg6[%c13_238, %c0_239, %c0_240] : memref<25x120x16xf32, #tpu.memory_space<vmem>>, vector<1x120x16xf32>
    %346 = vector.shape_cast %345 : vector<1x120x16xf32> to vector<120x16xf32>
    %cst_241 = arith.constant dense<0.000000e+00> : vector<120x1xf32>
    %347 = tpu.matmul %346, %344, %cst_241 {dimension_numbers = #tpu.dot_dimension_numbers<[1], [0], [0], [1], [0, 0, 1, 1], [], []>} : vector<120x16xf32>, vector<16x1xf32>, vector<120x1xf32> -> vector<120x1xf32>
    %348 = arith.addf %343, %347 : vector<120x1xf32>
    %349 = vector.extract_strided_slice %277 {offsets = [0, 272], sizes = [16, 1], strides = [1, 1]} : vector<16x529xf32> to vector<16x1xf32>
    %c14_242 = arith.constant 14 : index
    %c0_243 = arith.constant 0 : index
    %c0_244 = arith.constant 0 : index
    %350 = vector.load %arg6[%c14_242, %c0_243, %c0_244] : memref<25x120x16xf32, #tpu.memory_space<vmem>>, vector<1x120x16xf32>
    %351 = vector.shape_cast %350 : vector<1x120x16xf32> to vector<120x16xf32>
    %cst_245 = arith.constant dense<0.000000e+00> : vector<120x1xf32>
    %352 = tpu.matmul %351, %349, %cst_245 {dimension_numbers = #tpu.dot_dimension_numbers<[1], [0], [0], [1], [0, 0, 1, 1], [], []>} : vector<120x16xf32>, vector<16x1xf32>, vector<120x1xf32> -> vector<120x1xf32>
    %353 = arith.addf %348, %352 : vector<120x1xf32>
    %354 = vector.extract_strided_slice %277 {offsets = [0, 384], sizes = [16, 1], strides = [1, 1]} : vector<16x529xf32> to vector<16x1xf32>
    %c15_246 = arith.constant 15 : index
    %c0_247 = arith.constant 0 : index
    %c0_248 = arith.constant 0 : index
    %355 = vector.load %arg6[%c15_246, %c0_247, %c0_248] : memref<25x120x16xf32, #tpu.memory_space<vmem>>, vector<1x120x16xf32>
    %356 = vector.shape_cast %355 : vector<1x120x16xf32> to vector<120x16xf32>
    %cst_249 = arith.constant dense<0.000000e+00> : vector<120x1xf32>
    %357 = tpu.matmul %356, %354, %cst_249 {dimension_numbers = #tpu.dot_dimension_numbers<[1], [0], [0], [1], [0, 0, 1, 1], [], []>} : vector<120x16xf32>, vector<16x1xf32>, vector<120x1xf32> -> vector<120x1xf32>
    %358 = arith.addf %353, %357 : vector<120x1xf32>
    %359 = vector.extract_strided_slice %277 {offsets = [0, 388], sizes = [16, 1], strides = [1, 1]} : vector<16x529xf32> to vector<16x1xf32>
    %c16_250 = arith.constant 16 : index
    %c0_251 = arith.constant 0 : index
    %c0_252 = arith.constant 0 : index
    %360 = vector.load %arg6[%c16_250, %c0_251, %c0_252] : memref<25x120x16xf32, #tpu.memory_space<vmem>>, vector<1x120x16xf32>
    %361 = vector.shape_cast %360 : vector<1x120x16xf32> to vector<120x16xf32>
    %cst_253 = arith.constant dense<0.000000e+00> : vector<120x1xf32>
    %362 = tpu.matmul %361, %359, %cst_253 {dimension_numbers = #tpu.dot_dimension_numbers<[1], [0], [0], [1], [0, 0, 1, 1], [], []>} : vector<120x16xf32>, vector<16x1xf32>, vector<120x1xf32> -> vector<120x1xf32>
    %363 = arith.addf %358, %362 : vector<120x1xf32>
    %364 = vector.extract_strided_slice %277 {offsets = [0, 392], sizes = [16, 1], strides = [1, 1]} : vector<16x529xf32> to vector<16x1xf32>
    %c17_254 = arith.constant 17 : index
    %c0_255 = arith.constant 0 : index
    %c0_256 = arith.constant 0 : index
    %365 = vector.load %arg6[%c17_254, %c0_255, %c0_256] : memref<25x120x16xf32, #tpu.memory_space<vmem>>, vector<1x120x16xf32>
    %366 = vector.shape_cast %365 : vector<1x120x16xf32> to vector<120x16xf32>
    %cst_257 = arith.constant dense<0.000000e+00> : vector<120x1xf32>
    %367 = tpu.matmul %366, %364, %cst_257 {dimension_numbers = #tpu.dot_dimension_numbers<[1], [0], [0], [1], [0, 0, 1, 1], [], []>} : vector<120x16xf32>, vector<16x1xf32>, vector<120x1xf32> -> vector<120x1xf32>
    %368 = arith.addf %363, %367 : vector<120x1xf32>
    %369 = vector.extract_strided_slice %277 {offsets = [0, 396], sizes = [16, 1], strides = [1, 1]} : vector<16x529xf32> to vector<16x1xf32>
    %c18_258 = arith.constant 18 : index
    %c0_259 = arith.constant 0 : index
    %c0_260 = arith.constant 0 : index
    %370 = vector.load %arg6[%c18_258, %c0_259, %c0_260] : memref<25x120x16xf32, #tpu.memory_space<vmem>>, vector<1x120x16xf32>
    %371 = vector.shape_cast %370 : vector<1x120x16xf32> to vector<120x16xf32>
    %cst_261 = arith.constant dense<0.000000e+00> : vector<120x1xf32>
    %372 = tpu.matmul %371, %369, %cst_261 {dimension_numbers = #tpu.dot_dimension_numbers<[1], [0], [0], [1], [0, 0, 1, 1], [], []>} : vector<120x16xf32>, vector<16x1xf32>, vector<120x1xf32> -> vector<120x1xf32>
    %373 = arith.addf %368, %372 : vector<120x1xf32>
    %374 = vector.extract_strided_slice %277 {offsets = [0, 400], sizes = [16, 1], strides = [1, 1]} : vector<16x529xf32> to vector<16x1xf32>
    %c19_262 = arith.constant 19 : index
    %c0_263 = arith.constant 0 : index
    %c0_264 = arith.constant 0 : index
    %375 = vector.load %arg6[%c19_262, %c0_263, %c0_264] : memref<25x120x16xf32, #tpu.memory_space<vmem>>, vector<1x120x16xf32>
    %376 = vector.shape_cast %375 : vector<1x120x16xf32> to vector<120x16xf32>
    %cst_265 = arith.constant dense<0.000000e+00> : vector<120x1xf32>
    %377 = tpu.matmul %376, %374, %cst_265 {dimension_numbers = #tpu.dot_dimension_numbers<[1], [0], [0], [1], [0, 0, 1, 1], [], []>} : vector<120x16xf32>, vector<16x1xf32>, vector<120x1xf32> -> vector<120x1xf32>
    %378 = arith.addf %373, %377 : vector<120x1xf32>
    %379 = vector.extract_strided_slice %277 {offsets = [0, 512], sizes = [16, 1], strides = [1, 1]} : vector<16x529xf32> to vector<16x1xf32>
    %c20_266 = arith.constant 20 : index
    %c0_267 = arith.constant 0 : index
    %c0_268 = arith.constant 0 : index
    %380 = vector.load %arg6[%c20_266, %c0_267, %c0_268] : memref<25x120x16xf32, #tpu.memory_space<vmem>>, vector<1x120x16xf32>
    %381 = vector.shape_cast %380 : vector<1x120x16xf32> to vector<120x16xf32>
    %cst_269 = arith.constant dense<0.000000e+00> : vector<120x1xf32>
    %382 = tpu.matmul %381, %379, %cst_269 {dimension_numbers = #tpu.dot_dimension_numbers<[1], [0], [0], [1], [0, 0, 1, 1], [], []>} : vector<120x16xf32>, vector<16x1xf32>, vector<120x1xf32> -> vector<120x1xf32>
    %383 = arith.addf %378, %382 : vector<120x1xf32>
    %384 = vector.extract_strided_slice %277 {offsets = [0, 516], sizes = [16, 1], strides = [1, 1]} : vector<16x529xf32> to vector<16x1xf32>
    %c21_270 = arith.constant 21 : index
    %c0_271 = arith.constant 0 : index
    %c0_272 = arith.constant 0 : index
    %385 = vector.load %arg6[%c21_270, %c0_271, %c0_272] : memref<25x120x16xf32, #tpu.memory_space<vmem>>, vector<1x120x16xf32>
    %386 = vector.shape_cast %385 : vector<1x120x16xf32> to vector<120x16xf32>
    %cst_273 = arith.constant dense<0.000000e+00> : vector<120x1xf32>
    %387 = tpu.matmul %386, %384, %cst_273 {dimension_numbers = #tpu.dot_dimension_numbers<[1], [0], [0], [1], [0, 0, 1, 1], [], []>} : vector<120x16xf32>, vector<16x1xf32>, vector<120x1xf32> -> vector<120x1xf32>
    %388 = arith.addf %383, %387 : vector<120x1xf32>
    %389 = vector.extract_strided_slice %277 {offsets = [0, 520], sizes = [16, 1], strides = [1, 1]} : vector<16x529xf32> to vector<16x1xf32>
    %c22_274 = arith.constant 22 : index
    %c0_275 = arith.constant 0 : index
    %c0_276 = arith.constant 0 : index
    %390 = vector.load %arg6[%c22_274, %c0_275, %c0_276] : memref<25x120x16xf32, #tpu.memory_space<vmem>>, vector<1x120x16xf32>
    %391 = vector.shape_cast %390 : vector<1x120x16xf32> to vector<120x16xf32>
    %cst_277 = arith.constant dense<0.000000e+00> : vector<120x1xf32>
    %392 = tpu.matmul %391, %389, %cst_277 {dimension_numbers = #tpu.dot_dimension_numbers<[1], [0], [0], [1], [0, 0, 1, 1], [], []>} : vector<120x16xf32>, vector<16x1xf32>, vector<120x1xf32> -> vector<120x1xf32>
    %393 = arith.addf %388, %392 : vector<120x1xf32>
    %394 = vector.extract_strided_slice %277 {offsets = [0, 524], sizes = [16, 1], strides = [1, 1]} : vector<16x529xf32> to vector<16x1xf32>
    %c23_278 = arith.constant 23 : index
    %c0_279 = arith.constant 0 : index
    %c0_280 = arith.constant 0 : index
    %395 = vector.load %arg6[%c23_278, %c0_279, %c0_280] : memref<25x120x16xf32, #tpu.memory_space<vmem>>, vector<1x120x16xf32>
    %396 = vector.shape_cast %395 : vector<1x120x16xf32> to vector<120x16xf32>
    %cst_281 = arith.constant dense<0.000000e+00> : vector<120x1xf32>
    %397 = tpu.matmul %396, %394, %cst_281 {dimension_numbers = #tpu.dot_dimension_numbers<[1], [0], [0], [1], [0, 0, 1, 1], [], []>} : vector<120x16xf32>, vector<16x1xf32>, vector<120x1xf32> -> vector<120x1xf32>
    %398 = arith.addf %393, %397 : vector<120x1xf32>
    %399 = vector.extract_strided_slice %277 {offsets = [0, 528], sizes = [16, 1], strides = [1, 1]} : vector<16x529xf32> to vector<16x1xf32>
    %c24_282 = arith.constant 24 : index
    %c0_283 = arith.constant 0 : index
    %c0_284 = arith.constant 0 : index
    %400 = vector.load %arg6[%c24_282, %c0_283, %c0_284] : memref<25x120x16xf32, #tpu.memory_space<vmem>>, vector<1x120x16xf32>
    %401 = vector.shape_cast %400 : vector<1x120x16xf32> to vector<120x16xf32>
    %cst_285 = arith.constant dense<0.000000e+00> : vector<120x1xf32>
    %402 = tpu.matmul %401, %399, %cst_285 {dimension_numbers = #tpu.dot_dimension_numbers<[1], [0], [0], [1], [0, 0, 1, 1], [], []>} : vector<120x16xf32>, vector<16x1xf32>, vector<120x1xf32> -> vector<120x1xf32>
    %403 = arith.addf %398, %402 : vector<120x1xf32>
    %c0_286 = arith.constant 0 : index
    %c0_287 = arith.constant 0 : index
    %404 = vector.load %arg7[%c0_286, %c0_287] : memref<120x1xf32, #tpu.memory_space<vmem>>, vector<120x1xf32>
    %405 = arith.addf %403, %404 : vector<120x1xf32>
    %cst_288 = arith.constant 0.000000e+00 : f32
    %406 = vector.broadcast %cst_288 : f32 to vector<120x1xf32>
    %407 = arith.maximumf %405, %406 : vector<120x1xf32>
    %c0_289 = arith.constant 0 : index
    %c0_290 = arith.constant 0 : index
    %408 = vector.load %arg8[%c0_289, %c0_290] : memref<84x120xf32, #tpu.memory_space<vmem>>, vector<84x120xf32>
    %cst_291 = arith.constant dense<0.000000e+00> : vector<84x1xf32>
    %409 = tpu.matmul %408, %407, %cst_291 {dimension_numbers = #tpu.dot_dimension_numbers<[1], [0], [0], [1], [0, 0, 1, 1], [], []>} : vector<84x120xf32>, vector<120x1xf32>, vector<84x1xf32> -> vector<84x1xf32>
    %c0_292 = arith.constant 0 : index
    %c0_293 = arith.constant 0 : index
    %410 = vector.load %arg9[%c0_292, %c0_293] : memref<84x1xf32, #tpu.memory_space<vmem>>, vector<84x1xf32>
    %411 = arith.addf %409, %410 : vector<84x1xf32>
    %cst_294 = arith.constant 0.000000e+00 : f32
    %412 = vector.broadcast %cst_294 : f32 to vector<84x1xf32>
    %413 = arith.maximumf %411, %412 : vector<84x1xf32>
    %c0_295 = arith.constant 0 : index
    %c0_296 = arith.constant 0 : index
    %414 = vector.load %arg10[%c0_295, %c0_296] : memref<10x84xf32, #tpu.memory_space<vmem>>, vector<10x84xf32>
    %cst_297 = arith.constant dense<0.000000e+00> : vector<10x1xf32>
    %415 = tpu.matmul %414, %413, %cst_297 {dimension_numbers = #tpu.dot_dimension_numbers<[1], [0], [0], [1], [0, 0, 1, 1], [], []>} : vector<10x84xf32>, vector<84x1xf32>, vector<10x1xf32> -> vector<10x1xf32>
    %c0_298 = arith.constant 0 : index
    %c0_299 = arith.constant 0 : index
    %416 = vector.load %arg11[%c0_298, %c0_299] : memref<10x1xf32, #tpu.memory_space<vmem>>, vector<10x1xf32>
    %417 = arith.addf %415, %416 : vector<10x1xf32>
    %c0_300 = arith.constant 0 : index
    %c0_301 = arith.constant 0 : index
    %c0_302 = arith.constant 0 : index
    %418 = vector.load %arg12[%c0_300, %c0_301, %c0_302] : memref<1x10x1xf32, #tpu.memory_space<vmem>>, vector<1x10x1xf32>
    %419 = vector.shape_cast %418 : vector<1x10x1xf32> to vector<10x1xf32>
    %420 = vector.shape_cast %417 : vector<10x1xf32> to vector<1x10x1xf32>
    tpu.vector_store %arg12[%c0_300, %c0_301, %c0_302], %420 {strides = array<i32>} : memref<1x10x1xf32, #tpu.memory_space<vmem>>, vector<1x10x1xf32>,
    return
  }
  func.func @transform_0(%arg0: i32) -> (i32, i32, i32) {
    %c0_i32 = arith.constant 0 : i32
    %c0_i32_0 = arith.constant 0 : i32
    %c0_i32_1 = arith.constant 0 : i32
    return %arg0, %c0_i32, %c0_i32_0 : i32, i32, i32
  }
  func.func @transform_1(%arg0: i32) -> (i32, i32, i32) {
    %c0_i32 = arith.constant 0 : i32
    %c0_i32_0 = arith.constant 0 : i32
    %c0_i32_1 = arith.constant 0 : i32
    %c0_i32_2 = arith.constant 0 : i32
    return %c0_i32, %c0_i32_0, %c0_i32_1 : i32, i32, i32
  }
  func.func @transform_2(%arg0: i32) -> (i32, i32) {
    %c0_i32 = arith.constant 0 : i32
    %c0_i32_0 = arith.constant 0 : i32
    %c0_i32_1 = arith.constant 0 : i32
    return %c0_i32, %c0_i32_0 : i32, i32
  }
  func.func @transform_3(%arg0: i32) -> (i32, i32, i32) {
    %c0_i32 = arith.constant 0 : i32
    %c0_i32_0 = arith.constant 0 : i32
    %c0_i32_1 = arith.constant 0 : i32
    %c0_i32_2 = arith.constant 0 : i32
    return %c0_i32, %c0_i32_0, %c0_i32_1 : i32, i32, i32
  }
  func.func @transform_4(%arg0: i32) -> (i32, i32) {
    %c0_i32 = arith.constant 0 : i32
    %c0_i32_0 = arith.constant 0 : i32
    %c0_i32_1 = arith.constant 0 : i32
    return %c0_i32, %c0_i32_0 : i32, i32
  }
  func.func @transform_5(%arg0: i32) -> (i32, i32, i32) {
    %c0_i32 = arith.constant 0 : i32
    %c0_i32_0 = arith.constant 0 : i32
    %c0_i32_1 = arith.constant 0 : i32
    %c0_i32_2 = arith.constant 0 : i32
    return %c0_i32, %c0_i32_0, %c0_i32_1 : i32, i32, i32
  }
  func.func @transform_6(%arg0: i32) -> (i32, i32) {
    %c0_i32 = arith.constant 0 : i32
    %c0_i32_0 = arith.constant 0 : i32
    %c0_i32_1 = arith.constant 0 : i32
    return %c0_i32, %c0_i32_0 : i32, i32
  }
  func.func @transform_7(%arg0: i32) -> (i32, i32) {
    %c0_i32 = arith.constant 0 : i32
    %c0_i32_0 = arith.constant 0 : i32
    %c0_i32_1 = arith.constant 0 : i32
    return %c0_i32, %c0_i32_0 : i32, i32
  }
  func.func @transform_8(%arg0: i32) -> (i32, i32) {
    %c0_i32 = arith.constant 0 : i32
    %c0_i32_0 = arith.constant 0 : i32
    %c0_i32_1 = arith.constant 0 : i32
    return %c0_i32, %c0_i32_0 : i32, i32
  }
  func.func @transform_9(%arg0: i32) -> (i32, i32) {
    %c0_i32 = arith.constant 0 : i32
    %c0_i32_0 = arith.constant 0 : i32
    %c0_i32_1 = arith.constant 0 : i32
    return %c0_i32, %c0_i32_0 : i32, i32
  }
  func.func @transform_10(%arg0: i32) -> (i32, i32) {
    %c0_i32 = arith.constant 0 : i32
    %c0_i32_0 = arith.constant 0 : i32
    %c0_i32_1 = arith.constant 0 : i32
    return %c0_i32, %c0_i32_0 : i32, i32
  }
  func.func @transform_11(%arg0: i32) -> (i32, i32, i32) {
    %c0_i32 = arith.constant 0 : i32
    %c0_i32_0 = arith.constant 0 : i32
    %c0_i32_1 = arith.constant 0 : i32
    return %arg0, %c0_i32, %c0_i32_0 : i32, i32, i32
  }
}

</mosaic_0001>

<bundles_post_ra>
// kernel: mul.7
= control target key start
LH: loop header
LB: loop body
LE: loop exit
PB: predicated region body
PF: predicated region fallthrough
CT: control target
= control target key end

     0   :  { %3 = vsyncpa [#allocation1], 0  ;;  %s798_s0 = inlined_call_operand.hbm [shape: f32[120,400], index: 0, kind: input, shape index: {}]   ;;  %s799_s1 = inlined_call_operand.hbm [shape: f32[120,400], index: 1, kind: input, shape index: {}]   ;;  %s800_s2 = inlined_call_operand.vmem [shape: f32[120,400], index: 2, kind: output, shape index: {}]  }
   0x1   :  { %4 = vsyncpa [#allocation3], 0  ;;  %s623_s9 = smov [#allocation0]  }
   0x2   :  { %s8_s10 = sshll.u32 %s623_s9, 4  ;;  %s9_s10 = int_to_ptr.vmem [resolvable:$true] %s8_s10 }
   0x3   :  { %s587_s11 = scalar_lea.vmem %s9_s10, 6400  ;;  %p592_p1 = scmp.lt.s32.totalorder %s9_s10, %s9_s10 }
   0x4   :  { %p588_p0 = scmp.ne.s32.totalorder %s9_s10, %s587_s11  ;;  %p593_p2 = scmp.lt.s32.totalorder %s587_s11, %s587_s11 }
   0x6   :  { %p594_p3 = por %p593_p2, %p592_p1 }
   0x8   :  { %p595_p4 = pnand %p594_p3, %p588_p0 }
   0xa   :  { %598 = shalt.err (!%p595_p4)
}
   0xb   :  { %s624_s12 = smov 128   ;;  %s625_s13 = smov 8  }
   0xc   :  { %14 = dma.hbm_to_vmem [thread:$0]  %s798_s0, 6400, %s9_s10, [#allocation1], %s624_s12, %s624_s12, %s625_s13  }
   0xd   :  { %s626_s0 = smov [#allocation2]  }
   0xe   :  { %s18_s16 = sshll.u32 %s626_s0, 4  ;;  %s19_s16 = int_to_ptr.vmem [resolvable:$true] %s18_s16 }
   0xf   :  { %s607_s17 = scalar_lea.vmem %s19_s16, 6400  ;;  %p612_p6 = scmp.lt.s32.totalorder %s19_s16, %s19_s16 }
  0x10   :  { %p608_p5 = scmp.ne.s32.totalorder %s19_s16, %s607_s17  ;;  %p613_p7 = scmp.lt.s32.totalorder %s607_s17, %s607_s17 }
  0x12   :  { %p614_p8 = por %p613_p7, %p612_p6 }
  0x14   :  { %p615_p9 = pnand %p614_p8, %p608_p5 }
  0x16   :  { %618 = shalt.err (!%p615_p9)
}
  0x17   :  { %24 = dma.hbm_to_vmem [thread:$0]  %s799_s1, 6400, %s19_s16, [#allocation3], %s624_s12, %s624_s12, %s625_s13  }
  0x18   :  { %619 = dma.done.wait [#allocation1], 6400  }
  0x19   :  { %620 = vsyncadd [#allocation1], 4294960896 }
  0x1a   :  { %621 = dma.done.wait [#allocation3], 6400  }
  0x1b   :  { %622 = vsyncadd [#allocation3], 4294960896  ;;  %v27_v0 = vld [vmem:[#allocation0] sm:$0xff]  ;;  %v28_v1 = vld [vmem:[#allocation2] sm:$0xff] }
  0x1c   :  { %v35_v2 = vld [vmem:[#allocation0 + $0x8] sm:$0xff]  ;;  %v31_v3 = vmul.f32 %v28_v1, %v27_v0  ;;  %v37_v4 = vld [vmem:[#allocation2 + $0x8] sm:$0xff]  ;;  %v45_v5 = vld [vmem:[#allocation0 + $0x10] sm:$0xff] }
  0x1d   :  { %v47_v6 = vld [vmem:[#allocation2 + $0x10] sm:$0xff]  ;;  %v40_v7 = vmul.f32 %v37_v4, %v35_v2  ;;  %v55_v9 = vld [vmem:[#allocation0 + $0x18] sm:$0xff]  ;;  %v57_v10 = vld [vmem:[#allocation2 + $0x18] sm:$0xff] }
  0x1e   :  { %v50_v8 = vmul.f32 %v47_v6, %v45_v5  ;;  %v65_v11 = vld [vmem:[#allocation0 + $0x20] sm:$0xff]  ;;  %33 = vst [vmem:[%s800_s2] sm:$0xff] %v31_v3  ;;  %v60_v12 = vmul.f32 %v57_v10, %v55_v9  ;;  %v67_v13 = vld [vmem:[#allocation2 + $0x20] sm:$0xff]  ;;  %v75_v14 = vld [vmem:[#allocation0 + $0x28] sm:$0xff] }
  0x1f   :  { %v77_v15 = vld [vmem:[#allocation2 + $0x28] sm:$0xff]  ;;  %526 = vst [vmem:[%s800_s2 + $0x8] sm:$0xff] %v40_v7  ;;  %v70_v16 = vmul.f32 %v67_v13, %v65_v11  ;;  %v85_v18 = vld [vmem:[#allocation0 + $0x30] sm:$0xff]  ;;  %v87_v19 = vld [vmem:[#allocation2 + $0x30] sm:$0xff] }
  0x20   :  { %527 = vst [vmem:[%s800_s2 + $0x10] sm:$0xff] %v50_v8  ;;  %v80_v17 = vmul.f32 %v77_v15, %v75_v14  ;;  %v95_v20 = vld [vmem:[#allocation0 + $0x38] sm:$0xff]  ;;  %528 = vst [vmem:[%s800_s2 + $0x18] sm:$0xff] %v60_v12  ;;  %v90_v21 = vmul.f32 %v87_v19, %v85_v18  ;;  %v97_v22 = vld [vmem:[#allocation2 + $0x38] sm:$0xff] }
  0x21   :  { %v105_v23 = vld [vmem:[#allocation0 + $0x40] sm:$0xff]  ;;  %v107_v24 = vld [vmem:[#allocation2 + $0x40] sm:$0xff]  ;;  %529 = vst [vmem:[%s800_s2 + $0x20] sm:$0xff] %v70_v16  ;;  %v100_v25 = vmul.f32 %v97_v22, %v95_v20  ;;  %v115_v27 = vld [vmem:[#allocation0 + $0x48] sm:$0xff] }
  0x22   :  { %530 = vst [vmem:[%s800_s2 + $0x28] sm:$0xff] %v80_v17  ;;  %v110_v26 = vmul.f32 %v107_v24, %v105_v23  ;;  %v117_v28 = vld [vmem:[#allocation2 + $0x48] sm:$0xff]  ;;  %v125_v29 = vld [vmem:[#allocation0 + $0x50] sm:$0xff]  ;;  %531 = vst [vmem:[%s800_s2 + $0x30] sm:$0xff] %v90_v21 }
  0x23   :  { %v120_v30 = vmul.f32 %v117_v28, %v115_v27  ;;  %v127_v31 = vld [vmem:[#allocation2 + $0x50] sm:$0xff]  ;;  %v135_v32 = vld [vmem:[#allocation0 + $0x58] sm:$0xff]  ;;  %v137_v33 = vld [vmem:[#allocation2 + $0x58] sm:$0xff]  ;;  %532 = vst [vmem:[%s800_s2 + $0x38] sm:$0xff] %v100_v25 }
  0x24   :  { %533 = vst [vmem:[%s800_s2 + $0x40] sm:$0xff] %v110_v26  ;;  %v130_v34 = vmul.f32 %v127_v31, %v125_v29  ;;  %v140_v35 = vmul.f32 %v137_v33, %v135_v32  ;;  %v145_v36 = vld [vmem:[#allocation0 + $0x60] sm:$0xff]  ;;  %v147_v37 = vld [vmem:[#allocation2 + $0x60] sm:$0xff]  ;;  %v155_v38 = vld [vmem:[#allocation0 + $0x68] sm:$0xff] }
  0x25   :  { %534 = vst [vmem:[%s800_s2 + $0x48] sm:$0xff] %v120_v30  ;;  %v150_v39 = vmul.f32 %v147_v37, %v145_v36  ;;  %v157_v40 = vld [vmem:[#allocation2 + $0x68] sm:$0xff]  ;;  %v165_v41 = vld [vmem:[#allocation0 + $0x70] sm:$0xff]  ;;  %v167_v42 = vld [vmem:[#allocation2 + $0x70] sm:$0xff] }
  0x26   :  { %535 = vst [vmem:[%s800_s2 + $0x50] sm:$0xff] %v130_v34  ;;  %536 = vst [vmem:[%s800_s2 + $0x58] sm:$0xff] %v140_v35  ;;  %v160_v43 = vmul.f32 %v157_v40, %v155_v38  ;;  %v170_v44 = vmul.f32 %v167_v42, %v165_v41  ;;  %v175_v45 = vld [vmem:[#allocation0 + $0x78] sm:$0xff]  ;;  %v177_v46 = vld [vmem:[#allocation2 + $0x78] sm:$0xff] }
  0x27   :  { %v185_v47 = vld [vmem:[#allocation0 + $0x80] sm:$0xff]  ;;  %537 = vst [vmem:[%s800_s2 + $0x60] sm:$0xff] %v150_v39  ;;  %v180_v48 = vmul.f32 %v177_v46, %v175_v45  ;;  %v187_v49 = vld [vmem:[#allocation2 + $0x80] sm:$0xff]  ;;  %v195_v50 = vld [vmem:[#allocation0 + $0x88] sm:$0xff] }
  0x28   :  { %v197_v51 = vld [vmem:[#allocation2 + $0x88] sm:$0xff]  ;;  %538 = vst [vmem:[%s800_s2 + $0x68] sm:$0xff] %v160_v43  ;;  %539 = vst [vmem:[%s800_s2 + $0x70] sm:$0xff] %v170_v44  ;;  %v190_v52 = vmul.f32 %v187_v49, %v185_v47  ;;  %v205_v54 = vld [vmem:[#allocation0 + $0x90] sm:$0xff] }
  0x29   :  { %v200_v53 = vmul.f32 %v197_v51, %v195_v50  ;;  %v207_v55 = vld [vmem:[#allocation2 + $0x90] sm:$0xff]  ;;  %v215_v56 = vld [vmem:[#allocation0 + $0x98] sm:$0xff]  ;;  %540 = vst [vmem:[%s800_s2 + $0x78] sm:$0xff] %v180_v48  ;;  %v217_v58 = vld [vmem:[#allocation2 + $0x98] sm:$0xff] }
  0x2a   :  { %v210_v57 = vmul.f32 %v207_v55, %v205_v54  ;;  %v225_v59 = vld [vmem:[#allocation0 + $0xa0] sm:$0xff]  ;;  %v227_v60 = vld [vmem:[#allocation2 + $0xa0] sm:$0xff]  ;;  %541 = vst [vmem:[%s800_s2 + $0x80] sm:$0xff] %v190_v52  ;;  %v220_v61 = vmul.f32 %v217_v58, %v215_v56  ;;  %v235_v63 = vld [vmem:[#allocation0 + $0xa8] sm:$0xff] }
  0x2b   :  { %542 = vst [vmem:[%s800_s2 + $0x88] sm:$0xff] %v200_v53  ;;  %v230_v62 = vmul.f32 %v227_v60, %v225_v59  ;;  %v237_v0 = vld [vmem:[#allocation2 + $0xa8] sm:$0xff]  ;;  %v245_v1 = vld [vmem:[#allocation0 + $0xb0] sm:$0xff]  ;;  %v247_v3 = vld [vmem:[#allocation2 + $0xb0] sm:$0xff] }
  0x2c   :  { %543 = vst [vmem:[%s800_s2 + $0x90] sm:$0xff] %v210_v57  ;;  %v240_v2 = vmul.f32 %v237_v0, %v235_v63  ;;  %v255_v4 = vld [vmem:[#allocation0 + $0xb8] sm:$0xff]  ;;  %v257_v5 = vld [vmem:[#allocation2 + $0xb8] sm:$0xff]  ;;  %544 = vst [vmem:[%s800_s2 + $0x98] sm:$0xff] %v220_v61  ;;  %v250_v6 = vmul.f32 %v247_v3, %v245_v1 }
  0x2d   :  { %545 = vst [vmem:[%s800_s2 + $0xa0] sm:$0xff] %v230_v62  ;;  %v260_v7 = vmul.f32 %v257_v5, %v255_v4  ;;  %v265_v8 = vld [vmem:[#allocation0 + $0xc0] sm:$0xff]  ;;  %v267_v9 = vld [vmem:[#allocation2 + $0xc0] sm:$0xff]  ;;  %v275_v10 = vld [vmem:[#allocation0 + $0xc8] sm:$0xff] }
  0x2e   :  { %546 = vst [vmem:[%s800_s2 + $0xa8] sm:$0xff] %v240_v2  ;;  %v270_v11 = vmul.f32 %v267_v9, %v265_v8  ;;  %v277_v12 = vld [vmem:[#allocation2 + $0xc8] sm:$0xff]  ;;  %v285_v13 = vld [vmem:[#allocation0 + $0xd0] sm:$0xff]  ;;  %v287_v14 = vld [vmem:[#allocation2 + $0xd0] sm:$0xff] }
  0x2f   :  { %547 = vst [vmem:[%s800_s2 + $0xb0] sm:$0xff] %v250_v6  ;;  %548 = vst [vmem:[%s800_s2 + $0xb8] sm:$0xff] %v260_v7  ;;  %v280_v15 = vmul.f32 %v277_v12, %v275_v10  ;;  %v290_v16 = vmul.f32 %v287_v14, %v285_v13  ;;  %v295_v17 = vld [vmem:[#allocation0 + $0xd8] sm:$0xff]  ;;  %v297_v18 = vld [vmem:[#allocation2 + $0xd8] sm:$0xff] }
  0x30   :  { %v305_v19 = vld [vmem:[#allocation0 + $0xe0] sm:$0xff]  ;;  %549 = vst [vmem:[%s800_s2 + $0xc0] sm:$0xff] %v270_v11  ;;  %v300_v20 = vmul.f32 %v297_v18, %v295_v17  ;;  %v307_v21 = vld [vmem:[#allocation2 + $0xe0] sm:$0xff]  ;;  %v315_v22 = vld [vmem:[#allocation0 + $0xe8] sm:$0xff] }
  0x31   :  { %v317_v23 = vld [vmem:[#allocation2 + $0xe8] sm:$0xff]  ;;  %550 = vst [vmem:[%s800_s2 + $0xc8] sm:$0xff] %v280_v15  ;;  %551 = vst [vmem:[%s800_s2 + $0xd0] sm:$0xff] %v290_v16  ;;  %v310_v24 = vmul.f32 %v307_v21, %v305_v19  ;;  %v325_v26 = vld [vmem:[#allocation0 + $0xf0] sm:$0xff] }
  0x32   :  { %v320_v25 = vmul.f32 %v317_v23, %v315_v22  ;;  %v327_v27 = vld [vmem:[#allocation2 + $0xf0] sm:$0xff]  ;;  %v335_v28 = vld [vmem:[#allocation0 + $0xf8] sm:$0xff]  ;;  %552 = vst [vmem:[%s800_s2 + $0xd8] sm:$0xff] %v300_v20  ;;  %v337_v30 = vld [vmem:[#allocation2 + $0xf8] sm:$0xff] }
  0x33   :  { %v330_v29 = vmul.f32 %v327_v27, %v325_v26  ;;  %v345_v31 = vld [vmem:[#allocation0 + $0x100] sm:$0xff]  ;;  %v347_v32 = vld [vmem:[#allocation2 + $0x100] sm:$0xff]  ;;  %553 = vst [vmem:[%s800_s2 + $0xe0] sm:$0xff] %v310_v24  ;;  %v340_v33 = vmul.f32 %v337_v30, %v335_v28  ;;  %v355_v35 = vld [vmem:[#allocation0 + $0x108] sm:$0xff] }
  0x34   :  { %554 = vst [vmem:[%s800_s2 + $0xe8] sm:$0xff] %v320_v25  ;;  %v350_v34 = vmul.f32 %v347_v32, %v345_v31  ;;  %v357_v36 = vld [vmem:[#allocation2 + $0x108] sm:$0xff]  ;;  %v365_v37 = vld [vmem:[#allocation0 + $0x110] sm:$0xff]  ;;  %v367_v39 = vld [vmem:[#allocation2 + $0x110] sm:$0xff] }
  0x35   :  { %555 = vst [vmem:[%s800_s2 + $0xf0] sm:$0xff] %v330_v29  ;;  %v360_v38 = vmul.f32 %v357_v36, %v355_v35  ;;  %v375_v40 = vld [vmem:[#allocation0 + $0x118] sm:$0xff]  ;;  %v377_v41 = vld [vmem:[#allocation2 + $0x118] sm:$0xff]  ;;  %556 = vst [vmem:[%s800_s2 + $0xf8] sm:$0xff] %v340_v33  ;;  %v370_v42 = vmul.f32 %v367_v39, %v365_v37 }
  0x36   :  { %557 = vst [vmem:[%s800_s2 + $0x100] sm:$0xff] %v350_v34  ;;  %v380_v43 = vmul.f32 %v377_v41, %v375_v40  ;;  %v385_v44 = vld [vmem:[#allocation0 + $0x120] sm:$0xff]  ;;  %v387_v45 = vld [vmem:[#allocation2 + $0x120] sm:$0xff]  ;;  %v395_v46 = vld [vmem:[#allocation0 + $0x128] sm:$0xff] }
  0x37   :  { %558 = vst [vmem:[%s800_s2 + $0x108] sm:$0xff] %v360_v38  ;;  %v390_v47 = vmul.f32 %v387_v45, %v385_v44  ;;  %v397_v48 = vld [vmem:[#allocation2 + $0x128] sm:$0xff]  ;;  %v405_v49 = vld [vmem:[#allocation0 + $0x130] sm:$0xff]  ;;  %v407_v50 = vld [vmem:[#allocation2 + $0x130] sm:$0xff] }
  0x38   :  { %559 = vst [vmem:[%s800_s2 + $0x110] sm:$0xff] %v370_v42  ;;  %560 = vst [vmem:[%s800_s2 + $0x118] sm:$0xff] %v380_v43  ;;  %v400_v51 = vmul.f32 %v397_v48, %v395_v46  ;;  %v410_v52 = vmul.f32 %v407_v50, %v405_v49  ;;  %v415_v53 = vld [vmem:[#allocation0 + $0x138] sm:$0xff]  ;;  %v417_v54 = vld [vmem:[#allocation2 + $0x138] sm:$0xff] }
  0x39   :  { %v425_v55 = vld [vmem:[#allocation0 + $0x140] sm:$0xff]  ;;  %561 = vst [vmem:[%s800_s2 + $0x120] sm:$0xff] %v390_v47  ;;  %v420_v56 = vmul.f32 %v417_v54, %v415_v53  ;;  %v427_v57 = vld [vmem:[#allocation2 + $0x140] sm:$0xff]  ;;  %v435_v58 = vld [vmem:[#allocation0 + $0x148] sm:$0xff] }
  0x3a   :  { %v437_v59 = vld [vmem:[#allocation2 + $0x148] sm:$0xff]  ;;  %562 = vst [vmem:[%s800_s2 + $0x128] sm:$0xff] %v400_v51  ;;  %563 = vst [vmem:[%s800_s2 + $0x130] sm:$0xff] %v410_v52  ;;  %v430_v60 = vmul.f32 %v427_v57, %v425_v55  ;;  %v445_v62 = vld [vmem:[#allocation0 + $0x150] sm:$0xff] }
  0x3b   :  { %v440_v61 = vmul.f32 %v437_v59, %v435_v58  ;;  %v447_v63 = vld [vmem:[#allocation2 + $0x150] sm:$0xff]  ;;  %v455_v0 = vld [vmem:[#allocation0 + $0x158] sm:$0xff]  ;;  %564 = vst [vmem:[%s800_s2 + $0x138] sm:$0xff] %v420_v56  ;;  %v457_v2 = vld [vmem:[#allocation2 + $0x158] sm:$0xff] }
  0x3c   :  { %v450_v1 = vmul.f32 %v447_v63, %v445_v62  ;;  %v465_v3 = vld [vmem:[#allocation0 + $0x160] sm:$0xff]  ;;  %v467_v4 = vld [vmem:[#allocation2 + $0x160] sm:$0xff]  ;;  %565 = vst [vmem:[%s800_s2 + $0x140] sm:$0xff] %v430_v60  ;;  %v460_v5 = vmul.f32 %v457_v2, %v455_v0  ;;  %v475_v7 = vld [vmem:[#allocation0 + $0x168] sm:$0xff] }
  0x3d   :  { %566 = vst [vmem:[%s800_s2 + $0x148] sm:$0xff] %v440_v61  ;;  %v470_v6 = vmul.f32 %v467_v4, %v465_v3  ;;  %v477_v8 = vld [vmem:[#allocation2 + $0x168] sm:$0xff]  ;;  %v485_v9 = vld [vmem:[#allocation0 + $0x170] sm:$0xff]  ;;  %v487_v11 = vld [vmem:[#allocation2 + $0x170] sm:$0xff] }
  0x3e   :  { %567 = vst [vmem:[%s800_s2 + $0x150] sm:$0xff] %v450_v1  ;;  %v480_v10 = vmul.f32 %v477_v8, %v475_v7  ;;  %v495_v12 = vld [vmem:[#allocation0 + $0x178] sm:$0xff]  ;;  %v497_v13 = vld [vmem:[#allocation2 + $0x178] sm:$0xff]  ;;  %568 = vst [vmem:[%s800_s2 + $0x158] sm:$0xff] %v460_v5  ;;  %v490_v14 = vmul.f32 %v487_v11, %v485_v9 }
  0x3f   :  { %569 = vst [vmem:[%s800_s2 + $0x160] sm:$0xff] %v470_v6  ;;  %v500_v15 = vmul.f32 %v497_v13, %v495_v12  ;;  %v505_v16 = vld [vmem:[#allocation0 + $0x180] sm:$0xff]  ;;  %v507_v17 = vld [vmem:[#allocation2 + $0x180] sm:$0xff]  ;;  %v515_v18 = vld [vmem:[#allocation0 + $0x188] sm:$0xff] }
  0x40   :  { %570 = vst [vmem:[%s800_s2 + $0x168] sm:$0xff] %v480_v10  ;;  %v510_v19 = vmul.f32 %v507_v17, %v505_v16  ;;  %v517_v20 = vld [vmem:[#allocation2 + $0x188] sm:$0xff]  ;;  %571 = vst [vmem:[%s800_s2 + $0x170] sm:$0xff] %v490_v14 }
  0x41   :  { %572 = vst [vmem:[%s800_s2 + $0x178] sm:$0xff] %v500_v15  ;;  %v520_v21 = vmul.f32 %v517_v20, %v515_v18 }
  0x42   :  { %573 = vst [vmem:[%s800_s2 + $0x180] sm:$0xff] %v510_v19 }
  0x43   :  { %574 = vst [vmem:[%s800_s2 + $0x188] sm:$0xff] %v520_v21 }
  0x44   :  { %524 = vsyncpa [#allocation1], 1 }
  0x45   :  { %525 = vsyncpa [#allocation3], 1 }

// kernel: mul.8
= control target key start
LH: loop header
LB: loop body
LE: loop exit
PB: predicated region body
PF: predicated region fallthrough
CT: control target
= control target key end

     0   :  { %s254_s0 = inlined_call_operand.vmem [shape: f32[84,120], index: 0, kind: input, shape index: {}]   ;;  %s255_s1 = inlined_call_operand.vmem [shape: f32[84,120], index: 1, kind: input, shape index: {}]   ;;  %s256_s2 = inlined_call_operand.vmem [shape: f32[84,120], index: 2, kind: output, shape index: {}]  }
   0x1   :  { %v3_v0 = vld [vmem:[%s254_s0] sm:$0xff]  ;;  %v110_v2 = vld [vmem:[%s254_s0 + $0x8] sm:$0xff]  ;;  %v113_v5 = vld [vmem:[%s254_s0 + $0x10] sm:$0xff] }
   0x2   :  { %v4_v1 = vld [vmem:[%s255_s1] sm:$0xff]  ;;  %v111_v4 = vld [vmem:[%s255_s1 + $0x8] sm:$0xff]  ;;  %v114_v6 = vld [vmem:[%s255_s1 + $0x10] sm:$0xff] }
   0x3   :  { %v7_v3 = vmul.f32 %v4_v1, %v3_v0  ;;  %v16_v7 = vmul.f32 %v111_v4, %v110_v2  ;;  %v26_v8 = vmul.f32 %v114_v6, %v113_v5  ;;  %v116_v9 = vld [vmem:[%s254_s0 + $0x18] sm:$0xff]  ;;  %v119_v11 = vld [vmem:[%s254_s0 + $0x20] sm:$0xff]  ;;  %v122_v14 = vld [vmem:[%s254_s0 + $0x28] sm:$0xff] }
   0x4   :  { %v117_v10 = vld [vmem:[%s255_s1 + $0x18] sm:$0xff]  ;;  %v120_v13 = vld [vmem:[%s255_s1 + $0x20] sm:$0xff]  ;;  %v123_v15 = vld [vmem:[%s255_s1 + $0x28] sm:$0xff] }
   0x5   :  { %9 = vst [vmem:[%s256_s2] sm:$0xff] %v7_v3  ;;  %v36_v12 = vmul.f32 %v117_v10, %v116_v9  ;;  %112 = vst [vmem:[%s256_s2 + $0x8] sm:$0xff] %v16_v7  ;;  %v46_v16 = vmul.f32 %v120_v13, %v119_v11  ;;  %v56_v17 = vmul.f32 %v123_v15, %v122_v14  ;;  %v125_v18 = vld [vmem:[%s254_s0 + $0x30] sm:$0xff]  ;;  %v128_v20 = vld [vmem:[%s254_s0 + $0x38] sm:$0xff] }
   0x6   :  { %115 = vst [vmem:[%s256_s2 + $0x10] sm:$0xff] %v26_v8  ;;  %v126_v19 = vld [vmem:[%s255_s1 + $0x30] sm:$0xff]  ;;  %v129_v22 = vld [vmem:[%s255_s1 + $0x38] sm:$0xff]  ;;  %v131_v23 = vld [vmem:[%s254_s0 + $0x40] sm:$0xff] }
   0x7   :  { %118 = vst [vmem:[%s256_s2 + $0x18] sm:$0xff] %v36_v12  ;;  %v66_v21 = vmul.f32 %v126_v19, %v125_v18  ;;  %v132_v24 = vld [vmem:[%s255_s1 + $0x40] sm:$0xff]  ;;  %121 = vst [vmem:[%s256_s2 + $0x20] sm:$0xff] %v46_v16  ;;  %v76_v25 = vmul.f32 %v129_v22, %v128_v20  ;;  %v134_v27 = vld [vmem:[%s254_s0 + $0x48] sm:$0xff] }
   0x8   :  { %124 = vst [vmem:[%s256_s2 + $0x28] sm:$0xff] %v56_v17  ;;  %v86_v26 = vmul.f32 %v132_v24, %v131_v23  ;;  %v135_v28 = vld [vmem:[%s255_s1 + $0x48] sm:$0xff]  ;;  %v137_v29 = vld [vmem:[%s254_s0 + $0x50] sm:$0xff] }
   0x9   :  { %127 = vst [vmem:[%s256_s2 + $0x30] sm:$0xff] %v66_v21  ;;  %v96_v30 = vmul.f32 %v135_v28, %v134_v27  ;;  %v138_v31 = vld [vmem:[%s255_s1 + $0x50] sm:$0xff]  ;;  %130 = vst [vmem:[%s256_s2 + $0x38] sm:$0xff] %v76_v25 }
   0xa   :  { %133 = vst [vmem:[%s256_s2 + $0x40] sm:$0xff] %v86_v26  ;;  %v106_v32 = vmul.f32 %v138_v31, %v137_v29 }
   0xb   :  { %136 = vst [vmem:[%s256_s2 + $0x48] sm:$0xff] %v96_v30 }
   0xc   :  { %139 = vst [vmem:[%s256_s2 + $0x50] sm:$0xff] %v106_v32 }

// kernel: mul.9
= control target key start
LH: loop header
LB: loop body
LE: loop exit
PB: predicated region body
PF: predicated region fallthrough
CT: control target
= control target key end

     0   :  { %s56_s0 = inlined_call_operand.vmem [shape: f32[10,84], index: 0, kind: input, shape index: {}]   ;;  %s57_s1 = inlined_call_operand.vmem [shape: f32[10,84], index: 1, kind: input, shape index: {}]   ;;  %s58_s2 = inlined_call_operand.vmem [shape: f32[10,84], index: 2, kind: output, shape index: {}]  }
   0x1   :  { %v3_v0 = vld [vmem:[%s56_s0] sm:$0xff]  ;;  %v20_v2 = vld [vmem:[%s56_s0 + $0x8] sm:$0xff] }
   0x2   :  { %v4_v1 = vld [vmem:[%s57_s1] sm:$0xff]  ;;  %v21_v4 = vld [vmem:[%s57_s1 + $0x8] sm:$0xff] }
   0x3   :  { %v7_v3 = vmul.f32 %v4_v1, %v3_v0  ;;  %v16_v5 = vmul.f32 %v21_v4, %v20_v2 }
   0x5   :  { %9 = vst [vmem:[%s58_s2] sm:$0xff] %v7_v3  ;;  %22 = vst [vmem:[%s58_s2 + $0x8] sm:$0xff] %v16_v5 }

// kernel: net_forward.1
= control target key start
LH: loop header
LB: loop body
LE: loop exit
PB: predicated region body
PF: predicated region fallthrough
CT: control target
= control target key end

     0   :  { %s24841_s17 = smov 0   ;;  %s31055_s0 = inlined_call_operand.vmem [shape: f32[2,3,1024], index: 0, kind: input, shape index: {}]   ;;  %s31056_s1 = inlined_call_operand.vmem [shape: f32[25,6,3], index: 1, kind: input, shape index: {}]   ;;  %s31057_s2 = inlined_call_operand.vmem [shape: f32[6,1], index: 2, kind: input, shape index: {}]   ;;  %s31058_s3 = inlined_call_operand.vmem [shape: f32[25,16,6], index: 3, kind: input, shape index: {}]   ;;  %s31059_s4 = inlined_call_operand.vmem [shape: f32[16,1], index: 4, kind: input, shape index: {}]   ;;  %s31060_s5 = inlined_call_operand.vmem [shape: f32[25,120,16], index: 5, kind: input, shape index: {}]   ;;  %s31061_s6 = inlined_call_operand.vmem [shape: f32[120,1], index: 6, kind: input, shape index: {}]   ;;  %s31062_s7 = inlined_call_operand.vmem [shape: f32[84,120], index: 7, kind: input, shape index: {}]   ;;  %s31063_s8 = inlined_call_operand.vmem [shape: f32[84,1], index: 8, kind: input, shape index: {}]   ;;  %s31064_s9 = inlined_call_operand.vmem [shape: f32[10,84], index: 9, kind: input, shape index: {}]   ;;  %s31065_s10 = inlined_call_operand.vmem [shape: f32[10,1], index: 10, kind: input, shape index: {}]   ;;  %s31066_s11 = inlined_call_operand.vmem [shape: f32[2,10,1], index: 11, kind: output, shape index: {}]  }
   0x1 LB: > { %s21163_s18 = sadd.s32 4294967295, %s24751_s17   ;;  %p21167_p0 = scmp.ge.s32.totalorder %s24751_s17, 1  ;;  %s24751_s17 = sphi %s24841_s17, %s21_s17  }
   0x2   : > { %p337_p1 = scmp.lt.s32.totalorder %s24751_s17, 3 }
   0x4   : > { %p338_p2 = pnand %p21167_p0, %p337_p1 }
   0x6   : > { %341 = sbr.rel (%p338_p2) target bundleno = 3428 (0xd64), region = 64 }
   0xb   : > { %p377_p3 = scmp.lt.s32.totalorder %s21163_s18, 1  ;;  %v31067_v0 = vmov 0.0   ;;  %s24754_s23 = smov 127   ;;  %vm24755_vm0 = vmmov 0   ;;  %vm415_vm1 = vcmask 1039360   ;;  %vm426_vm2 = vcmask 1042432  }
   0xc   : > { %505 = vmatprep.mubr.f32.mxu0 %v31067_v0  ;;  %23136 = vmatprep.subr.mxu1 %v31067_v0  ;;  %s24756_s24 = smov 126   ;;  %s24757_s25 = smov 125   ;;  %v21172_v17 = vld [vmem:[%s31056_s1 + $0x8] sm:$0x3f]  ;;  %vm422_vm3 = vcmask 23552   ;;  %vm1040_vm4 = vcmask 1031168  }
   0xd   : > { %s31229_s18 = smov (!%p377_p3, %s21163_s18), 1  ;;  %23138 = vmatprep.mubr.msk.f32.mxu1 %vm24755_vm0, %v31067_v0  ;;  %s24758_s26 = smov 124   ;;  %v391_v26 = vld [vmem:[%s31056_s1] sm:$0x3f]  ;;  %v21195_v36 = vld [vmem:[%s31056_s1 + $0x10] sm:$0x3f] }
   0xe   : > { %s22545_s19 = sshll.u32 %s31229_s18, 5  ;;  %s24759_s27 = smov 96   ;;  %vm1370_vm5 = vcmask 1022976   ;;  %v21207_v50 = vld [vmem:[%s31056_s1 + $0x18] sm:$0x3f]  ;;  %vm1700_vm6 = vcmask 1014784  }
   0xf   : > { %s24855_s22 = scalar_lea.vmem %s31055_s0, %s22545_s19  ;;  %s24760_s28 = smov 95   ;;  %v21219_v63 = vld [vmem:[%s31056_s1 + $0x20] sm:$0x3f]  ;;  %vm2033_vm7 = vcmask 785408   ;;  %vm2366_vm8 = vcmask 777216   ;;  %vm2699_vm9 = vcmask 769024  }
  0x10   : > { %v24860_v1 = vld [vmem:[%s24855_s22 + $0x8] sm:$0x77]  ;;  %v24863_v2 = vld [vmem:[%s24855_s22] sm:$0x77]  ;;  %v24874_v4 = vld [vmem:[%s24855_s22 + $0x10] sm:$0x77] }
  0x11   : > { %405 = vrot.lane.b32.xlu0 %v24860_v1, %s24754_s23  ;;  %401 = vrot.lane.b32.xlu1 %v24863_v2, %s24754_s23  ;;  %v24871_v3 = vcombine.high %v24860_v1, %v24860_v1  ;;  %v24884_v5 = vcombine.high %v24874_v4, %v24874_v4  ;;  %v24888_v6 = vcombine.high %v24863_v2, %v24863_v2  ;;  %v24895_v7 = vld [vmem:[%s24855_s22 + $0x18] sm:$0x77]  ;;  %s24761_s29 = smov 94   ;;  %s24762_s30 = smov 93   ;;  %vm3032_vm10 = vcmask 760832  }
  0x12   : > { %v24955_v8 = vcombine.high %v24895_v7, %v24895_v7  ;;  %s24763_s12 = smov 92   ;;  %s24764_s19 = smov 64   ;;  %vm3365_vm11 = vcmask 752640   ;;  %vm3698_vm12 = vcmask 523264   ;;  %vm4031_vm13 = vcmask 515072  }
  0x13   : > { %s24766_s14 = smov 62   ;;  %s24767_s20 = smov 61   ;;  %vm4364_vm14 = vcmask 506880   ;;  %vm4697_vm15 = vcmask 498688  }
  0x14   : > { %s24769_s13 = smov 32   ;;  %s24772_s15 = smov 29  }
  0x15   : > { %409 = vrot.lane.b32.xlu0 %v24874_v4, %s24754_s23  ;;  %407 = vrot.lane.b32.xlu1 %v24871_v3, %s24754_s23  ;;  %s24773_s21 = smov 28  }
  0x19   : > { %411 = vrot.lane.b32.xlu1 %v24884_v5, %s24754_s23  ;;  %403 = vrot.lane.b32.xlu0 %v24888_v6, %s24754_s23 }
  0x1d   : > { %1028 = vrot.lane.b32.xlu1 %v24888_v6, %s24756_s24  ;;  %413 = vrot.lane.b32.xlu0 %v24895_v7, %s24754_s23 }
  0x21   : > { %1026 = vrot.lane.b32.xlu1 %v24863_v2, %s24756_s24  ;;  %1030 = vrot.lane.b32.xlu0 %v24860_v1, %s24756_s24 }
  0x25   : > { %1034 = vrot.lane.b32.xlu1 %v24874_v4, %s24756_s24  ;;  %1032 = vrot.lane.b32.xlu0 %v24871_v3, %s24756_s24 }
  0x29   : > { %1038 = vrot.lane.b32.xlu1 %v24895_v7, %s24756_s24  ;;  %1036 = vrot.lane.b32.xlu0 %v24884_v5, %s24756_s24 }
  0x2d   : > { %1360 = vrot.lane.b32.xlu1 %v24860_v1, %s24757_s25  ;;  %1358 = vrot.lane.b32.xlu0 %v24888_v6, %s24757_s25 }
  0x31   : > { %1362 = vrot.lane.b32.xlu1 %v24871_v3, %s24757_s25  ;;  %1356 = vrot.lane.b32.xlu0 %v24863_v2, %s24757_s25 }
  0x35   : > { %1366 = vrot.lane.b32.xlu1 %v24884_v5, %s24757_s25  ;;  %1364 = vrot.lane.b32.xlu0 %v24874_v4, %s24757_s25 }
  0x39   : > { %1688 = vrot.lane.b32.xlu1 %v24888_v6, %s24758_s26  ;;  %1368 = vrot.lane.b32.xlu0 %v24895_v7, %s24757_s25 }
  0x3d   : > { %1686 = vrot.lane.b32.xlu1 %v24863_v2, %s24758_s26  ;;  %1690 = vrot.lane.b32.xlu0 %v24860_v1, %s24758_s26 }
  0x41   : > { %1694 = vrot.lane.b32.xlu1 %v24874_v4, %s24758_s26  ;;  %1692 = vrot.lane.b32.xlu0 %v24871_v3, %s24758_s26 }
  0x45   : > { %1698 = vrot.lane.b32.xlu1 %v24895_v7, %s24758_s26  ;;  %1696 = vrot.lane.b32.xlu0 %v24884_v5, %s24758_s26 }
  0x49   : > { %2021 = vrot.lane.b32.xlu1 %v24860_v1, %s24759_s27  ;;  %2019 = vrot.lane.b32.xlu0 %v24888_v6, %s24759_s27 }
  0x4d   : > { %2023 = vrot.lane.b32.xlu1 %v24871_v3, %s24759_s27  ;;  %2017 = vrot.lane.b32.xlu0 %v24863_v2, %s24759_s27 }
  0x51   : > { %2027 = vrot.lane.b32.xlu1 %v24884_v5, %s24759_s27  ;;  %2025 = vrot.lane.b32.xlu0 %v24874_v4, %s24759_s27 }
  0x55   : > { %2031 = vrot.lane.b32.xlu1 %v24955_v8, %s24759_s27  ;;  %2029 = vrot.lane.b32.xlu0 %v24895_v7, %s24759_s27 }
  0x59   : > { %2354 = vrot.lane.b32.xlu1 %v24860_v1, %s24760_s28  ;;  %2352 = vrot.lane.b32.xlu0 %v24888_v6, %s24760_s28 }
  0x5d   : > { %2356 = vrot.lane.b32.xlu1 %v24871_v3, %s24760_s28  ;;  %2350 = vrot.lane.b32.xlu0 %v24863_v2, %s24760_s28 }
  0x61   : > { %2360 = vrot.lane.b32.xlu1 %v24884_v5, %s24760_s28  ;;  %2358 = vrot.lane.b32.xlu0 %v24874_v4, %s24760_s28 }
  0x65   : > { %2364 = vrot.lane.b32.xlu1 %v24955_v8, %s24760_s28  ;;  %2362 = vrot.lane.b32.xlu0 %v24895_v7, %s24760_s28 }
  0x69   : > { %2687 = vrot.lane.b32.xlu1 %v24860_v1, %s24761_s29  ;;  %2685 = vrot.lane.b32.xlu0 %v24888_v6, %s24761_s29 }
  0x6d   : > { %2689 = vrot.lane.b32.xlu1 %v24871_v3, %s24761_s29  ;;  %2683 = vrot.lane.b32.xlu0 %v24863_v2, %s24761_s29 }
  0x71   : > { %2693 = vrot.lane.b32.xlu1 %v24884_v5, %s24761_s29  ;;  %2691 = vrot.lane.b32.xlu0 %v24874_v4, %s24761_s29 }
  0x75   : > { %2697 = vrot.lane.b32.xlu1 %v24955_v8, %s24761_s29  ;;  %2695 = vrot.lane.b32.xlu0 %v24895_v7, %s24761_s29  ;;  %s24768_s29 = smov 60  }
  0x79   : > { %3020 = vrot.lane.b32.xlu1 %v24860_v1, %s24762_s30  ;;  %3018 = vrot.lane.b32.xlu0 %v24888_v6, %s24762_s30 }
  0x7d   : > { %3022 = vrot.lane.b32.xlu1 %v24871_v3, %s24762_s30  ;;  %3016 = vrot.lane.b32.xlu0 %v24863_v2, %s24762_s30 }
  0x81   : > { %3026 = vrot.lane.b32.xlu1 %v24884_v5, %s24762_s30  ;;  %3024 = vrot.lane.b32.xlu0 %v24874_v4, %s24762_s30 }
  0x83   : > { %v406_v9 = vpop.permute.xlu0 %405  ;;  %v402_v10 = vpop.permute.xlu1 %401 }
  0x85   : > { %3030 = vrot.lane.b32.xlu1 %v24955_v8, %s24762_s30  ;;  %3028 = vrot.lane.b32.xlu0 %v24895_v7, %s24762_s30  ;;  %s24765_s30 = smov 63  }
  0x87   : > { %v410_v11 = vpop.permute.xlu0 %409  ;;  %v408_v12 = vpop.permute.xlu1 %407 }
  0x88   : > { %v25006_v19 = vsel %vm415_vm1, %v408_v12, %v410_v11  ;;  %v25011_v21 = vsel %vm415_vm1, %v406_v9, %v408_v12 }
  0x89   : > { %3353 = vrot.lane.b32.xlu1 %v24860_v1, %s24763_s12  ;;  %3351 = vrot.lane.b32.xlu0 %v24888_v6, %s24763_s12 }
  0x8b   : > { %v412_v13 = vpop.permute.xlu1 %411  ;;  %v404_v14 = vpop.permute.xlu0 %403 }
  0x8c   : > { %v24990_v15 = vsel %vm415_vm1, %v404_v14, %v406_v9  ;;  %v416_v16 = vsel %vm415_vm1, %v402_v10, %v404_v14  ;;  %v25035_v25 = vsel %vm415_vm1, %v410_v11, %v412_v13 }
  0x8d   : > { %3355 = vrot.lane.b32.xlu1 %v24871_v3, %s24763_s12  ;;  %3349 = vrot.lane.b32.xlu0 %v24863_v2, %s24763_s12 }
  0x8e   : > { %21173 = vmatprep.subr.msk.mxu0 %vm426_vm2, %v24990_v15 }
  0x8f   : > { %21174 = vmatpush1.msk.msra.mxu0 %vm426_vm2, %v416_v16  ;;  %v25003_v18 = vpop.permute.xlu1 %1028  ;;  %v25008_v20 = vpop.permute.xlu0 %413 }
  0x90   : > { %21175 = vmatmul.mubr.msk.f32.vlgmr.msra.gmra.mxu0 %vm422_vm3, %v21172_v17  ;;  %21176 = vmatprep.subr.msk.mxu0 %vm426_vm2, %v25006_v19  ;;  %v25018_v22 = vsel %vm415_vm1, %v412_v13, %v25008_v20 }
  0x91   : > { %21177 = vmatpush1.msk.msra.mxu0 %vm426_vm2, %v25011_v21  ;;  %23137 = vmatpush3.msk.msra.mxu1 %vm426_vm2, %v25008_v20 }
  0x92   : > { %3359 = vrot.lane.b32.xlu1 %v24884_v5, %s24763_s12  ;;  %3357 = vrot.lane.b32.xlu0 %v24874_v4, %s24763_s12 }
  0x93   : > { %21179 = vmatprep.subr.msk.mxu0 %vm426_vm2, %v25018_v22  ;;  %23139 = vmatmul.mubr.msk.f32.vlgmr.msra.gmra.mxu1 %vm422_vm3, %v21172_v17  ;;  %v1027_v23 = vpop.permute.xlu1 %1026  ;;  %v1031_v24 = vpop.permute.xlu0 %1030 }
  0x94   : > { %576 = vmatprep.mubr.f32.mxu0 %v31067_v0  ;;  %21187 = vmatprep.subr.msk.mxu1 %vm426_vm2, %v24871_v3  ;;  %v25087_v35 = vsel %vm1040_vm4, %v25003_v18, %v1031_v24  ;;  %v1041_v39 = vsel %vm1040_vm4, %v1027_v23, %v25003_v18  ;;  %v21231_v18 = vld [vmem:[%s31056_s1 + $0x28] sm:$0x3f] }
  0x95   : > { %21178 = vmatmul.mubr.msk.f32.vlgmr.msra.gmra.mxu0 %vm422_vm3, %v21172_v17  ;;  %21188 = vmatpush1.msk.msra.mxu1 %vm426_vm2, %v24860_v1 }
  0x96   : > { %21180 = vmatpush1.msk.msra.mxu0 %vm426_vm2, %v25035_v25  ;;  %876 = vmatprep.mubr.f32.mxu1 %v31067_v0 }
  0x97   : > { %3363 = vrot.lane.b32.xlu1 %v24955_v8, %s24763_s12  ;;  %3361 = vrot.lane.b32.xlu0 %v24895_v7, %s24763_s12  ;;  %v1035_v27 = vpop.permute.xlu1 %1034  ;;  %v1033_v28 = vpop.permute.xlu0 %1032 }
  0x98   : > { %21189 = vmatmul.mubr.msk.f32.vlgmr.msra.gmra.mxu1 %vm422_vm3, %v391_v26  ;;  %647 = vmatprep.mubr.f32.mxu0 %v31067_v0  ;;  %v25059_v29 = vsel %vm1040_vm4, %v1033_v28, %v1035_v27  ;;  %v25068_v32 = vsel %vm1040_vm4, %v1031_v24, %v1033_v28 }
  0x99   : > { %21181 = vmatmul.mubr.msk.f32.vlgmr.msra.gmra.mxu0 %vm422_vm3, %v21172_v17  ;;  %23141 = vmatprep.subr.mxu1 %v31067_v0 }
  0x9a   : > { %21184 = vmatprep.subr.msk.mxu0 %vm426_vm2, %v24888_v6  ;;  %23142 = vmatpush3.msk.msra.mxu1 %vm426_vm2, %v24895_v7 }
  0x9b   : > { %23143 = vmatprep.mubr.msk.f32.mxu1 %vm24755_vm0, %v31067_v0  ;;  %3686 = vrot.lane.b32.xlu1 %v24860_v1, %s24764_s19  ;;  %v25065_v30 = vpop.permute.xlu1 %1038  ;;  %v1037_v31 = vpop.permute.xlu0 %1036 }
  0x9c   : > { %3684 = vrot.lane.b32.xlu0 %v24888_v6, %s24764_s19  ;;  %21185 = vmatpush1.msk.msra.mxu0 %vm426_vm2, %v24863_v2  ;;  %v25110_v40 = vsel %vm1040_vm4, %v1037_v31, %v25065_v30  ;;  %v25122_v43 = vsel %vm1040_vm4, %v1035_v27, %v1037_v31 }
  0x9d   : > { %23144 = vmatmul.mubr.msk.f32.vlgmr.msra.gmra.mxu1 %vm422_vm3, %v391_v26  ;;  %21199 = vmatprep.subr.msk.mxu1 %vm426_vm2, %v25059_v29 }
  0x9e   : > { %805 = vmatprep.mubr.f32.mxu0 %v31067_v0  ;;  %21190 = vmatprep.subr.msk.mxu0 %vm426_vm2, %v24884_v5 }
  0x9f   : > { %21200 = vmatpush1.msk.msra.mxu1 %vm426_vm2, %v25068_v32  ;;  %21186 = vmatmul.mubr.msk.f32.vlgmr.msra.gmra.mxu0 %vm422_vm3, %v391_v26  ;;  %v1361_v33 = vpop.permute.xlu1 %1360  ;;  %v1359_v34 = vpop.permute.xlu0 %1358 }
  0xa0   : > { %21191 = vmatpush1.msk.msra.mxu0 %vm426_vm2, %v24874_v4  ;;  %1199 = vmatprep.mubr.f32.mxu1 %v31067_v0  ;;  %v25132_v45 = vsel %vm1370_vm5, %v1359_v34, %v1361_v33 }
  0xa1   : > { %21196 = vmatprep.subr.msk.mxu0 %vm426_vm2, %v25087_v35  ;;  %23146 = vmatprep.subr.mxu1 %v31067_v0 }
  0xa2   : > { %3688 = vrot.lane.b32.xlu1 %v24871_v3, %s24764_s19  ;;  %3682 = vrot.lane.b32.xlu0 %v24863_v2, %s24764_s19 }
  0xa3   : > { %21201 = vmatmul.mubr.msk.f32.vlgmr.msra.gmra.mxu1 %vm422_vm3, %v21195_v36  ;;  %947 = vmatprep.mubr.f32.mxu0 %v31067_v0  ;;  %v1363_v37 = vpop.permute.xlu1 %1362  ;;  %v1357_v38 = vpop.permute.xlu0 %1356 }
  0xa4   : > { %23147 = vmatpush3.msk.msra.mxu1 %vm426_vm2, %v25065_v30  ;;  %21192 = vmatmul.mubr.msk.f32.vlgmr.msra.gmra.mxu0 %vm422_vm3, %v391_v26  ;;  %v25140_v46 = vsel %vm1370_vm5, %v1361_v33, %v1363_v37  ;;  %v1371_v49 = vsel %vm1370_vm5, %v1357_v38, %v1359_v34 }
  0xa5   : > { %21197 = vmatpush1.msk.msra.mxu0 %vm426_vm2, %v1041_v39  ;;  %1128 = vmatprep.mubr.f32.mxu0 %v31067_v0 }
  0xa6   : > { %21202 = vmatprep.subr.msk.mxu0 %vm426_vm2, %v25110_v40  ;;  %3692 = vrot.lane.b32.xlu1 %v24884_v5, %s24764_s19 }
  0xa7   : > { %3690 = vrot.lane.b32.xlu0 %v24874_v4, %s24764_s19  ;;  %v1367_v41 = vpop.permute.xlu1 %1366  ;;  %23148 = vmatprep.mubr.msk.f32.mxu1 %vm24755_vm0, %v31067_v0  ;;  %v1365_v42 = vpop.permute.xlu0 %1364 }
  0xa8   : > { %21198 = vmatmul.mubr.msk.f32.vlgmr.msra.gmra.mxu0 %vm422_vm3, %v21195_v36  ;;  %23149 = vmatmul.mubr.msk.f32.vlgmr.msra.gmra.mxu1 %vm422_vm3, %v21195_v36  ;;  %v25127_v44 = vsel %vm1370_vm5, %v1363_v37, %v1365_v42  ;;  %v25171_v54 = vsel %vm1370_vm5, %v1365_v42, %v1367_v41 }
  0xa9   : > { %21203 = vmatpush1.msk.msra.mxu0 %vm426_vm2, %v25122_v43  ;;  %1270 = vmatprep.mubr.f32.mxu0 %v31067_v0 }
  0xaa   : > { %21208 = vmatprep.subr.msk.mxu0 %vm426_vm2, %v25132_v45  ;;  %3696 = vrot.lane.b32.xlu1 %v24955_v8, %s24764_s19 }
  0xab   : > { %3694 = vrot.lane.b32.xlu0 %v24895_v7, %s24764_s19  ;;  %21211 = vmatprep.subr.msk.mxu1 %vm426_vm2, %v25127_v44  ;;  %v1689_v47 = vpop.permute.xlu1 %1688  ;;  %v25146_v48 = vpop.permute.xlu0 %1368 }
  0xac   : > { %21204 = vmatmul.mubr.msk.f32.vlgmr.msra.gmra.mxu0 %vm422_vm3, %v21195_v36  ;;  %21212 = vmatpush1.msk.msra.mxu1 %vm426_vm2, %v25140_v46  ;;  %v25162_v51 = vsel %vm1370_vm5, %v1367_v41, %v25146_v48 }
  0xad   : > { %21209 = vmatpush1.msk.msra.mxu0 %vm426_vm2, %v1371_v49  ;;  %1529 = vmatprep.mubr.f32.mxu1 %v31067_v0 }
  0xae   : > { %4019 = vrot.lane.b32.xlu1 %v24860_v1, %s24765_s30  ;;  %23151 = vmatprep.subr.mxu1 %v31067_v0 }
  0xaf   : > { %4017 = vrot.lane.b32.xlu0 %v24888_v6, %s24765_s30  ;;  %21213 = vmatmul.mubr.msk.f32.vlgmr.msra.gmra.mxu1 %vm422_vm3, %v21207_v50  ;;  %v1687_v52 = vpop.permute.xlu1 %1686  ;;  %v1691_v53 = vpop.permute.xlu0 %1690 }
  0xb0   : > { %23152 = vmatpush3.msk.msra.mxu1 %vm426_vm2, %v25146_v48  ;;  %1458 = vmatprep.mubr.f32.mxu0 %v31067_v0  ;;  %v25177_v55 = vsel %vm1700_vm6, %v1689_v47, %v1691_v53  ;;  %v1701_v56 = vsel %vm1700_vm6, %v1687_v52, %v1689_v47  ;;  %v21243_v47 = vld [vmem:[%s31056_s1 + $0x30] sm:$0x3f] }
  0xb1   : > { %21214 = vmatprep.subr.msk.mxu0 %vm426_vm2, %v25162_v51  ;;  %21210 = vmatmul.mubr.msk.f32.vlgmr.msra.gmra.mxu0 %vm422_vm3, %v21207_v50 }
  0xb2   : > { %4021 = vrot.lane.b32.xlu1 %v24871_v3, %s24765_s30  ;;  %21215 = vmatpush1.msk.msra.mxu0 %vm426_vm2, %v25171_v54 }
  0xb3   : > { %4015 = vrot.lane.b32.xlu0 %v24863_v2, %s24765_s30  ;;  %1600 = vmatprep.mubr.f32.mxu0 %v31067_v0  ;;  %v1695_v57 = vpop.permute.xlu1 %1694  ;;  %v1693_v58 = vpop.permute.xlu0 %1692 }
  0xb4   : > { %21220 = vmatprep.subr.msk.mxu0 %vm426_vm2, %v25177_v55  ;;  %23153 = vmatprep.mubr.msk.f32.mxu1 %vm24755_vm0, %v31067_v0  ;;  %v25192_v59 = vsel %vm1700_vm6, %v1693_v58, %v1695_v57  ;;  %v25196_v60 = vsel %vm1700_vm6, %v1691_v53, %v1693_v58 }
  0xb5   : > { %21216 = vmatmul.mubr.msk.f32.vlgmr.msra.gmra.mxu0 %vm422_vm3, %v21207_v50  ;;  %23154 = vmatmul.mubr.msk.f32.vlgmr.msra.gmra.mxu1 %vm422_vm3, %v21207_v50 }
  0xb6   : > { %4025 = vrot.lane.b32.xlu1 %v24884_v5, %s24765_s30  ;;  %21221 = vmatpush1.msk.msra.mxu0 %vm426_vm2, %v1701_v56 }
  0xb7   : > { %4023 = vrot.lane.b32.xlu0 %v24874_v4, %s24765_s30  ;;  %21223 = vmatprep.subr.msk.mxu1 %vm426_vm2, %v25192_v59  ;;  %v25206_v61 = vpop.permute.xlu1 %1698  ;;  %v1697_v62 = vpop.permute.xlu0 %1696 }
  0xb8   : > { %21224 = vmatpush1.msk.msra.mxu1 %vm426_vm2, %v25196_v60  ;;  %1859 = vmatprep.mubr.f32.mxu1 %v31067_v0  ;;  %v25216_v9 = vsel %vm1700_vm6, %v1697_v62, %v25206_v61  ;;  %v25223_v10 = vsel %vm1700_vm6, %v1695_v57, %v1697_v62 }
  0xb9   : > { %23156 = vmatprep.subr.mxu1 %v31067_v0  ;;  %1788 = vmatprep.mubr.f32.mxu0 %v31067_v0 }
  0xba   : > { %4029 = vrot.lane.b32.xlu1 %v24955_v8, %s24765_s30  ;;  %21225 = vmatmul.mubr.msk.f32.vlgmr.msra.gmra.mxu1 %vm422_vm3, %v21219_v63 }
  0xbb   : > { %4027 = vrot.lane.b32.xlu0 %v24895_v7, %s24765_s30  ;;  %21226 = vmatprep.subr.msk.mxu0 %vm426_vm2, %v25216_v9  ;;  %v2022_v11 = vpop.permute.xlu1 %2021  ;;  %v2020_v12 = vpop.permute.xlu0 %2019  ;;  %s24771_s30 = smov 30  }
  0xbc   : > { %23157 = vmatpush3.msk.msra.mxu1 %vm426_vm2, %v25206_v61  ;;  %21222 = vmatmul.mubr.msk.f32.vlgmr.msra.gmra.mxu0 %vm422_vm3, %v21219_v63  ;;  %v2035_v13 = vsel %vm2033_vm7, %v2020_v12, %v2022_v11 }
  0xbd   : > { %21227 = vmatpush1.msk.msra.mxu0 %vm426_vm2, %v25223_v10  ;;  %1930 = vmatprep.mubr.f32.mxu0 %v31067_v0 }
  0xbe   : > { %4352 = vrot.lane.b32.xlu1 %v24860_v1, %s24766_s14  ;;  %21232 = vmatprep.subr.msk.mxu0 %vm426_vm2, %v2035_v13 }
  0xbf   : > { %4350 = vrot.lane.b32.xlu0 %v24888_v6, %s24766_s14  ;;  %v2024_v14 = vpop.permute.xlu1 %2023  ;;  %v2018_v16 = vpop.permute.xlu0 %2017  ;;  %23158 = vmatprep.mubr.msk.f32.mxu1 %vm24755_vm0, %v31067_v0 }
  0xc0   : > { %v2034_v17 = vsel %vm2033_vm7, %v2018_v16, %v2020_v12  ;;  %21228 = vmatmul.mubr.msk.f32.vlgmr.msra.gmra.mxu0 %vm422_vm3, %v21219_v63  ;;  %23159 = vmatmul.mubr.msk.f32.vlgmr.msra.gmra.mxu1 %vm422_vm3, %v21219_v63  ;;  %v2036_v27 = vsel %vm2033_vm7, %v2022_v11, %v2024_v14 }
  0xc1   : > { %21233 = vmatpush1.msk.msra.mxu0 %vm426_vm2, %v2034_v17  ;;  %2193 = vmatprep.mubr.f32.mxu1 %v31067_v0 }
  0xc2   : > { %4354 = vrot.lane.b32.xlu1 %v24871_v3, %s24766_s14  ;;  %2122 = vmatprep.mubr.f32.mxu0 %v31067_v0 }
  0xc3   : > { %4348 = vrot.lane.b32.xlu0 %v24863_v2, %s24766_s14  ;;  %v2028_v23 = vpop.permute.xlu1 %2027  ;;  %v2026_v24 = vpop.permute.xlu0 %2025 }
  0xc4   : > { %v2037_v26 = vsel %vm2033_vm7, %v2024_v14, %v2026_v24  ;;  %21234 = vmatmul.mubr.msk.f32.vlgmr.msra.gmra.mxu0 %vm422_vm3, %v21231_v18  ;;  %v2038_v36 = vsel %vm2033_vm7, %v2026_v24, %v2028_v23 }
  0xc5   : > { %21235 = vmatprep.subr.msk.mxu1 %vm426_vm2, %v2037_v26  ;;  %2264 = vmatprep.mubr.f32.mxu0 %v31067_v0 }
  0xc6   : > { %4358 = vrot.lane.b32.xlu1 %v24884_v5, %s24766_s14  ;;  %21236 = vmatpush1.msk.msra.mxu1 %vm426_vm2, %v2036_v27 }
  0xc7   : > { %4356 = vrot.lane.b32.xlu0 %v24874_v4, %s24766_s14  ;;  %v2032_v28 = vpop.permute.xlu1 %2031  ;;  %v2030_v31 = vpop.permute.xlu0 %2029  ;;  %23161 = vmatprep.subr.mxu1 %v31067_v0 }
  0xc8   : > { %v2040_v33 = vsel %vm2033_vm7, %v2030_v31, %v2032_v28  ;;  %21237 = vmatmul.mubr.msk.f32.vlgmr.msra.gmra.mxu1 %vm422_vm3, %v21231_v18  ;;  %v2039_v34 = vsel %vm2033_vm7, %v2028_v23, %v2030_v31 }
  0xc9   : > { %21238 = vmatprep.subr.msk.mxu0 %vm426_vm2, %v2039_v34  ;;  %23162 = vmatpush3.msk.msra.mxu1 %vm426_vm2, %v2040_v33 }
  0xca   : > { %4362 = vrot.lane.b32.xlu1 %v24955_v8, %s24766_s14  ;;  %21239 = vmatpush1.msk.msra.mxu0 %vm426_vm2, %v2038_v36 }
  0xcb   : > { %4360 = vrot.lane.b32.xlu0 %v24895_v7, %s24766_s14  ;;  %v2355_v37 = vpop.permute.xlu1 %2354  ;;  %v2353_v38 = vpop.permute.xlu0 %2352  ;;  %21240 = vmatmul.mubr.msk.f32.vlgmr.msra.gmra.mxu0 %vm422_vm3, %v21231_v18 }
  0xcc   : > { %v2368_v39 = vsel %vm2366_vm8, %v2353_v38, %v2355_v37  ;;  %23163 = vmatprep.mubr.msk.f32.mxu1 %vm24755_vm0, %v31067_v0  ;;  %2455 = vmatprep.mubr.f32.mxu0 %v31067_v0 }
  0xcd   : > { %21244 = vmatprep.subr.msk.mxu0 %vm426_vm2, %v2368_v39  ;;  %23164 = vmatmul.mubr.msk.f32.vlgmr.msra.gmra.mxu1 %vm422_vm3, %v21231_v18  ;;  %v21255_v18 = vld [vmem:[%s31056_s1 + $0x38] sm:$0x3f] }
  0xce   : > { %4685 = vrot.lane.b32.xlu1 %v24860_v1, %s24767_s20  ;;  %2526 = vmatprep.mubr.f32.mxu1 %v31067_v0 }
  0xcf   : > { %4683 = vrot.lane.b32.xlu0 %v24888_v6, %s24767_s20  ;;  %v2357_v41 = vpop.permute.xlu1 %2356  ;;  %v2351_v42 = vpop.permute.xlu0 %2350 }
  0xd0   : > { %v2367_v49 = vsel %vm2366_vm8, %v2351_v42, %v2353_v38  ;;  %v2369_v56 = vsel %vm2366_vm8, %v2355_v37, %v2357_v41 }
  0xd1   : > { %21245 = vmatpush1.msk.msra.mxu0 %vm426_vm2, %v2367_v49  ;;  %v21267_v49 = vld [vmem:[%s31056_s1 + $0x40] sm:$0x3f] }
  0xd2   : > { %4687 = vrot.lane.b32.xlu1 %v24871_v3, %s24767_s20  ;;  %21246 = vmatmul.mubr.msk.f32.vlgmr.msra.gmra.mxu0 %vm422_vm3, %v21243_v47 }
  0xd3   : > { %4681 = vrot.lane.b32.xlu0 %v24863_v2, %s24767_s20  ;;  %v2361_v50 = vpop.permute.xlu1 %2360  ;;  %v2359_v52 = vpop.permute.xlu0 %2358  ;;  %2597 = vmatprep.mubr.f32.mxu0 %v31067_v0 }
  0xd4   : > { %v2370_v53 = vsel %vm2366_vm8, %v2357_v41, %v2359_v52  ;;  %v2371_v11 = vsel %vm2366_vm8, %v2359_v52, %v2361_v50 }
  0xd5   : > { %21247 = vmatprep.subr.msk.mxu1 %vm426_vm2, %v2370_v53 }
  0xd6   : > { %4691 = vrot.lane.b32.xlu1 %v24884_v5, %s24767_s20  ;;  %21248 = vmatpush1.msk.msra.mxu1 %vm426_vm2, %v2369_v56 }
  0xd7   : > { %4689 = vrot.lane.b32.xlu0 %v24874_v4, %s24767_s20  ;;  %v2365_v57 = vpop.permute.xlu1 %2364  ;;  %v2363_v58 = vpop.permute.xlu0 %2362  ;;  %23166 = vmatprep.subr.mxu1 %v31067_v0 }
  0xd8   : > { %v2373_v62 = vsel %vm2366_vm8, %v2363_v58, %v2365_v57  ;;  %21249 = vmatmul.mubr.msk.f32.vlgmr.msra.gmra.mxu1 %vm422_vm3, %v21243_v47  ;;  %v2372_v63 = vsel %vm2366_vm8, %v2361_v50, %v2363_v58  ;;  %vm5030_vm8 = vcmask 490496  }
  0xd9   : > { %21250 = vmatprep.subr.msk.mxu0 %vm426_vm2, %v2372_v63  ;;  %23167 = vmatpush3.msk.msra.mxu1 %vm426_vm2, %v2373_v62 }
  0xda   : > { %4695 = vrot.lane.b32.xlu1 %v24955_v8, %s24767_s20  ;;  %21251 = vmatpush1.msk.msra.mxu0 %vm426_vm2, %v2371_v11 }
  0xdb   : > { %4693 = vrot.lane.b32.xlu0 %v24895_v7, %s24767_s20  ;;  %v2688_v12 = vpop.permute.xlu1 %2687  ;;  %v2686_v13 = vpop.permute.xlu0 %2685  ;;  %21252 = vmatmul.mubr.msk.f32.vlgmr.msra.gmra.mxu0 %vm422_vm3, %v21243_v47  ;;  %s24770_s20 = smov 31  }
  0xdc   : > { %v2701_v14 = vsel %vm2699_vm9, %v2686_v13, %v2688_v12  ;;  %23168 = vmatprep.mubr.msk.f32.mxu1 %vm24755_vm0, %v31067_v0  ;;  %2788 = vmatprep.mubr.f32.mxu0 %v31067_v0 }
  0xdd   : > { %21256 = vmatprep.subr.msk.mxu0 %vm426_vm2, %v2701_v14  ;;  %23169 = vmatmul.mubr.msk.f32.vlgmr.msra.gmra.mxu1 %vm422_vm3, %v21243_v47 }
  0xde   : > { %5018 = vrot.lane.b32.xlu1 %v24860_v1, %s24768_s29  ;;  %2859 = vmatprep.mubr.f32.mxu1 %v31067_v0 }
  0xdf   : > { %5016 = vrot.lane.b32.xlu0 %v24888_v6, %s24768_s29  ;;  %v2690_v16 = vpop.permute.xlu1 %2689  ;;  %v2684_v17 = vpop.permute.xlu0 %2683 }
  0xe0   : > { %v2700_v23 = vsel %vm2699_vm9, %v2684_v17, %v2686_v13  ;;  %v2702_v28 = vsel %vm2699_vm9, %v2688_v12, %v2690_v16 }
  0xe1   : > { %21257 = vmatpush1.msk.msra.mxu0 %vm426_vm2, %v2700_v23  ;;  %v21279_v23 = vld [vmem:[%s31056_s1 + $0x48] sm:$0x3f] }
  0xe2   : > { %5020 = vrot.lane.b32.xlu1 %v24871_v3, %s24768_s29  ;;  %21258 = vmatmul.mubr.msk.f32.vlgmr.msra.gmra.mxu0 %vm422_vm3, %v21255_v18 }
  0xe3   : > { %5014 = vrot.lane.b32.xlu0 %v24863_v2, %s24768_s29  ;;  %v2694_v24 = vpop.permute.xlu1 %2693  ;;  %v2692_v26 = vpop.permute.xlu0 %2691  ;;  %2930 = vmatprep.mubr.f32.mxu0 %v31067_v0 }
  0xe4   : > { %v2703_v27 = vsel %vm2699_vm9, %v2690_v16, %v2692_v26  ;;  %v2704_v37 = vsel %vm2699_vm9, %v2692_v26, %v2694_v24 }
  0xe5   : > { %21259 = vmatprep.subr.msk.mxu1 %vm426_vm2, %v2703_v27 }
  0xe6   : > { %5024 = vrot.lane.b32.xlu1 %v24884_v5, %s24768_s29  ;;  %21260 = vmatpush1.msk.msra.mxu1 %vm426_vm2, %v2702_v28 }
  0xe7   : > { %5022 = vrot.lane.b32.xlu0 %v24874_v4, %s24768_s29  ;;  %v2698_v31 = vpop.permute.xlu1 %2697  ;;  %v2696_v33 = vpop.permute.xlu0 %2695  ;;  %23171 = vmatprep.subr.mxu1 %v31067_v0 }
  0xe8   : > { %v2706_v34 = vsel %vm2699_vm9, %v2696_v33, %v2698_v31  ;;  %21261 = vmatmul.mubr.msk.f32.vlgmr.msra.gmra.mxu1 %vm422_vm3, %v21255_v18  ;;  %v2705_v36 = vsel %vm2699_vm9, %v2694_v24, %v2696_v33  ;;  %vm5363_vm9 = vcmask 261120  }
  0xe9   : > { %21262 = vmatprep.subr.msk.mxu0 %vm426_vm2, %v2705_v36  ;;  %23172 = vmatpush3.msk.msra.mxu1 %vm426_vm2, %v2706_v34 }
  0xea   : > { %5028 = vrot.lane.b32.xlu1 %v24955_v8, %s24768_s29  ;;  %21263 = vmatpush1.msk.msra.mxu0 %vm426_vm2, %v2704_v37 }
  0xeb   : > { %5026 = vrot.lane.b32.xlu0 %v24895_v7, %s24768_s29  ;;  %v3021_v38 = vpop.permute.xlu1 %3020  ;;  %v3019_v39 = vpop.permute.xlu0 %3018  ;;  %21264 = vmatmul.mubr.msk.f32.vlgmr.msra.gmra.mxu0 %vm422_vm3, %v21255_v18 }
  0xec   : > { %v3034_v41 = vsel %vm3032_vm10, %v3019_v39, %v3021_v38  ;;  %23173 = vmatprep.mubr.msk.f32.mxu1 %vm24755_vm0, %v31067_v0  ;;  %3121 = vmatprep.mubr.f32.mxu0 %v31067_v0 }
  0xed   : > { %21268 = vmatprep.subr.msk.mxu0 %vm426_vm2, %v3034_v41  ;;  %23174 = vmatmul.mubr.msk.f32.vlgmr.msra.gmra.mxu1 %vm422_vm3, %v21255_v18 }
  0xee   : > { %5351 = vrot.lane.b32.xlu1 %v24860_v1, %s24769_s13  ;;  %3192 = vmatprep.mubr.f32.mxu1 %v31067_v0 }
  0xef   : > { %5349 = vrot.lane.b32.xlu0 %v24888_v6, %s24769_s13  ;;  %v3023_v42 = vpop.permute.xlu1 %3022  ;;  %v3017_v47 = vpop.permute.xlu0 %3016 }
  0xf0   : > { %v3033_v50 = vsel %vm3032_vm10, %v3017_v47, %v3019_v39  ;;  %v3035_v57 = vsel %vm3032_vm10, %v3021_v38, %v3023_v42 }
  0xf1   : > { %21269 = vmatpush1.msk.msra.mxu0 %vm426_vm2, %v3033_v50  ;;  %v21291_v50 = vld [vmem:[%s31056_s1 + $0x50] sm:$0x3f] }
  0xf2   : > { %5353 = vrot.lane.b32.xlu1 %v24871_v3, %s24769_s13  ;;  %21270 = vmatmul.mubr.msk.f32.vlgmr.msra.gmra.mxu0 %vm422_vm3, %v21267_v49 }
  0xf3   : > { %5347 = vrot.lane.b32.xlu0 %v24863_v2, %s24769_s13  ;;  %v3027_v52 = vpop.permute.xlu1 %3026  ;;  %v3025_v53 = vpop.permute.xlu0 %3024  ;;  %3263 = vmatprep.mubr.f32.mxu0 %v31067_v0 }
  0xf4   : > { %v3036_v56 = vsel %vm3032_vm10, %v3023_v42, %v3025_v53  ;;  %v3037_v12 = vsel %vm3032_vm10, %v3025_v53, %v3027_v52 }
  0xf5   : > { %21271 = vmatprep.subr.msk.mxu1 %vm426_vm2, %v3036_v56 }
  0xf6   : > { %5357 = vrot.lane.b32.xlu1 %v24884_v5, %s24769_s13  ;;  %21272 = vmatpush1.msk.msra.mxu1 %vm426_vm2, %v3035_v57 }
  0xf7   : > { %5355 = vrot.lane.b32.xlu0 %v24874_v4, %s24769_s13  ;;  %v3031_v58 = vpop.permute.xlu1 %3030  ;;  %v3029_v62 = vpop.permute.xlu0 %3028  ;;  %23176 = vmatprep.subr.mxu1 %v31067_v0 }
  0xf8   : > { %v3039_v63 = vsel %vm3032_vm10, %v3029_v62, %v3031_v58  ;;  %21273 = vmatmul.mubr.msk.f32.vlgmr.msra.gmra.mxu1 %vm422_vm3, %v21267_v49  ;;  %v3038_v11 = vsel %vm3032_vm10, %v3027_v52, %v3029_v62  ;;  %vm5696_vm10 = vcmask 252928  }
  0xf9   : > { %21274 = vmatprep.subr.msk.mxu0 %vm426_vm2, %v3038_v11  ;;  %23177 = vmatpush3.msk.msra.mxu1 %vm426_vm2, %v3039_v63 }
  0xfa   : > { %5361 = vrot.lane.b32.xlu1 %v24955_v8, %s24769_s13  ;;  %21275 = vmatpush1.msk.msra.mxu0 %vm426_vm2, %v3037_v12 }
  0xfb   : > { %5359 = vrot.lane.b32.xlu0 %v24895_v7, %s24769_s13  ;;  %v3354_v13 = vpop.permute.xlu1 %3353  ;;  %v3352_v14 = vpop.permute.xlu0 %3351  ;;  %21276 = vmatmul.mubr.msk.f32.vlgmr.msra.gmra.mxu0 %vm422_vm3, %v21267_v49 }
  0xfc   : > { %v3367_v16 = vsel %vm3365_vm11, %v3352_v14, %v3354_v13  ;;  %23178 = vmatprep.mubr.msk.f32.mxu1 %vm24755_vm0, %v31067_v0  ;;  %3454 = vmatprep.mubr.f32.mxu0 %v31067_v0 }
  0xfd   : > { %21280 = vmatprep.subr.msk.mxu0 %vm426_vm2, %v3367_v16  ;;  %23179 = vmatmul.mubr.msk.f32.vlgmr.msra.gmra.mxu1 %vm422_vm3, %v21267_v49 }
  0xfe   : > { %5684 = vrot.lane.b32.xlu1 %v24860_v1, %s24770_s20  ;;  %3525 = vmatprep.mubr.f32.mxu1 %v31067_v0 }
  0xff   : > { %5682 = vrot.lane.b32.xlu0 %v24888_v6, %s24770_s20  ;;  %v3356_v17 = vpop.permute.xlu1 %3355  ;;  %v3350_v18 = vpop.permute.xlu0 %3349 }
 0x100   : > { %v3366_v24 = vsel %vm3365_vm11, %v3350_v18, %v3352_v14  ;;  %v3368_v31 = vsel %vm3365_vm11, %v3354_v13, %v3356_v17 }
 0x101   : > { %21281 = vmatpush1.msk.msra.mxu0 %vm426_vm2, %v3366_v24 }
 0x102   : > { %5686 = vrot.lane.b32.xlu1 %v24871_v3, %s24770_s20  ;;  %21282 = vmatmul.mubr.msk.f32.vlgmr.msra.gmra.mxu0 %vm422_vm3, %v21279_v23 }
 0x103   : > { %5680 = vrot.lane.b32.xlu0 %v24863_v2, %s24770_s20  ;;  %3596 = vmatprep.mubr.f32.mxu0 %v31067_v0 }
 0x104   : > { %v3360_v26 = vpop.permute.xlu1 %3359  ;;  %v3358_v27 = vpop.permute.xlu0 %3357 }
 0x105   : > { %v3369_v28 = vsel %vm3365_vm11, %v3356_v17, %v3358_v27  ;;  %v3370_v38 = vsel %vm3365_vm11, %v3358_v27, %v3360_v26 }
 0x106   : > { %5690 = vrot.lane.b32.xlu1 %v24884_v5, %s24770_s20  ;;  %21283 = vmatprep.subr.msk.mxu1 %vm426_vm2, %v3369_v28 }
 0x107   : > { %5688 = vrot.lane.b32.xlu0 %v24874_v4, %s24770_s20  ;;  %21284 = vmatpush1.msk.msra.mxu1 %vm426_vm2, %v3368_v31 }
 0x108   : > { %23181 = vmatprep.subr.mxu1 %v31067_v0  ;;  %21285 = vmatmul.mubr.msk.f32.vlgmr.msra.gmra.mxu1 %vm422_vm3, %v21279_v23 }
 0x109   : > { %v3364_v33 = vpop.permute.xlu1 %3363  ;;  %v3362_v34 = vpop.permute.xlu0 %3361  ;;  %23183 = vmatprep.mubr.msk.f32.mxu1 %vm24755_vm0, %v31067_v0 }
 0x10a   : > { %5694 = vrot.lane.b32.xlu1 %v24955_v8, %s24770_s20  ;;  %v3372_v36 = vsel %vm3365_vm11, %v3362_v34, %v3364_v33  ;;  %v3371_v37 = vsel %vm3365_vm11, %v3360_v26, %v3362_v34  ;;  %v25517_v34 = vld [vmem:[%s24855_s22 + $0x8] sm:$0x77]  ;;  %vm6029_vm11 = vcmask 244736  }
 0x10b   : > { %5692 = vrot.lane.b32.xlu0 %v24895_v7, %s24770_s20  ;;  %21286 = vmatprep.subr.msk.mxu0 %vm426_vm2, %v3371_v37  ;;  %s24777_s20 = smov 58  }
 0x10c   : > { %23182 = vmatpush3.msk.msra.mxu1 %vm426_vm2, %v3372_v36  ;;  %21287 = vmatpush1.msk.msra.mxu0 %vm426_vm2, %v3370_v38 }
 0x10d   : > { %v3687_v39 = vpop.permute.xlu1 %3686  ;;  %21288 = vmatmul.mubr.msk.f32.vlgmr.msra.gmra.mxu0 %vm422_vm3, %v21279_v23  ;;  %23184 = vmatmul.mubr.msk.f32.vlgmr.msra.gmra.mxu1 %vm422_vm3, %v21279_v23  ;;  %v21303_v23 = vld [vmem:[%s31056_s1 + $0x58] sm:$0x3f] }
 0x10e   : > { %6017 = vrot.lane.b32.xlu1 %v24860_v1, %s24771_s30  ;;  %v3685_v41 = vpop.permute.xlu0 %3684  ;;  %3858 = vmatprep.mubr.f32.mxu1 %v31067_v0 }
 0x10f   : > { %6015 = vrot.lane.b32.xlu0 %v24888_v6, %s24771_s30  ;;  %v3700_v42 = vsel %vm3698_vm12, %v3685_v41, %v3687_v39  ;;  %3787 = vmatprep.mubr.f32.mxu0 %v31067_v0 }
 0x110   : > { %21292 = vmatprep.subr.msk.mxu0 %vm426_vm2, %v3700_v42 }
 0x112   : > { %6019 = vrot.lane.b32.xlu1 %v24871_v3, %s24771_s30 }
 0x113   : > { %6013 = vrot.lane.b32.xlu0 %v24863_v2, %s24771_s30 }
 0x114   : > { %v3689_v47 = vpop.permute.xlu1 %3688  ;;  %v3683_v49 = vpop.permute.xlu0 %3682 }
 0x115   : > { %v3699_v52 = vsel %vm3698_vm12, %v3683_v49, %v3685_v41  ;;  %v3701_v58 = vsel %vm3698_vm12, %v3687_v39, %v3689_v47  ;;  %v24742_v41 = vld [vmem:[%s24855_s22] sm:$0x77] }
 0x116   : > { %6023 = vrot.lane.b32.xlu1 %v24884_v5, %s24771_s30  ;;  %21293 = vmatpush1.msk.msra.mxu0 %vm426_vm2, %v3699_v52  ;;  %v21315_v49 = vld [vmem:[%s31056_s1 + $0x60] sm:$0x3f]  ;;  %v25547_v52 = vld [vmem:[%s24855_s22 + $0x10] sm:$0x77] }
 0x117   : > { %6021 = vrot.lane.b32.xlu0 %v24874_v4, %s24771_s30  ;;  %21294 = vmatmul.mubr.msk.f32.vlgmr.msra.gmra.mxu0 %vm422_vm3, %v21291_v50 }
 0x118   : > { %v3693_v53 = vpop.permute.xlu1 %3692  ;;  %3929 = vmatprep.mubr.f32.mxu0 %v31067_v0 }
 0x119   : > { %v3691_v56 = vpop.permute.xlu0 %3690 }
 0x11a   : > { %6027 = vrot.lane.b32.xlu1 %v24955_v8, %s24771_s30  ;;  %v3702_v57 = vsel %vm3698_vm12, %v3689_v47, %v3691_v56  ;;  %v3703_v13 = vsel %vm3698_vm12, %v3691_v56, %v3693_v53 }
 0x11b   : > { %6025 = vrot.lane.b32.xlu0 %v24895_v7, %s24771_s30  ;;  %21295 = vmatprep.subr.msk.mxu1 %vm426_vm2, %v3702_v57 }
 0x11c   : > { %21296 = vmatpush1.msk.msra.mxu1 %vm426_vm2, %v3701_v58  ;;  %v3697_v62 = vpop.permute.xlu1 %3696 }
 0x11d   : > { %v3695_v63 = vpop.permute.xlu0 %3694  ;;  %23186 = vmatprep.subr.mxu1 %v31067_v0  ;;  %21297 = vmatmul.mubr.msk.f32.vlgmr.msra.gmra.mxu1 %vm422_vm3, %v21291_v50 }
 0x11e   : > { %v3705_v11 = vsel %vm3698_vm12, %v3695_v63, %v3697_v62  ;;  %6350 = vrot.lane.b32.xlu1 %v24860_v1, %s24772_s15  ;;  %v3704_v12 = vsel %vm3698_vm12, %v3693_v53, %v3695_v63  ;;  %23188 = vmatprep.mubr.msk.f32.mxu1 %vm24755_vm0, %v31067_v0  ;;  %v25559_v62 = vld [vmem:[%s24855_s22 + $0x18] sm:$0x77] }
 0x11f   : > { %6348 = vrot.lane.b32.xlu0 %v24888_v6, %s24772_s15  ;;  %21298 = vmatprep.subr.msk.mxu0 %vm426_vm2, %v3704_v12 }
 0x120   : > { %23187 = vmatpush3.msk.msra.mxu1 %vm426_vm2, %v3705_v11  ;;  %21299 = vmatpush1.msk.msra.mxu0 %vm426_vm2, %v3703_v13  ;;  %v4020_v14 = vpop.permute.xlu1 %4019 }
 0x121   : > { %v4018_v16 = vpop.permute.xlu0 %4017  ;;  %21300 = vmatmul.mubr.msk.f32.vlgmr.msra.gmra.mxu0 %vm422_vm3, %v21291_v50  ;;  %23189 = vmatmul.mubr.msk.f32.vlgmr.msra.gmra.mxu1 %vm422_vm3, %v21291_v50 }
 0x122   : > { %6352 = vrot.lane.b32.xlu1 %v24871_v3, %s24772_s15  ;;  %v4033_v1 = vsel %vm4031_vm13, %v4018_v16, %v4020_v14  ;;  %4120 = vmatprep.mubr.f32.mxu0 %v31067_v0 }
 0x123   : > { %6346 = vrot.lane.b32.xlu0 %v24863_v2, %s24772_s15  ;;  %21304 = vmatprep.subr.msk.mxu0 %vm426_vm2, %v4033_v1 }
 0x124   : > { %v4022_v17 = vpop.permute.xlu1 %4021  ;;  %4191 = vmatprep.mubr.f32.mxu1 %v31067_v0 }
 0x125   : > { %v4016_v18 = vpop.permute.xlu0 %4015  ;;  %v4034_v28 = vsel %vm4031_vm13, %v4020_v14, %v4022_v17 }
 0x126   : > { %v4032_v24 = vsel %vm4031_vm13, %v4016_v18, %v4018_v16  ;;  %6356 = vrot.lane.b32.xlu1 %v24884_v5, %s24772_s15 }
 0x127   : > { %6354 = vrot.lane.b32.xlu0 %v24874_v4, %s24772_s15  ;;  %21305 = vmatpush1.msk.msra.mxu0 %vm426_vm2, %v4032_v24  ;;  %v21327_v24 = vld [vmem:[%s31056_s1 + $0x68] sm:$0x3f] }
 0x128   : > { %21306 = vmatmul.mubr.msk.f32.vlgmr.msra.gmra.mxu0 %vm422_vm3, %v21303_v23  ;;  %v4026_v2 = vpop.permute.xlu1 %4025 }
 0x129   : > { %v4024_v26 = vpop.permute.xlu0 %4023  ;;  %4262 = vmatprep.mubr.f32.mxu0 %v31067_v0 }
 0x12a   : > { %6360 = vrot.lane.b32.xlu1 %v24955_v8, %s24772_s15  ;;  %v4035_v27 = vsel %vm4031_vm13, %v4022_v17, %v4024_v26  ;;  %v4036_v36 = vsel %vm4031_vm13, %v4024_v26, %v4026_v2 }
 0x12b   : > { %6358 = vrot.lane.b32.xlu0 %v24895_v7, %s24772_s15  ;;  %21307 = vmatprep.subr.msk.mxu1 %vm426_vm2, %v4035_v27 }
 0x12c   : > { %21308 = vmatpush1.msk.msra.mxu1 %vm426_vm2, %v4034_v28  ;;  %v4030_v4 = vpop.permute.xlu1 %4029 }
 0x12d   : > { %21309 = vmatmul.mubr.msk.f32.vlgmr.msra.gmra.mxu1 %vm422_vm3, %v21303_v23  ;;  %v4028_v31 = vpop.permute.xlu0 %4027  ;;  %23191 = vmatprep.subr.mxu1 %v31067_v0 }
 0x12e   : > { %v4038_v33 = vsel %vm4031_vm13, %v4028_v31, %v4030_v4  ;;  %6683 = vrot.lane.b32.xlu1 %v25517_v34, %s24773_s21  ;;  %v4037_v7 = vsel %vm4031_vm13, %v4026_v2, %v4028_v31  ;;  %23193 = vmatprep.mubr.msk.f32.mxu1 %vm24755_vm0, %v31067_v0  ;;  %vm6362_vm13 = vcmask 236544  }
 0x12f   : > { %6681 = vrot.lane.b32.xlu0 %v24888_v6, %s24773_s21  ;;  %21310 = vmatprep.subr.msk.mxu0 %vm426_vm2, %v4037_v7 }
 0x130   : > { %23192 = vmatpush3.msk.msra.mxu1 %vm426_vm2, %v4038_v33  ;;  %21311 = vmatpush1.msk.msra.mxu0 %vm426_vm2, %v4036_v36  ;;  %v4353_v37 = vpop.permute.xlu1 %4352 }
 0x131   : > { %21312 = vmatmul.mubr.msk.f32.vlgmr.msra.gmra.mxu0 %vm422_vm3, %v21303_v23  ;;  %23194 = vmatmul.mubr.msk.f32.vlgmr.msra.gmra.mxu1 %vm422_vm3, %v21303_v23  ;;  %v4351_v38 = vpop.permute.xlu0 %4350 }
 0x132   : > { %6685 = vrot.lane.b32.xlu1 %v24871_v3, %s24773_s21  ;;  %v4366_v39 = vsel %vm4364_vm14, %v4351_v38, %v4353_v37  ;;  %4453 = vmatprep.mubr.f32.mxu0 %v31067_v0 }
 0x133   : > { %6679 = vrot.lane.b32.xlu0 %v24742_v41, %s24773_s21  ;;  %21316 = vmatprep.subr.msk.mxu0 %vm426_vm2, %v4366_v39 }
 0x134   : > { %v4355_v42 = vpop.permute.xlu1 %4354  ;;  %4524 = vmatprep.mubr.f32.mxu1 %v31067_v0 }
 0x135   : > { %v4349_v47 = vpop.permute.xlu0 %4348  ;;  %v4367_v58 = vsel %vm4364_vm14, %v4353_v37, %v4355_v42 }
 0x136   : > { %v4365_v50 = vsel %vm4364_vm14, %v4349_v47, %v4351_v38  ;;  %6689 = vrot.lane.b32.xlu1 %v24884_v5, %s24773_s21 }
 0x137   : > { %6687 = vrot.lane.b32.xlu0 %v25547_v52, %s24773_s21  ;;  %21317 = vmatpush1.msk.msra.mxu0 %vm426_vm2, %v4365_v50 }
 0x138   : > { %21318 = vmatmul.mubr.msk.f32.vlgmr.msra.gmra.mxu0 %vm422_vm3, %v21315_v49  ;;  %v4359_v53 = vpop.permute.xlu1 %4358 }
 0x139   : > { %v4357_v56 = vpop.permute.xlu0 %4356  ;;  %4595 = vmatprep.mubr.f32.mxu0 %v31067_v0 }
 0x13a   : > { %6693 = vrot.lane.b32.xlu1 %v24955_v8, %s24773_s21  ;;  %v4368_v57 = vsel %vm4364_vm14, %v4355_v42, %v4357_v56  ;;  %v4369_v14 = vsel %vm4364_vm14, %v4357_v56, %v4359_v53  ;;  %v21339_v56 = vld [vmem:[%s31056_s1 + $0x70] sm:$0x3f] }
 0x13b   : > { %6691 = vrot.lane.b32.xlu0 %v25559_v62, %s24773_s21  ;;  %21319 = vmatprep.subr.msk.mxu1 %vm426_vm2, %v4368_v57  ;;  %s24778_s21 = smov 56  }
 0x13c   : > { %21320 = vmatpush1.msk.msra.mxu1 %vm426_vm2, %v4367_v58  ;;  %v4363_v63 = vpop.permute.xlu1 %4362 }
 0x13d   : > { %21321 = vmatmul.mubr.msk.f32.vlgmr.msra.gmra.mxu1 %vm422_vm3, %v21315_v49  ;;  %v4361_v11 = vpop.permute.xlu0 %4360  ;;  %23196 = vmatprep.subr.mxu1 %v31067_v0 }
 0x13e   : > { %v4371_v12 = vsel %vm4364_vm14, %v4361_v11, %v4363_v63  ;;  %7611 = vrot.lane.b32.xlu1 %v24955_v8, %s24756_s24  ;;  %v4370_v13 = vsel %vm4364_vm14, %v4359_v53, %v4361_v11  ;;  %23198 = vmatprep.mubr.msk.f32.mxu1 %vm24755_vm0, %v31067_v0 }
 0x13f   : > { %7309 = vrot.lane.b32.xlu0 %v24955_v8, %s24754_s23  ;;  %21322 = vmatprep.subr.msk.mxu0 %vm426_vm2, %v4370_v13 }
 0x140   : > { %23197 = vmatpush3.msk.msra.mxu1 %vm426_vm2, %v4371_v12  ;;  %21323 = vmatpush1.msk.msra.mxu0 %vm426_vm2, %v4369_v14  ;;  %v4686_v16 = vpop.permute.xlu1 %4685 }
 0x141   : > { %21324 = vmatmul.mubr.msk.f32.vlgmr.msra.gmra.mxu0 %vm422_vm3, %v21315_v49  ;;  %23199 = vmatmul.mubr.msk.f32.vlgmr.msra.gmra.mxu1 %vm422_vm3, %v21315_v49  ;;  %v4684_v1 = vpop.permute.xlu0 %4683 }
 0x142   : > { %8215 = vrot.lane.b32.xlu1 %v24955_v8, %s24758_s26  ;;  %v4699_v17 = vsel %vm4697_vm15, %v4684_v1, %v4686_v16  ;;  %4786 = vmatprep.mubr.f32.mxu0 %v31067_v0 }
 0x143   : > { %7913 = vrot.lane.b32.xlu0 %v24955_v8, %s24757_s25  ;;  %21328 = vmatprep.subr.msk.mxu0 %vm426_vm2, %v4699_v17  ;;  %s24779_s25 = smov 116  }
 0x144   : > { %v4688_v18 = vpop.permute.xlu1 %4687  ;;  %4857 = vmatprep.mubr.f32.mxu1 %v31067_v0 }
 0x145   : > { %v4682_v23 = vpop.permute.xlu0 %4681  ;;  %v4700_v4 = vsel %vm4697_vm15, %v4686_v16, %v4688_v18 }
 0x146   : > { %v4698_v2 = vsel %vm4697_vm15, %v4682_v23, %v4684_v1 }
 0x147   : > { %21329 = vmatpush1.msk.msra.mxu0 %vm426_vm2, %v4698_v2 }
 0x148   : > { %21330 = vmatmul.mubr.msk.f32.vlgmr.msra.gmra.mxu0 %vm422_vm3, %v21327_v24  ;;  %v4692_v26 = vpop.permute.xlu1 %4691 }
 0x149   : > { %v4690_v27 = vpop.permute.xlu0 %4689  ;;  %4928 = vmatprep.mubr.f32.mxu0 %v31067_v0 }
 0x14a   : > { %v4701_v28 = vsel %vm4697_vm15, %v4688_v18, %v4690_v27  ;;  %v4702_v37 = vsel %vm4697_vm15, %v4690_v27, %v4692_v26 }
 0x14b   : > { %21331 = vmatprep.subr.msk.mxu1 %vm426_vm2, %v4701_v28 }
 0x14c   : > { %21332 = vmatpush1.msk.msra.mxu1 %vm426_vm2, %v4700_v4  ;;  %v4696_v31 = vpop.permute.xlu1 %4695 }
 0x14d   : > { %21333 = vmatmul.mubr.msk.f32.vlgmr.msra.gmra.mxu1 %vm422_vm3, %v21327_v24  ;;  %v4694_v33 = vpop.permute.xlu0 %4693  ;;  %23201 = vmatprep.subr.mxu1 %v31067_v0 }
 0x14e   : > { %v4704_v7 = vsel %vm4697_vm15, %v4694_v33, %v4696_v31  ;;  %v4703_v36 = vsel %vm4697_vm15, %v4692_v26, %v4694_v33  ;;  %23203 = vmatprep.mubr.msk.f32.mxu1 %vm24755_vm0, %v31067_v0  ;;  %vm6695_vm15 = vcmask 228352  }
 0x14f   : > { %21334 = vmatprep.subr.msk.mxu0 %vm426_vm2, %v4703_v36  ;;  %23202 = vmatpush3.msk.msra.mxu1 %vm426_vm2, %v4704_v7 }
 0x150   : > { %21335 = vmatpush1.msk.msra.mxu0 %vm426_vm2, %v4702_v37  ;;  %v5019_v38 = vpop.permute.xlu1 %5018  ;;  %v507_v39 = vpop.f32.mrf.mxu0 }
 0x151   : > { %21336 = vmatmul.mubr.msk.f32.vlgmr.msra.gmra.mxu0 %vm422_vm3, %v21327_v24  ;;  %23204 = vmatmul.mubr.msk.f32.vlgmr.msra.gmra.mxu1 %vm422_vm3, %v21327_v24  ;;  %v5017_v41 = vpop.permute.xlu0 %5016 }
 0x152   : > { %v5032_v42 = vsel %vm5030_vm8, %v5017_v41, %v5019_v38  ;;  %5119 = vmatprep.mubr.f32.mxu0 %v31067_v0  ;;  %5190 = vmatprep.mubr.f32.mxu1 %v31067_v0  ;;  %v25615_v47 = vpop.f32.mrf.mxu0 }
 0x153   : > { %21340 = vmatprep.subr.msk.mxu0 %vm426_vm2, %v5032_v42  ;;  %v720_v49 = vpop.f32.mrf.mxu1 }
 0x154   : > { %v5021_v50 = vpop.permute.xlu1 %5020 }
 0x155   : > { %v5015_v53 = vpop.permute.xlu0 %5014  ;;  %v578_v57 = vpop.f32.mrf.mxu0  ;;  %v5033_v23 = vsel %vm5030_vm8, %v5019_v38, %v5021_v50 }
 0x156   : > { %v5031_v58 = vsel %vm5030_vm8, %v5015_v53, %v5017_v41  ;;  %v23140_v63 = vpop.f32.mrf.mxu1 }
 0x157   : > { %21341 = vmatpush1.msk.msra.mxu0 %vm426_vm2, %v5031_v58  ;;  %v25623_v11 = vpop.f32.mrf.mxu0 }
 0x158   : > { %21342 = vmatmul.mubr.msk.f32.vlgmr.msra.gmra.mxu0 %vm422_vm3, %v21339_v56  ;;  %v5025_v12 = vpop.permute.xlu1 %5024  ;;  %v878_v13 = vpop.f32.mrf.mxu1 }
 0x159   : > { %v5023_v14 = vpop.permute.xlu0 %5022  ;;  %5261 = vmatprep.mubr.f32.mxu0 %v31067_v0  ;;  %v649_v16 = vpop.f32.mrf.mxu0  ;;  %v879_v1 = vadd.f32 %v878_v13, %v578_v57 }
 0x15a   : > { %v5034_v17 = vsel %vm5030_vm8, %v5021_v50, %v5023_v14  ;;  %v25628_v18 = vpop.f32.mrf.mxu1  ;;  %v5035_v33 = vsel %vm5030_vm8, %v5023_v14, %v5025_v12 }
 0x15b   : > { %21343 = vmatprep.subr.msk.mxu1 %vm426_vm2, %v5034_v17  ;;  %v25632_v24 = vpop.f32.mrf.mxu0 }
 0x15c   : > { %21344 = vmatpush1.msk.msra.mxu1 %vm426_vm2, %v5033_v23  ;;  %v5029_v2 = vpop.permute.xlu1 %5028 }
 0x15d   : > { %21345 = vmatmul.mubr.msk.f32.vlgmr.msra.gmra.mxu1 %vm422_vm3, %v21339_v56  ;;  %v5027_v26 = vpop.permute.xlu0 %5026  ;;  %23206 = vmatprep.subr.mxu1 %v31067_v0  ;;  %v1020_v27 = vpop.f32.mrf.mxu1 }
 0x15e   : > { %v5037_v28 = vsel %vm5030_vm8, %v5027_v26, %v5029_v2  ;;  %v5036_v4 = vsel %vm5030_vm8, %v5025_v12, %v5027_v26  ;;  %23208 = vmatprep.mubr.msk.f32.mxu1 %vm24755_vm0, %v31067_v0  ;;  %v1021_v31 = vadd.f32 %v1020_v27, %v720_v49 }
 0x15f   : > { %21346 = vmatprep.subr.msk.mxu0 %vm426_vm2, %v5036_v4  ;;  %23207 = vmatpush3.msk.msra.mxu1 %vm426_vm2, %v5037_v28  ;;  %v807_v7 = vpop.f32.mrf.mxu0  ;;  %v23145_v36 = vpop.f32.mrf.mxu1 }
 0x160   : > { %21347 = vmatpush1.msk.msra.mxu0 %vm426_vm2, %v5035_v33  ;;  %v5352_v37 = vpop.permute.xlu1 %5351  ;;  %v808_v38 = vadd.f32 %v807_v7, %v507_v39 }
 0x161   : > { %21348 = vmatmul.mubr.msk.f32.vlgmr.msra.gmra.mxu0 %vm422_vm3, %v21339_v56  ;;  %23209 = vmatmul.mubr.msk.f32.vlgmr.msra.gmra.mxu1 %vm422_vm3, %v21339_v56  ;;  %v5350_v41 = vpop.permute.xlu0 %5349  ;;  %v25647_v42 = vpop.f32.mrf.mxu0  ;;  %v21351_v56 = vld [vmem:[%s31056_s1 + $0x78] sm:$0x3f] }
 0x162   : > { %v5365_v49 = vsel %vm5363_vm9, %v5350_v41, %v5352_v37  ;;  %5452 = vmatprep.mubr.f32.mxu0 %v31067_v0  ;;  %5523 = vmatprep.mubr.f32.mxu1 %v31067_v0 }
 0x163   : > { %21352 = vmatprep.subr.msk.mxu0 %vm426_vm2, %v5365_v49  ;;  %v1201_v50 = vpop.f32.mrf.mxu1 }
 0x164   : > { %v5354_v53 = vpop.permute.xlu1 %5353  ;;  %v949_v57 = vpop.f32.mrf.mxu0  ;;  %v1349_v58 = vadd.f32 %v1201_v50, %v879_v1 }
 0x165   : > { %v5348_v39 = vpop.permute.xlu0 %5347  ;;  %v950_v63 = vadd.f32 %v949_v57, %v649_v16  ;;  %v25656_v12 = vpop.f32.mrf.mxu1  ;;  %v5366_v4 = vsel %vm5363_vm9, %v5352_v37, %v5354_v53 }
 0x166   : > { %v5364_v13 = vsel %vm5363_vm9, %v5348_v39, %v5350_v41  ;;  %v25659_v14 = vpop.f32.mrf.mxu0 }
 0x167   : > { %21353 = vmatpush1.msk.msra.mxu0 %vm426_vm2, %v5364_v13 }
 0x168   : > { %21354 = vmatmul.mubr.msk.f32.vlgmr.msra.gmra.mxu0 %vm422_vm3, %v21351_v56  ;;  %v5358_v17 = vpop.permute.xlu1 %5357  ;;  %v1130_v23 = vpop.f32.mrf.mxu0 }
 0x169   : > { %v5356_v2 = vpop.permute.xlu0 %5355  ;;  %5594 = vmatprep.mubr.f32.mxu0 %v31067_v0  ;;  %v1347_v1 = vadd.f32 %v1130_v23, %v808_v38  ;;  %v1343_v26 = vpop.f32.mrf.mxu1 }
 0x16a   : > { %v5367_v27 = vsel %vm5363_vm9, %v5354_v53, %v5356_v2  ;;  %v25665_v16 = vpop.f32.mrf.mxu0  ;;  %v1353_v28 = vadd.f32 %v1343_v26, %v1021_v31  ;;  %v5368_v37 = vsel %vm5363_vm9, %v5356_v2, %v5358_v17 }
 0x16b   : > { %21355 = vmatprep.subr.msk.mxu1 %vm426_vm2, %v5367_v27  ;;  %v23150_v33 = vpop.f32.mrf.mxu1 }
 0x16c   : > { %21356 = vmatpush1.msk.msra.mxu1 %vm426_vm2, %v5366_v4  ;;  %v5362_v7 = vpop.permute.xlu1 %5361  ;;  %v1272_v36 = vpop.f32.mrf.mxu0 }
 0x16d   : > { %21357 = vmatmul.mubr.msk.f32.vlgmr.msra.gmra.mxu1 %vm422_vm3, %v21351_v56  ;;  %v5360_v41 = vpop.permute.xlu0 %5359  ;;  %23211 = vmatprep.subr.mxu1 %v31067_v0  ;;  %v1351_v38 = vadd.f32 %v1272_v36, %v950_v63 }
 0x16e   : > { %v5370_v49 = vsel %vm5363_vm9, %v5360_v41, %v5362_v7  ;;  %v5369_v50 = vsel %vm5363_vm9, %v5358_v17, %v5360_v41  ;;  %23213 = vmatprep.mubr.msk.f32.mxu1 %vm24755_vm0, %v31067_v0  ;;  %v25676_v31 = vpop.f32.mrf.mxu0  ;;  %vm11068_vm9 = vcmask 457728  }
 0x16f   : > { %21358 = vmatprep.subr.msk.mxu0 %vm426_vm2, %v5369_v50  ;;  %23212 = vmatpush3.msk.msra.mxu1 %vm426_vm2, %v5370_v49  ;;  %v1531_v53 = vpop.f32.mrf.mxu1 }
 0x170   : > { %21359 = vmatpush1.msk.msra.mxu0 %vm426_vm2, %v5368_v37  ;;  %v5685_v57 = vpop.permute.xlu1 %5684  ;;  %v1679_v39 = vadd.f32 %v1531_v53, %v1349_v58 }
 0x171   : > { %21360 = vmatmul.mubr.msk.f32.vlgmr.msra.gmra.mxu0 %vm422_vm3, %v21351_v56  ;;  %23214 = vmatmul.mubr.msk.f32.vlgmr.msra.gmra.mxu1 %vm422_vm3, %v21351_v56  ;;  %v5683_v63 = vpop.permute.xlu0 %5682  ;;  %v1460_v13 = vpop.f32.mrf.mxu0  ;;  %v21363_v56 = vld [vmem:[%s31056_s1 + $0x80] sm:$0x3f] }
 0x172   : > { %v5698_v23 = vsel %vm5696_vm10, %v5683_v63, %v5685_v57  ;;  %5785 = vmatprep.mubr.f32.mxu0 %v31067_v0  ;;  %5856 = vmatprep.mubr.f32.mxu1 %v31067_v0  ;;  %v1677_v17 = vadd.f32 %v1460_v13, %v1347_v1  ;;  %v25687_v2 = vpop.f32.mrf.mxu1 }
 0x173   : > { %21364 = vmatprep.subr.msk.mxu0 %vm426_vm2, %v5698_v23  ;;  %v25690_v26 = vpop.f32.mrf.mxu0 }
 0x174   : > { %v5687_v58 = vpop.permute.xlu1 %5686 }
 0x175   : > { %v5681_v27 = vpop.permute.xlu0 %5680  ;;  %v1602_v4 = vpop.f32.mrf.mxu0  ;;  %v5699_v23 = vsel %vm5696_vm10, %v5685_v57, %v5687_v58 }
 0x176   : > { %v5697_v33 = vsel %vm5696_vm10, %v5681_v27, %v5683_v63  ;;  %v1681_v7 = vadd.f32 %v1602_v4, %v1351_v38  ;;  %v1673_v36 = vpop.f32.mrf.mxu1 }
 0x177   : > { %21365 = vmatpush1.msk.msra.mxu0 %vm426_vm2, %v5697_v33  ;;  %v25697_v1 = vpop.f32.mrf.mxu0  ;;  %v1683_v41 = vadd.f32 %v1673_v36, %v1353_v28 }
 0x178   : > { %31071 = vst [vmem:[#allocation2_spill] sm:$0xff] %v25697_v1  ;;  %21366 = vmatmul.mubr.msk.f32.vlgmr.msra.gmra.mxu0 %vm422_vm3, %v21363_v56  ;;  %v5691_v49 = vpop.permute.xlu1 %5690  ;;  %v23155_v50 = vpop.f32.mrf.mxu1 }
 0x179   : > { %v5689_v37 = vpop.permute.xlu0 %5688  ;;  %5927 = vmatprep.mubr.f32.mxu0 %v31067_v0 }
 0x17a   : > { %v5700_v53 = vsel %vm5696_vm10, %v5687_v58, %v5689_v37  ;;  %v1861_v13 = vpop.f32.mrf.mxu1 }
 0x17b   : > { %21367 = vmatprep.subr.msk.mxu1 %vm426_vm2, %v5700_v53  ;;  %v2009_v38 = vadd.f32 %v1861_v13, %v1679_v39  ;;  %v5701_v39 = vsel %vm5696_vm10, %v5689_v37, %v5691_v49 }
 0x17c   : > { %21368 = vmatpush1.msk.msra.mxu1 %vm426_vm2, %v5699_v23  ;;  %v5695_v63 = vpop.permute.xlu1 %5694  ;;  %v1790_v27 = vpop.f32.mrf.mxu0 }
 0x17d   : > { %21369 = vmatmul.mubr.msk.f32.vlgmr.msra.gmra.mxu1 %vm422_vm3, %v21363_v56  ;;  %v5693_v28 = vpop.permute.xlu0 %5692  ;;  %23216 = vmatprep.subr.mxu1 %v31067_v0  ;;  %v2007_v4 = vadd.f32 %v1790_v27, %v1677_v17  ;;  %v25707_v33 = vpop.f32.mrf.mxu1 }
 0x17e   : > { %v5703_v36 = vsel %vm5696_vm10, %v5693_v28, %v5695_v63  ;;  %v5702_v50 = vsel %vm5696_vm10, %v5691_v49, %v5693_v28  ;;  %23218 = vmatprep.mubr.msk.f32.mxu1 %vm24755_vm0, %v31067_v0  ;;  %v25713_v57 = vpop.f32.mrf.mxu0 }
 0x17f   : > { %21370 = vmatprep.subr.msk.mxu0 %vm426_vm2, %v5702_v50  ;;  %23217 = vmatpush3.msk.msra.mxu1 %vm426_vm2, %v5703_v36 }
 0x180   : > { %21371 = vmatpush1.msk.msra.mxu0 %vm426_vm2, %v5701_v39  ;;  %v6018_v17 = vpop.permute.xlu1 %6017  ;;  %v1932_v58 = vpop.f32.mrf.mxu0 }
 0x181   : > { %21372 = vmatmul.mubr.msk.f32.vlgmr.msra.gmra.mxu0 %vm422_vm3, %v21363_v56  ;;  %23219 = vmatmul.mubr.msk.f32.vlgmr.msra.gmra.mxu1 %vm422_vm3, %v21363_v56  ;;  %v6016_v53 = vpop.permute.xlu0 %6015  ;;  %v2011_v13 = vadd.f32 %v1932_v58, %v1681_v7  ;;  %v2003_v23 = vpop.f32.mrf.mxu1  ;;  %v21375_v56 = vld [vmem:[%s31056_s1 + $0x88] sm:$0x3f] }
 0x182   : > { %v6031_v63 = vsel %vm6029_vm11, %v6016_v53, %v6018_v17  ;;  %6118 = vmatprep.mubr.f32.mxu0 %v31067_v0  ;;  %6189 = vmatprep.mubr.f32.mxu1 %v31067_v0  ;;  %v25724_v49 = vpop.f32.mrf.mxu0  ;;  %v2013_v37 = vadd.f32 %v2003_v23, %v1683_v41 }
 0x183   : > { %31072 = vst [vmem:[#allocation3_spill] sm:$0xff] %v25724_v49  ;;  %21376 = vmatprep.subr.msk.mxu0 %vm426_vm2, %v6031_v63  ;;  %v23160_v27 = vpop.f32.mrf.mxu1 }
 0x184   : > { %v6020_v28 = vpop.permute.xlu1 %6019  ;;  %v2124_v36 = vpop.f32.mrf.mxu0 }
 0x185   : > { %v6014_v50 = vpop.permute.xlu0 %6013  ;;  %v2341_v7 = vadd.f32 %v2124_v36, %v2007_v4  ;;  %v6032_v4 = vsel %vm6029_vm11, %v6018_v17, %v6020_v28 }
 0x186   : > { %v6030_v39 = vsel %vm6029_vm11, %v6014_v50, %v6016_v53  ;;  %v25732_v58 = vpop.f32.mrf.mxu0 }
 0x187   : > { %21377 = vmatpush1.msk.msra.mxu0 %vm426_vm2, %v6030_v39  ;;  %31073 = vst [vmem:[#allocation4_spill] sm:$0xff] %v25732_v58  ;;  %v24774_v58 = vmov 0  }
 0x188   : > { %21378 = vmatmul.mubr.msk.f32.vlgmr.msra.gmra.mxu0 %vm422_vm3, %v21375_v56  ;;  %v6024_v41 = vpop.permute.xlu1 %6023  ;;  %v2195_v23 = vpop.f32.mrf.mxu1  ;;  %24735 = vset.pattern.permute.xlu0 %v24774_v58 }
 0x189   : > { %v6022_v63 = vpop.permute.xlu0 %6021  ;;  %6260 = vmatprep.mubr.f32.mxu0 %v31067_v0  ;;  %v2343_v27 = vadd.f32 %v2195_v23, %v2009_v38  ;;  %24736 = vset.pattern.permute.xlu1 %v24774_v58  ;;  %v21399_v58 = vld [vmem:[%s31056_s1 + $0x98] sm:$0x3f] }
 0x18a   : > { %v6033_v49 = vsel %vm6029_vm11, %v6020_v28, %v6022_v63  ;;  %v25737_v1 = vpop.f32.mrf.mxu1  ;;  %v6034_v28 = vsel %vm6029_vm11, %v6022_v63, %v6024_v41 }
 0x18b   : > { %31074 = vst [vmem:[#allocation5_spill] sm:$0xff] %v25737_v1  ;;  %21379 = vmatprep.subr.msk.mxu1 %vm426_vm2, %v6033_v49  ;;  %v2266_v53 = vpop.f32.mrf.mxu0 }
 0x18c   : > { %21380 = vmatpush1.msk.msra.mxu1 %vm426_vm2, %v6032_v4  ;;  %v6028_v36 = vpop.permute.xlu1 %6027  ;;  %v2345_v50 = vadd.f32 %v2266_v53, %v2011_v13 }
 0x18d   : > { %21381 = vmatmul.mubr.msk.f32.vlgmr.msra.gmra.mxu1 %vm422_vm3, %v21375_v56  ;;  %v6026_v39 = vpop.permute.xlu0 %6025  ;;  %23221 = vmatprep.subr.mxu1 %v31067_v0  ;;  %v25748_v17 = vpop.f32.mrf.mxu0 }
 0x18e   : > { %v6036_v38 = vsel %vm6029_vm11, %v6026_v39, %v6028_v36  ;;  %v6035_v23 = vsel %vm6029_vm11, %v6024_v41, %v6026_v39  ;;  %23223 = vmatprep.mubr.msk.f32.mxu1 %vm24755_vm0, %v31067_v0  ;;  %31075 = vst [vmem:[#allocation6_spill] sm:$0xff] %v25748_v17  ;;  %v2337_v49 = vpop.f32.mrf.mxu1  ;;  %v31077_v17 = vmov 0.0  }
 0x18f   : > { %21382 = vmatprep.subr.msk.mxu0 %vm426_vm2, %v6035_v23  ;;  %23222 = vmatpush3.msk.msra.mxu1 %vm426_vm2, %v6036_v38  ;;  %v2347_v13 = vadd.f32 %v2337_v49, %v2013_v37  ;;  %v21387_v23 = vld [vmem:[%s31056_s1 + $0x90] sm:$0x3f] }
 0x190   : > { %21383 = vmatpush1.msk.msra.mxu0 %vm426_vm2, %v6034_v28  ;;  %v6351_v4 = vpop.permute.xlu1 %6350  ;;  %v23165_v53 = vpop.f32.mrf.mxu1 }
 0x191   : > { %21384 = vmatmul.mubr.msk.f32.vlgmr.msra.gmra.mxu0 %vm422_vm3, %v21375_v56  ;;  %23224 = vmatmul.mubr.msk.f32.vlgmr.msra.gmra.mxu1 %vm422_vm3, %v21375_v56  ;;  %v6349_v36 = vpop.permute.xlu0 %6348 }
 0x192   : > { %v6364_v39 = vsel %vm6362_vm13, %v6349_v36, %v6351_v4  ;;  %6451 = vmatprep.mubr.f32.mxu0 %v31067_v0  ;;  %6522 = vmatprep.mubr.f32.mxu1 %v31067_v0  ;;  %v2457_v41 = vpop.f32.mrf.mxu0 }
 0x193   : > { %21388 = vmatprep.subr.msk.mxu0 %vm426_vm2, %v6364_v39  ;;  %v2674_v63 = vadd.f32 %v2457_v41, %v2341_v7 }
 0x194   : > { %v6353_v37 = vpop.permute.xlu1 %6352  ;;  %v25765_v56 = vpop.f32.mrf.mxu0 }
 0x195   : > { %v6347_v38 = vpop.permute.xlu0 %6346  ;;  %31076 = vst [vmem:[#allocation7_spill] sm:$0xff] %v25765_v56  ;;  %v6365_v1 = vsel %vm6362_vm13, %v6351_v4, %v6353_v37 }
 0x196   : > { %v6363_v49 = vsel %vm6362_vm13, %v6347_v38, %v6349_v36  ;;  %v8515_v38 = vld [vmem:[%s31057_s2] sm:$0x3f] }
 0x197   : > { %21389 = vmatpush1.msk.msra.mxu0 %vm426_vm2, %v6363_v49  ;;  %8518 = vperm.xlu0 %24735, %v8515_v38  }
 0x198   : > { %21390 = vmatmul.mubr.msk.f32.vlgmr.msra.gmra.mxu0 %vm422_vm3, %v21387_v23  ;;  %v6357_v28 = vpop.permute.xlu1 %6356  ;;  %v2528_v53 = vpop.f32.mrf.mxu1 }
 0x199   : > { %v6355_v0 = vpop.permute.xlu0 %6354  ;;  %6593 = vmatprep.mubr.f32.mxu0 %v31077_v17  ;;  %v2676_v7 = vadd.f32 %v2528_v53, %v2343_v27 }
 0x19a   : > { %v6366_v39 = vsel %vm6362_vm13, %v6353_v37, %v6355_v0  ;;  %v25770_v41 = vpop.f32.mrf.mxu1 }
 0x19b   : > { %21391 = vmatprep.subr.msk.mxu1 %vm426_vm2, %v6366_v39  ;;  %v2599_v36 = vpop.f32.mrf.mxu0 }
 0x19c   : > { %21392 = vmatpush1.msk.msra.mxu1 %vm426_vm2, %v6365_v1  ;;  %v6361_v49 = vpop.permute.xlu1 %6360  ;;  %v2678_v56 = vadd.f32 %v2599_v36, %v2345_v50  ;;  %v6367_v1 = vsel %vm6362_vm13, %v6355_v0, %v6357_v28 }
 0x19d   : > { %21393 = vmatmul.mubr.msk.f32.vlgmr.msra.gmra.mxu1 %vm422_vm3, %v21387_v23  ;;  %v6359_v27 = vpop.permute.xlu0 %6358  ;;  %23226 = vmatprep.subr.mxu1 %v31077_v17  ;;  %v25784_v53 = vpop.f32.mrf.mxu0 }
 0x19e   : > { %v6369_v4 = vsel %vm6362_vm13, %v6359_v27, %v6361_v49  ;;  %v6368_v37 = vsel %vm6362_vm13, %v6357_v28, %v6359_v27  ;;  %23228 = vmatprep.mubr.msk.f32.mxu1 %vm24755_vm0, %v31077_v17  ;;  %31078 = vst [vmem:[#allocation8_spill] sm:$0xff] %v25784_v53  ;;  %v2670_v39 = vpop.f32.mrf.mxu1 }
 0x19f   : > { %21394 = vmatprep.subr.msk.mxu0 %vm426_vm2, %v6368_v37  ;;  %23227 = vmatpush3.msk.msra.mxu1 %vm426_vm2, %v6369_v4  ;;  %v2680_v50 = vadd.f32 %v2670_v39, %v2347_v13 }
 0x1a0   : > { %21395 = vmatpush1.msk.msra.mxu0 %vm426_vm2, %v6367_v1  ;;  %v6684_v36 = vpop.permute.xlu1 %6683  ;;  %v23170_v49 = vpop.f32.mrf.mxu1 }
 0x1a1   : > { %21396 = vmatmul.mubr.msk.f32.vlgmr.msra.gmra.mxu0 %vm422_vm3, %v21387_v23  ;;  %23229 = vmatmul.mubr.msk.f32.vlgmr.msra.gmra.mxu1 %vm422_vm3, %v21387_v23  ;;  %v6682_v27 = vpop.permute.xlu0 %6681 }
 0x1a2   : > { %v6697_v38 = vsel %vm6695_vm15, %v6682_v27, %v6684_v36  ;;  %6784 = vmatprep.mubr.f32.mxu0 %v31077_v17  ;;  %6855 = vmatprep.mubr.f32.mxu1 %v31077_v17  ;;  %v2790_v0 = vpop.f32.mrf.mxu0 }
 0x1a3   : > { %21400 = vmatprep.subr.msk.mxu0 %vm426_vm2, %v6697_v38  ;;  %v3007_v13 = vadd.f32 %v2790_v0, %v2674_v63 }
 0x1a4   : > { %v6686_v28 = vpop.permute.xlu1 %6685  ;;  %v25801_v23 = vpop.f32.mrf.mxu0 }
 0x1a5   : > { %v6680_v4 = vpop.permute.xlu0 %6679  ;;  %31079 = vst [vmem:[#allocation9_spill] sm:$0xff] %v25801_v23  ;;  %v6698_v53 = vsel %vm6695_vm15, %v6684_v36, %v6686_v28 }
 0x1a6   : > { %v6696_v37 = vsel %vm6695_vm15, %v6680_v4, %v6682_v27 }
 0x1a7   : > { %21401 = vmatpush1.msk.msra.mxu0 %vm426_vm2, %v6696_v37 }
 0x1a8   : > { %21402 = vmatmul.mubr.msk.f32.vlgmr.msra.gmra.mxu0 %vm422_vm3, %v21399_v58  ;;  %v6690_v39 = vpop.permute.xlu1 %6689  ;;  %v2861_v1 = vpop.f32.mrf.mxu1 }
 0x1a9   : > { %v6688_v49 = vpop.permute.xlu0 %6687  ;;  %6926 = vmatprep.mubr.f32.mxu0 %v31077_v17  ;;  %v3009_v63 = vadd.f32 %v2861_v1, %v2676_v7 }
 0x1aa   : > { %v6699_v38 = vsel %vm6695_vm15, %v6686_v28, %v6688_v49  ;;  %v25806_v0 = vpop.f32.mrf.mxu1 }
 0x1ab   : > { %21403 = vmatprep.subr.msk.mxu1 %vm426_vm2, %v6699_v38  ;;  %v2932_v27 = vpop.f32.mrf.mxu0  ;;  %v6700_v38 = vsel %vm6695_vm15, %v6688_v49, %v6690_v39 }
 0x1ac   : > { %21404 = vmatpush1.msk.msra.mxu1 %vm426_vm2, %v6698_v53  ;;  %v6694_v4 = vpop.permute.xlu1 %6693  ;;  %v3011_v37 = vadd.f32 %v2932_v27, %v2678_v56 }
 0x1ad   : > { %21405 = vmatmul.mubr.msk.f32.vlgmr.msra.gmra.mxu1 %vm422_vm3, %v21399_v58  ;;  %v6692_v23 = vpop.permute.xlu0 %6691  ;;  %23231 = vmatprep.subr.mxu1 %v31077_v17  ;;  %v25817_v36 = vpop.f32.mrf.mxu0 }
 0x1ae   : > { %v6702_v7 = vsel %vm6695_vm15, %v6692_v23, %v6694_v4  ;;  %v6701_v1 = vsel %vm6695_vm15, %v6690_v39, %v6692_v23  ;;  %23233 = vmatprep.mubr.msk.f32.mxu1 %vm24755_vm0, %v31077_v17  ;;  %v3003_v28 = vpop.f32.mrf.mxu1 }
 0x1af   : > { %21406 = vmatprep.subr.msk.mxu0 %vm426_vm2, %v6701_v1  ;;  %23232 = vmatpush3.msk.msra.mxu1 %vm426_vm2, %v6702_v7  ;;  %v3013_v56 = vadd.f32 %v3003_v28, %v2680_v50  ;;  %v21411_v50 = vld [vmem:[%s31056_s1 + $0xa0] sm:$0x3f] }
 0x1b0   : > { %21407 = vmatpush1.msk.msra.mxu0 %vm426_vm2, %v6700_v38  ;;  %21415 = vmatprep.subr.msk.mxu1 %vm426_vm2, %v25547_v52  ;;  %v23175_v53 = vpop.f32.mrf.mxu1 }
 0x1b1   : > { %21408 = vmatmul.mubr.msk.f32.vlgmr.msra.gmra.mxu0 %vm422_vm3, %v21399_v58  ;;  %23234 = vmatmul.mubr.msk.f32.vlgmr.msra.gmra.mxu1 %vm422_vm3, %v21399_v58  ;;  %v7612_v58 = vpop.permute.xlu1 %7611 }
 0x1b2   : > { %21412 = vmatprep.subr.msk.mxu0 %vm426_vm2, %v25517_v34  ;;  %21416 = vmatpush1.msk.msra.mxu1 %vm426_vm2, %v24871_v3  ;;  %v3123_v23 = vpop.f32.mrf.mxu0  ;;  %v7310_v3 = vpop.permute.xlu0 %7309 }
 0x1b3   : > { %21413 = vmatpush1.msk.msra.mxu0 %vm426_vm2, %v24888_v6  ;;  %7081 = vmatprep.mubr.f32.mxu0 %v31077_v17  ;;  %v3340_v52 = vadd.f32 %v3123_v23, %v3007_v13 }
 0x1b4   : > { %7152 = vmatprep.mubr.f32.mxu1 %v31077_v17  ;;  %21418 = vmatprep.subr.msk.mxu0 %vm426_vm2, %v25559_v62  ;;  %v25849_v6 = vpop.f32.mrf.mxu0 }
 0x1b5   : > { %23236 = vmatprep.subr.mxu1 %v31077_v17  ;;  %21414 = vmatmul.mubr.msk.f32.vlgmr.msra.gmra.mxu0 %vm422_vm3, %v21411_v50 }
 0x1b6   : > { %21417 = vmatmul.mubr.msk.f32.vlgmr.msra.gmra.mxu1 %vm422_vm3, %v21411_v50  ;;  %21419 = vmatpush1.msk.msra.mxu0 %vm426_vm2, %v24884_v5 }
 0x1b7   : > { %23237 = vmatpush3.msk.msra.mxu1 %vm426_vm2, %v24955_v8  ;;  %21424 = vmatprep.subr.msk.mxu0 %vm426_vm2, %v25011_v21  ;;  %v7311_v8 = vsel %vm415_vm1, %v25008_v20, %v7310_v3  ;;  %v21423_v21 = vld [vmem:[%s31056_s1 + $0xa8] sm:$0x3f] }
 0x1b8   : > { %21427 = vmatprep.subr.msk.mxu1 %vm426_vm2, %v25035_v25  ;;  %7223 = vmatprep.mubr.f32.mxu0 %v31077_v17  ;;  %v3194_v34 = vpop.f32.mrf.mxu1 }
 0x1b9   : > { %23238 = vmatprep.mubr.msk.f32.mxu1 %vm24755_vm0, %v31077_v17  ;;  %21420 = vmatmul.mubr.msk.f32.vlgmr.msra.gmra.mxu0 %vm422_vm3, %v21411_v50  ;;  %v3342_v5 = vadd.f32 %v3194_v34, %v3009_v63 }
 0x1ba   : > { %23239 = vmatmul.mubr.msk.f32.vlgmr.msra.gmra.mxu1 %vm422_vm3, %v21411_v50  ;;  %21425 = vmatpush1.msk.msra.mxu0 %vm426_vm2, %v24990_v15  ;;  %v25865_v25 = vpop.f32.mrf.mxu1 }
 0x1bb   : > { %21428 = vmatpush1.msk.msra.mxu1 %vm426_vm2, %v25006_v19  ;;  %21430 = vmatprep.subr.msk.mxu0 %vm426_vm2, %v7311_v8  ;;  %v3265_v62 = vpop.f32.mrf.mxu0 }
 0x1bc   : > { %7383 = vmatprep.mubr.f32.mxu0 %v31077_v17  ;;  %7454 = vmatprep.mubr.f32.mxu1 %v31077_v17  ;;  %v3344_v15 = vadd.f32 %v3265_v62, %v3011_v37 }
 0x1bd   : > { %23241 = vmatprep.subr.mxu1 %v31077_v17  ;;  %21426 = vmatmul.mubr.msk.f32.vlgmr.msra.gmra.mxu0 %vm422_vm3, %v21423_v21  ;;  %v3336_v20 = vpop.f32.mrf.mxu1  ;;  %v25877_v13 = vpop.f32.mrf.mxu0 }
 0x1be   : > { %21429 = vmatmul.mubr.msk.f32.vlgmr.msra.gmra.mxu1 %vm422_vm3, %v21423_v21  ;;  %21431 = vmatpush1.msk.msra.mxu0 %vm426_vm2, %v25018_v22  ;;  %v3346_v19 = vadd.f32 %v3336_v20, %v3013_v56  ;;  %v7613_v22 = vsel %vm1040_vm4, %v25065_v30, %v7612_v58  ;;  %v7914_v30 = vpop.permute.xlu0 %7913 }
 0x1bf   : > { %23242 = vmatpush3.msk.msra.mxu1 %vm426_vm2, %v7310_v3  ;;  %21436 = vmatprep.subr.msk.mxu0 %vm426_vm2, %v25068_v32  ;;  %v23180_v39 = vpop.f32.mrf.mxu1  ;;  %v21435_v32 = vld [vmem:[%s31056_s1 + $0xb0] sm:$0x3f] }
 0x1c0   : > { %21439 = vmatprep.subr.msk.mxu1 %vm426_vm2, %v25122_v43  ;;  %7525 = vmatprep.mubr.f32.mxu0 %v31077_v17 }
 0x1c1   : > { %23243 = vmatprep.mubr.msk.f32.mxu1 %vm24755_vm0, %v31077_v17  ;;  %21432 = vmatmul.mubr.msk.f32.vlgmr.msra.gmra.mxu0 %vm422_vm3, %v21423_v21 }
 0x1c2   : > { %23244 = vmatmul.mubr.msk.f32.vlgmr.msra.gmra.mxu1 %vm422_vm3, %v21423_v21  ;;  %21437 = vmatpush1.msk.msra.mxu0 %vm426_vm2, %v25087_v35  ;;  %v3456_v43 = vpop.f32.mrf.mxu0 }
 0x1c3   : > { %21440 = vmatpush1.msk.msra.mxu1 %vm426_vm2, %v25059_v29  ;;  %21442 = vmatprep.subr.msk.mxu0 %vm426_vm2, %v7613_v22  ;;  %v3673_v49 = vadd.f32 %v3456_v43, %v3340_v52 }
 0x1c4   : > { %7685 = vmatprep.mubr.f32.mxu0 %v31077_v17  ;;  %7756 = vmatprep.mubr.f32.mxu1 %v31077_v17  ;;  %v25915_v35 = vpop.f32.mrf.mxu0 }
 0x1c5   : > { %23246 = vmatprep.subr.mxu1 %v31077_v17  ;;  %21438 = vmatmul.mubr.msk.f32.vlgmr.msra.gmra.mxu0 %vm422_vm3, %v21435_v32 }
 0x1c6   : > { %21441 = vmatmul.mubr.msk.f32.vlgmr.msra.gmra.mxu1 %vm422_vm3, %v21435_v32  ;;  %21443 = vmatpush1.msk.msra.mxu0 %vm426_vm2, %v25110_v40 }
 0x1c7   : > { %23247 = vmatpush3.msk.msra.mxu1 %vm426_vm2, %v7612_v58  ;;  %21448 = vmatprep.subr.msk.mxu0 %vm426_vm2, %v25140_v46  ;;  %v7915_v46 = vsel %vm1370_vm5, %v25146_v48, %v7914_v30  ;;  %vm9691_vm5 = vcmask 982016  }
 0x1c8   : > { %21451 = vmatprep.subr.msk.mxu1 %vm426_vm2, %v25171_v54  ;;  %7827 = vmatprep.mubr.f32.mxu0 %v31077_v17  ;;  %v3527_v29 = vpop.f32.mrf.mxu1  ;;  %v21447_v54 = vld [vmem:[%s31056_s1 + $0xb8] sm:$0x3f] }
 0x1c9   : > { %23248 = vmatprep.mubr.msk.f32.mxu1 %vm24755_vm0, %v31077_v17  ;;  %21444 = vmatmul.mubr.msk.f32.vlgmr.msra.gmra.mxu0 %vm422_vm3, %v21435_v32  ;;  %v3675_v40 = vadd.f32 %v3527_v29, %v3342_v5 }
 0x1ca   : > { %23249 = vmatmul.mubr.msk.f32.vlgmr.msra.gmra.mxu1 %vm422_vm3, %v21435_v32  ;;  %21449 = vmatpush1.msk.msra.mxu0 %vm426_vm2, %v25132_v45  ;;  %v25925_v63 = vpop.f32.mrf.mxu1 }
 0x1cb   : > { %21452 = vmatpush1.msk.msra.mxu1 %vm426_vm2, %v25127_v44  ;;  %21454 = vmatprep.subr.msk.mxu0 %vm426_vm2, %v7915_v46  ;;  %v8216_v44 = vpop.permute.xlu1 %8215 }
 0x1cc   : > { %7987 = vmatprep.mubr.f32.mxu0 %v31077_v17  ;;  %8058 = vmatprep.mubr.f32.mxu1 %v31077_v17 }
 0x1cd   : > { %23251 = vmatprep.subr.mxu1 %v31077_v17  ;;  %21450 = vmatmul.mubr.msk.f32.vlgmr.msra.gmra.mxu0 %vm422_vm3, %v21447_v54  ;;  %v3598_v45 = vpop.f32.mrf.mxu0  ;;  %v3669_v48 = vpop.f32.mrf.mxu1 }
 0x1ce   : > { %21453 = vmatmul.mubr.msk.f32.vlgmr.msra.gmra.mxu1 %vm422_vm3, %v21447_v54  ;;  %21455 = vmatpush1.msk.msra.mxu0 %vm426_vm2, %v25162_v51  ;;  %v3677_v27 = vadd.f32 %v3598_v45, %v3344_v15  ;;  %v3679_v4 = vadd.f32 %v3669_v48, %v3346_v19  ;;  %v8217_v51 = vsel %vm1700_vm6, %v25206_v61, %v8216_v44 }
 0x1cf   : > { %23252 = vmatpush3.msk.msra.mxu1 %vm426_vm2, %v7914_v30  ;;  %21460 = vmatprep.subr.msk.mxu0 %vm426_vm2, %v25196_v60  ;;  %v23185_v37 = vpop.f32.mrf.mxu1  ;;  %v21459_v60 = vld [vmem:[%s31056_s1 + $0xc0] sm:$0x3f] }
 0x1d0   : > { %21463 = vmatprep.subr.msk.mxu1 %vm426_vm2, %v25223_v10  ;;  %8129 = vmatprep.mubr.f32.mxu0 %v31077_v17  ;;  %v25957_v10 = vpop.f32.mrf.mxu0 }
 0x1d1   : > { %23253 = vmatprep.mubr.msk.f32.mxu1 %vm24755_vm0, %v31077_v17  ;;  %21456 = vmatmul.mubr.msk.f32.vlgmr.msra.gmra.mxu0 %vm422_vm3, %v21447_v54 }
 0x1d2   : > { %23254 = vmatmul.mubr.msk.f32.vlgmr.msra.gmra.mxu1 %vm422_vm3, %v21447_v54  ;;  %21461 = vmatpush1.msk.msra.mxu0 %vm426_vm2, %v25177_v55 }
 0x1d3   : > { %21464 = vmatpush1.msk.msra.mxu1 %vm426_vm2, %v25192_v59  ;;  %21466 = vmatprep.subr.msk.mxu0 %vm426_vm2, %v8217_v51 }
 0x1d4   : > { %8289 = vmatprep.mubr.f32.mxu0 %v31077_v17  ;;  %8360 = vmatprep.mubr.f32.mxu1 %v31077_v17 }
 0x1d5   : > { %21462 = vmatmul.mubr.msk.f32.vlgmr.msra.gmra.mxu0 %vm422_vm3, %v21459_v60  ;;  %23256 = vmatprep.subr.mxu1 %v31077_v17 }
 0x1d6   : > { %21465 = vmatmul.mubr.msk.f32.vlgmr.msra.gmra.mxu1 %vm422_vm3, %v21459_v60  ;;  %21467 = vmatpush1.msk.msra.mxu0 %vm426_vm2, %v25216_v9 }
 0x1d7   : > { %8431 = vmatprep.mubr.f32.mxu0 %v31077_v17  ;;  %23257 = vmatpush3.msk.msra.mxu1 %vm426_vm2, %v8216_v44  ;;  %v3789_v55 = vpop.f32.mrf.mxu0  ;;  %vm8641_vm2 = vcmask 48128  }
 0x1d8   : > { %23258 = vmatprep.mubr.msk.f32.mxu1 %vm24755_vm0, %v31077_v17  ;;  %v4006_v59 = vadd.f32 %v3789_v55, %v3673_v49 }
 0x1d9   : > { %21468 = vmatmul.mubr.msk.f32.vlgmr.msra.gmra.mxu0 %vm422_vm3, %v21459_v60  ;;  %v25974_v61 = vpop.f32.mrf.mxu0 }
 0x1da   : > { %23259 = vmatmul.mubr.msk.f32.vlgmr.msra.gmra.mxu1 %vm422_vm3, %v21459_v60  ;;  %8723 = vmatprep.mubr.f32.mxu0 %v31077_v17  ;;  %vm9418_vm3 = vcmask 998400  }
 0x1db   : > { %8800 = vmatprep.mubr.f32.mxu1 %v31077_v17 }
 0x1dd   : > { %v3860_v9 = vpop.f32.mrf.mxu1 }
 0x1de   : > { %v4008_v7 = vadd.f32 %v3860_v9, %v3675_v40 }
 0x1df   : > { %v25976_v1 = vpop.f32.mrf.mxu1 }
 0x1e1   : > { %v3931_v28 = vpop.f32.mrf.mxu0  ;;  %v4002_v38 = vpop.f32.mrf.mxu1 }
 0x1e2   : > { %v4010_v56 = vadd.f32 %v3931_v28, %v3677_v27  ;;  %v4012_v53 = vadd.f32 %v4002_v38, %v3679_v4 }
 0x1e3   : > { %v23190_v50 = vpop.f32.mrf.mxu1  ;;  %v25978_v23 = vpop.f32.mrf.mxu0 }
 0x1e8   : > { %v4122_v52 = vpop.f32.mrf.mxu0 }
 0x1e9   : > { %v4339_v3 = vadd.f32 %v4122_v52, %v4006_v59 }
 0x1ea   : > { %v25980_v8 = vpop.f32.mrf.mxu0 }
 0x1ed   : > { %v4193_v34 = vpop.f32.mrf.mxu1 }
 0x1ee   : > { %v4341_v5 = vadd.f32 %v4193_v34, %v4008_v7 }
 0x1ef   : > { %v25982_v21 = vpop.f32.mrf.mxu1 }
 0x1f1   : > { %v4264_v62 = vpop.f32.mrf.mxu0  ;;  %v4335_v15 = vpop.f32.mrf.mxu1 }
 0x1f2   : > { %v4343_v20 = vadd.f32 %v4264_v62, %v4010_v56  ;;  %v4345_v19 = vadd.f32 %v4335_v15, %v4012_v53 }
 0x1f3   : > { %v23195_v58 = vpop.f32.mrf.mxu1  ;;  %v25984_v39 = vpop.f32.mrf.mxu0 }
 0x1f8   : > { %v4455_v22 = vpop.f32.mrf.mxu0 }
 0x1f9   : > { %v4672_v32 = vadd.f32 %v4455_v22, %v4339_v3 }
 0x1fa   : > { %v25986_v30 = vpop.f32.mrf.mxu0 }
 0x1fd   : > { %v4526_v43 = vpop.f32.mrf.mxu1 }
 0x1fe   : > { %v4674_v49 = vadd.f32 %v4526_v43, %v4341_v5 }
 0x1ff   : > { %v25988_v29 = vpop.f32.mrf.mxu1 }
 0x201   : > { %v4597_v40 = vpop.f32.mrf.mxu0  ;;  %v4668_v46 = vpop.f32.mrf.mxu1 }
 0x202   : > { %v4676_v54 = vadd.f32 %v4597_v40, %v4343_v20  ;;  %v4678_v45 = vadd.f32 %v4668_v46, %v4345_v19 }
 0x203   : > { %v23200_v48 = vpop.f32.mrf.mxu1  ;;  %v25990_v27 = vpop.f32.mrf.mxu0 }
 0x208   : > { %v4788_v4 = vpop.f32.mrf.mxu0 }
 0x209   : > { %v5005_v44 = vadd.f32 %v4788_v4, %v4672_v32 }
 0x20a   : > { %v25992_v60 = vpop.f32.mrf.mxu0 }
 0x20d   : > { %v4859_v37 = vpop.f32.mrf.mxu1 }
 0x20e   : > { %v5007_v51 = vadd.f32 %v4859_v37, %v4674_v49 }
 0x20f   : > { %v25994_v55 = vpop.f32.mrf.mxu1 }
 0x211   : > { %v4930_v59 = vpop.f32.mrf.mxu0  ;;  %v5001_v9 = vpop.f32.mrf.mxu1 }
 0x212   : > { %v25996_v7 = vadd.f32 %v4930_v59, %v4676_v54  ;;  %v5011_v28 = vadd.f32 %v5001_v9, %v4678_v45 }
 0x213   : > { %v23205_v38 = vpop.f32.mrf.mxu1  ;;  %v25998_v56 = vpop.f32.mrf.mxu0 }
 0x218   : > { %v5121_v53 = vpop.f32.mrf.mxu0 }
 0x219   : > { %v26000_v50 = vadd.f32 %v5121_v53, %v5005_v44 }
 0x21a   : > { %v26006_v43 = vpop.f32.mrf.mxu0 }
 0x21d   : > { %v5192_v52 = vpop.f32.mrf.mxu1 }
 0x21e   : > { %v5340_v3 = vadd.f32 %v5192_v52, %v5007_v51 }
 0x21f   : > { %v26002_v34 = vpop.f32.mrf.mxu1 }
 0x221   : > { %v5334_v5 = vpop.f32.mrf.mxu1  ;;  %v26008_v40 = vpop.f32.mrf.mxu0 }
 0x222   : > { %v5344_v62 = vadd.f32 %v5334_v5, %v5011_v28 }
 0x223   : > { %v23210_v15 = vpop.f32.mrf.mxu1  ;;  %v26010_v46 = vpop.f32.mrf.mxu0 }
 0x228   : > { %v26012_v54 = vpop.f32.mrf.mxu0 }
 0x22a   : > { %v26016_v4 = vpop.f32.mrf.mxu0 }
 0x22d   : > { %v5525_v20 = vpop.f32.mrf.mxu1 }
 0x22e   : > { %v5673_v19 = vadd.f32 %v5525_v20, %v5340_v3 }
 0x22f   : > { %v26004_v58 = vpop.f32.mrf.mxu1 }
 0x231   : > { %v5667_v22 = vpop.f32.mrf.mxu1  ;;  %v26020_v37 = vpop.f32.mrf.mxu0 }
 0x232   : > { %v5677_v32 = vadd.f32 %v5667_v22, %v5344_v62 }
 0x233   : > { %v23215_v49 = vpop.f32.mrf.mxu1  ;;  %v26022_v28 = vpop.f32.mrf.mxu0 }
 0x234   : > { %v810_v49 = vadd.f32 %v25647_v42, %v25615_v47 }
 0x238   : > { %v26024_v38 = vpop.f32.mrf.mxu0 }
 0x23a   : > { %v26026_v53 = vpop.f32.mrf.mxu0 }
 0x23d   : > { %v5858_v45 = vpop.f32.mrf.mxu1 }
 0x23e   : > { %v26014_v48 = vadd.f32 %v5858_v45, %v5673_v19  ;;  %v881_v45 = vadd.f32 %v25628_v18, %v25623_v11 }
 0x23f   : > { %v26018_v44 = vpop.f32.mrf.mxu1 }
 0x240   : > { %v1350_v17 = vadd.f32 %v25656_v12, %v881_v45 }
 0x241   : > { %v6000_v51 = vpop.f32.mrf.mxu1  ;;  %v26028_v52 = vpop.f32.mrf.mxu0 }
 0x242   : > { %v6010_v59 = vadd.f32 %v6000_v51, %v5677_v32  ;;  %v1680_v11 = vadd.f32 %v25687_v2, %v1350_v17  ;;  %v31090_v17 = vld [vmem:[#allocation3_spill] sm:$0xff] }
 0x243   : > { %v23220_v9 = vpop.f32.mrf.mxu1  ;;  %v26034_v62 = vpop.f32.mrf.mxu0 }
 0x244   : > { %31080 = vst [vmem:[#allocation10_spill] sm:$0xff] %v26034_v62  ;;  %v1348_v9 = vadd.f32 %v25665_v16, %v810_v49  ;;  %v2010_v45 = vadd.f32 %v25707_v33, %v1680_v11  ;;  %v31092_v33 = vld [vmem:[#allocation6_spill] sm:$0xff] }
 0x246   : > { %v1678_v47 = vadd.f32 %v25690_v26, %v1348_v9  ;;  %v31089_v26 = vld [vmem:[#allocation5_spill] sm:$0xff] }
 0x247   : > { %v2344_v9 = vadd.f32 %v31089_v26, %v2010_v45  ;;  %v31094_v26 = vld [vmem:[#allocation8_spill] sm:$0xff] }
 0x248   : > { %v26038_v19 = vpop.f32.mrf.mxu0  ;;  %v2008_v49 = vadd.f32 %v25713_v57, %v1678_v47 }
 0x249   : > { %v2677_v57 = vadd.f32 %v25770_v41, %v2344_v9 }
 0x24a   : > { %v26040_v32 = vpop.f32.mrf.mxu0 }
 0x24b   : > { %v3010_v45 = vadd.f32 %v25806_v0, %v2677_v57 }
 0x24d   : > { %v26030_v3 = vpop.f32.mrf.mxu1 }
 0x24f   : > { %v26032_v5 = vpop.f32.mrf.mxu1 }
 0x251   : > { %v6333_v15 = vpop.f32.mrf.mxu1  ;;  %v26046_v51 = vpop.f32.mrf.mxu0 }
 0x252   : > { %v26036_v20 = vadd.f32 %v6333_v15, %v6010_v59  ;;  %v952_v15 = vadd.f32 %v25659_v14, %v25632_v24  ;;  %v31087_v14 = vld [vmem:[#allocation2_spill] sm:$0xff] }
 0x253   : > { %v23225_v22 = vpop.f32.mrf.mxu1  ;;  %v26050_v62 = vpop.f32.mrf.mxu0 }
 0x254   : > { %31081 = vst [vmem:[#allocation11_spill] sm:$0xff] %v26036_v20  ;;  %31082 = vst [vmem:[#allocation12_spill] sm:$0xff] %v26050_v62  ;;  %v1352_v42 = vadd.f32 %v25676_v31, %v952_v15  ;;  %v31091_v15 = vld [vmem:[#allocation7_spill] sm:$0xff] }
 0x256   : > { %v1682_v62 = vadd.f32 %v31087_v14, %v1352_v42 }
 0x258   : > { %v26056_v22 = vpop.f32.mrf.mxu0 }
 0x259   : > { %31083 = vst [vmem:[#allocation13_spill] sm:$0xff] %v26056_v22 }
 0x25a   : > { %v26065_v12 = vpop.f32.mrf.mxu0 }
 0x25d   : > { %v26052_v59 = vpop.f32.mrf.mxu1 }
 0x25f   : > { %v26058_v20 = vpop.f32.mrf.mxu1 }
 0x260   : > { %31084 = vst [vmem:[#allocation14_spill] sm:$0xff] %v26058_v20  ;;  %v31088_v20 = vld [vmem:[#allocation4_spill] sm:$0xff] }
 0x261   : > { %v26062_v18 = vpop.f32.mrf.mxu1  ;;  %v26069_v24 = vpop.f32.mrf.mxu0  ;;  %v2342_v22 = vadd.f32 %v31088_v20, %v2008_v49  ;;  %v31093_v20 = vld [vmem:[#allocation9_spill] sm:$0xff] }
 0x262   : > { %31085 = vst [vmem:[#allocation15_spill] sm:$0xff] %v26062_v18  ;;  %31086 = vst [vmem:[#allocation16_spill] sm:$0xff] %v26069_v24  ;;  %v2012_v18 = vadd.f32 %v31090_v17, %v1682_v62 }
 0x263   : > { %v23230_v16 = vpop.f32.mrf.mxu1  ;;  %v26074_v2 = vpop.f32.mrf.mxu0 }
 0x264   : > { %v2675_v16 = vadd.f32 %v31091_v15, %v2342_v22  ;;  %v2346_v11 = vadd.f32 %v31092_v33, %v2012_v18  ;;  %v3343_v18 = vadd.f32 %v25865_v25, %v3010_v45 }
 0x266   : > { %v3008_v49 = vadd.f32 %v31093_v20, %v2675_v16  ;;  %v2679_v22 = vadd.f32 %v31094_v26, %v2346_v11  ;;  %v3676_v11 = vadd.f32 %v25925_v63, %v3343_v18 }
 0x268   : > { %v26077_v31 = vpop.f32.mrf.mxu0  ;;  %v3341_v9 = vadd.f32 %v25849_v6, %v3008_v49  ;;  %v3012_v33 = vadd.f32 %v25817_v36, %v2679_v22  ;;  %v4009_v22 = vadd.f32 %v25976_v1, %v3676_v11 }
 0x26a   : > { %v26084_v24 = vpop.f32.mrf.mxu0  ;;  %v3674_v57 = vadd.f32 %v25915_v35, %v3341_v9  ;;  %v3345_v6 = vadd.f32 %v25877_v13, %v3012_v33  ;;  %v4342_v18 = vadd.f32 %v25982_v21, %v4009_v22 }
 0x26c   : > { %v4007_v36 = vadd.f32 %v25974_v61, %v3674_v57  ;;  %v3678_v35 = vadd.f32 %v25957_v10, %v3345_v6  ;;  %v4675_v61 = vadd.f32 %v25988_v29, %v4342_v18 }
 0x26d   : > { %v26081_v47 = vpop.f32.mrf.mxu1 }
 0x26e   : > { %v4340_v9 = vadd.f32 %v25980_v8, %v4007_v36  ;;  %v4011_v1 = vadd.f32 %v25978_v23, %v3678_v35  ;;  %v5008_v8 = vadd.f32 %v25994_v55, %v4675_v61  ;;  %v5342_v35 = vadd.f32 %v26008_v40, %v25996_v7 }
 0x26f   : > { %v26086_v42 = vpop.f32.mrf.mxu1  ;;  %v5671_v55 = vadd.f32 %v26012_v54, %v26000_v50  ;;  %v6339_v7 = vadd.f32 %v26030_v3, %v26014_v48 }
 0x270   : > { %v4673_v33 = vadd.f32 %v25986_v30, %v4340_v9  ;;  %v4344_v21 = vadd.f32 %v25984_v39, %v4011_v1  ;;  %v31096_v1 = vld [vmem:[#allocation13_spill] sm:$0xff] }
 0x271   : > { %v26090_v14 = vpop.f32.mrf.mxu0  ;;  %v26092_v62 = vpop.f32.mrf.mxu1 }
 0x272   : > { %v5006_v10 = vadd.f32 %v25992_v60, %v4673_v33  ;;  %v4677_v22 = vadd.f32 %v25990_v27, %v4344_v21  ;;  %v5675_v33 = vadd.f32 %v26020_v37, %v5342_v35  ;;  %v6004_v27 = vadd.f32 %v26024_v38, %v5671_v55  ;;  %v31098_v21 = vld [vmem:[#allocation10_spill] sm:$0xff]  ;;  %v31101_v55 = vld [vmem:[#allocation11_spill] sm:$0xff] }
 0x273   : > { %v26095_v17 = vpop.f32.mrf.mxu0  ;;  %v23235_v41 = vpop.f32.mrf.mxu1  ;;  %v6672_v37 = vadd.f32 %v26052_v59, %v6339_v7 }
 0x274   : > { %v5339_v30 = vadd.f32 %v26006_v43, %v5006_v10  ;;  %v5010_v43 = vadd.f32 %v25998_v56, %v4677_v22  ;;  %v6008_v56 = vadd.f32 %v26028_v52, %v5675_v33  ;;  %v31097_v10 = vld [vmem:[#allocation14_spill] sm:$0xff] }
 0x275   : > { %v26099_v15 = vpop.f32.mrf.mxu0  ;;  %v7005_v52 = vadd.f32 %v26081_v47, %v6672_v37 }
 0x276   : > { %v26102_v16 = vpop.f32.mrf.mxu1  ;;  %v5672_v23 = vadd.f32 %v26016_v4, %v5339_v30  ;;  %v5343_v50 = vadd.f32 %v26010_v46, %v5010_v43  ;;  %v6341_v46 = vadd.f32 %v26046_v51, %v6008_v56 }
 0x277   : > { %v26104_v0 = vpop.f32.mrf.mxu0  ;;  %v7302_v51 = vadd.f32 %v26102_v16, %v7005_v52 }
 0x278   : > { %v26107_v20 = vpop.f32.mrf.mxu1 }
 0x279   : > { %v26110_v26 = vpop.f32.mrf.mxu0 }
 0x27a   : > { %v26113_v49 = vpop.f32.mrf.mxu1 }
 0x27b   : > { %v26115_v25 = vpop.f32.mrf.mxu0 }
 0x27c   : > { %31095 = vst [vmem:[#allocation2_spill] sm:$0xff] %v26115_v25  ;;  %v23240_v45 = vpop.f32.mrf.mxu1 }
 0x27d   : > { %v26119_v41 = vpop.f32.mrf.mxu0  ;;  %v5341_v45 = vadd.f32 %v26002_v34, %v5008_v8  ;;  %v6005_v34 = vadd.f32 %v26026_v53, %v5672_v23  ;;  %v6337_v53 = vadd.f32 %v26038_v19, %v6004_v27  ;;  %v31100_v23 = vld [vmem:[#allocation12_spill] sm:$0xff] }
 0x27e   : > { %v26123_v63 = vpop.f32.mrf.mxu1 }
 0x27f   : > { %v26126_v13 = vpop.f32.mrf.mxu0  ;;  %v5674_v39 = vadd.f32 %v26004_v58, %v5341_v45  ;;  %v6338_v58 = vadd.f32 %v26040_v32, %v6005_v34  ;;  %v6670_v32 = vadd.f32 %v31096_v1, %v6337_v53 }
 0x280   : > { %v26129_v25 = vpop.f32.mrf.mxu1 }
 0x281   : > { %v26132_v57 = vpop.f32.mrf.mxu0  ;;  %v6007_v4 = vadd.f32 %v26018_v44, %v5674_v39  ;;  %v5676_v44 = vadd.f32 %v26022_v28, %v5343_v50  ;;  %v6671_v48 = vadd.f32 %v26065_v12, %v6338_v58  ;;  %v7003_v28 = vadd.f32 %v26077_v31, %v6670_v32  ;;  %v31102_v39 = vld [vmem:[#allocation15_spill] sm:$0xff] }
 0x282   : > { %v26136_v11 = vpop.f32.mrf.mxu1  ;;  %v6676_v47 = vadd.f32 %v31102_v39, %v31101_v55  ;;  %v7604_v31 = vadd.f32 %v26123_v63, %v7302_v51 }
 0x283   : > { %v26139_v6 = vpop.f32.mrf.mxu0  ;;  %v6340_v61 = vadd.f32 %v26032_v5, %v6007_v4  ;;  %v6009_v5 = vadd.f32 %v31098_v21, %v5676_v44  ;;  %v7004_v59 = vadd.f32 %v26084_v24, %v6671_v48  ;;  %v7300_v33 = vadd.f32 %v26099_v15, %v7003_v28 }
 0x284   : > { %v23245_v36 = vpop.f32.mrf.mxu1  ;;  %v7009_v4 = vadd.f32 %v26092_v62, %v6676_v47 }
 0x285   : > { %v26144_v29 = vpop.f32.mrf.mxu0  ;;  %v6673_v8 = vadd.f32 %v31097_v10, %v6340_v61  ;;  %v31099_v36 = vld [vmem:[#allocation16_spill] sm:$0xff]  ;;  %v6342_v35 = vadd.f32 %v31100_v23, %v6009_v5  ;;  %v7301_v43 = vadd.f32 %v26104_v0, %v7004_v59  ;;  %v7602_v0 = vadd.f32 %v26119_v41, %v7300_v33 }
 0x286   : > { %v7758_v60 = vpop.f32.mrf.mxu1  ;;  %v6674_v45 = vadd.f32 %v31099_v36, %v6341_v46  ;;  %v7306_v63 = vadd.f32 %v26113_v49, %v7009_v4 }
 0x287   : > { %v7689_v9 = vpop.f32.mrf.mxu0  ;;  %v7006_v12 = vadd.f32 %v26086_v42, %v6673_v8  ;;  %v6675_v16 = vadd.f32 %v26074_v2, %v6342_v35  ;;  %v7603_v7 = vadd.f32 %v26126_v13, %v7301_v43  ;;  %v7906_v56 = vadd.f32 %v7758_v60, %v7604_v31 }
 0x288   : > { %v7760_v18 = vpop.f32.mrf.mxu1  ;;  %v7007_v24 = vadd.f32 %v26090_v14, %v6674_v45  ;;  %v7904_v62 = vadd.f32 %v26144_v29, %v7602_v0  ;;  %v7608_v41 = vadd.f32 %v26136_v11, %v7306_v63 }
 0x289   : > { %v7829_v40 = vpop.f32.mrf.mxu0  ;;  %v7303_v27 = vadd.f32 %v26107_v20, %v7006_v12  ;;  %v7008_v20 = vadd.f32 %v26095_v17, %v6675_v16  ;;  %v7905_v53 = vadd.f32 %v7689_v9, %v7603_v7 }
 0x28a   : > { %v7900_v54 = vpop.f32.mrf.mxu1  ;;  %v7304_v58 = vadd.f32 %v26110_v26, %v7007_v24  ;;  %v31103_v26 = vld [vmem:[#allocation2_spill] sm:$0xff] }
 0x28b   : > { %v26166_v38 = vpop.f32.mrf.mxu0  ;;  %v7605_v14 = vadd.f32 %v26129_v25, %v7303_v27  ;;  %v7305_v48 = vadd.f32 %v31103_v26, %v7008_v20 }
 0x28c   : > { %v23250_v3 = vpop.f32.mrf.mxu1  ;;  %v7606_v2 = vadd.f32 %v26132_v57, %v7304_v58  ;;  %v7910_v57 = vadd.f32 %v7900_v54, %v7608_v41 }
 0x28d   : > { %v7989_v19 = vpop.f32.mrf.mxu0  ;;  %v7907_v13 = vadd.f32 %v7760_v18, %v7605_v14  ;;  %v8519_v3 = vpop.permute.xlu0 %8518  ;;  %v7607_v32 = vadd.f32 %v26139_v6, %v7305_v48 }
 0x28e   : > { %v8060_v30 = vpop.f32.mrf.mxu1  ;;  %v7908_v46 = vadd.f32 %v7829_v40, %v7606_v2  ;;  %v8206_v17 = vadd.f32 %v7989_v19, %v7904_v62 }
 0x28f   : > { %v7991_v22 = vpop.f32.mrf.mxu0  ;;  %v8208_v37 = vadd.f32 %v8060_v30, %v7906_v56  ;;  %v7909_v11 = vadd.f32 %v26166_v38, %v7607_v32 }
 0x290   : > { %v8062_v34 = vpop.f32.mrf.mxu1  ;;  %v8207_v25 = vadd.f32 %v7991_v22, %v7905_v53 }
 0x291   : > { %v8131_v42 = vpop.f32.mrf.mxu0  ;;  %v8209_v1 = vadd.f32 %v8062_v34, %v7907_v13 }
 0x292   : > { %v8202_v50 = vpop.f32.mrf.mxu1  ;;  %v8210_v18 = vadd.f32 %v8131_v42, %v7908_v46 }
 0x293   : > { %v8133_v15 = vpop.f32.mrf.mxu0  ;;  %v8212_v59 = vadd.f32 %v8202_v50, %v7910_v57 }
 0x294   : > { %v23255_v61 = vpop.f32.mrf.mxu1  ;;  %v8211_v51 = vadd.f32 %v8133_v15, %v7909_v11 }
 0x295   : > { %v8291_v44 = vpop.f32.mrf.mxu0 }
 0x296   : > { %v8362_v60 = vpop.f32.mrf.mxu1  ;;  %v8508_v8 = vadd.f32 %v8291_v44, %v8206_v17 }
 0x297   : > { %v8510_v49 = vadd.f32 %v8362_v60, %v8208_v37  ;;  %v8293_v9 = vpop.f32.mrf.mxu0 }
 0x298   : > { %v8509_v10 = vadd.f32 %v8293_v9, %v8207_v25  ;;  %v8364_v29 = vpop.f32.mrf.mxu1  ;;  %v8521_v22 = vadd.f32 %v8519_v3, %v8508_v8 }
 0x299   : > { %v8511_v52 = vadd.f32 %v8364_v29, %v8209_v1  ;;  %v8433_v21 = vpop.f32.mrf.mxu0  ;;  %v8523_v5 = vadd.f32 %v8519_v3, %v8510_v49 }
 0x29a   : > { %v8504_v30 = vpop.f32.mrf.mxu1  ;;  %v8512_v36 = vadd.f32 %v8433_v21, %v8210_v18  ;;  %v8522_v45 = vadd.f32 %v8519_v3, %v8509_v10  ;;  %v8528_v39 = vmax.f32 %v8521_v22, 0.0  ;;  %v15135_v22 = vld [vmem:[%s31059_s4] sm:$0xff] }
 0x29b   : > { %v8530_v40 = vmax.f32 %v8523_v5, 0.0  ;;  %v8524_v19 = vadd.f32 %v8519_v3, %v8511_v52  ;;  %v8435_v28 = vpop.f32.mrf.mxu0  ;;  %v8514_v6 = vadd.f32 %v8504_v30, %v8212_v59 }
 0x29c   : > { %v23260_v12 = vpop.f32.mrf.mxu1  ;;  %v8525_v23 = vadd.f32 %v8519_v3, %v8512_v36  ;;  %v8513_v35 = vadd.f32 %v8435_v28, %v8211_v51  ;;  %v8529_v55 = vmax.f32 %v8522_v45, 0.0  ;;  %v21471_v36 = vld [vmem:[%s31058_s3 + $0x10] sm:$0xff]  ;;  %v31104_v51 = vmov 0.0  }
 0x29d   : > { %8546 = vrot.lane.b32.xlu1 %v8530_v40, %s24754_s23  ;;  %v8531_v54 = vmax.f32 %v8524_v19, 0.0  ;;  %v8527_v38 = vadd.f32 %v8519_v3, %v8514_v6  ;;  %v21472_v12 = vld [vmem:[%s31058_s3 + $0x18] sm:$0xff] }
 0x29e   : > { %v8532_v47 = vmax.f32 %v8525_v23, 0.0  ;;  %v8526_v43 = vadd.f32 %v8519_v3, %v8513_v35 }
 0x29f   : > { %8548 = vrot.lane.b32.xlu0 %v8531_v54, %s24754_s23  ;;  %v8534_v34 = vmax.f32 %v8527_v38, 0.0  ;;  %v8617_v38 = vld [vmem:[%s31058_s3] sm:$0xff] }
 0x2a0   : > { %v8533_v24 = vmax.f32 %v8526_v43, 0.0 }
 0x2a1   : > { %8544 = vrot.lane.b32.xlu1 %v8529_v55, %s24754_s23 }
 0x2a3   : > { %8542 = vrot.lane.b32.xlu0 %v8528_v39, %s24754_s23 }
 0x2a5   : > { %8550 = vrot.lane.b32.xlu1 %v8532_v47, %s24754_s23 }
 0x2a7   : > { %8554 = vrot.lane.b32.xlu0 %v8534_v34, %s24754_s23 }
 0x2a9   : > { %8552 = vrot.lane.b32.xlu1 %v8533_v24, %s24754_s23  ;;  %s24775_s23 = smov 122  }
 0x30f   : > { %v8547_v33 = vpop.permute.xlu1 %8546 }
 0x311   : > { %v8549_v27 = vpop.permute.xlu0 %8548 }
 0x312   : > { %v8558_v31 = vsel %vm415_vm1, %v8547_v33, %v8549_v27 }
 0x313   : > { %v8571_v42 = vmax.f32 %v8530_v40, %v8558_v31  ;;  %v8545_v16 = vpop.permute.xlu1 %8544  ;;  %v21495_v31 = vld [vmem:[%s31058_s3 + $0x20] sm:$0xff] }
 0x314   : > { %v8557_v4 = vsel %vm415_vm1, %v8545_v16, %v8547_v33 }
 0x315   : > { %v8570_v7 = vmax.f32 %v8529_v55, %v8557_v4  ;;  %8587 = vrot.lane.b32.xlu0 %v8571_v42, %s24759_s27  ;;  %v8543_v50 = vpop.permute.xlu0 %8542 }
 0x316   : > { %v8556_v58 = vsel %vm415_vm1, %v8543_v50, %v8545_v16  ;;  %v21496_v50 = vld [vmem:[%s31058_s3 + $0x28] sm:$0xff] }
 0x317   : > { %v8569_v0 = vmax.f32 %v8528_v39, %v8556_v58  ;;  %8585 = vrot.lane.b32.xlu1 %v8570_v7, %s24759_s27  ;;  %v8551_v14 = vpop.permute.xlu1 %8550 }
 0x318   : > { %v8559_v56 = vsel %vm415_vm1, %v8549_v27, %v8551_v14 }
 0x319   : > { %v8572_v15 = vmax.f32 %v8531_v54, %v8559_v56  ;;  %8583 = vrot.lane.b32.xlu0 %v8569_v0, %s24759_s27  ;;  %v8555_v20 = vpop.permute.xlu0 %8554 }
 0x31a   : > { %v26221_v13 = vmax.f32 %v8534_v34, %v8555_v20  ;;  %v8618_v34 = vld [vmem:[%s31058_s3 + $0x8] sm:$0xff] }
 0x31b   : > { %8589 = vrot.lane.b32.xlu1 %v8572_v15, %s24759_s27  ;;  %v8553_v63 = vpop.permute.xlu1 %8552 }
 0x31c   : > { %v8560_v53 = vsel %vm415_vm1, %v8551_v14, %v8553_v63  ;;  %v8561_v61 = vsel %vm415_vm1, %v8553_v63, %v8555_v20  ;;  %vm8648_vm1 = vcmask 1045504  }
 0x31d   : > { %v8573_v2 = vmax.f32 %v8532_v47, %v8560_v53  ;;  %v8574_v62 = vmax.f32 %v8533_v24, %v8561_v61  ;;  %v21508_v53 = vld [vmem:[%s31058_s3 + $0x30] sm:$0xff] }
 0x31f   : > { %8591 = vrot.lane.b32.xlu1 %v8573_v2, %s24759_s27  ;;  %8593 = vrot.lane.b32.xlu0 %v8574_v62, %s24759_s27 }
 0x323   : > { %8595 = vrot.lane.b32.xlu1 %v26221_v13, %s24759_s27  ;;  %s24776_s27 = smov 120  }
 0x387   : > { %v8588_v37 = vpop.permute.xlu0 %8587 }
 0x389   : > { %v8586_v44 = vpop.permute.xlu1 %8585 }
 0x38a   : > { %v8598_v26 = vsel %vm2033_vm7, %v8586_v44, %v8588_v37 }
 0x38b   : > { %v26226_v48 = vmax.f32 %v8570_v7, %v8598_v26  ;;  %v8584_v41 = vpop.permute.xlu0 %8583 }
 0x38c   : > { %v8597_v25 = vsel %vm2033_vm7, %v8584_v41, %v8586_v44 }
 0x38d   : > { %v8590_v60 = vpop.permute.xlu1 %8589  ;;  %8629 = vrot.lane.b32.xlu0 %v26226_v48, %s24756_s24  ;;  %v26232_v46 = vmax.f32 %v8569_v0, %v8597_v25  ;;  %v21521_v25 = vld [vmem:[%s31058_s3 + $0x40] sm:$0xff] }
 0x38e   : > { %v8599_v3 = vsel %vm2033_vm7, %v8588_v37, %v8590_v60  ;;  %v21509_v37 = vld [vmem:[%s31058_s3 + $0x38] sm:$0xff] }
 0x38f   : > { %v26234_v17 = vmax.f32 %v8571_v42, %v8599_v3 }
 0x391   : > { %v8592_v1 = vpop.permute.xlu1 %8591  ;;  %8631 = vrot.lane.b32.xlu1 %v26234_v17, %s24756_s24  ;;  %8627 = vrot.lane.b32.xlu0 %v26232_v46, %s24756_s24  ;;  %v8594_v49 = vpop.permute.xlu0 %8593 }
 0x392   : > { %v8600_v9 = vsel %vm2033_vm7, %v8590_v60, %v8592_v1  ;;  %v8601_v32 = vsel %vm2033_vm7, %v8592_v1, %v8594_v49 }
 0x393   : > { %v26242_v57 = vmax.f32 %v8572_v15, %v8600_v9  ;;  %v26244_v10 = vmax.f32 %v8573_v2, %v8601_v32 }
 0x395   : > { %8633 = vrot.lane.b32.xlu1 %v26242_v57, %s24756_s24  ;;  %8635 = vrot.lane.b32.xlu0 %v26244_v10, %s24756_s24  ;;  %v8596_v29 = vpop.permute.xlu1 %8595 }
 0x396   : > { %v8602_v18 = vsel %vm2033_vm7, %v8594_v49, %v8596_v29  ;;  %v26338_v52 = vmax.f32 %v26221_v13, %v8596_v29  ;;  %v21522_v49 = vld [vmem:[%s31058_s3 + $0x48] sm:$0xff]  ;;  %vm10792_vm7 = vcmask 474112  }
 0x397   : > { %v26299_v8 = vmax.f32 %v8574_v62, %v8602_v18 }
 0x399   : > { %9138 = vrot.lane.b32.xlu1 %v26226_v48, %s24758_s26  ;;  %9140 = vrot.lane.b32.xlu0 %v26234_v17, %s24758_s26 }
 0x39d   : > { %9136 = vrot.lane.b32.xlu1 %v26232_v46, %s24758_s26  ;;  %9410 = vrot.lane.b32.xlu0 %v26226_v48, %s24775_s23 }
 0x3a1   : > { %9412 = vrot.lane.b32.xlu1 %v26234_v17, %s24775_s23  ;;  %9408 = vrot.lane.b32.xlu0 %v26232_v46, %s24775_s23 }
 0x3a5   : > { %9144 = vrot.lane.b32.xlu1 %v26244_v10, %s24758_s26  ;;  %9142 = vrot.lane.b32.xlu0 %v26242_v57, %s24758_s26 }
 0x3a9   : > { %9683 = vrot.lane.b32.xlu1 %v26226_v48, %s24776_s27  ;;  %9685 = vrot.lane.b32.xlu0 %v26234_v17, %s24776_s27 }
 0x3ad   : > { %9681 = vrot.lane.b32.xlu1 %v26232_v46, %s24776_s27  ;;  %9957 = vrot.lane.b32.xlu0 %v26226_v48, %s24764_s19 }
 0x3b1   : > { %9414 = vrot.lane.b32.xlu1 %v26242_v57, %s24775_s23  ;;  %9416 = vrot.lane.b32.xlu0 %v26244_v10, %s24775_s23 }
 0x3b5   : > { %9959 = vrot.lane.b32.xlu1 %v26234_v17, %s24764_s19  ;;  %9955 = vrot.lane.b32.xlu0 %v26232_v46, %s24764_s19 }
 0x3b9   : > { %9689 = vrot.lane.b32.xlu1 %v26244_v10, %s24776_s27  ;;  %9687 = vrot.lane.b32.xlu0 %v26242_v57, %s24776_s27 }
 0x3bd   : > { %10234 = vrot.lane.b32.xlu1 %v26234_v17, %s24766_s14  ;;  %10232 = vrot.lane.b32.xlu0 %v26226_v48, %s24766_s14 }
 0x3c1   : > { %9961 = vrot.lane.b32.xlu1 %v26242_v57, %s24764_s19  ;;  %10230 = vrot.lane.b32.xlu0 %v26232_v46, %s24766_s14 }
 0x3c5   : > { %10509 = vrot.lane.b32.xlu1 %v26234_v17, %s24768_s29  ;;  %9963 = vrot.lane.b32.xlu0 %v26244_v10, %s24764_s19 }
 0x3c9   : > { %9965 = vrot.lane.b32.xlu1 %v26299_v8, %s24764_s19  ;;  %10507 = vrot.lane.b32.xlu0 %v26226_v48, %s24768_s29 }
 0x3cd   : > { %10236 = vrot.lane.b32.xlu1 %v26242_v57, %s24766_s14  ;;  %10238 = vrot.lane.b32.xlu0 %v26244_v10, %s24766_s14 }
 0x3d1   : > { %10784 = vrot.lane.b32.xlu1 %v26234_v17, %s24777_s20  ;;  %10505 = vrot.lane.b32.xlu0 %v26232_v46, %s24768_s29 }
 0x3d5   : > { %10240 = vrot.lane.b32.xlu1 %v26299_v8, %s24766_s14  ;;  %10782 = vrot.lane.b32.xlu0 %v26226_v48, %s24777_s20 }
 0x3d9   : > { %10511 = vrot.lane.b32.xlu1 %v26242_v57, %s24768_s29  ;;  %10513 = vrot.lane.b32.xlu0 %v26244_v10, %s24768_s29 }
 0x3dd   : > { %10515 = vrot.lane.b32.xlu1 %v26299_v8, %s24768_s29  ;;  %10780 = vrot.lane.b32.xlu0 %v26232_v46, %s24777_s20 }
 0x3e1   : > { %10786 = vrot.lane.b32.xlu1 %v26242_v57, %s24777_s20  ;;  %10788 = vrot.lane.b32.xlu0 %v26244_v10, %s24777_s20 }
 0x3e5   : > { %11060 = vrot.lane.b32.xlu1 %v26234_v17, %s24778_s21  ;;  %11058 = vrot.lane.b32.xlu0 %v26226_v48, %s24778_s21 }
 0x3e9   : > { %10790 = vrot.lane.b32.xlu1 %v26299_v8, %s24777_s20  ;;  %11056 = vrot.lane.b32.xlu0 %v26232_v46, %s24778_s21 }
 0x3ed   : > { %11062 = vrot.lane.b32.xlu1 %v26242_v57, %s24778_s21  ;;  %11064 = vrot.lane.b32.xlu0 %v26244_v10, %s24778_s21 }
 0x3f1   : > { %11066 = vrot.lane.b32.xlu1 %v26299_v8, %s24778_s21  ;;  %11582 = vrot.lane.b32.xlu0 %v26299_v8, %s24756_s24 }
 0x3f5   : > { %11837 = vrot.lane.b32.xlu1 %v26299_v8, %s24758_s26  ;;  %12092 = vrot.lane.b32.xlu0 %v26299_v8, %s24775_s23 }
 0x3f9   : > { %12347 = vrot.lane.b32.xlu1 %v26299_v8, %s24776_s27  ;;  %12603 = vrot.lane.b32.xlu0 %v26338_v52, %s24764_s19 }
 0x3fd   : > { %12856 = vrot.lane.b32.xlu1 %v26338_v52, %s24766_s14  ;;  %13109 = vrot.lane.b32.xlu0 %v26338_v52, %s24768_s29  ;;  %s24780_s14 = smov 112  }
 0x3ff   : > { %v8630_v21 = vpop.permute.xlu0 %8629 }
 0x401   : > { %13362 = vrot.lane.b32.xlu1 %v26338_v52, %s24777_s20  ;;  %13615 = vrot.lane.b32.xlu0 %v26338_v52, %s24778_s21  ;;  %s22546_s20 = sshll.u32 %s31229_s18, 4 }
 0x402   : > { %s386_s30 = scalar_lea.vmem %s31066_s11, %s22546_s20 }
 0x403   : > { %v8632_v5 = vpop.permute.xlu1 %8631  ;;  %v8628_v11 = vpop.permute.xlu0 %8627 }
 0x404   : > { %v8637_v59 = vsel %vm1040_vm4, %v8628_v11, %v8630_v21  ;;  %v26352_v30 = vsel %vm1040_vm4, %v8630_v21, %v8632_v5 }
 0x405   : > { %14118 = vrot.lane.b32.xlu1 %v26338_v52, %s24756_s24  ;;  %14373 = vrot.lane.b32.xlu0 %v26338_v52, %s24758_s26 }
 0x406   : > { %21473 = vmatprep.subr.msk.mxu0 %vm8648_vm1, %v26352_v30 }
 0x407   : > { %21474 = vmatpush1.msk.msra.mxu0 %vm8648_vm1, %v8637_v59  ;;  %v8634_v40 = vpop.permute.xlu1 %8633  ;;  %v26364_v19 = vpop.permute.xlu0 %8635  ;;  %v21534_v59 = vld [vmem:[%s31058_s3 + $0x50] sm:$0xff] }
 0x408   : > { %v26367_v45 = vsel %vm1040_vm4, %v8632_v5, %v8634_v40  ;;  %21475 = vmatmul.mubr.msk.f32.vlgmr.msra.gmra.mxu0 %vm8641_vm2, %v21471_v36  ;;  %23261 = vmatprep.subr.msk.mxu0 %vm8648_vm1, %v26364_v19  ;;  %v26374_v28 = vsel %vm1040_vm4, %v8634_v40, %v26364_v19 }
 0x409   : > { %14628 = vrot.lane.b32.xlu1 %v26338_v52, %s24775_s23  ;;  %14883 = vrot.lane.b32.xlu0 %v26338_v52, %s24776_s27 }
 0x40a   : > { %21477 = vmatprep.subr.msk.mxu1 %vm8648_vm1, %v26374_v28  ;;  %23262 = vmatpush3.msk.msra.mxu0 %vm8648_vm1, %v26364_v19 }
 0x40b   : > { %8729 = vmatprep.mubr.f32.mxu0 %v31104_v51  ;;  %21478 = vmatpush1.msk.msra.mxu1 %vm8648_vm1, %v26367_v45  ;;  %v9139_v6 = vpop.permute.xlu1 %9138  ;;  %v9141_v54 = vpop.permute.xlu0 %9140 }
 0x40c   : > { %21488 = vmatprep.subr.msk.mxu0 %vm8648_vm1, %v26242_v57  ;;  %21476 = vmatmul.mubr.msk.f32.gmra.mxu0 %vm8641_vm2, %v21472_v12  ;;  %v26410_v55 = vsel %vm1700_vm6, %v9139_v6, %v9141_v54 }
 0x40d   : > { %21479 = vmatmul.mubr.msk.f32.vlgmr.msra.gmra.mxu1 %vm8641_vm2, %v21471_v36  ;;  %21484 = vmatprep.subr.msk.mxu1 %vm8648_vm1, %v26226_v48 }
 0x40e   : > { %21485 = vmatpush1.msk.msra.mxu1 %vm8648_vm1, %v26232_v46  ;;  %15139 = vperm.xlu0 %24735, %v15135_v22   ;;  %v21535_v22 = vld [vmem:[%s31058_s3 + $0x58] sm:$0xff] }
 0x40f   : > { %23266 = vmatprep.subr.msk.mxu1 %vm8648_vm1, %v26244_v10  ;;  %8806 = vmatprep.mubr.f32.mxu1 %v31104_v51  ;;  %v9137_v23 = vpop.permute.xlu1 %9136  ;;  %v9411_v35 = vpop.permute.xlu0 %9410 }
 0x410   : > { %23263 = vmatprep.mubr.msk.f32.mxu0 %vm8641_vm2, %v21471_v36  ;;  %v9146_v43 = vsel %vm1700_vm6, %v9137_v23, %v9139_v6 }
 0x411   : > { %21480 = vmatmul.mubr.msk.f32.gmra.mxu1 %vm8641_vm2, %v21472_v12  ;;  %23264 = vmatmul.mubr.msk.f32.vlgmr.msra.gmra.mxu0 %vm8641_vm2, %v21472_v12 }
 0x412   : > { %21489 = vmatpush1.msk.msra.mxu0 %vm8648_vm1, %v26234_v17  ;;  %8968 = vmatprep.mubr.f32.mxu1 %v31104_v51 }
 0x413   : > { %21497 = vmatprep.subr.msk.mxu0 %vm8648_vm1, %v26410_v55  ;;  %9045 = vmatprep.mubr.f32.mxu0 %v31104_v51  ;;  %v9413_v39 = vpop.permute.xlu1 %9412  ;;  %v9409_v47 = vpop.permute.xlu0 %9408 }
 0x414   : > { %v26457_v7 = vsel %vm9418_vm3, %v9411_v35, %v9413_v39  ;;  %v9419_v14 = vsel %vm9418_vm3, %v9409_v47, %v9411_v35 }
 0x415   : > { %21486 = vmatmul.mubr.msk.f32.vlgmr.msra.gmra.mxu1 %vm8641_vm2, %v8617_v38  ;;  %21490 = vmatmul.mubr.msk.f32.vlgmr.msra.gmra.mxu0 %vm8641_vm2, %v8617_v38 }
 0x416   : > { %23267 = vmatpush3.msk.msra.mxu1 %vm8648_vm1, %v26244_v10  ;;  %21498 = vmatpush1.msk.msra.mxu0 %vm8648_vm1, %v9146_v43 }
 0x417   : > { %8974 = vmatprep.mubr.f32.mxu1 %v31104_v51  ;;  %9051 = vmatprep.mubr.f32.mxu0 %v31104_v51  ;;  %v26430_v24 = vpop.permute.xlu1 %9144  ;;  %v9143_v33 = vpop.permute.xlu0 %9142 }
 0x418   : > { %23271 = vmatprep.subr.msk.mxu0 %vm8648_vm1, %v26430_v24  ;;  %v26436_v27 = vsel %vm1700_vm6, %v9143_v33, %v26430_v24  ;;  %v26448_v4 = vsel %vm1700_vm6, %v9141_v54, %v9143_v33 }
 0x419   : > { %21487 = vmatmul.mubr.msk.f32.gmra.mxu1 %vm8641_vm2, %v8618_v34  ;;  %21491 = vmatmul.mubr.msk.f32.gmra.mxu0 %vm8641_vm2, %v8618_v34 }
 0x41a   : > { %21501 = vmatprep.subr.msk.mxu1 %vm8648_vm1, %v26436_v27  ;;  %23268 = vmatprep.mubr.msk.f32.mxu1 %vm8641_vm2, %v8617_v38 }
 0x41b   : > { %9230 = vmatprep.mubr.f32.mxu0 %v31104_v51  ;;  %v9684_v42 = vpop.permute.xlu1 %9683  ;;  %v9686_v16 = vpop.permute.xlu0 %9685 }
 0x41c   : > { %v26495_v2 = vsel %vm9691_vm5, %v9684_v42, %v9686_v16 }
 0x41d   : > { %23269 = vmatmul.mubr.msk.f32.vlgmr.msra.gmra.mxu1 %vm8641_vm2, %v8618_v34  ;;  %21499 = vmatmul.mubr.msk.f32.vlgmr.msra.gmra.mxu0 %vm8641_vm2, %v21495_v31 }
 0x41e   : > { %21502 = vmatpush1.msk.msra.mxu1 %vm8648_vm1, %v26448_v4  ;;  %23272 = vmatpush3.msk.msra.mxu0 %vm8648_vm1, %v26430_v24 }
 0x41f   : > { %21510 = vmatprep.subr.msk.mxu1 %vm8648_vm1, %v26457_v7  ;;  %9236 = vmatprep.mubr.f32.mxu0 %v31104_v51  ;;  %v9682_v58 = vpop.permute.xlu1 %9681  ;;  %v9958_v0 = vpop.permute.xlu0 %9957 }
 0x420   : > { %9307 = vmatprep.mubr.f32.mxu1 %v31104_v51  ;;  %v9692_v13 = vsel %vm9691_vm5, %v9682_v58, %v9684_v42 }
 0x421   : > { %21500 = vmatmul.mubr.msk.f32.gmra.mxu0 %vm8641_vm2, %v21496_v50  ;;  %21503 = vmatmul.mubr.msk.f32.vlgmr.msra.gmra.mxu1 %vm8641_vm2, %v21495_v31 }
 0x422   : > { %21511 = vmatpush1.msk.msra.mxu1 %vm8648_vm1, %v9419_v14  ;;  %9313 = vmatprep.mubr.f32.mxu1 %v31104_v51 }
 0x423   : > { %23273 = vmatprep.mubr.msk.f32.mxu0 %vm8641_vm2, %v21495_v31  ;;  %v9415_v56 = vpop.permute.xlu1 %9414  ;;  %v26472_v15 = vpop.permute.xlu0 %9416  ;;  %v21548_v31 = vld [vmem:[%s31058_s3 + $0x68] sm:$0xff] }
 0x424   : > { %v26475_v20 = vsel %vm9418_vm3, %v9413_v39, %v9415_v56  ;;  %23276 = vmatprep.subr.msk.mxu1 %vm8648_vm1, %v26472_v15  ;;  %v26481_v63 = vsel %vm9418_vm3, %v9415_v56, %v26472_v15  ;;  %v21547_v39 = vld [vmem:[%s31058_s3 + $0x60] sm:$0xff] }
 0x425   : > { %21504 = vmatmul.mubr.msk.f32.gmra.mxu1 %vm8641_vm2, %v21496_v50  ;;  %23274 = vmatmul.mubr.msk.f32.vlgmr.msra.gmra.mxu0 %vm8641_vm2, %v21496_v50 }
 0x426   : > { %21514 = vmatprep.subr.msk.mxu0 %vm8648_vm1, %v26481_v63  ;;  %9503 = vmatprep.mubr.f32.mxu1 %v31104_v51 }
 0x427   : > { %21515 = vmatpush1.msk.msra.mxu0 %vm8648_vm1, %v26475_v20  ;;  %9580 = vmatprep.mubr.f32.mxu0 %v31104_v51  ;;  %v9960_v61 = vpop.permute.xlu1 %9959  ;;  %v9956_v62 = vpop.permute.xlu0 %9955 }
 0x428   : > { %21523 = vmatprep.subr.msk.mxu0 %vm8648_vm1, %v26495_v2  ;;  %v26537_v1 = vsel %vm3698_vm12, %v9958_v0, %v9960_v61  ;;  %v9967_v29 = vsel %vm3698_vm12, %v9956_v62, %v9958_v0 }
 0x429   : > { %21512 = vmatmul.mubr.msk.f32.vlgmr.msra.gmra.mxu1 %vm8641_vm2, %v21508_v53  ;;  %21516 = vmatmul.mubr.msk.f32.vlgmr.msra.gmra.mxu0 %vm8641_vm2, %v21508_v53 }
 0x42a   : > { %23277 = vmatpush3.msk.msra.mxu1 %vm8648_vm1, %v26472_v15  ;;  %21524 = vmatpush1.msk.msra.mxu0 %vm8648_vm1, %v9692_v13 }
 0x42b   : > { %9509 = vmatprep.mubr.f32.mxu1 %v31104_v51  ;;  %9586 = vmatprep.mubr.f32.mxu0 %v31104_v51  ;;  %v26510_v44 = vpop.permute.xlu1 %9689  ;;  %v9688_v26 = vpop.permute.xlu0 %9687 }
 0x42c   : > { %23281 = vmatprep.subr.msk.mxu0 %vm8648_vm1, %v26510_v44  ;;  %v26516_v41 = vsel %vm9691_vm5, %v9688_v26, %v26510_v44  ;;  %v26528_v46 = vsel %vm9691_vm5, %v9686_v16, %v9688_v26 }
 0x42d   : > { %21513 = vmatmul.mubr.msk.f32.gmra.mxu1 %vm8641_vm2, %v21509_v37  ;;  %21517 = vmatmul.mubr.msk.f32.gmra.mxu0 %vm8641_vm2, %v21509_v37 }
 0x42e   : > { %21527 = vmatprep.subr.msk.mxu1 %vm8648_vm1, %v26516_v41  ;;  %23278 = vmatprep.mubr.msk.f32.mxu1 %vm8641_vm2, %v21508_v53 }
 0x42f   : > { %9776 = vmatprep.mubr.f32.mxu0 %v31104_v51  ;;  %v10235_v60 = vpop.permute.xlu1 %10234  ;;  %v10233_v3 = vpop.permute.xlu0 %10232 }
 0x430   : > { %v26572_v40 = vsel %vm4364_vm14, %v10233_v3, %v10235_v60 }
 0x431   : > { %23279 = vmatmul.mubr.msk.f32.vlgmr.msra.gmra.mxu1 %vm8641_vm2, %v21509_v37  ;;  %21525 = vmatmul.mubr.msk.f32.vlgmr.msra.gmra.mxu0 %vm8641_vm2, %v21521_v25 }
 0x432   : > { %21528 = vmatpush1.msk.msra.mxu1 %vm8648_vm1, %v26528_v46  ;;  %23282 = vmatpush3.msk.msra.mxu0 %vm8648_vm1, %v26510_v44 }
 0x433   : > { %21536 = vmatprep.subr.msk.mxu1 %vm8648_vm1, %v26537_v1  ;;  %9782 = vmatprep.mubr.f32.mxu0 %v31104_v51  ;;  %v9962_v9 = vpop.permute.xlu1 %9961  ;;  %v10231_v32 = vpop.permute.xlu0 %10230 }
 0x434   : > { %9853 = vmatprep.mubr.f32.mxu1 %v31104_v51  ;;  %v26558_v11 = vsel %vm3698_vm12, %v9960_v61, %v9962_v9  ;;  %v10242_v54 = vsel %vm4364_vm14, %v10231_v32, %v10233_v3  ;;  %v21560_v61 = vld [vmem:[%s31058_s3 + $0x70] sm:$0xff]  ;;  %v21573_v32 = vld [vmem:[%s31058_s3 + $0x80] sm:$0xff] }
 0x435   : > { %21526 = vmatmul.mubr.msk.f32.gmra.mxu0 %vm8641_vm2, %v21522_v49  ;;  %21529 = vmatmul.mubr.msk.f32.vlgmr.msra.gmra.mxu1 %vm8641_vm2, %v21521_v25 }
 0x436   : > { %21537 = vmatpush1.msk.msra.mxu1 %vm8648_vm1, %v9967_v29  ;;  %9859 = vmatprep.mubr.f32.mxu1 %v31104_v51 }
 0x437   : > { %23283 = vmatprep.mubr.msk.f32.mxu0 %vm8641_vm2, %v21521_v25  ;;  %v10510_v18 = vpop.permute.xlu1 %10509  ;;  %v9964_v21 = vpop.permute.xlu0 %9963 }
 0x438   : > { %v26553_v5 = vsel %vm3698_vm12, %v9962_v9, %v9964_v21 }
 0x439   : > { %21530 = vmatmul.mubr.msk.f32.gmra.mxu1 %vm8641_vm2, %v21522_v49  ;;  %23284 = vmatmul.mubr.msk.f32.vlgmr.msra.gmra.mxu0 %vm8641_vm2, %v21522_v49 }
 0x43a   : > { %21540 = vmatprep.subr.msk.mxu0 %vm8648_vm1, %v26553_v5  ;;  %10052 = vmatprep.mubr.f32.mxu1 %v31104_v51 }
 0x43b   : > { %21541 = vmatpush1.msk.msra.mxu0 %vm8648_vm1, %v26558_v11  ;;  %10129 = vmatprep.mubr.f32.mxu0 %v31104_v51  ;;  %v26569_v36 = vpop.permute.xlu1 %9965  ;;  %v10508_v12 = vpop.permute.xlu0 %10507 }
 0x43c   : > { %v26576_v6 = vsel %vm3698_vm12, %v9964_v21, %v26569_v36  ;;  %21549 = vmatprep.subr.msk.mxu0 %vm8648_vm1, %v26572_v40  ;;  %v26611_v33 = vsel %vm5030_vm8, %v10508_v12, %v10510_v18 }
 0x43d   : > { %21538 = vmatmul.mubr.msk.f32.vlgmr.msra.gmra.mxu1 %vm8641_vm2, %v21534_v59  ;;  %21542 = vmatmul.mubr.msk.f32.vlgmr.msra.gmra.mxu0 %vm8641_vm2, %v21534_v59 }
 0x43e   : > { %21550 = vmatpush1.msk.msra.mxu0 %vm8648_vm1, %v10242_v54  ;;  %23286 = vmatprep.subr.msk.mxu1 %vm8648_vm1, %v26576_v6 }
 0x43f   : > { %10058 = vmatprep.mubr.f32.mxu1 %v31104_v51  ;;  %10135 = vmatprep.mubr.f32.mxu0 %v31104_v51  ;;  %v10237_v23 = vpop.permute.xlu1 %10236  ;;  %v10239_v35 = vpop.permute.xlu0 %10238 }
 0x440   : > { %23287 = vmatpush3.msk.msra.mxu1 %vm8648_vm1, %v26576_v6  ;;  %v26594_v38 = vsel %vm4364_vm14, %v10237_v23, %v10239_v35  ;;  %v26606_v34 = vsel %vm4364_vm14, %v10235_v60, %v10237_v23  ;;  %v21561_v60 = vld [vmem:[%s31058_s3 + $0x78] sm:$0xff] }
 0x441   : > { %21539 = vmatmul.mubr.msk.f32.gmra.mxu1 %vm8641_vm2, %v21535_v22  ;;  %21543 = vmatmul.mubr.msk.f32.gmra.mxu0 %vm8641_vm2, %v21535_v22 }
 0x442   : > { %21553 = vmatprep.subr.msk.mxu1 %vm8648_vm1, %v26594_v38  ;;  %23288 = vmatprep.mubr.msk.f32.mxu1 %vm8641_vm2, %v21534_v59 }
 0x443   : > { %10327 = vmatprep.mubr.f32.mxu0 %v31104_v51  ;;  %v10785_v47 = vpop.permute.xlu1 %10784  ;;  %v10506_v43 = vpop.permute.xlu0 %10505 }
 0x444   : > { %v10517_v58 = vsel %vm5030_vm8, %v10506_v43, %v10508_v12  ;;  %v21574_v12 = vld [vmem:[%s31058_s3 + $0x88] sm:$0xff] }
 0x445   : > { %23289 = vmatmul.mubr.msk.f32.vlgmr.msra.gmra.mxu1 %vm8641_vm2, %v21535_v22  ;;  %21551 = vmatmul.mubr.msk.f32.vlgmr.msra.gmra.mxu0 %vm8641_vm2, %v21547_v39 }
 0x446   : > { %21554 = vmatpush1.msk.msra.mxu1 %vm8648_vm1, %v26606_v34  ;;  %10333 = vmatprep.mubr.f32.mxu0 %v31104_v51 }
 0x447   : > { %21562 = vmatprep.subr.msk.mxu1 %vm8648_vm1, %v26611_v33  ;;  %10404 = vmatprep.mubr.f32.mxu1 %v31104_v51  ;;  %v26622_v42 = vpop.permute.xlu1 %10240  ;;  %v10783_v16 = vpop.permute.xlu0 %10782 }
 0x448   : > { %v26626_v50 = vsel %vm4364_vm14, %v10239_v35, %v26622_v42  ;;  %v26653_v62 = vsel %vm10792_vm7, %v10783_v16, %v10785_v47 }
 0x449   : > { %21552 = vmatmul.mubr.msk.f32.gmra.mxu0 %vm8641_vm2, %v21548_v31  ;;  %21555 = vmatmul.mubr.msk.f32.vlgmr.msra.gmra.mxu1 %vm8641_vm2, %v21547_v39 }
 0x44a   : > { %21563 = vmatpush1.msk.msra.mxu1 %vm8648_vm1, %v10517_v58  ;;  %23291 = vmatprep.subr.msk.mxu0 %vm8648_vm1, %v26626_v50 }
 0x44b   : > { %10410 = vmatprep.mubr.f32.mxu1 %v31104_v51  ;;  %23292 = vmatpush3.msk.msra.mxu0 %vm8648_vm1, %v26626_v50  ;;  %v10512_v0 = vpop.permute.xlu1 %10511  ;;  %v10514_v14 = vpop.permute.xlu0 %10513 }
 0x44c   : > { %23293 = vmatprep.mubr.msk.f32.mxu0 %vm8641_vm2, %v21547_v39  ;;  %v26639_v56 = vsel %vm5030_vm8, %v10510_v18, %v10512_v0  ;;  %v26642_v53 = vsel %vm5030_vm8, %v10512_v0, %v10514_v14 }
 0x44d   : > { %21556 = vmatmul.mubr.msk.f32.gmra.mxu1 %vm8641_vm2, %v21548_v31  ;;  %23294 = vmatmul.mubr.msk.f32.vlgmr.msra.gmra.mxu0 %vm8641_vm2, %v21548_v31 }
 0x44e   : > { %21566 = vmatprep.subr.msk.mxu0 %vm8648_vm1, %v26642_v53  ;;  %10602 = vmatprep.mubr.f32.mxu1 %v31104_v51 }
 0x44f   : > { %21567 = vmatpush1.msk.msra.mxu0 %vm8648_vm1, %v26639_v56  ;;  %10679 = vmatprep.mubr.f32.mxu0 %v31104_v51  ;;  %v26658_v13 = vpop.permute.xlu1 %10515  ;;  %v10781_v37 = vpop.permute.xlu0 %10780 }
 0x450   : > { %v26662_v26 = vsel %vm5030_vm8, %v10514_v14, %v26658_v13  ;;  %21575 = vmatprep.subr.msk.mxu0 %vm8648_vm1, %v26653_v62  ;;  %v10793_v25 = vsel %vm10792_vm7, %v10781_v37, %v10783_v16  ;;  %v21586_v16 = vld [vmem:[%s31058_s3 + $0x90] sm:$0xff] }
 0x451   : > { %21564 = vmatmul.mubr.msk.f32.vlgmr.msra.gmra.mxu1 %vm8641_vm2, %v21560_v61  ;;  %21568 = vmatmul.mubr.msk.f32.vlgmr.msra.gmra.mxu0 %vm8641_vm2, %v21560_v61 }
 0x452   : > { %23296 = vmatprep.subr.msk.mxu1 %vm8648_vm1, %v26662_v26  ;;  %21576 = vmatpush1.msk.msra.mxu0 %vm8648_vm1, %v10793_v25 }
 0x453   : > { %10608 = vmatprep.mubr.f32.mxu1 %v31104_v51  ;;  %10685 = vmatprep.mubr.f32.mxu0 %v31104_v51  ;;  %v10787_v3 = vpop.permute.xlu1 %10786  ;;  %v10789_v49 = vpop.permute.xlu0 %10788 }
 0x454   : > { %23297 = vmatpush3.msk.msra.mxu1 %vm8648_vm1, %v26662_v26  ;;  %v26680_v9 = vsel %vm10792_vm7, %v10787_v3, %v10789_v49  ;;  %v26695_v59 = vsel %vm10792_vm7, %v10785_v47, %v10787_v3 }
 0x455   : > { %21565 = vmatmul.mubr.msk.f32.gmra.mxu1 %vm8641_vm2, %v21561_v60  ;;  %21569 = vmatmul.mubr.msk.f32.gmra.mxu0 %vm8641_vm2, %v21561_v60 }
 0x456   : > { %21579 = vmatprep.subr.msk.mxu1 %vm8648_vm1, %v26680_v9  ;;  %23298 = vmatprep.mubr.msk.f32.mxu1 %vm8641_vm2, %v21560_v61  ;;  %v21587_v61 = vld [vmem:[%s31058_s3 + $0x98] sm:$0xff] }
 0x457   : > { %10878 = vmatprep.mubr.f32.mxu0 %v31104_v51  ;;  %v11061_v29 = vpop.permute.xlu1 %11060  ;;  %v11059_v18 = vpop.permute.xlu0 %11058 }
 0x458   : > { %v26692_v21 = vsel %vm11068_vm9, %v11059_v18, %v11061_v29 }
 0x459   : > { %23299 = vmatmul.mubr.msk.f32.vlgmr.msra.gmra.mxu1 %vm8641_vm2, %v21561_v60  ;;  %21577 = vmatmul.mubr.msk.f32.vlgmr.msra.gmra.mxu0 %vm8641_vm2, %v21573_v32 }
 0x45a   : > { %21580 = vmatpush1.msk.msra.mxu1 %vm8648_vm1, %v26695_v59  ;;  %10884 = vmatprep.mubr.f32.mxu0 %v31104_v51 }
 0x45b   : > { %21588 = vmatprep.subr.msk.mxu1 %vm8648_vm1, %v26692_v21  ;;  %10955 = vmatprep.mubr.f32.mxu1 %v31104_v51  ;;  %v26708_v54 = vpop.permute.xlu1 %10790  ;;  %v11057_v22 = vpop.permute.xlu0 %11056 }
 0x45c   : > { %v26712_v23 = vsel %vm10792_vm7, %v10789_v49, %v26708_v54  ;;  %v11069_v35 = vsel %vm11068_vm9, %v11057_v22, %v11059_v18 }
 0x45d   : > { %21578 = vmatmul.mubr.msk.f32.gmra.mxu0 %vm8641_vm2, %v21574_v12  ;;  %21581 = vmatmul.mubr.msk.f32.vlgmr.msra.gmra.mxu1 %vm8641_vm2, %v21573_v32 }
 0x45e   : > { %23301 = vmatprep.subr.msk.mxu0 %vm8648_vm1, %v26712_v23  ;;  %21589 = vmatpush1.msk.msra.mxu1 %vm8648_vm1, %v11069_v35 }
 0x45f   : > { %10961 = vmatprep.mubr.f32.mxu1 %v31104_v51  ;;  %23302 = vmatpush3.msk.msra.mxu0 %vm8648_vm1, %v26712_v23  ;;  %v11063_v39 = vpop.permute.xlu1 %11062  ;;  %v11065_v47 = vpop.permute.xlu0 %11064 }
 0x460   : > { %23303 = vmatprep.mubr.msk.f32.mxu0 %vm8641_vm2, %v21573_v32  ;;  %v26725_v43 = vsel %vm11068_vm9, %v11061_v29, %v11063_v39  ;;  %v26728_v31 = vsel %vm11068_vm9, %v11063_v39, %v11065_v47  ;;  %v21600_v32 = vld [vmem:[%s31058_s3 + $0xa8] sm:$0xff]  ;;  %v21613_v39 = vld [vmem:[%s31058_s3 + $0xb8] sm:$0xff] }
 0x461   : > { %21582 = vmatmul.mubr.msk.f32.gmra.mxu1 %vm8641_vm2, %v21574_v12  ;;  %23304 = vmatmul.mubr.msk.f32.vlgmr.msra.gmra.mxu0 %vm8641_vm2, %v21574_v12 }
 0x462   : > { %21592 = vmatprep.subr.msk.mxu0 %vm8648_vm1, %v26728_v31  ;;  %11154 = vmatprep.mubr.f32.mxu1 %v31104_v51 }
 0x463   : > { %21593 = vmatpush1.msk.msra.mxu0 %vm8648_vm1, %v26725_v43  ;;  %11231 = vmatprep.mubr.f32.mxu0 %v31104_v51  ;;  %v11067_v58 = vpop.permute.xlu1 %11066  ;;  %v26741_v0 = vpop.permute.xlu0 %11582 }
 0x464   : > { %v26744_v14 = vsel %vm11068_vm9, %v11065_v47, %v11067_v58  ;;  %21601 = vmatprep.subr.msk.mxu0 %vm8648_vm1, %v26234_v17  ;;  %v26789_v49 = vsel %vm1040_vm4, %v26364_v19, %v26741_v0  ;;  %v21626_v47 = vld [vmem:[%s31058_s3 + $0xc8] sm:$0xff] }
 0x465   : > { %21590 = vmatmul.mubr.msk.f32.vlgmr.msra.gmra.mxu1 %vm8641_vm2, %v21586_v16  ;;  %21594 = vmatmul.mubr.msk.f32.vlgmr.msra.gmra.mxu0 %vm8641_vm2, %v21586_v16 }
 0x466   : > { %21602 = vmatpush1.msk.msra.mxu0 %vm8648_vm1, %v26226_v48  ;;  %23306 = vmatprep.subr.msk.mxu1 %vm8648_vm1, %v26744_v14  ;;  %v21599_v48 = vld [vmem:[%s31058_s3 + $0xa0] sm:$0xff] }
 0x467   : > { %23311 = vmatprep.subr.msk.mxu0 %vm8648_vm1, %v26299_v8  ;;  %11160 = vmatprep.mubr.f32.mxu1 %v31104_v51  ;;  %v26760_v37 = vpop.permute.xlu1 %11837  ;;  %v26762_v25 = vpop.permute.xlu0 %12092 }
 0x468   : > { %11237 = vmatprep.mubr.f32.mxu0 %v31104_v51  ;;  %23307 = vmatpush3.msk.msra.mxu1 %vm8648_vm1, %v26744_v14 }
 0x469   : > { %21591 = vmatmul.mubr.msk.f32.gmra.mxu1 %vm8641_vm2, %v21587_v61  ;;  %21595 = vmatmul.mubr.msk.f32.gmra.mxu0 %vm8641_vm2, %v21587_v61 }
 0x46a   : > { %21605 = vmatprep.subr.msk.mxu1 %vm8648_vm1, %v26244_v10  ;;  %23308 = vmatprep.mubr.msk.f32.mxu1 %vm8641_vm2, %v21586_v16  ;;  %v21639_v16 = vld [vmem:[%s31058_s3 + $0xd8] sm:$0xff] }
 0x46b   : > { %11404 = vmatprep.mubr.f32.mxu0 %v31104_v51  ;;  %v26776_v60 = vpop.permute.xlu1 %12347  ;;  %v26778_v3 = vpop.permute.xlu0 %12603 }
 0x46d   : > { %23309 = vmatmul.mubr.msk.f32.vlgmr.msra.gmra.mxu1 %vm8641_vm2, %v21587_v61  ;;  %21603 = vmatmul.mubr.msk.f32.vlgmr.msra.gmra.mxu0 %vm8641_vm2, %v21599_v48 }
 0x46e   : > { %21606 = vmatpush1.msk.msra.mxu1 %vm8648_vm1, %v26242_v57  ;;  %23312 = vmatpush3.msk.msra.mxu0 %vm8648_vm1, %v26299_v8 }
 0x46f   : > { %21614 = vmatprep.subr.msk.mxu1 %vm8648_vm1, %v26367_v45  ;;  %21618 = vmatprep.subr.msk.mxu0 %vm8648_vm1, %v26789_v49  ;;  %v26798_v29 = vpop.permute.xlu1 %12856  ;;  %v26800_v18 = vpop.permute.xlu0 %13109 }
 0x470   : > { %11410 = vmatprep.mubr.f32.mxu0 %v31104_v51  ;;  %11481 = vmatprep.mubr.f32.mxu1 %v31104_v51 }
 0x471   : > { %21604 = vmatmul.mubr.msk.f32.gmra.mxu0 %vm8641_vm2, %v21600_v32  ;;  %21607 = vmatmul.mubr.msk.f32.vlgmr.msra.gmra.mxu1 %vm8641_vm2, %v21599_v48 }
 0x472   : > { %21615 = vmatpush1.msk.msra.mxu1 %vm8648_vm1, %v26352_v30  ;;  %11487 = vmatprep.mubr.f32.mxu1 %v31104_v51  ;;  %v21612_v30 = vld [vmem:[%s31058_s3 + $0xb0] sm:$0xff] }
 0x473   : > { %23316 = vmatprep.subr.msk.mxu1 %vm8648_vm1, %v26741_v0  ;;  %23313 = vmatprep.mubr.msk.f32.mxu0 %vm8641_vm2, %v21599_v48  ;;  %v13363_v19 = vpop.permute.xlu1 %13362  ;;  %v13616_v12 = vpop.permute.xlu0 %13615 }
 0x474   : > { %v26814_v22 = vsel %vm10792_vm7, %v26708_v54, %v13363_v19  ;;  %v26817_v35 = vsel %vm11068_vm9, %v11067_v58, %v13616_v12  ;;  %v26839_v54 = vsel %vm1700_vm6, %v26430_v24, %v26760_v37  ;;  %v26866_v24 = vsel %vm9418_vm3, %v26472_v15, %v26762_v25 }
 0x475   : > { %21608 = vmatmul.mubr.msk.f32.gmra.mxu1 %vm8641_vm2, %v21600_v32  ;;  %23314 = vmatmul.mubr.msk.f32.vlgmr.msra.gmra.mxu0 %vm8641_vm2, %v21600_v32  ;;  %v26905_v15 = vsel %vm9691_vm5, %v26510_v44, %v26776_v60  ;;  %v21652_v44 = vld [vmem:[%s31058_s3 + $0xe8] sm:$0xff]  ;;  %v12605_v58 = vsel %vm3698_vm12, %v26569_v36, %v26778_v3  ;;  %v21677_v36 = vld [vmem:[%s31058_s3 + $0x100] sm:$0xff] }
 0x476   : > { %21619 = vmatpush1.msk.msra.mxu0 %vm8648_vm1, %v26374_v28  ;;  %11659 = vmatprep.mubr.f32.mxu1 %v31104_v51 }
 0x477   : > { %21627 = vmatprep.subr.msk.mxu0 %vm8648_vm1, %v26448_v4  ;;  %11736 = vmatprep.mubr.f32.mxu0 %v31104_v51  ;;  %v14374_v12 = vpop.permute.xlu0 %14373 }
 0x479   : > { %21616 = vmatmul.mubr.msk.f32.vlgmr.msra.gmra.mxu1 %vm8641_vm2, %v21612_v30  ;;  %21620 = vmatmul.mubr.msk.f32.vlgmr.msra.gmra.mxu0 %vm8641_vm2, %v21612_v30 }
 0x47a   : > { %23317 = vmatpush3.msk.msra.mxu1 %vm8648_vm1, %v26741_v0  ;;  %21628 = vmatpush1.msk.msra.mxu0 %vm8648_vm1, %v26410_v55  ;;  %v21625_v55 = vld [vmem:[%s31058_s3 + $0xc0] sm:$0xff] }
 0x47b   : > { %21631 = vmatprep.subr.msk.mxu1 %vm8648_vm1, %v26839_v54  ;;  %23321 = vmatprep.subr.msk.mxu0 %vm8648_vm1, %v26760_v37 }
 0x47c   : > { %11665 = vmatprep.mubr.f32.mxu1 %v31104_v51  ;;  %11742 = vmatprep.mubr.f32.mxu0 %v31104_v51 }
 0x47d   : > { %21617 = vmatmul.mubr.msk.f32.gmra.mxu1 %vm8641_vm2, %v21613_v39  ;;  %21621 = vmatmul.mubr.msk.f32.gmra.mxu0 %vm8641_vm2, %v21613_v39 }
 0x47e   : > { %23318 = vmatprep.mubr.msk.f32.mxu1 %vm8641_vm2, %v21612_v30  ;;  %11914 = vmatprep.mubr.f32.mxu0 %v31104_v51 }
 0x481   : > { %23319 = vmatmul.mubr.msk.f32.vlgmr.msra.gmra.mxu1 %vm8641_vm2, %v21613_v39  ;;  %21629 = vmatmul.mubr.msk.f32.vlgmr.msra.gmra.mxu0 %vm8641_vm2, %v21625_v55 }
 0x482   : > { %21632 = vmatpush1.msk.msra.mxu1 %vm8648_vm1, %v26436_v27  ;;  %23322 = vmatpush3.msk.msra.mxu0 %vm8648_vm1, %v26760_v37 }
 0x483   : > { %21640 = vmatprep.subr.msk.mxu1 %vm8648_vm1, %v26475_v20  ;;  %21644 = vmatprep.subr.msk.mxu0 %vm8648_vm1, %v26866_v24 }
 0x484   : > { %11920 = vmatprep.mubr.f32.mxu0 %v31104_v51  ;;  %11991 = vmatprep.mubr.f32.mxu1 %v31104_v51 }
 0x485   : > { %21630 = vmatmul.mubr.msk.f32.gmra.mxu0 %vm8641_vm2, %v21626_v47  ;;  %21633 = vmatmul.mubr.msk.f32.vlgmr.msra.gmra.mxu1 %vm8641_vm2, %v21625_v55 }
 0x486   : > { %21641 = vmatpush1.msk.msra.mxu1 %vm8648_vm1, %v26457_v7  ;;  %11997 = vmatprep.mubr.f32.mxu1 %v31104_v51  ;;  %v21638_v7 = vld [vmem:[%s31058_s3 + $0xd0] sm:$0xff] }
 0x487   : > { %23326 = vmatprep.subr.msk.mxu1 %vm8648_vm1, %v26762_v25  ;;  %23323 = vmatprep.mubr.msk.f32.mxu0 %vm8641_vm2, %v21625_v55 }
 0x489   : > { %21634 = vmatmul.mubr.msk.f32.gmra.mxu1 %vm8641_vm2, %v21626_v47  ;;  %23324 = vmatmul.mubr.msk.f32.vlgmr.msra.gmra.mxu0 %vm8641_vm2, %v21626_v47 }
 0x48a   : > { %21645 = vmatpush1.msk.msra.mxu0 %vm8648_vm1, %v26481_v63  ;;  %12169 = vmatprep.mubr.f32.mxu1 %v31104_v51 }
 0x48b   : > { %21653 = vmatprep.subr.msk.mxu0 %vm8648_vm1, %v26528_v46  ;;  %12246 = vmatprep.mubr.f32.mxu0 %v31104_v51 }
 0x48d   : > { %21642 = vmatmul.mubr.msk.f32.vlgmr.msra.gmra.mxu1 %vm8641_vm2, %v21638_v7  ;;  %21646 = vmatmul.mubr.msk.f32.vlgmr.msra.gmra.mxu0 %vm8641_vm2, %v21638_v7 }
 0x48e   : > { %23327 = vmatpush3.msk.msra.mxu1 %vm8648_vm1, %v26762_v25  ;;  %21654 = vmatpush1.msk.msra.mxu0 %vm8648_vm1, %v26495_v2  ;;  %v21651_v2 = vld [vmem:[%s31058_s3 + $0xe0] sm:$0xff] }
 0x48f   : > { %21657 = vmatprep.subr.msk.mxu1 %vm8648_vm1, %v26905_v15  ;;  %23331 = vmatprep.subr.msk.mxu0 %vm8648_vm1, %v26776_v60 }
 0x490   : > { %12175 = vmatprep.mubr.f32.mxu1 %v31104_v51  ;;  %12252 = vmatprep.mubr.f32.mxu0 %v31104_v51 }
 0x491   : > { %21643 = vmatmul.mubr.msk.f32.gmra.mxu1 %vm8641_vm2, %v21639_v16  ;;  %21647 = vmatmul.mubr.msk.f32.gmra.mxu0 %vm8641_vm2, %v21639_v16 }
 0x492   : > { %23328 = vmatprep.mubr.msk.f32.mxu1 %vm8641_vm2, %v21638_v7  ;;  %12424 = vmatprep.mubr.f32.mxu0 %v31104_v51 }
 0x495   : > { %23329 = vmatmul.mubr.msk.f32.vlgmr.msra.gmra.mxu1 %vm8641_vm2, %v21639_v16  ;;  %21655 = vmatmul.mubr.msk.f32.vlgmr.msra.gmra.mxu0 %vm8641_vm2, %v21651_v2 }
 0x496   : > { %21658 = vmatpush1.msk.msra.mxu1 %vm8648_vm1, %v26516_v41  ;;  %23332 = vmatpush3.msk.msra.mxu0 %vm8648_vm1, %v26776_v60 }
 0x497   : > { %21666 = vmatprep.subr.msk.mxu1 %vm8648_vm1, %v26558_v11  ;;  %21670 = vmatprep.subr.msk.mxu0 %vm8648_vm1, %v26576_v6  ;;  %v21664_v11 = vld [vmem:[%s31058_s3 + $0xf0] sm:$0xff]  ;;  %v13111_v6 = vsel %vm5030_vm8, %v26658_v13, %v26800_v18  ;;  %v21717_v13 = vld [vmem:[%s31058_s3 + $0x138] sm:$0xff] }
 0x498   : > { %12430 = vmatprep.mubr.f32.mxu0 %v31104_v51  ;;  %12501 = vmatprep.mubr.f32.mxu1 %v31104_v51 }
 0x499   : > { %21656 = vmatmul.mubr.msk.f32.gmra.mxu0 %vm8641_vm2, %v21652_v44  ;;  %21659 = vmatmul.mubr.msk.f32.vlgmr.msra.gmra.mxu1 %vm8641_vm2, %v21651_v2 }
 0x49a   : > { %21667 = vmatpush1.msk.msra.mxu1 %vm8648_vm1, %v26537_v1  ;;  %12507 = vmatprep.mubr.f32.mxu1 %v31104_v51  ;;  %v12858_v1 = vsel %vm4364_vm14, %v26622_v42, %v26798_v29  ;;  %v21704_v42 = vld [vmem:[%s31058_s3 + $0x128] sm:$0xff]  ;;  %vm21104_vm14 = vcmask 7168  }
 0x49b   : > { %23336 = vmatprep.subr.msk.mxu1 %vm8648_vm1, %v12605_v58  ;;  %23333 = vmatprep.mubr.msk.f32.mxu0 %vm8641_vm2, %v21651_v2 }
 0x49d   : > { %21660 = vmatmul.mubr.msk.f32.gmra.mxu1 %vm8641_vm2, %v21652_v44  ;;  %23334 = vmatmul.mubr.msk.f32.vlgmr.msra.gmra.mxu0 %vm8641_vm2, %v21652_v44  ;;  %v21743_v44 = vld [vmem:[%s31058_s3 + $0x158] sm:$0xff] }
 0x49e   : > { %21671 = vmatpush1.msk.msra.mxu0 %vm8648_vm1, %v26553_v5  ;;  %12678 = vmatprep.mubr.f32.mxu1 %v31104_v51  ;;  %v21665_v5 = vld [vmem:[%s31058_s3 + $0xf8] sm:$0xff] }
 0x49f   : > { %21679 = vmatprep.subr.msk.mxu0 %vm8648_vm1, %v26606_v34  ;;  %12755 = vmatprep.mubr.f32.mxu0 %v31104_v51  ;;  %v21691_v34 = vld [vmem:[%s31058_s3 + $0x118] sm:$0xff] }
 0x4a1   : > { %21668 = vmatmul.mubr.msk.f32.vlgmr.msra.gmra.mxu1 %vm8641_vm2, %v21664_v11  ;;  %21672 = vmatmul.mubr.msk.f32.vlgmr.msra.gmra.mxu0 %vm8641_vm2, %v21664_v11 }
 0x4a2   : > { %23337 = vmatpush3.msk.msra.mxu1 %vm8648_vm1, %v12605_v58  ;;  %21680 = vmatpush1.msk.msra.mxu0 %vm8648_vm1, %v26572_v40  ;;  %v21678_v40 = vld [vmem:[%s31058_s3 + $0x108] sm:$0xff] }
 0x4a3   : > { %21683 = vmatprep.subr.msk.mxu1 %vm8648_vm1, %v26626_v50  ;;  %23341 = vmatprep.subr.msk.mxu0 %vm8648_vm1, %v12858_v1  ;;  %v15136_v50 = vld [vmem:[%s31059_s4 + $0x8] sm:$0xff] }
 0x4a4   : > { %12684 = vmatprep.mubr.f32.mxu1 %v31104_v51  ;;  %12761 = vmatprep.mubr.f32.mxu0 %v31104_v51 }
 0x4a5   : > { %21669 = vmatmul.mubr.msk.f32.gmra.mxu1 %vm8641_vm2, %v21665_v5  ;;  %21673 = vmatmul.mubr.msk.f32.gmra.mxu0 %vm8641_vm2, %v21665_v5 }
 0x4a6   : > { %23338 = vmatprep.mubr.msk.f32.mxu1 %vm8641_vm2, %v21664_v11  ;;  %12931 = vmatprep.mubr.f32.mxu0 %v31104_v51 }
 0x4a7   : > { %15144 = vperm.xlu1 %24736, %v15136_v50  }
 0x4a9   : > { %23339 = vmatmul.mubr.msk.f32.vlgmr.msra.gmra.mxu1 %vm8641_vm2, %v21665_v5  ;;  %21681 = vmatmul.mubr.msk.f32.vlgmr.msra.gmra.mxu0 %vm8641_vm2, %v21677_v36 }
 0x4aa   : > { %21684 = vmatpush1.msk.msra.mxu1 %vm8648_vm1, %v26594_v38  ;;  %23342 = vmatpush3.msk.msra.mxu0 %vm8648_vm1, %v12858_v1  ;;  %v21690_v38 = vld [vmem:[%s31058_s3 + $0x110] sm:$0xff] }
 0x4ab   : > { %21692 = vmatprep.subr.msk.mxu1 %vm8648_vm1, %v26639_v56  ;;  %21696 = vmatprep.subr.msk.mxu0 %vm8648_vm1, %v26662_v26  ;;  %v21716_v56 = vld [vmem:[%s31058_s3 + $0x130] sm:$0xff] }
 0x4ac   : > { %12937 = vmatprep.mubr.f32.mxu0 %v31104_v51  ;;  %13008 = vmatprep.mubr.f32.mxu1 %v31104_v51 }
 0x4ad   : > { %21682 = vmatmul.mubr.msk.f32.gmra.mxu0 %vm8641_vm2, %v21678_v40  ;;  %21685 = vmatmul.mubr.msk.f32.vlgmr.msra.gmra.mxu1 %vm8641_vm2, %v21677_v36 }
 0x4ae   : > { %21693 = vmatpush1.msk.msra.mxu1 %vm8648_vm1, %v26611_v33  ;;  %13014 = vmatprep.mubr.f32.mxu1 %v31104_v51  ;;  %v21703_v33 = vld [vmem:[%s31058_s3 + $0x120] sm:$0xff] }
 0x4af   : > { %23346 = vmatprep.subr.msk.mxu1 %vm8648_vm1, %v13111_v6  ;;  %23343 = vmatprep.mubr.msk.f32.mxu0 %vm8641_vm2, %v21677_v36 }
 0x4b1   : > { %21686 = vmatmul.mubr.msk.f32.gmra.mxu1 %vm8641_vm2, %v21678_v40  ;;  %23344 = vmatmul.mubr.msk.f32.vlgmr.msra.gmra.mxu0 %vm8641_vm2, %v21678_v40 }
 0x4b2   : > { %21697 = vmatpush1.msk.msra.mxu0 %vm8648_vm1, %v26642_v53  ;;  %13184 = vmatprep.mubr.f32.mxu1 %v31104_v51 }
 0x4b3   : > { %21705 = vmatprep.subr.msk.mxu0 %vm8648_vm1, %v26695_v59  ;;  %13261 = vmatprep.mubr.f32.mxu0 %v31104_v51 }
 0x4b5   : > { %21694 = vmatmul.mubr.msk.f32.vlgmr.msra.gmra.mxu1 %vm8641_vm2, %v21690_v38  ;;  %21698 = vmatmul.mubr.msk.f32.vlgmr.msra.gmra.mxu0 %vm8641_vm2, %v21690_v38 }
 0x4b6   : > { %23347 = vmatpush3.msk.msra.mxu1 %vm8648_vm1, %v13111_v6  ;;  %21706 = vmatpush1.msk.msra.mxu0 %vm8648_vm1, %v26653_v62 }
 0x4b7   : > { %21709 = vmatprep.subr.msk.mxu1 %vm8648_vm1, %v26712_v23  ;;  %23351 = vmatprep.subr.msk.mxu0 %vm8648_vm1, %v26814_v22 }
 0x4b8   : > { %13190 = vmatprep.mubr.f32.mxu1 %v31104_v51  ;;  %13267 = vmatprep.mubr.f32.mxu0 %v31104_v51 }
 0x4b9   : > { %21695 = vmatmul.mubr.msk.f32.gmra.mxu1 %vm8641_vm2, %v21691_v34  ;;  %21699 = vmatmul.mubr.msk.f32.gmra.mxu0 %vm8641_vm2, %v21691_v34 }
 0x4ba   : > { %23348 = vmatprep.mubr.msk.f32.mxu1 %vm8641_vm2, %v21690_v38  ;;  %13437 = vmatprep.mubr.f32.mxu0 %v31104_v51  ;;  %v21755_v38 = vld [vmem:[%s31058_s3 + $0x160] sm:$0xff] }
 0x4bd   : > { %23349 = vmatmul.mubr.msk.f32.vlgmr.msra.gmra.mxu1 %vm8641_vm2, %v21691_v34  ;;  %21707 = vmatmul.mubr.msk.f32.vlgmr.msra.gmra.mxu0 %vm8641_vm2, %v21703_v33 }
 0x4be   : > { %21710 = vmatpush1.msk.msra.mxu1 %vm8648_vm1, %v26680_v9  ;;  %23352 = vmatpush3.msk.msra.mxu0 %vm8648_vm1, %v26814_v22  ;;  %v14119_v9 = vpop.permute.xlu1 %14118 }
 0x4bf   : > { %21718 = vmatprep.subr.msk.mxu1 %vm8648_vm1, %v26725_v43  ;;  %21722 = vmatprep.subr.msk.mxu0 %vm8648_vm1, %v26744_v14  ;;  %v14120_v43 = vsel %vm1040_vm4, %v26741_v0, %v14119_v9 }
 0x4c0   : > { %13443 = vmatprep.mubr.f32.mxu0 %v31104_v51  ;;  %13514 = vmatprep.mubr.f32.mxu1 %v31104_v51 }
 0x4c1   : > { %21708 = vmatmul.mubr.msk.f32.gmra.mxu0 %vm8641_vm2, %v21704_v42  ;;  %21711 = vmatmul.mubr.msk.f32.vlgmr.msra.gmra.mxu1 %vm8641_vm2, %v21703_v33 }
 0x4c2   : > { %21719 = vmatpush1.msk.msra.mxu1 %vm8648_vm1, %v26692_v21  ;;  %13520 = vmatprep.mubr.f32.mxu1 %v31104_v51  ;;  %v14629_v36 = vpop.permute.xlu1 %14628 }
 0x4c3   : > { %23356 = vmatprep.subr.msk.mxu1 %vm8648_vm1, %v26817_v35  ;;  %23353 = vmatprep.mubr.msk.f32.mxu0 %vm8641_vm2, %v21703_v33 }
 0x4c5   : > { %21712 = vmatmul.mubr.msk.f32.gmra.mxu1 %vm8641_vm2, %v21704_v42  ;;  %23354 = vmatmul.mubr.msk.f32.vlgmr.msra.gmra.mxu0 %vm8641_vm2, %v21704_v42 }
 0x4c6   : > { %21723 = vmatpush1.msk.msra.mxu0 %vm8648_vm1, %v26728_v31  ;;  %13690 = vmatprep.mubr.f32.mxu1 %v31104_v51  ;;  %v21730_v31 = vld [vmem:[%s31058_s3 + $0x148] sm:$0xff] }
 0x4c7   : > { %21731 = vmatprep.subr.msk.mxu0 %vm8648_vm1, %v26242_v57  ;;  %13767 = vmatprep.mubr.f32.mxu0 %v31104_v51 }
 0x4c8   : > { %v8725_v53 = vpop.f32.mrf.mxu0 }
 0x4c9   : > { %21720 = vmatmul.mubr.msk.f32.vlgmr.msra.gmra.mxu1 %vm8641_vm2, %v21716_v56  ;;  %21724 = vmatmul.mubr.msk.f32.vlgmr.msra.gmra.mxu0 %vm8641_vm2, %v21716_v56 }
 0x4ca   : > { %23357 = vmatpush3.msk.msra.mxu1 %vm8648_vm1, %v26817_v35  ;;  %21732 = vmatpush1.msk.msra.mxu0 %vm8648_vm1, %v26234_v17  ;;  %v8727_v62 = vpop.f32.mrf.mxu0 }
 0x4cb   : > { %21735 = vmatprep.subr.msk.mxu1 %vm8648_vm1, %v26299_v8  ;;  %23361 = vmatprep.subr.msk.mxu0 %vm8648_vm1, %v26338_v52  ;;  %v21729_v8 = vld [vmem:[%s31058_s3 + $0x140] sm:$0xff] }
 0x4cc   : > { %13696 = vmatprep.mubr.f32.mxu1 %v31104_v51  ;;  %13773 = vmatprep.mubr.f32.mxu0 %v31104_v51  ;;  %v8731_v57 = vpop.f32.mrf.mxu0 }
 0x4cd   : > { %v8802_v26 = vpop.f32.mrf.mxu1  ;;  %21721 = vmatmul.mubr.msk.f32.gmra.mxu1 %vm8641_vm2, %v21717_v13  ;;  %21725 = vmatmul.mubr.msk.f32.gmra.mxu0 %vm8641_vm2, %v21717_v13 }
 0x4ce   : > { %v8733_v17 = vpop.f32.mrf.mxu0  ;;  %23358 = vmatprep.mubr.msk.f32.mxu1 %vm8641_vm2, %v21716_v56  ;;  %13940 = vmatprep.mubr.f32.mxu0 %v31104_v51 }
 0x4cf   : > { %v8804_v21 = vpop.f32.mrf.mxu1 }
 0x4d1   : > { %v8808_v59 = vpop.f32.mrf.mxu1  ;;  %v23265_v23 = vpop.f32.mrf.mxu0  ;;  %23359 = vmatmul.mubr.msk.f32.vlgmr.msra.gmra.mxu1 %vm8641_vm2, %v21717_v13  ;;  %21733 = vmatmul.mubr.msk.f32.vlgmr.msra.gmra.mxu0 %vm8641_vm2, %v21729_v8 }
 0x4d2   : > { %21736 = vmatpush1.msk.msra.mxu1 %vm8648_vm1, %v26244_v10  ;;  %23362 = vmatpush3.msk.msra.mxu0 %vm8648_vm1, %v26338_v52 }
 0x4d3   : > { %21744 = vmatprep.subr.msk.mxu1 %vm8648_vm1, %v26374_v28  ;;  %21748 = vmatprep.subr.msk.mxu0 %vm8648_vm1, %v14120_v43  ;;  %v8810_v14 = vpop.f32.mrf.mxu1  ;;  %v8879_v61 = vpop.f32.mrf.mxu0 }
 0x4d4   : > { %13946 = vmatprep.mubr.f32.mxu0 %v31104_v51  ;;  %14017 = vmatprep.mubr.f32.mxu1 %v31104_v51 }
 0x4d5   : > { %v8970_v10 = vpop.f32.mrf.mxu1  ;;  %v9047_v52 = vpop.f32.mrf.mxu0  ;;  %21734 = vmatmul.mubr.msk.f32.gmra.mxu0 %vm8641_vm2, %v21730_v31  ;;  %21737 = vmatmul.mubr.msk.f32.vlgmr.msra.gmra.mxu1 %vm8641_vm2, %v21729_v8 }
 0x4d6   : > { %v8971_v0 = vadd.f32 %v8970_v10, %v8725_v53  ;;  %v9048_v48 = vadd.f32 %v9047_v52, %v8802_v26  ;;  %21745 = vmatpush1.msk.msra.mxu1 %vm8648_vm1, %v26367_v45  ;;  %14023 = vmatprep.mubr.f32.mxu1 %v31104_v51  ;;  %v21742_v45 = vld [vmem:[%s31058_s3 + $0x150] sm:$0xff]  ;;  %v21756_v26 = vld [vmem:[%s31058_s3 + $0x168] sm:$0xff] }
 0x4d7   : > { %23366 = vmatprep.subr.msk.mxu1 %vm8648_vm1, %v14119_v9  ;;  %v8972_v28 = vpop.f32.mrf.mxu1  ;;  %v9049_v3 = vpop.f32.mrf.mxu0  ;;  %23363 = vmatprep.mubr.msk.f32.mxu0 %vm8641_vm2, %v21729_v8 }
 0x4d8   : > { %v8973_v32 = vadd.f32 %v8972_v28, %v8727_v62  ;;  %v9050_v29 = vadd.f32 %v9049_v3, %v8804_v21  ;;  %v21769_v3 = vld [vmem:[%s31058_s3 + $0x178] sm:$0xff] }
 0x4d9   : > { %v8976_v18 = vpop.f32.mrf.mxu1  ;;  %v9053_v19 = vpop.f32.mrf.mxu0  ;;  %21738 = vmatmul.mubr.msk.f32.gmra.mxu1 %vm8641_vm2, %v21730_v31  ;;  %23364 = vmatmul.mubr.msk.f32.vlgmr.msra.gmra.mxu0 %vm8641_vm2, %v21730_v31 }
 0x4da   : > { %v8977_v22 = vadd.f32 %v8976_v18, %v8731_v57  ;;  %v9054_v35 = vadd.f32 %v9053_v19, %v8808_v59  ;;  %21749 = vmatpush1.msk.msra.mxu0 %vm8648_vm1, %v26789_v49  ;;  %14195 = vmatprep.mubr.f32.mxu1 %v31104_v51  ;;  %v14630_v57 = vsel %vm9418_vm3, %v26762_v25, %v14629_v36  ;;  %v14884_v31 = vpop.permute.xlu0 %14883 }
 0x4db   : > { %21757 = vmatprep.subr.msk.mxu0 %vm8648_vm1, %v26436_v27  ;;  %v8978_v30 = vpop.f32.mrf.mxu1  ;;  %v9055_v39 = vpop.f32.mrf.mxu0  ;;  %14272 = vmatprep.mubr.f32.mxu0 %v31104_v51  ;;  %v14375_v27 = vsel %vm1700_vm6, %v26760_v37, %v14374_v12  ;;  %vm15322_vm6 = vcmask 130048  }
 0x4dc   : > { %v8979_v55 = vadd.f32 %v8978_v30, %v8733_v17  ;;  %v27131_v47 = vadd.f32 %v9055_v39, %v8810_v14 }
 0x4dd   : > { %v23270_v7 = vpop.f32.mrf.mxu1  ;;  %v9232_v16 = vpop.f32.mrf.mxu0  ;;  %21746 = vmatmul.mubr.msk.f32.vlgmr.msra.gmra.mxu1 %vm8641_vm2, %v21742_v45  ;;  %21750 = vmatmul.mubr.msk.f32.vlgmr.msra.gmra.mxu0 %vm8641_vm2, %v21742_v45 }
 0x4de   : > { %31105 = vst [vmem:[#allocation4_spill] sm:$0xff] %v27131_v47  ;;  %v9130_v49 = vadd.f32 %v23270_v7, %v23265_v23  ;;  %v9395_v2 = vadd.f32 %v9232_v16, %v8971_v0  ;;  %23367 = vmatpush3.msk.msra.mxu1 %vm8648_vm1, %v14119_v9  ;;  %21758 = vmatpush1.msk.msra.mxu0 %vm8648_vm1, %v26448_v4  ;;  %v21782_v7 = vld [vmem:[%s31058_s3 + $0x188] sm:$0xff] }
 0x4df   : > { %21761 = vmatprep.subr.msk.mxu1 %vm8648_vm1, %v14375_v27  ;;  %23371 = vmatprep.subr.msk.mxu0 %vm8648_vm1, %v14374_v12  ;;  %v9124_v58 = vpop.f32.mrf.mxu1  ;;  %v9234_v11 = vpop.f32.mrf.mxu0 }
 0x4e0   : > { %v27145_v1 = vadd.f32 %v9124_v58, %v8879_v61  ;;  %v27147_v5 = vadd.f32 %v9234_v11, %v8973_v32  ;;  %14201 = vmatprep.mubr.f32.mxu1 %v31104_v51  ;;  %14278 = vmatprep.mubr.f32.mxu0 %v31104_v51 }
 0x4e1   : > { %v9238_v4 = vpop.f32.mrf.mxu0  ;;  %v9309_v37 = vpop.f32.mrf.mxu1  ;;  %21747 = vmatmul.mubr.msk.f32.gmra.mxu1 %vm8641_vm2, %v21743_v44  ;;  %21751 = vmatmul.mubr.msk.f32.gmra.mxu0 %vm8641_vm2, %v21743_v44 }
 0x4e2   : > { %31106 = vst [vmem:[#allocation5_spill] sm:$0xff] %v27145_v1  ;;  %v9400_v40 = vadd.f32 %v9238_v4, %v8977_v22  ;;  %v9397_v6 = vadd.f32 %v9309_v37, %v9048_v48  ;;  %23368 = vmatprep.mubr.msk.f32.mxu1 %vm8641_vm2, %v21742_v45  ;;  %14450 = vmatprep.mubr.f32.mxu0 %v31104_v51 }
 0x4e3   : > { %v9240_v34 = vpop.f32.mrf.mxu0  ;;  %v9311_v33 = vpop.f32.mrf.mxu1 }
 0x4e4   : > { %v27158_v42 = vadd.f32 %v9240_v34, %v8979_v55  ;;  %v27160_v50 = vadd.f32 %v9311_v33, %v9050_v29 }
 0x4e5   : > { %v9315_v56 = vpop.f32.mrf.mxu1  ;;  %v23275_v53 = vpop.f32.mrf.mxu0  ;;  %23369 = vmatmul.mubr.msk.f32.vlgmr.msra.gmra.mxu1 %vm8641_vm2, %v21743_v44  ;;  %21759 = vmatmul.mubr.msk.f32.vlgmr.msra.gmra.mxu0 %vm8641_vm2, %v21755_v38 }
 0x4e6   : > { %31107 = vst [vmem:[#allocation3_spill] sm:$0xff] %v27160_v50  ;;  %v9402_v62 = vadd.f32 %v9315_v56, %v9054_v35  ;;  %v9404_v13 = vadd.f32 %v23275_v53, %v9130_v49  ;;  %21762 = vmatpush1.msk.msra.mxu1 %vm8648_vm1, %v26839_v54  ;;  %23372 = vmatpush3.msk.msra.mxu0 %vm8648_vm1, %v14374_v12  ;;  %v21781_v12 = vld [vmem:[%s31058_s3 + $0x180] sm:$0xff] }
 0x4e7   : > { %21770 = vmatprep.subr.msk.mxu1 %vm8648_vm1, %v26481_v63  ;;  %21774 = vmatprep.subr.msk.mxu0 %vm8648_vm1, %v14630_v57  ;;  %v27175_v17 = vpop.f32.mrf.mxu1  ;;  %v27177_v8 = vpop.f32.mrf.mxu0 }
 0x4e8   : > { %31108 = vst [vmem:[#allocation7_spill] sm:$0xff] %v27175_v17  ;;  %31109 = vst [vmem:[#allocation6_spill] sm:$0xff] %v27177_v8  ;;  %14456 = vmatprep.mubr.f32.mxu0 %v31104_v51  ;;  %14527 = vmatprep.mubr.f32.mxu1 %v31104_v51 }
 0x4e9   : > { %v9505_v54 = vpop.f32.mrf.mxu1  ;;  %v9582_v9 = vpop.f32.mrf.mxu0  ;;  %21760 = vmatmul.mubr.msk.f32.gmra.mxu0 %vm8641_vm2, %v21756_v26  ;;  %21763 = vmatmul.mubr.msk.f32.vlgmr.msra.gmra.mxu1 %vm8641_vm2, %v21755_v38 }
 0x4ea   : > { %v9668_v25 = vadd.f32 %v9505_v54, %v9395_v2  ;;  %v9670_v21 = vadd.f32 %v9582_v9, %v9397_v6  ;;  %21771 = vmatpush1.msk.msra.mxu1 %vm8648_vm1, %v26475_v20  ;;  %14533 = vmatprep.mubr.f32.mxu1 %v31104_v51  ;;  %v21768_v20 = vld [vmem:[%s31058_s3 + $0x170] sm:$0xff] }
 0x4eb   : > { %23376 = vmatprep.subr.msk.mxu1 %vm8648_vm1, %v14629_v36  ;;  %v27187_v63 = vpop.f32.mrf.mxu1  ;;  %v27189_v59 = vpop.f32.mrf.mxu0  ;;  %23373 = vmatprep.mubr.msk.f32.mxu0 %vm8641_vm2, %v21755_v38 }
 0x4ec   : > { %31110 = vst [vmem:[#allocation9_spill] sm:$0xff] %v27189_v59 }
 0x4ed   : > { %v9511_v23 = vpop.f32.mrf.mxu1  ;;  %v9588_v43 = vpop.f32.mrf.mxu0  ;;  %21764 = vmatmul.mubr.msk.f32.gmra.mxu1 %vm8641_vm2, %v21756_v26  ;;  %23374 = vmatmul.mubr.msk.f32.vlgmr.msra.gmra.mxu0 %vm8641_vm2, %v21756_v26 }
 0x4ee   : > { %v9673_v14 = vadd.f32 %v9511_v23, %v9400_v40  ;;  %v9675_v61 = vadd.f32 %v9588_v43, %v9402_v62  ;;  %21775 = vmatpush1.msk.msra.mxu0 %vm8648_vm1, %v26866_v24  ;;  %14705 = vmatprep.mubr.f32.mxu1 %v31104_v51 }
 0x4ef   : > { %21783 = vmatprep.subr.msk.mxu0 %vm8648_vm1, %v26516_v41  ;;  %v27202_v10 = vpop.f32.mrf.mxu1  ;;  %v27204_v52 = vpop.f32.mrf.mxu0  ;;  %14782 = vmatprep.mubr.f32.mxu0 %v31104_v51  ;;  %v14885_v41 = vsel %vm9691_vm5, %v26776_v60, %v14884_v31 }
 0x4f0   : > { %31111 = vst [vmem:[#allocation8_spill] sm:$0xff] %v27204_v52 }
 0x4f1   : > { %v23280_v0 = vpop.f32.mrf.mxu1  ;;  %v9778_v48 = vpop.f32.mrf.mxu0  ;;  %21772 = vmatmul.mubr.msk.f32.vlgmr.msra.gmra.mxu1 %vm8641_vm2, %v21768_v20  ;;  %21776 = vmatmul.mubr.msk.f32.vlgmr.msra.gmra.mxu0 %vm8641_vm2, %v21768_v20 }
 0x4f2   : > { %v9677_v24 = vadd.f32 %v23280_v0, %v9404_v13  ;;  %v9941_v28 = vadd.f32 %v9778_v48, %v9668_v25  ;;  %23377 = vmatpush3.msk.msra.mxu1 %vm8648_vm1, %v14629_v36  ;;  %21784 = vmatpush1.msk.msra.mxu0 %vm8648_vm1, %v26528_v46 }
 0x4f3   : > { %21787 = vmatprep.subr.msk.mxu1 %vm8648_vm1, %v14885_v41  ;;  %23381 = vmatprep.subr.msk.mxu0 %vm8648_vm1, %v14884_v31  ;;  %v27219_v32 = vpop.f32.mrf.mxu1  ;;  %v27221_v29 = vpop.f32.mrf.mxu0 }
 0x4f4   : > { %31112 = vst [vmem:[#allocation13_spill] sm:$0xff] %v27219_v32  ;;  %14711 = vmatprep.mubr.f32.mxu1 %v31104_v51  ;;  %14788 = vmatprep.mubr.f32.mxu0 %v31104_v51 }
 0x4f5   : > { %v9784_v46 = vpop.f32.mrf.mxu0  ;;  %v9855_v18 = vpop.f32.mrf.mxu1  ;;  %21773 = vmatmul.mubr.msk.f32.gmra.mxu1 %vm8641_vm2, %v21769_v3  ;;  %21777 = vmatmul.mubr.msk.f32.gmra.mxu0 %vm8641_vm2, %v21769_v3 }
 0x4f6   : > { %v9946_v60 = vadd.f32 %v9784_v46, %v9673_v14  ;;  %v9943_v19 = vadd.f32 %v9855_v18, %v9670_v21  ;;  %23378 = vmatprep.mubr.msk.f32.mxu1 %vm8641_vm2, %v21768_v20  ;;  %14960 = vmatprep.mubr.f32.mxu0 %v31104_v51 }
 0x4f7   : > { %v27232_v22 = vpop.f32.mrf.mxu0  ;;  %v27234_v35 = vpop.f32.mrf.mxu1 }
 0x4f8   : > { %31113 = vst [vmem:[#allocation14_spill] sm:$0xff] %v27234_v35 }
 0x4f9   : > { %v9861_v45 = vpop.f32.mrf.mxu1  ;;  %v23285_v30 = vpop.f32.mrf.mxu0  ;;  %23379 = vmatmul.mubr.msk.f32.vlgmr.msra.gmra.mxu1 %vm8641_vm2, %v21769_v3  ;;  %21785 = vmatmul.mubr.msk.f32.vlgmr.msra.gmra.mxu0 %vm8641_vm2, %v21781_v12 }
 0x4fa   : > { %v9948_v39 = vadd.f32 %v9861_v45, %v9675_v61  ;;  %v9950_v55 = vadd.f32 %v23285_v30, %v9677_v24  ;;  %21788 = vmatpush1.msk.msra.mxu1 %vm8648_vm1, %v26905_v15  ;;  %23382 = vmatpush3.msk.msra.mxu0 %vm8648_vm1, %v14884_v31 }
 0x4fb   : > { %v27244_v16 = vpop.f32.mrf.mxu1  ;;  %v27246_v49 = vpop.f32.mrf.mxu0  ;;  %14966 = vmatprep.mubr.f32.mxu0 %v31104_v51  ;;  %15037 = vmatprep.mubr.f32.mxu1 %v31104_v51 }
 0x4fc   : > { %31114 = vst [vmem:[#allocation10_spill] sm:$0xff] %v27244_v16  ;;  %31115 = vst [vmem:[#allocation16_spill] sm:$0xff] %v27246_v49  ;;  %23435 = vmatprep.subr.mxu0 %v31104_v51  ;;  %23386 = vmatprep.subr.mxu1 %v31104_v51 }
 0x4fd   : > { %v10054_v2 = vpop.f32.mrf.mxu1  ;;  %v10131_v15 = vpop.f32.mrf.mxu0  ;;  %21786 = vmatmul.mubr.msk.f32.gmra.mxu0 %vm8641_vm2, %v21782_v7  ;;  %21789 = vmatmul.mubr.msk.f32.vlgmr.msra.gmra.mxu1 %vm8641_vm2, %v21781_v12 }
 0x4fe   : > { %v10217_v27 = vadd.f32 %v10054_v2, %v9941_v28  ;;  %v10219_v44 = vadd.f32 %v10131_v15, %v9943_v19  ;;  %15043 = vmatprep.mubr.f32.mxu1 %v31104_v51  ;;  %23383 = vmatprep.mubr.msk.f32.mxu0 %vm8641_vm2, %v21781_v12 }
 0x4ff   : > { %v27256_v58 = vpop.f32.mrf.mxu1  ;;  %v27258_v11 = vpop.f32.mrf.mxu0 }
 0x500   : > { %31116 = vst [vmem:[#allocation12_spill] sm:$0xff] %v27258_v11 }
 0x501   : > { %v10060_v4 = vpop.f32.mrf.mxu1  ;;  %v10137_v37 = vpop.f32.mrf.mxu0  ;;  %21790 = vmatmul.mubr.msk.f32.gmra.mxu1 %vm8641_vm2, %v21782_v7  ;;  %23384 = vmatmul.mubr.msk.f32.vlgmr.msra.gmra.mxu0 %vm8641_vm2, %v21782_v7 }
 0x502   : > { %v10222_v36 = vadd.f32 %v10060_v4, %v9946_v60  ;;  %v10224_v40 = vadd.f32 %v10137_v37, %v9948_v39  ;;  %23390 = vmatprep.mubr.msk.f32.mxu1 %vm24755_vm0, %v31104_v51  ;;  %23439 = vmatprep.mubr.msk.f32.mxu0 %vm24755_vm0, %v31104_v51 }
 0x503   : > { %v27266_v6 = vpop.f32.mrf.mxu1  ;;  %v27268_v38 = vpop.f32.mrf.mxu0 }
 0x504   : > { %31117 = vst [vmem:[#allocation11_spill] sm:$0xff] %v27268_v38 }
 0x505   : > { %v23290_v34 = vpop.f32.mrf.mxu1  ;;  %v10329_v33 = vpop.f32.mrf.mxu0 }
 0x506   : > { %v10226_v56 = vadd.f32 %v23290_v34, %v9950_v55  ;;  %v10492_v53 = vadd.f32 %v10329_v33, %v10217_v27 }
 0x507   : > { %v27270_v62 = vpop.f32.mrf.mxu1  ;;  %v27272_v13 = vpop.f32.mrf.mxu0 }
 0x508   : > { %31118 = vst [vmem:[#allocation15_spill] sm:$0xff] %v27270_v62 }
 0x509   : > { %v10335_v57 = vpop.f32.mrf.mxu0  ;;  %v10406_v26 = vpop.f32.mrf.mxu1 }
 0x50a   : > { %v10497_v54 = vadd.f32 %v10335_v57, %v10222_v36  ;;  %v10494_v9 = vadd.f32 %v10406_v26, %v10219_v44 }
 0x50b   : > { %v27274_v25 = vpop.f32.mrf.mxu0  ;;  %v27276_v21 = vpop.f32.mrf.mxu1 }
 0x50c   : > { %31119 = vst [vmem:[#allocation2_spill] sm:$0xff] %v27276_v21 }
 0x50d   : > { %v10412_v23 = vpop.f32.mrf.mxu1  ;;  %v23295_v43 = vpop.f32.mrf.mxu0 }
 0x50e   : > { %v10499_v31 = vadd.f32 %v10412_v23, %v10224_v40  ;;  %v10501_v14 = vadd.f32 %v23295_v43, %v10226_v56 }
 0x50f   : > { %v27278_v61 = vpop.f32.mrf.mxu1  ;;  %v27280_v20 = vpop.f32.mrf.mxu0 }
 0x510   : > { %31120 = vst [vmem:[#allocation17_spill] sm:$0xff] %v27278_v61  ;;  %31121 = vst [vmem:[#allocation18_spill] sm:$0xff] %v27280_v20 }
 0x511   : > { %v10604_v0 = vpop.f32.mrf.mxu1  ;;  %v10681_v48 = vpop.f32.mrf.mxu0 }
 0x512   : > { %v10767_v24 = vadd.f32 %v10604_v0, %v10492_v53  ;;  %v10769_v28 = vadd.f32 %v10681_v48, %v10494_v9 }
 0x513   : > { %v27282_v41 = vpop.f32.mrf.mxu1  ;;  %v27284_v3 = vpop.f32.mrf.mxu0 }
 0x514   : > { %31122 = vst [vmem:[#allocation19_spill] sm:$0xff] %v27284_v3 }
 0x515   : > { %v10610_v46 = vpop.f32.mrf.mxu1  ;;  %v10687_v18 = vpop.f32.mrf.mxu0 }
 0x516   : > { %v10772_v60 = vadd.f32 %v10610_v46, %v10497_v54  ;;  %v10774_v19 = vadd.f32 %v10687_v18, %v10499_v31 }
 0x517   : > { %v27286_v12 = vpop.f32.mrf.mxu1  ;;  %v27288_v45 = vpop.f32.mrf.mxu0 }
 0x518   : > { %31123 = vst [vmem:[#allocation20_spill] sm:$0xff] %v27288_v45 }
 0x519   : > { %v23300_v30 = vpop.f32.mrf.mxu1  ;;  %v10880_v39 = vpop.f32.mrf.mxu0 }
 0x51a   : > { %v10776_v55 = vadd.f32 %v23300_v30, %v10501_v14  ;;  %v11043_v7 = vadd.f32 %v10880_v39, %v10767_v24 }
 0x51b   : > { %v27290_v2 = vpop.f32.mrf.mxu1  ;;  %v27292_v15 = vpop.f32.mrf.mxu0 }
 0x51c   : > { %31124 = vst [vmem:[#allocation21_spill] sm:$0xff] %v27290_v2 }
 0x51d   : > { %v10886_v27 = vpop.f32.mrf.mxu0  ;;  %v10957_v44 = vpop.f32.mrf.mxu1 }
 0x51e   : > { %v11048_v4 = vadd.f32 %v10886_v27, %v10772_v60  ;;  %v11045_v37 = vadd.f32 %v10957_v44, %v10769_v28 }
 0x51f   : > { %v27294_v36 = vpop.f32.mrf.mxu0  ;;  %v27296_v40 = vpop.f32.mrf.mxu1 }
 0x520   : > { %31125 = vst [vmem:[#allocation22_spill] sm:$0xff] %v27296_v40 }
 0x521   : > { %v10963_v34 = vpop.f32.mrf.mxu1  ;;  %v23305_v33 = vpop.f32.mrf.mxu0 }
 0x522   : > { %v11050_v56 = vadd.f32 %v10963_v34, %v10774_v19  ;;  %v11052_v53 = vadd.f32 %v23305_v33, %v10776_v55 }
 0x523   : > { %v27298_v57 = vpop.f32.mrf.mxu1  ;;  %v27300_v26 = vpop.f32.mrf.mxu0 }
 0x524   : > { %31126 = vst [vmem:[#allocation23_spill] sm:$0xff] %v27298_v57  ;;  %31127 = vst [vmem:[#allocation24_spill] sm:$0xff] %v27300_v26 }
 0x525   : > { %v11156_v54 = vpop.f32.mrf.mxu1  ;;  %v11233_v9 = vpop.f32.mrf.mxu0 }
 0x526   : > { %v11319_v23 = vadd.f32 %v11156_v54, %v11043_v7  ;;  %v11321_v43 = vadd.f32 %v11233_v9, %v11045_v37 }
 0x527   : > { %v27302_v31 = vpop.f32.mrf.mxu1  ;;  %v27304_v14 = vpop.f32.mrf.mxu0 }
 0x528   : > { %31128 = vst [vmem:[#allocation25_spill] sm:$0xff] %v27304_v14 }
 0x529   : > { %v11162_v0 = vpop.f32.mrf.mxu1  ;;  %v11239_v48 = vpop.f32.mrf.mxu0 }
 0x52a   : > { %v11324_v24 = vadd.f32 %v11162_v0, %v11048_v4  ;;  %v11326_v28 = vadd.f32 %v11239_v48, %v11050_v56 }
 0x52b   : > { %v27306_v46 = vpop.f32.mrf.mxu1  ;;  %v27308_v18 = vpop.f32.mrf.mxu0 }
 0x52c   : > { %31129 = vst [vmem:[#allocation26_spill] sm:$0xff] %v27308_v18 }
 0x52d   : > { %v23310_v60 = vpop.f32.mrf.mxu1  ;;  %v11406_v19 = vpop.f32.mrf.mxu0 }
 0x52e   : > { %v11328_v30 = vadd.f32 %v23310_v60, %v11052_v53  ;;  %v11569_v39 = vadd.f32 %v11406_v19, %v11319_v23 }
 0x52f   : > { %v27310_v55 = vpop.f32.mrf.mxu1  ;;  %v27312_v7 = vpop.f32.mrf.mxu0 }
 0x530   : > { %31130 = vst [vmem:[#allocation27_spill] sm:$0xff] %v27310_v55 }
 0x531   : > { %v11412_v27 = vpop.f32.mrf.mxu0  ;;  %v11483_v44 = vpop.f32.mrf.mxu1 }
 0x532   : > { %v11574_v37 = vadd.f32 %v11412_v27, %v11324_v24  ;;  %v11571_v34 = vadd.f32 %v11483_v44, %v11321_v43 }
 0x533   : > { %v27314_v33 = vpop.f32.mrf.mxu0  ;;  %v27316_v4 = vpop.f32.mrf.mxu1 }
 0x534   : > { %31131 = vst [vmem:[#allocation28_spill] sm:$0xff] %v27316_v4 }
 0x535   : > { %v11489_v56 = vpop.f32.mrf.mxu1  ;;  %v23315_v54 = vpop.f32.mrf.mxu0 }
 0x536   : > { %v11576_v9 = vadd.f32 %v11489_v56, %v11326_v28  ;;  %v11578_v0 = vadd.f32 %v23315_v54, %v11328_v30 }
 0x537   : > { %v27318_v48 = vpop.f32.mrf.mxu1  ;;  %v27320_v53 = vpop.f32.mrf.mxu0 }
 0x538   : > { %31132 = vst [vmem:[#allocation29_spill] sm:$0xff] %v27318_v48  ;;  %31133 = vst [vmem:[#allocation30_spill] sm:$0xff] %v27320_v53 }
 0x539   : > { %v11661_v23 = vpop.f32.mrf.mxu1  ;;  %v11738_v60 = vpop.f32.mrf.mxu0 }
 0x53a   : > { %v11824_v19 = vadd.f32 %v11661_v23, %v11569_v39  ;;  %v11826_v55 = vadd.f32 %v11738_v60, %v11571_v34 }
 0x53b   : > { %v27322_v26 = vpop.f32.mrf.mxu1  ;;  %v27324_v24 = vpop.f32.mrf.mxu0 }
 0x53c   : > { %31134 = vst [vmem:[#allocation31_spill] sm:$0xff] %v27324_v24 }
 0x53d   : > { %v11667_v43 = vpop.f32.mrf.mxu1  ;;  %v11744_v27 = vpop.f32.mrf.mxu0 }
 0x53e   : > { %v11829_v44 = vadd.f32 %v11667_v43, %v11574_v37  ;;  %v11831_v2 = vadd.f32 %v11744_v27, %v11576_v9 }
 0x53f   : > { %v27326_v20 = vpop.f32.mrf.mxu1  ;;  %v27328_v28 = vpop.f32.mrf.mxu0 }
 0x540   : > { %31135 = vst [vmem:[#allocation32_spill] sm:$0xff] %v27328_v28 }
 0x541   : > { %v23320_v30 = vpop.f32.mrf.mxu1  ;;  %v11916_v56 = vpop.f32.mrf.mxu0 }
 0x542   : > { %v11833_v54 = vadd.f32 %v23320_v30, %v11578_v0  ;;  %v12079_v53 = vadd.f32 %v11916_v56, %v11824_v19 }
 0x543   : > { %v27330_v62 = vpop.f32.mrf.mxu1  ;;  %v27332_v39 = vpop.f32.mrf.mxu0 }
 0x544   : > { %31136 = vst [vmem:[#allocation33_spill] sm:$0xff] %v27330_v62 }
 0x545   : > { %v11922_v34 = vpop.f32.mrf.mxu0  ;;  %v11993_v23 = vpop.f32.mrf.mxu1 }
 0x546   : > { %v12084_v60 = vadd.f32 %v11922_v34, %v11829_v44  ;;  %v12081_v49 = vadd.f32 %v11993_v23, %v11826_v55 }
 0x547   : > { %v27334_v32 = vpop.f32.mrf.mxu0  ;;  %v27336_v37 = vpop.f32.mrf.mxu1 }
 0x548   : > { %31137 = vst [vmem:[#allocation34_spill] sm:$0xff] %v27336_v37 }
 0x549   : > { %v11999_v9 = vpop.f32.mrf.mxu1  ;;  %v23325_v43 = vpop.f32.mrf.mxu0 }
 0x54a   : > { %v12086_v27 = vadd.f32 %v11999_v9, %v11831_v2  ;;  %v12088_v8 = vadd.f32 %v23325_v43, %v11833_v54 }
 0x54b   : > { %v27338_v1 = vpop.f32.mrf.mxu1  ;;  %v27340_v0 = vpop.f32.mrf.mxu0 }
 0x54c   : > { %31138 = vst [vmem:[#allocation35_spill] sm:$0xff] %v27338_v1  ;;  %31139 = vst [vmem:[#allocation36_spill] sm:$0xff] %v27340_v0 }
 0x54d   : > { %v12171_v19 = vpop.f32.mrf.mxu1  ;;  %v12248_v30 = vpop.f32.mrf.mxu0 }
 0x54e   : > { %v12334_v56 = vadd.f32 %v12171_v19, %v12079_v53  ;;  %v12336_v62 = vadd.f32 %v12248_v30, %v12081_v49 }
 0x54f   : > { %v27342_v51 = vpop.f32.mrf.mxu1  ;;  %v27344_v44 = vpop.f32.mrf.mxu0 }
 0x550   : > { %31140 = vst [vmem:[#allocation37_spill] sm:$0xff] %v27344_v44 }
 0x551   : > { %v12177_v55 = vpop.f32.mrf.mxu1  ;;  %v12254_v34 = vpop.f32.mrf.mxu0 }
 0x552   : > { %v12339_v23 = vadd.f32 %v12177_v55, %v12084_v60  ;;  %v12341_v37 = vadd.f32 %v12254_v34, %v12086_v27 }
 0x553   : > { %v27346_v24 = vpop.f32.mrf.mxu1  ;;  %v27348_v2 = vpop.f32.mrf.mxu0 }
 0x554   : > { %31141 = vst [vmem:[#allocation38_spill] sm:$0xff] %v27348_v2 }
 0x555   : > { %v23330_v54 = vpop.f32.mrf.mxu1  ;;  %v12426_v9 = vpop.f32.mrf.mxu0 }
 0x556   : > { %v12343_v43 = vadd.f32 %v23330_v54, %v12088_v8  ;;  %v12589_v0 = vadd.f32 %v12426_v9, %v12334_v56 }
 0x557   : > { %v27350_v1 = vpop.f32.mrf.mxu1  ;;  %v27352_v53 = vpop.f32.mrf.mxu0 }
 0x558   : > { %31142 = vst [vmem:[#allocation39_spill] sm:$0xff] %v27350_v1 }
 0x559   : > { %v12432_v49 = vpop.f32.mrf.mxu0  ;;  %v12503_v19 = vpop.f32.mrf.mxu1 }
 0x55a   : > { %v12594_v30 = vadd.f32 %v12432_v49, %v12339_v23  ;;  %v12591_v44 = vadd.f32 %v12503_v19, %v12336_v62 }
 0x55b   : > { %v27354_v4 = vpop.f32.mrf.mxu0  ;;  %v27356_v60 = vpop.f32.mrf.mxu1 }
 0x55c   : > { %31143 = vst [vmem:[#allocation40_spill] sm:$0xff] %v27356_v60 }
 0x55d   : > { %v12509_v27 = vpop.f32.mrf.mxu1  ;;  %v23335_v55 = vpop.f32.mrf.mxu0 }
 0x55e   : > { %v12596_v34 = vadd.f32 %v12509_v27, %v12341_v37  ;;  %v12598_v2 = vadd.f32 %v23335_v55, %v12343_v43 }
 0x55f   : > { %v27358_v28 = vpop.f32.mrf.mxu1  ;;  %v27360_v8 = vpop.f32.mrf.mxu0 }
 0x560   : > { %31144 = vst [vmem:[#allocation41_spill] sm:$0xff] %v27358_v28  ;;  %31145 = vst [vmem:[#allocation42_spill] sm:$0xff] %v27360_v8 }
 0x561   : > { %v12680_v56 = vpop.f32.mrf.mxu1  ;;  %v12757_v54 = vpop.f32.mrf.mxu0 }
 0x562   : > { %v12843_v9 = vadd.f32 %v12680_v56, %v12589_v0  ;;  %v12845_v1 = vadd.f32 %v12757_v54, %v12591_v44 }
 0x563   : > { %v27362_v14 = vpop.f32.mrf.mxu1  ;;  %v27364_v23 = vpop.f32.mrf.mxu0 }
 0x564   : > { %31146 = vst [vmem:[#allocation43_spill] sm:$0xff] %v27364_v23 }
 0x565   : > { %v12686_v62 = vpop.f32.mrf.mxu1  ;;  %v12763_v49 = vpop.f32.mrf.mxu0 }
 0x566   : > { %v12848_v19 = vadd.f32 %v12686_v62, %v12594_v30  ;;  %v12850_v60 = vadd.f32 %v12763_v49, %v12596_v34 }
 0x567   : > { %v27366_v48 = vpop.f32.mrf.mxu1  ;;  %v27368_v37 = vpop.f32.mrf.mxu0 }
 0x568   : > { %31147 = vst [vmem:[#allocation44_spill] sm:$0xff] %v27368_v37 }
 0x569   : > { %v23340_v43 = vpop.f32.mrf.mxu1  ;;  %v12933_v27 = vpop.f32.mrf.mxu0 }
 0x56a   : > { %v12852_v55 = vadd.f32 %v23340_v43, %v12598_v2  ;;  %v27370_v8 = vadd.f32 %v12933_v27, %v12843_v9 }
 0x56b   : > { %v27372_v28 = vpop.f32.mrf.mxu1  ;;  %v27374_v0 = vpop.f32.mrf.mxu0 }
 0x56c   : > { %31148 = vst [vmem:[#allocation45_spill] sm:$0xff] %v27372_v28 }
 0x56d   : > { %v12939_v44 = vpop.f32.mrf.mxu0  ;;  %v13010_v56 = vpop.f32.mrf.mxu1 }
 0x56e   : > { %v27376_v54 = vadd.f32 %v12939_v44, %v12848_v19  ;;  %v13098_v23 = vadd.f32 %v13010_v56, %v12845_v1 }
 0x56f   : > { %v27378_v30 = vpop.f32.mrf.mxu0  ;;  %v27380_v34 = vpop.f32.mrf.mxu1 }
 0x570   : > { %31149 = vst [vmem:[#allocation46_spill] sm:$0xff] %v27380_v34 }
 0x571   : > { %v13016_v62 = vpop.f32.mrf.mxu1  ;;  %v23345_v49 = vpop.f32.mrf.mxu0 }
 0x572   : > { %v27382_v37 = vadd.f32 %v13016_v62, %v12850_v60  ;;  %v13105_v2 = vadd.f32 %v23345_v49, %v12852_v55 }
 0x573   : > { %v27384_v9 = vpop.f32.mrf.mxu1  ;;  %v27386_v43 = vpop.f32.mrf.mxu0 }
 0x574   : > { %31150 = vst [vmem:[#allocation47_spill] sm:$0xff] %v27384_v9  ;;  %31151 = vst [vmem:[#allocation48_spill] sm:$0xff] %v27386_v43 }
 0x575   : > { %v27388_v27 = vpop.f32.mrf.mxu1  ;;  %v13263_v28 = vpop.f32.mrf.mxu0 }
 0x576   : > { %v27390_v40 = vadd.f32 %v13263_v28, %v13098_v23 }
 0x577   : > { %v27392_v19 = vpop.f32.mrf.mxu1  ;;  %v27394_v1 = vpop.f32.mrf.mxu0 }
 0x578   : > { %31152 = vst [vmem:[#allocation49_spill] sm:$0xff] %v27394_v1 }
 0x579   : > { %v27396_v44 = vpop.f32.mrf.mxu1  ;;  %v27398_v56 = vpop.f32.mrf.mxu0 }
 0x57b   : > { %v27400_v60 = vpop.f32.mrf.mxu1  ;;  %v27402_v55 = vpop.f32.mrf.mxu0 }
 0x57c   : > { %31153 = vst [vmem:[#allocation50_spill] sm:$0xff] %v27402_v55 }
 0x57d   : > { %v23350_v62 = vpop.f32.mrf.mxu1  ;;  %v27404_v49 = vpop.f32.mrf.mxu0 }
 0x57e   : > { %v13358_v43 = vadd.f32 %v23350_v62, %v13105_v2 }
 0x57f   : > { %v27406_v34 = vpop.f32.mrf.mxu1  ;;  %v27408_v28 = vpop.f32.mrf.mxu0 }
 0x580   : > { %31154 = vst [vmem:[#allocation51_spill] sm:$0xff] %v27406_v34 }
 0x581   : > { %v27410_v23 = vpop.f32.mrf.mxu0  ;;  %v27412_v9 = vpop.f32.mrf.mxu1 }
 0x583   : > { %v27414_v1 = vpop.f32.mrf.mxu0  ;;  %v27416_v18 = vpop.f32.mrf.mxu1 }
 0x584   : > { %31155 = vst [vmem:[#allocation52_spill] sm:$0xff] %v27416_v18 }
 0x585   : > { %v27418_v3 = vpop.f32.mrf.mxu1  ;;  %v23355_v57 = vpop.f32.mrf.mxu0 }
 0x586   : > { %v13611_v55 = vadd.f32 %v23355_v57, %v13358_v43 }
 0x587   : > { %v27420_v21 = vpop.f32.mrf.mxu1  ;;  %v27422_v45 = vpop.f32.mrf.mxu0 }
 0x588   : > { %31156 = vst [vmem:[#allocation53_spill] sm:$0xff] %v27420_v21  ;;  %31157 = vst [vmem:[#allocation54_spill] sm:$0xff] %v27422_v45 }
 0x589   : > { %v27424_v2 = vpop.f32.mrf.mxu1  ;;  %v27426_v62 = vpop.f32.mrf.mxu0 }
 0x58b   : > { %v27428_v34 = vpop.f32.mrf.mxu1  ;;  %v27430_v11 = vpop.f32.mrf.mxu0 }
 0x58c   : > { %31158 = vst [vmem:[#allocation55_spill] sm:$0xff] %v27428_v34  ;;  %31159 = vst [vmem:[#allocation56_spill] sm:$0xff] %v27430_v11  ;;  %v9674_v11 = vadd.f32 %v27202_v10, %v27158_v42 }
 0x58d   : > { %v27432_v61 = vpop.f32.mrf.mxu1  ;;  %v27434_v35 = vpop.f32.mrf.mxu0 }
 0x58f   : > { %v27436_v18 = vpop.f32.mrf.mxu1  ;;  %v27438_v38 = vpop.f32.mrf.mxu0 }
 0x590   : > { %31160 = vst [vmem:[#allocation57_spill] sm:$0xff] %v27438_v38  ;;  %v9947_v38 = vadd.f32 %v27232_v22, %v9674_v11 }
 0x591   : > { %v23360_v57 = vpop.f32.mrf.mxu1  ;;  %v27440_v43 = vpop.f32.mrf.mxu0 }
 0x592   : > { %v13864_v45 = vadd.f32 %v23360_v57, %v13611_v55  ;;  %v9669_v55 = vadd.f32 %v27187_v63, %v27147_v5  ;;  %v10223_v47 = vadd.f32 %v27266_v6, %v9947_v38 }
 0x593   : > { %v27442_v21 = vpop.f32.mrf.mxu1  ;;  %v27444_v59 = vpop.f32.mrf.mxu0 }
 0x594   : > { %31161 = vst [vmem:[#allocation58_spill] sm:$0xff] %v27442_v21  ;;  %31162 = vst [vmem:[#allocation59_spill] sm:$0xff] %v27444_v59  ;;  %v9942_v34 = vadd.f32 %v27221_v29, %v9669_v55  ;;  %v10498_v10 = vadd.f32 %v27274_v25, %v10223_v47 }
 0x595   : > { %v27446_v50 = vpop.f32.mrf.mxu0  ;;  %v27448_v16 = vpop.f32.mrf.mxu1 }
 0x596   : > { %31163 = vst [vmem:[#allocation60_spill] sm:$0xff] %v27448_v16  ;;  %v10773_v5 = vadd.f32 %v27286_v12, %v10498_v10 }
 0x597   : > { %v27452_v52 = vpop.f32.mrf.mxu0  ;;  %v27454_v17 = vpop.f32.mrf.mxu1 }
 0x598   : > { %31164 = vst [vmem:[#allocation61_spill] sm:$0xff] %v27454_v17  ;;  %v10218_v17 = vadd.f32 %v27256_v58, %v9942_v34  ;;  %v11049_v29 = vadd.f32 %v27294_v36, %v10773_v5 }
 0x599   : > { %v27459_v57 = vpop.f32.mrf.mxu1  ;;  %v23365_v21 = vpop.f32.mrf.mxu0 }
 0x59a   : > { %31165 = vst [vmem:[#allocation62_spill] sm:$0xff] %v27459_v57  ;;  %v14114_v59 = vadd.f32 %v23365_v21, %v13864_v45  ;;  %v10493_v63 = vadd.f32 %v27272_v13, %v10218_v17  ;;  %v11325_v58 = vadd.f32 %v27306_v46, %v11049_v29 }
 0x59b   : > { %v27463_v16 = vpop.f32.mrf.mxu1  ;;  %v27465_v42 = vpop.f32.mrf.mxu0 }
 0x59c   : > { %v10768_v38 = vadd.f32 %v27282_v41, %v10493_v63  ;;  %v11575_v17 = vadd.f32 %v27314_v33, %v11325_v58 }
 0x59d   : > { %v14197_v22 = vpop.f32.mrf.mxu1  ;;  %v27469_v11 = vpop.f32.mrf.mxu0 }
 0x59e   : > { %v11044_v25 = vadd.f32 %v27292_v15, %v10768_v38  ;;  %v11830_v41 = vadd.f32 %v27326_v20, %v11575_v17 }
 0x59f   : > { %v27473_v57 = vpop.f32.mrf.mxu1  ;;  %v27475_v6 = vpop.f32.mrf.mxu0 }
 0x5a0   : > { %v11320_v13 = vadd.f32 %v27302_v31, %v11044_v25  ;;  %v12085_v15 = vadd.f32 %v27334_v32, %v11830_v41 }
 0x5a1   : > { %v27479_v21 = vpop.f32.mrf.mxu1  ;;  %v27481_v47 = vpop.f32.mrf.mxu0 }
 0x5a2   : > { %v11570_v10 = vadd.f32 %v27312_v7, %v11320_v13  ;;  %v12340_v31 = vadd.f32 %v27346_v24, %v12085_v15  ;;  %v13349_v7 = vadd.f32 %v27388_v27, %v27370_v8  ;;  %v13354_v8 = vadd.f32 %v27396_v44, %v27376_v54 }
 0x5a3   : > { %v27485_v45 = vpop.f32.mrf.mxu1  ;;  %v27487_v12 = vpop.f32.mrf.mxu0  ;;  %v13604_v54 = vadd.f32 %v27412_v9, %v27390_v40 }
 0x5a4   : > { %v11825_v63 = vadd.f32 %v27322_v26, %v11570_v10  ;;  %v13602_v13 = vadd.f32 %v27404_v49, %v13349_v7 }
 0x5a5   : > { %v23370_v34 = vpop.f32.mrf.mxu1  ;;  %v14452_v36 = vpop.f32.mrf.mxu0 }
 0x5a6   : > { %v14369_v55 = vadd.f32 %v23370_v34, %v14114_v59  ;;  %v12080_v33 = vadd.f32 %v27332_v39, %v11825_v63  ;;  %v12595_v59 = vadd.f32 %v27354_v4, %v12340_v31 }
 0x5a7   : > { %v27493_v5 = vpop.f32.mrf.mxu1  ;;  %v27495_v46 = vpop.f32.mrf.mxu0 }
 0x5a8   : > { %v12335_v25 = vadd.f32 %v27342_v51, %v12080_v33  ;;  %v12849_v26 = vadd.f32 %v27366_v48, %v12595_v59  ;;  %v13855_v51 = vadd.f32 %v27424_v2, %v13602_v13  ;;  %v31166_v59 = vld [vmem:[#allocation60_spill] sm:$0xff]  ;;  %v27548_v13 = vpop.permute.xlu0 %15139 }
 0x5a9   : > { %v14458_v29 = vpop.f32.mrf.mxu0  ;;  %v27499_v38 = vpop.f32.mrf.mxu1 }
 0x5aa   : > { %v12590_v24 = vadd.f32 %v27352_v53, %v12335_v25  ;;  %v13102_v4 = vadd.f32 %v27378_v30, %v12849_v26  ;;  %v14105_v53 = vadd.f32 %v27440_v43, %v13855_v51  ;;  %v13356_v30 = vadd.f32 %v27398_v56, %v27382_v37  ;;  %v31167_v25 = vld [vmem:[#allocation55_spill] sm:$0xff] }
 0x5ab   : > { %v14460_v58 = vpop.f32.mrf.mxu0  ;;  %v27503_v20 = vpop.f32.mrf.mxu1 }
 0x5ac   : > { %v12844_v27 = vadd.f32 %v27362_v14, %v12590_v24  ;;  %v13355_v49 = vadd.f32 %v27400_v60, %v13102_v4  ;;  %v14360_v60 = vadd.f32 %v14197_v22, %v14105_v53  ;;  %v13609_v43 = vadd.f32 %v27418_v3, %v13356_v30 }
 0x5ad   : > { %v14535_v32 = vpop.f32.mrf.mxu1  ;;  %v23375_v17 = vpop.f32.mrf.mxu0 }
 0x5ae   : > { %v14624_v34 = vadd.f32 %v23375_v17, %v14369_v55  ;;  %v13607_v55 = vadd.f32 %v27410_v23, %v13354_v8  ;;  %v13097_v15 = vadd.f32 %v27374_v0, %v12844_v27  ;;  %v13608_v14 = vadd.f32 %v27414_v1, %v13355_v49 }
 0x5af   : > { %v27512_v39 = vpop.f32.mrf.mxu1  ;;  %v27514_v41 = vpop.f32.mrf.mxu0  ;;  %v13857_v0 = vadd.f32 %v27426_v62, %v13604_v54  ;;  %v14615_v9 = vadd.f32 %v14452_v36, %v14360_v60  ;;  %v13862_v1 = vadd.f32 %v27434_v35, %v13609_v43 }
 0x5b0   : > { %v13860_v63 = vadd.f32 %v27432_v61, %v13607_v55  ;;  %v13350_v23 = vadd.f32 %v27392_v19, %v13097_v15  ;;  %v13861_v37 = vadd.f32 %v27436_v18, %v13608_v14  ;;  %v31168_v18 = vld [vmem:[#allocation62_spill] sm:$0xff]  ;;  %v27560_v60 = vpop.permute.xlu1 %15144 }
 0x5b1   : > { %v14707_v10 = vpop.f32.mrf.mxu1  ;;  %v14784_v48 = vpop.f32.mrf.mxu0  ;;  %v14107_v61 = vadd.f32 %v31166_v59, %v13857_v0  ;;  %v14112_v26 = vadd.f32 %v31168_v18, %v13862_v1 }
 0x5b2   : > { %v14110_v40 = vadd.f32 %v27446_v50, %v13860_v63  ;;  %v13603_v56 = vadd.f32 %v27408_v28, %v13350_v23  ;;  %v14111_v3 = vadd.f32 %v27452_v52, %v13861_v37  ;;  %v14870_v62 = vadd.f32 %v14707_v10, %v14615_v9  ;;  %v31169_v52 = vld [vmem:[#allocation59_spill] sm:$0xff] }
 0x5b3   : > { %v14709_v44 = vpop.f32.mrf.mxu1  ;;  %v27529_v2 = vpop.f32.mrf.mxu0  ;;  %v14362_v50 = vadd.f32 %v27469_v11, %v14107_v61 }
 0x5b4   : > { %v14365_v19 = vadd.f32 %v27479_v21, %v14110_v40  ;;  %v13856_v17 = vadd.f32 %v31167_v25, %v13603_v56  ;;  %v14366_v35 = vadd.f32 %v27485_v45, %v14111_v3  ;;  %v14367_v21 = vadd.f32 %v27481_v47, %v14112_v26 }
 0x5b5   : > { %v14713_v31 = vpop.f32.mrf.mxu1  ;;  %v14790_v33 = vpop.f32.mrf.mxu0  ;;  %v14617_v49 = vadd.f32 %v27499_v38, %v14362_v50 }
 0x5b6   : > { %v14620_v24 = vadd.f32 %v14458_v29, %v14365_v19  ;;  %v14106_v51 = vadd.f32 %v31169_v52, %v13856_v17  ;;  %v14621_v11 = vadd.f32 %v14460_v58, %v14366_v35  ;;  %v14622_v45 = vadd.f32 %v14535_v32, %v14367_v21  ;;  %v31170_v52 = vld [vmem:[#allocation4_spill] sm:$0xff] }
 0x5b7   : > { %v14715_v22 = vpop.f32.mrf.mxu1  ;;  %v27541_v7 = vpop.f32.mrf.mxu0  ;;  %v14872_v30 = vadd.f32 %v14784_v48, %v14617_v49 }
 0x5b8   : > { %v14875_v55 = vadd.f32 %v14713_v31, %v14620_v24  ;;  %v14361_v15 = vadd.f32 %v27473_v57, %v14106_v51  ;;  %v14876_v54 = vadd.f32 %v14715_v22, %v14621_v11  ;;  %v14877_v38 = vadd.f32 %v14790_v33, %v14622_v45  ;;  %v31171_v51 = vld [vmem:[#allocation7_spill] sm:$0xff]  ;;  %v31173_v11 = vld [vmem:[#allocation10_spill] sm:$0xff] }
 0x5b9   : > { %v23380_v36 = vpop.f32.mrf.mxu1  ;;  %v14962_v28 = vpop.f32.mrf.mxu0  ;;  %v9403_v21 = vadd.f32 %v31171_v51, %v31170_v52  ;;  %v31191_v51 = vld [vmem:[#allocation31_spill] sm:$0xff] }
 0x5ba   : > { %v27551_v4 = vadd.f32 %v23380_v36, %v14624_v34  ;;  %v15125_v8 = vadd.f32 %v14962_v28, %v14870_v62  ;;  %v14616_v47 = vadd.f32 %v27495_v46, %v14361_v15  ;;  %v31175_v15 = vld [vmem:[#allocation9_spill] sm:$0xff] }
 0x5bb   : > { %v27555_v27 = vpop.f32.mrf.mxu1  ;;  %v14964_v10 = vpop.f32.mrf.mxu0 }
 0x5bc   : > { %v15147_v53 = vadd.f32 %v27548_v13, %v15125_v8  ;;  %v14871_v57 = vadd.f32 %v14709_v44, %v14616_v47  ;;  %v31179_v47 = vld [vmem:[#allocation12_spill] sm:$0xff] }
 0x5bd   : > { %v14968_v29 = vpop.f32.mrf.mxu0  ;;  %v15039_v34 = vpop.f32.mrf.mxu1 }
 0x5be   : > { %v15157_v14 = vmax.f32 %v15147_v53, 0.0  ;;  %v15130_v63 = vadd.f32 %v14968_v29, %v14875_v55  ;;  %v15127_v58 = vadd.f32 %v15039_v34, %v14872_v30  ;;  %v15126_v40 = vadd.f32 %v14964_v10, %v14871_v57  ;;  %v31172_v10 = vld [vmem:[#allocation8_spill] sm:$0xff]  ;;  %v31174_v53 = vld [vmem:[#allocation3_spill] sm:$0xff]  ;;  %v31177_v30 = vld [vmem:[#allocation14_spill] sm:$0xff] }
 0x5bf   : > { %v14970_v23 = vpop.f32.mrf.mxu0  ;;  %v27563_v43 = vpop.f32.mrf.mxu1  ;;  %v9676_v49 = vadd.f32 %v31172_v10, %v9403_v21  ;;  %v9671_v45 = vadd.f32 %v31175_v15, %v31174_v53  ;;  %v31176_v29 = vld [vmem:[#allocation11_spill] sm:$0xff]  ;;  %v31192_v10 = vld [vmem:[#allocation38_spill] sm:$0xff]  ;;  %v31194_v53 = vld [vmem:[#allocation41_spill] sm:$0xff] }
 0x5c0   : > { %v15131_v0 = vadd.f32 %v14970_v23, %v14876_v54  ;;  %15177 = vrot.lane.b32.xlu0 %v15157_v14, %s24756_s24  ;;  %v15152_v31 = vadd.f32 %v27560_v60, %v15130_v63  ;;  %v27569_v56 = vadd.f32 %v27548_v13, %v15127_v58  ;;  %v15148_v44 = vadd.f32 %v27548_v13, %v15126_v40  ;;  %v31184_v40 = vld [vmem:[#allocation26_spill] sm:$0xff] }
 0x5c1   : > { %v15045_v32 = vpop.f32.mrf.mxu1  ;;  %v9949_v55 = vadd.f32 %v31173_v11, %v9676_v49  ;;  %v9944_v54 = vadd.f32 %v31177_v30, %v9671_v45  ;;  %v31193_v11 = vld [vmem:[#allocation34_spill] sm:$0xff]  ;;  %v31195_v45 = vld [vmem:[#allocation37_spill] sm:$0xff] }
 0x5c2   : > { %v15153_v48 = vadd.f32 %v27560_v60, %v15131_v0  ;;  %v15132_v37 = vadd.f32 %v15045_v32, %v14877_v38  ;;  %v15162_v9 = vmax.f32 %v15152_v31, 0.0  ;;  %v15159_v59 = vmax.f32 %v27569_v56, 0.0  ;;  %v31180_v38 = vld [vmem:[#allocation20_spill] sm:$0xff]  ;;  %v31181_v0 = vld [vmem:[#allocation2_spill] sm:$0xff]  ;;  %v31182_v32 = vld [vmem:[#allocation23_spill] sm:$0xff] }
 0x5c3   : > { %v15158_v61 = vmax.f32 %v15148_v44, 0.0  ;;  %v10225_v34 = vadd.f32 %v31176_v29, %v9949_v55  ;;  %v10220_v23 = vadd.f32 %v31179_v47, %v9944_v54  ;;  %v31197_v54 = vld [vmem:[#allocation40_spill] sm:$0xff] }
 0x5c4   : > { %v15163_v46 = vmax.f32 %v15153_v48, 0.0  ;;  %v27572_v1 = vadd.f32 %v27560_v60, %v15132_v37  ;;  %15187 = vrot.lane.b32.xlu1 %v15162_v9, %s24756_s24  ;;  %v31183_v48 = vld [vmem:[#allocation19_spill] sm:$0xff] }
 0x5c5   : > { %v10495_v57 = vadd.f32 %v31181_v0, %v10220_v23  ;;  %v31199_v23 = vld [vmem:[#allocation43_spill] sm:$0xff] }
 0x5c6   : > { %v15164_v33 = vmax.f32 %v27572_v1, 0.0  ;;  %15189 = vrot.lane.b32.xlu0 %v15163_v46, %s24756_s24 }
 0x5c7   : > { %v10770_v37 = vadd.f32 %v31183_v48, %v10495_v57  ;;  %v31201_v57 = vld [vmem:[#allocation46_spill] sm:$0xff] }
 0x5c8   : > { %15191 = vrot.lane.b32.xlu1 %v15164_v33, %s24756_s24 }
 0x5ca   : > { %15181 = vrot.lane.b32.xlu0 %v15159_v59, %s24756_s24 }
 0x5cc   : > { %15179 = vrot.lane.b32.xlu1 %v15158_v61, %s24756_s24 }
 0x632   : > { %v15178_v22 = vpop.permute.xlu0 %15177 }
 0x636   : > { %v15188_v3 = vpop.permute.xlu1 %15187 }
 0x638   : > { %v15190_v19 = vpop.permute.xlu0 %15189 }
 0x639   : > { %v15201_v62 = vsel %vm1040_vm4, %v15188_v3, %v15190_v19  ;;  %v31187_v3 = vld [vmem:[#allocation25_spill] sm:$0xff] }
 0x63a   : > { %v27587_v25 = vmax.f32 %v15162_v9, %v15201_v62  ;;  %v27589_v17 = vpop.permute.xlu1 %15191  ;;  %v31188_v62 = vld [vmem:[#allocation32_spill] sm:$0xff] }
 0x63b   : > { %v15202_v18 = vsel %vm1040_vm4, %v15190_v19, %v27589_v17 }
 0x63c   : > { %15245 = vrot.lane.b32.xlu1 %v27587_v25, %s24764_s19  ;;  %v27595_v26 = vmax.f32 %v15163_v46, %v15202_v18  ;;  %v27597_v50 = vpop.permute.xlu0 %15181  ;;  %v31185_v46 = vld [vmem:[#allocation22_spill] sm:$0xff] }
 0x63d   : > { %v11046_v44 = vadd.f32 %v31185_v46, %v10770_v37  ;;  %v31203_v37 = vld [vmem:[#allocation49_spill] sm:$0xff] }
 0x63e   : > { %v15180_v36 = vpop.permute.xlu1 %15179  ;;  %15247 = vrot.lane.b32.xlu0 %v27595_v26, %s24764_s19 }
 0x63f   : > { %v15197_v28 = vsel %vm1040_vm4, %v15178_v22, %v15180_v36  ;;  %v15198_v35 = vsel %vm1040_vm4, %v15180_v36, %v27597_v50  ;;  %v11322_v19 = vadd.f32 %v31187_v3, %v11046_v44  ;;  %v31189_v36 = vld [vmem:[#allocation28_spill] sm:$0xff] }
 0x640   : > { %v27604_v24 = vmax.f32 %v15157_v14, %v15197_v28  ;;  %v27606_v8 = vmax.f32 %v15158_v61, %v15198_v35  ;;  %v31178_v14 = vld [vmem:[#allocation17_spill] sm:$0xff]  ;;  %v31190_v35 = vld [vmem:[#allocation35_spill] sm:$0xff]  ;;  %v31205_v44 = vld [vmem:[#allocation52_spill] sm:$0xff] }
 0x641   : > { %v10500_v63 = vadd.f32 %v31178_v14, %v10225_v34  ;;  %v31186_v61 = vld [vmem:[#allocation29_spill] sm:$0xff]  ;;  %v11572_v28 = vadd.f32 %v31189_v36, %v11322_v19  ;;  %v31196_v34 = vld [vmem:[#allocation44_spill] sm:$0xff] }
 0x642   : > { %15235 = vrot.lane.b32.xlu1 %v27604_v24, %s24764_s19  ;;  %15237 = vrot.lane.b32.xlu0 %v27606_v8, %s24764_s19  ;;  %v31206_v3 = vld [vmem:[#allocation56_spill] sm:$0xff] }
 0x643   : > { %v10775_v58 = vadd.f32 %v31180_v38, %v10500_v63  ;;  %v11827_v21 = vadd.f32 %v31191_v51, %v11572_v28  ;;  %v31198_v63 = vld [vmem:[#allocation47_spill] sm:$0xff] }
 0x645   : > { %v11051_v31 = vadd.f32 %v31182_v32, %v10775_v58  ;;  %v12082_v55 = vadd.f32 %v31193_v11, %v11827_v21  ;;  %v31200_v58 = vld [vmem:[#allocation50_spill] sm:$0xff] }
 0x647   : > { %v11327_v9 = vadd.f32 %v31184_v40, %v11051_v31  ;;  %v12337_v29 = vadd.f32 %v31195_v45, %v12082_v55  ;;  %v31202_v31 = vld [vmem:[#allocation53_spill] sm:$0xff]  ;;  %v15283_v45 = vld [vmem:[%s31060_s5] sm:$0xff] }
 0x649   : > { %v11577_v22 = vadd.f32 %v31186_v61, %v11327_v9  ;;  %v12592_v14 = vadd.f32 %v31197_v54, %v12337_v29  ;;  %v31204_v9 = vld [vmem:[#allocation57_spill] sm:$0xff]  ;;  %v15287_v54 = vld [vmem:[%s31060_s5 + $0x20] sm:$0xff] }
 0x64b   : > { %v11832_v18 = vadd.f32 %v31188_v62, %v11577_v22  ;;  %v12846_v38 = vadd.f32 %v31199_v23, %v12592_v14  ;;  %v15288_v14 = vld [vmem:[%s31060_s5 + $0x28] sm:$0xff]  ;;  %v15291_v23 = vld [vmem:[%s31060_s5 + $0x40] sm:$0xff] }
 0x64d   : > { %v12087_v52 = vadd.f32 %v31190_v35, %v11832_v18  ;;  %v13099_v32 = vadd.f32 %v31201_v57, %v12846_v38  ;;  %v31207_v18 = vld [vmem:[#allocation61_spill] sm:$0xff]  ;;  %v15047_v35 = vpop.f32.mrf.mxu1  ;;  %v15292_v38 = vld [vmem:[%s31060_s5 + $0x48] sm:$0xff]  ;;  %v15295_v57 = vld [vmem:[%s31060_s5 + $0x60] sm:$0xff] }
 0x64f   : > { %v12342_v49 = vadd.f32 %v31192_v10, %v12087_v52  ;;  %v13352_v40 = vadd.f32 %v31203_v37, %v13099_v32  ;;  %v15296_v32 = vld [vmem:[%s31060_s5 + $0x68] sm:$0xff]  ;;  %v21794_v37 = vld [vmem:[%s31060_s5 + $0x78] sm:$0xff] }
 0x651   : > { %v12597_v15 = vadd.f32 %v31194_v53, %v12342_v49  ;;  %v13605_v61 = vadd.f32 %v31205_v44, %v13352_v40  ;;  %v31208_v53 = vmov 0.0  }
 0x653   : > { %v12851_v30 = vadd.f32 %v31196_v34, %v12597_v15  ;;  %v13858_v19 = vadd.f32 %v31206_v3, %v13605_v61  ;;  %v15285_v34 = vld [vmem:[%s31060_s5 + $0x10] sm:$0xff]  ;;  %v21795_v61 = vld [vmem:[%s31060_s5 + $0x80] sm:$0xff]  ;;  %v21796_v3 = vld [vmem:[%s31060_s5 + $0x88] sm:$0xff] }
 0x655   : > { %v13104_v47 = vadd.f32 %v31198_v63, %v12851_v30  ;;  %v14108_v36 = vadd.f32 %v31207_v18, %v13858_v19  ;;  %v15286_v30 = vld [vmem:[%s31060_s5 + $0x18] sm:$0xff]  ;;  %v15289_v63 = vld [vmem:[%s31060_s5 + $0x30] sm:$0xff] }
 0x656   : > { %v21798_v18 = vld [vmem:[%s31060_s5 + $0x98] sm:$0xff] }
 0x657   : > { %v13357_v0 = vadd.f32 %v31200_v58, %v13104_v47  ;;  %v14363_v52 = vadd.f32 %v27475_v6, %v14108_v36  ;;  %v15290_v47 = vld [vmem:[%s31060_s5 + $0x38] sm:$0xff]  ;;  %v15293_v58 = vld [vmem:[%s31060_s5 + $0x50] sm:$0xff] }
 0x658   : > { %v21870_v36 = vld [vmem:[%s31060_s5 + $0x170] sm:$0xff] }
 0x659   : > { %v13610_v48 = vadd.f32 %v31202_v31, %v13357_v0  ;;  %v14618_v21 = vadd.f32 %v27503_v20, %v14363_v52  ;;  %v15294_v0 = vld [vmem:[%s31060_s5 + $0x58] sm:$0xff]  ;;  %v15297_v31 = vld [vmem:[%s31060_s5 + $0x70] sm:$0xff]  ;;  %v21800_v52 = vld [vmem:[%s31060_s5 + $0xa8] sm:$0xff] }
 0x65b   : > { %v13863_v46 = vadd.f32 %v31204_v9, %v13610_v48  ;;  %v14873_v49 = vadd.f32 %v27529_v2, %v14618_v21  ;;  %v21801_v21 = vld [vmem:[%s31060_s5 + $0xb0] sm:$0xff] }
 0x65d   : > { %v14113_v22 = vadd.f32 %v27463_v16, %v13863_v46  ;;  %v15128_v55 = vadd.f32 %v27563_v43, %v14873_v49  ;;  %v21802_v49 = vld [vmem:[%s31060_s5 + $0xb8] sm:$0xff] }
 0x65f   : > { %v14368_v62 = vadd.f32 %v27487_v12, %v14113_v22  ;;  %v27677_v43 = vadd.f32 %v27548_v13, %v15128_v55  ;;  %v21875_v55 = vld [vmem:[%s31060_s5 + $0x198] sm:$0xff] }
 0x661   : > { %v14623_v28 = vadd.f32 %v27512_v39, %v14368_v62  ;;  %v15160_v29 = vmax.f32 %v27677_v43, 0.0  ;;  %v21869_v62 = vld [vmem:[%s31060_s5 + $0x168] sm:$0xff] }
 0x663   : > { %v14878_v51 = vadd.f32 %v27541_v7, %v14623_v28  ;;  %v21799_v28 = vld [vmem:[%s31060_s5 + $0xa0] sm:$0xff] }
 0x665   : > { %v15133_v10 = vadd.f32 %v15047_v35, %v14878_v51  ;;  %v21871_v35 = vld [vmem:[%s31060_s5 + $0x178] sm:$0xff]  ;;  %v21872_v51 = vld [vmem:[%s31060_s5 + $0x180] sm:$0xff] }
 0x667   : > { %v27663_v39 = vadd.f32 %v27560_v60, %v15133_v10  ;;  %v21873_v10 = vld [vmem:[%s31060_s5 + $0x188] sm:$0xff] }
 0x669   : > { %v15165_v15 = vmax.f32 %v27663_v39, 0.0 }
 0x6ae   : > { %v15246_v11 = vpop.permute.xlu1 %15245 }
 0x6b0   : > { %v27657_v16 = vpop.permute.xlu0 %15247 }
 0x6b1   : > { %v15259_v12 = vsel %vm3698_vm12, %v15246_v11, %v27657_v16  ;;  %v21874_v11 = vld [vmem:[%s31060_s5 + $0x190] sm:$0xff] }
 0x6b2   : > { %v27666_v6 = vmax.f32 %v27587_v25, %v15259_v12  ;;  %v21803_v12 = vld [vmem:[%s31060_s5 + $0xc0] sm:$0xff] }
 0x6b4   : > { %v15236_v7 = vpop.permute.xlu1 %15235  ;;  %15318 = vrot.lane.b32.xlu1 %v27666_v6, %s24758_s26  ;;  %23436 = vmatpush3.msra.mxu0 %v27666_v6  ;;  %v27671_v20 = vpop.permute.xlu0 %15237 }
 0x6b5   : > { %v15255_v2 = vsel %vm3698_vm12, %v15236_v7, %v27671_v20  ;;  %23437 = vmatprep.subr.mxu0 %v31208_v53  ;;  %v21876_v7 = vld [vmem:[%s31060_s5 + $0x1a0] sm:$0xff] }
 0x6b6   : > { %v27681_v25 = vmax.f32 %v27604_v24, %v15255_v2  ;;  %v15284_v24 = vld [vmem:[%s31060_s5 + $0x8] sm:$0xff]  ;;  %v21805_v2 = vld [vmem:[%s31060_s5 + $0xd0] sm:$0xff] }
 0x6b8   : > { %15193 = vrot.lane.b32.xlu1 %v15165_v15, %s24756_s24  ;;  %15316 = vrot.lane.b32.xlu0 %v27681_v25, %s24758_s26 }
 0x6b9   : > { %23438 = vmatpush3.msra.mxu0 %v27681_v25 }
 0x6ba   : > { %23533 = vmatprep.subr.mxu0 %v31208_v53  ;;  %23440 = vmatmul.mubr.msk.f32.vlgmr.msra.gmra.mxu0 %vm15322_vm6, %v15283_v45  ;;  %v21806_v45 = vld [vmem:[%s31060_s5 + $0xd8] sm:$0xff] }
 0x6bb   : > { %23442 = vmatprep.mubr.msk.f32.mxu0 %vm24755_vm0, %v31208_v53 }
 0x6bc   : > { %15711 = vrot.lane.b32.xlu1 %v27666_v6, %s24776_s27  ;;  %15183 = vrot.lane.b32.xlu0 %v15160_v29, %s24756_s24 }
 0x6be   : > { %23443 = vmatmul.mubr.msk.f32.gmra.mxu0 %vm15322_vm6, %v15284_v24  ;;  %v21878_v24 = vld [vmem:[%s31060_s5 + $0x1b0] sm:$0xff] }
 0x6bf   : > { %23445 = vmatprep.mubr.msk.f32.mxu0 %vm24755_vm0, %v31208_v53 }
 0x6c0   : > { %15931 = vrot.lane.b32.xlu1 %v27681_v25, %s24779_s25  ;;  %15709 = vrot.lane.b32.xlu0 %v27681_v25, %s24776_s27 }
 0x6c2   : > { %23446 = vmatmul.mubr.msk.f32.gmra.mxu0 %vm15322_vm6, %v15285_v34  ;;  %v21807_v34 = vld [vmem:[%s31060_s5 + $0xe0] sm:$0xff] }
 0x6c3   : > { %23448 = vmatprep.mubr.msk.f32.mxu0 %vm24755_vm0, %v31208_v53 }
 0x6c4   : > { %15933 = vrot.lane.b32.xlu1 %v27666_v6, %s24779_s25 }
 0x6c6   : > { %23449 = vmatmul.mubr.msk.f32.gmra.mxu0 %vm15322_vm6, %v15286_v30  ;;  %v21879_v30 = vld [vmem:[%s31060_s5 + $0x1b8] sm:$0xff] }
 0x6c7   : > { %23451 = vmatprep.mubr.msk.f32.mxu0 %vm24755_vm0, %v31208_v53 }
 0x6ca   : > { %23452 = vmatmul.mubr.msk.f32.gmra.mxu0 %vm15322_vm6, %v15287_v54  ;;  %v21808_v54 = vld [vmem:[%s31060_s5 + $0xe8] sm:$0xff] }
 0x6cb   : > { %23454 = vmatprep.mubr.msk.f32.mxu0 %vm24755_vm0, %v31208_v53 }
 0x6ce   : > { %23455 = vmatmul.mubr.msk.f32.gmra.mxu0 %vm15322_vm6, %v15288_v14  ;;  %v21880_v14 = vld [vmem:[%s31060_s5 + $0x1c0] sm:$0xff] }
 0x6cf   : > { %23457 = vmatprep.mubr.msk.f32.mxu0 %vm24755_vm0, %v31208_v53 }
 0x6d2   : > { %23458 = vmatmul.mubr.msk.f32.gmra.mxu0 %vm15322_vm6, %v15289_v63  ;;  %v21839_v63 = vld [vmem:[%s31060_s5 + $0xf0] sm:$0xff] }
 0x6d3   : > { %23460 = vmatprep.mubr.msk.f32.mxu0 %vm24755_vm0, %v31208_v53 }
 0x6d6   : > { %23461 = vmatmul.mubr.msk.f32.gmra.mxu0 %vm15322_vm6, %v15290_v47  ;;  %v21881_v47 = vld [vmem:[%s31060_s5 + $0x1c8] sm:$0xff] }
 0x6d7   : > { %23463 = vmatprep.mubr.msk.f32.mxu0 %vm24755_vm0, %v31208_v53 }
 0x6da   : > { %23464 = vmatmul.mubr.msk.f32.gmra.mxu0 %vm15322_vm6, %v15291_v23  ;;  %v21840_v23 = vld [vmem:[%s31060_s5 + $0xf8] sm:$0xff] }
 0x6db   : > { %23466 = vmatprep.mubr.msk.f32.mxu0 %vm24755_vm0, %v31208_v53 }
 0x6de   : > { %23467 = vmatmul.mubr.msk.f32.gmra.mxu0 %vm15322_vm6, %v15292_v38  ;;  %v21882_v38 = vld [vmem:[%s31060_s5 + $0x1d0] sm:$0xff] }
 0x6df   : > { %23469 = vmatprep.mubr.msk.f32.mxu0 %vm24755_vm0, %v31208_v53 }
 0x6e2   : > { %23470 = vmatmul.mubr.msk.f32.gmra.mxu0 %vm15322_vm6, %v15293_v58  ;;  %v21841_v58 = vld [vmem:[%s31060_s5 + $0x100] sm:$0xff] }
 0x6e3   : > { %23472 = vmatprep.mubr.msk.f32.mxu0 %vm24755_vm0, %v31208_v53 }
 0x6e6   : > { %23473 = vmatmul.mubr.msk.f32.gmra.mxu0 %vm15322_vm6, %v15294_v0  ;;  %v21883_v0 = vld [vmem:[%s31060_s5 + $0x1d8] sm:$0xff] }
 0x6e7   : > { %23475 = vmatprep.mubr.msk.f32.mxu0 %vm24755_vm0, %v31208_v53 }
 0x6ea   : > { %23476 = vmatmul.mubr.msk.f32.gmra.mxu0 %vm15322_vm6, %v15295_v57  ;;  %v21842_v57 = vld [vmem:[%s31060_s5 + $0x108] sm:$0xff] }
 0x6eb   : > { %23478 = vmatprep.mubr.msk.f32.mxu0 %vm24755_vm0, %v31208_v53 }
 0x6ee   : > { %23479 = vmatmul.mubr.msk.f32.gmra.mxu0 %vm15322_vm6, %v15296_v32  ;;  %v21843_v32 = vld [vmem:[%s31060_s5 + $0x110] sm:$0xff] }
 0x6ef   : > { %23481 = vmatprep.mubr.msk.f32.mxu0 %vm24755_vm0, %v31208_v53 }
 0x6f2   : > { %23482 = vmatmul.mubr.msk.f32.gmra.mxu0 %vm15322_vm6, %v15297_v31  ;;  %v31209_v31 = vld [vmem:[#allocation5_spill] sm:$0xff] }
 0x6f3   : > { %23537 = vmatprep.mubr.msk.f32.mxu0 %vm24755_vm0, %v31208_v53 }
 0x726   : > { %v15319_v48 = vpop.permute.xlu1 %15318 }
 0x727   : > { %23387 = vmatpush3.msra.mxu1 %v15319_v48  ;;  %v31210_v48 = vld [vmem:[#allocation6_spill] sm:$0xff] }
 0x728   : > { %23388 = vmatprep.subr.mxu1 %v31208_v53 }
 0x72a   : > { %v27796_v40 = vpop.permute.xlu1 %15193  ;;  %v15317_v9 = vpop.permute.xlu0 %15316 }
 0x72b   : > { %v15203_v46 = vsel %vm1040_vm4, %v27589_v17, %v27796_v40  ;;  %23389 = vmatpush3.msra.mxu1 %v15317_v9  ;;  %v31211_v9 = vld [vmem:[#allocation13_spill] sm:$0xff] }
 0x72c   : > { %v27803_v44 = vmax.f32 %v15164_v33, %v15203_v46  ;;  %23484 = vmatprep.subr.mxu1 %v31208_v53  ;;  %23391 = vmatmul.mubr.msk.f32.vlgmr.msra.gmra.mxu1 %vm15322_vm6, %v21794_v37  ;;  %v9399_v37 = vadd.f32 %v31210_v48, %v31209_v31  ;;  %v31223_v31 = vld [vmem:[#allocation45_spill] sm:$0xff] }
 0x72d   : > { %23393 = vmatprep.mubr.msk.f32.mxu1 %vm24755_vm0, %v31208_v53 }
 0x72e   : > { %v15712_v22 = vpop.permute.xlu1 %15711  ;;  %15249 = vrot.lane.b32.xlu0 %v27803_v44, %s24764_s19  ;;  %v27814_v17 = vpop.permute.xlu0 %15183  ;;  %v9672_v46 = vadd.f32 %v31211_v9, %v9399_v37  ;;  %v21850_v37 = vld [vmem:[%s31060_s5 + $0x148] sm:$0xff] }
 0x72f   : > { %v15199_v1 = vsel %vm1040_vm4, %v27597_v50, %v27814_v17  ;;  %23485 = vmatpush3.msra.mxu1 %v15712_v22  ;;  %v21844_v22 = vld [vmem:[%s31060_s5 + $0x118] sm:$0xff] }
 0x730   : > { %v27821_v33 = vmax.f32 %v15159_v59, %v15199_v1  ;;  %23486 = vmatprep.subr.mxu1 %v31208_v53  ;;  %23394 = vmatmul.mubr.msk.f32.gmra.mxu1 %vm15322_vm6, %v21795_v61  ;;  %v21797_v59 = vld [vmem:[%s31060_s5 + $0x90] sm:$0xff]  ;;  %v28035_v61 = vpop.f32.mrf.mxu0 }
 0x731   : > { %23396 = vmatprep.mubr.msk.f32.mxu1 %vm24755_vm0, %v31208_v53  ;;  %v31212_v1 = vld [vmem:[#allocation16_spill] sm:$0xff] }
 0x732   : > { %v15932_v19 = vpop.permute.xlu1 %15931  ;;  %16155 = vrot.lane.b32.xlu0 %v27666_v6, %s24780_s14  ;;  %15239 = vrot.lane.b32.xlu1 %v27821_v33, %s24764_s19  ;;  %v15710_v56 = vpop.permute.xlu0 %15709  ;;  %v21804_v6 = vld [vmem:[%s31060_s5 + $0xc8] sm:$0xff] }
 0x733   : > { %23487 = vmatpush3.msra.mxu1 %v15710_v56 }
 0x734   : > { %23397 = vmatmul.mubr.msk.f32.gmra.mxu1 %vm15322_vm6, %v21796_v3  ;;  %23582 = vmatprep.subr.mxu1 %v31208_v53  ;;  %v9945_v3 = vadd.f32 %v31212_v1, %v9672_v46  ;;  %v31224_v46 = vld [vmem:[#allocation48_spill] sm:$0xff] }
 0x735   : > { %23399 = vmatprep.mubr.msk.f32.mxu1 %vm24755_vm0, %v31208_v53 }
 0x736   : > { %v15934_v50 = vpop.permute.xlu1 %15933  ;;  %16153 = vrot.lane.b32.xlu0 %v27681_v25, %s24780_s14  ;;  %v21877_v25 = vld [vmem:[%s31060_s5 + $0x1a8] sm:$0xff] }
 0x737   : > { %23534 = vmatpush3.msra.mxu0 %v15934_v50  ;;  %v21845_v50 = vld [vmem:[%s31060_s5 + $0x120] sm:$0xff] }
 0x738   : > { %23535 = vmatprep.subr.mxu0 %v31208_v53  ;;  %23400 = vmatmul.mubr.msk.f32.gmra.mxu1 %vm15322_vm6, %v21797_v59  ;;  %v28045_v59 = vpop.f32.mrf.mxu0 }
 0x739   : > { %23536 = vmatpush3.msra.mxu0 %v15932_v19  ;;  %23402 = vmatprep.mubr.msk.f32.mxu1 %vm24755_vm0, %v31208_v53  ;;  %v31213_v19 = vld [vmem:[#allocation15_spill] sm:$0xff] }
 0x73a   : > { %23538 = vmatmul.mubr.msk.f32.vlgmr.msra.gmra.mxu0 %vm15322_vm6, %v21869_v62  ;;  %23631 = vmatprep.subr.mxu0 %v31208_v53  ;;  %v10221_v56 = vadd.f32 %v31213_v19, %v9945_v3  ;;  %v31214_v62 = vld [vmem:[#allocation18_spill] sm:$0xff]  ;;  %v31225_v3 = vld [vmem:[#allocation51_spill] sm:$0xff] }
 0x73b   : > { %23540 = vmatprep.mubr.msk.f32.mxu0 %vm24755_vm0, %v31208_v53 }
 0x73c   : > { %23403 = vmatmul.mubr.msk.f32.gmra.mxu1 %vm15322_vm6, %v21798_v18  ;;  %v10496_v18 = vadd.f32 %v31214_v62, %v10221_v56  ;;  %v21851_v56 = vld [vmem:[%s31060_s5 + $0x150] sm:$0xff]  ;;  %v31226_v62 = vld [vmem:[#allocation54_spill] sm:$0xff] }
 0x73d   : > { %23405 = vmatprep.mubr.msk.f32.mxu1 %vm24755_vm0, %v31208_v53 }
 0x73e   : > { %23541 = vmatmul.mubr.msk.f32.gmra.mxu0 %vm15322_vm6, %v21870_v36 }
 0x73f   : > { %23543 = vmatprep.mubr.msk.f32.mxu0 %vm24755_vm0, %v31208_v53 }
 0x740   : > { %23406 = vmatmul.mubr.msk.f32.gmra.mxu1 %vm15322_vm6, %v21799_v28  ;;  %v31215_v28 = vld [vmem:[#allocation21_spill] sm:$0xff] }
 0x741   : > { %23408 = vmatprep.mubr.msk.f32.mxu1 %vm24755_vm0, %v31208_v53 }
 0x742   : > { %23544 = vmatmul.mubr.msk.f32.gmra.mxu0 %vm15322_vm6, %v21871_v35  ;;  %v10771_v35 = vadd.f32 %v31215_v28, %v10496_v18 }
 0x743   : > { %23546 = vmatprep.mubr.msk.f32.mxu0 %vm24755_vm0, %v31208_v53 }
 0x744   : > { %23409 = vmatmul.mubr.msk.f32.gmra.mxu1 %vm15322_vm6, %v21800_v52  ;;  %v21846_v52 = vld [vmem:[%s31060_s5 + $0x128] sm:$0xff] }
 0x745   : > { %23411 = vmatprep.mubr.msk.f32.mxu1 %vm24755_vm0, %v31208_v53 }
 0x746   : > { %23547 = vmatmul.mubr.msk.f32.gmra.mxu0 %vm15322_vm6, %v21872_v51 }
 0x747   : > { %23549 = vmatprep.mubr.msk.f32.mxu0 %vm24755_vm0, %v31208_v53 }
 0x748   : > { %23412 = vmatmul.mubr.msk.f32.gmra.mxu1 %vm15322_vm6, %v21801_v21  ;;  %v31216_v21 = vld [vmem:[#allocation24_spill] sm:$0xff] }
 0x749   : > { %23414 = vmatprep.mubr.msk.f32.mxu1 %vm24755_vm0, %v31208_v53 }
 0x74a   : > { %23550 = vmatmul.mubr.msk.f32.gmra.mxu0 %vm15322_vm6, %v21873_v10  ;;  %v11047_v10 = vadd.f32 %v31216_v21, %v10771_v35  ;;  %v31227_v35 = vld [vmem:[#allocation58_spill] sm:$0xff] }
 0x74b   : > { %23552 = vmatprep.mubr.msk.f32.mxu0 %vm24755_vm0, %v31208_v53 }
 0x74c   : > { %23415 = vmatmul.mubr.msk.f32.gmra.mxu1 %vm15322_vm6, %v21802_v49 }
 0x74d   : > { %23417 = vmatprep.mubr.msk.f32.mxu1 %vm24755_vm0, %v31208_v53 }
 0x74e   : > { %23553 = vmatmul.mubr.msk.f32.gmra.mxu0 %vm15322_vm6, %v21874_v11  ;;  %v31217_v11 = vld [vmem:[#allocation27_spill] sm:$0xff] }
 0x74f   : > { %23555 = vmatprep.mubr.msk.f32.mxu0 %vm24755_vm0, %v31208_v53 }
 0x750   : > { %23418 = vmatmul.mubr.msk.f32.gmra.mxu1 %vm15322_vm6, %v21803_v12  ;;  %v11323_v12 = vadd.f32 %v31217_v11, %v11047_v10 }
 0x751   : > { %23420 = vmatprep.mubr.msk.f32.mxu1 %vm24755_vm0, %v31208_v53 }
 0x752   : > { %23556 = vmatmul.mubr.msk.f32.gmra.mxu0 %vm15322_vm6, %v21875_v55  ;;  %v21847_v55 = vld [vmem:[%s31060_s5 + $0x130] sm:$0xff] }
 0x753   : > { %23558 = vmatprep.mubr.msk.f32.mxu0 %vm24755_vm0, %v31208_v53 }
 0x754   : > { %23421 = vmatmul.mubr.msk.f32.gmra.mxu1 %vm15322_vm6, %v21804_v6 }
 0x755   : > { %23423 = vmatprep.mubr.msk.f32.mxu1 %vm24755_vm0, %v31208_v53 }
 0x756   : > { %23559 = vmatmul.mubr.msk.f32.gmra.mxu0 %vm15322_vm6, %v21876_v7  ;;  %v31218_v7 = vld [vmem:[#allocation30_spill] sm:$0xff] }
 0x757   : > { %23561 = vmatprep.mubr.msk.f32.mxu0 %vm24755_vm0, %v31208_v53 }
 0x758   : > { %23424 = vmatmul.mubr.msk.f32.gmra.mxu1 %vm15322_vm6, %v21805_v2  ;;  %v11573_v2 = vadd.f32 %v31218_v7, %v11323_v12 }
 0x759   : > { %23426 = vmatprep.mubr.msk.f32.mxu1 %vm24755_vm0, %v31208_v53 }
 0x75a   : > { %23562 = vmatmul.mubr.msk.f32.gmra.mxu0 %vm15322_vm6, %v21877_v25 }
 0x75b   : > { %23564 = vmatprep.mubr.msk.f32.mxu0 %vm24755_vm0, %v31208_v53 }
 0x75c   : > { %23427 = vmatmul.mubr.msk.f32.gmra.mxu1 %vm15322_vm6, %v21806_v45  ;;  %v31219_v45 = vld [vmem:[#allocation33_spill] sm:$0xff] }
 0x75d   : > { %23429 = vmatprep.mubr.msk.f32.mxu1 %vm24755_vm0, %v31208_v53 }
 0x75e   : > { %23565 = vmatmul.mubr.msk.f32.gmra.mxu0 %vm15322_vm6, %v21878_v24  ;;  %v11828_v24 = vadd.f32 %v31219_v45, %v11573_v2  ;;  %v15134_v2 = vadd.f32 %v28035_v61, %v27551_v4 }
 0x75f   : > { %23567 = vmatprep.mubr.msk.f32.mxu0 %vm24755_vm0, %v31208_v53 }
 0x760   : > { %23430 = vmatmul.mubr.msk.f32.gmra.mxu1 %vm15322_vm6, %v21807_v34  ;;  %v21848_v34 = vld [vmem:[%s31060_s5 + $0x138] sm:$0xff] }
 0x761   : > { %23432 = vmatprep.mubr.msk.f32.mxu1 %vm24755_vm0, %v31208_v53 }
 0x762   : > { %23568 = vmatmul.mubr.msk.f32.gmra.mxu0 %vm15322_vm6, %v21879_v30 }
 0x763   : > { %23570 = vmatprep.mubr.msk.f32.mxu0 %vm24755_vm0, %v31208_v53 }
 0x764   : > { %23433 = vmatmul.mubr.msk.f32.gmra.mxu1 %vm15322_vm6, %v21808_v54  ;;  %v31220_v54 = vld [vmem:[#allocation36_spill] sm:$0xff] }
 0x765   : > { %23488 = vmatprep.mubr.msk.f32.mxu1 %vm24755_vm0, %v31208_v53 }
 0x766   : > { %23571 = vmatmul.mubr.msk.f32.gmra.mxu0 %vm15322_vm6, %v21880_v14  ;;  %v12083_v14 = vadd.f32 %v31220_v54, %v11828_v24 }
 0x767   : > { %23573 = vmatprep.mubr.msk.f32.mxu0 %vm24755_vm0, %v31208_v53 }
 0x768   : > { %23489 = vmatmul.mubr.msk.f32.vlgmr.msra.gmra.mxu1 %vm15322_vm6, %v21839_v63 }
 0x769   : > { %23491 = vmatprep.mubr.msk.f32.mxu1 %vm24755_vm0, %v31208_v53 }
 0x76a   : > { %23574 = vmatmul.mubr.msk.f32.gmra.mxu0 %vm15322_vm6, %v21881_v47  ;;  %v31221_v47 = vld [vmem:[#allocation39_spill] sm:$0xff] }
 0x76b   : > { %23576 = vmatprep.mubr.msk.f32.mxu0 %vm24755_vm0, %v31208_v53 }
 0x76c   : > { %23492 = vmatmul.mubr.msk.f32.gmra.mxu1 %vm15322_vm6, %v21840_v23  ;;  %v12338_v23 = vadd.f32 %v31221_v47, %v12083_v14  ;;  %v21899_v47 = vld [vmem:[%s31060_s5 + $0x1e0] sm:$0xff] }
 0x76d   : > { %23494 = vmatprep.mubr.msk.f32.mxu1 %vm24755_vm0, %v31208_v53 }
 0x76e   : > { %23577 = vmatmul.mubr.msk.f32.gmra.mxu0 %vm15322_vm6, %v21882_v38  ;;  %v21849_v38 = vld [vmem:[%s31060_s5 + $0x140] sm:$0xff] }
 0x76f   : > { %23579 = vmatprep.mubr.msk.f32.mxu0 %vm24755_vm0, %v31208_v53 }
 0x770   : > { %23495 = vmatmul.mubr.msk.f32.gmra.mxu1 %vm15322_vm6, %v21841_v58 }
 0x771   : > { %23497 = vmatprep.mubr.msk.f32.mxu1 %vm24755_vm0, %v31208_v53 }
 0x772   : > { %23580 = vmatmul.mubr.msk.f32.gmra.mxu0 %vm15322_vm6, %v21883_v0  ;;  %v31222_v0 = vld [vmem:[#allocation42_spill] sm:$0xff] }
 0x773   : > { %23635 = vmatprep.mubr.msk.f32.mxu0 %vm24755_vm0, %v31208_v53 }
 0x774   : > { %23498 = vmatmul.mubr.msk.f32.gmra.mxu1 %vm15322_vm6, %v21842_v57  ;;  %v12593_v57 = vadd.f32 %v31222_v0, %v12338_v23  ;;  %v21930_v0 = vld [vmem:[%s31060_s5 + $0x260] sm:$0xff] }
 0x775   : > { %23500 = vmatprep.mubr.msk.f32.mxu1 %vm24755_vm0, %v31208_v53 }
 0x776   : > { %v12847_v48 = vadd.f32 %v31223_v31, %v12593_v57 }
 0x778   : > { %23501 = vmatmul.mubr.msk.f32.gmra.mxu1 %vm15322_vm6, %v21843_v32 }
 0x779   : > { %23503 = vmatprep.mubr.msk.f32.mxu1 %vm24755_vm0, %v31208_v53 }
 0x77a   : > { %v28053_v36 = vpop.f32.mrf.mxu0 }
 0x77c   : > { %23504 = vmatmul.mubr.msk.f32.gmra.mxu1 %vm15322_vm6, %v21844_v22  ;;  %v23441_v51 = vpop.f32.mrf.mxu0  ;;  %v13100_v22 = vadd.f32 %v31224_v46, %v12847_v48  ;;  %v21901_v48 = vld [vmem:[%s31060_s5 + $0x1f0] sm:$0xff] }
 0x77d   : > { %23506 = vmatprep.mubr.msk.f32.mxu1 %vm24755_vm0, %v31208_v53  ;;  %v21852_v51 = vld [vmem:[%s31060_s5 + $0x158] sm:$0xff] }
 0x77e   : > { %v28063_v49 = vpop.f32.mrf.mxu0  ;;  %v13353_v19 = vadd.f32 %v31225_v3, %v13100_v22  ;;  %v21902_v22 = vld [vmem:[%s31060_s5 + $0x1f8] sm:$0xff]  ;;  %v21932_v3 = vld [vmem:[%s31060_s5 + $0x270] sm:$0xff] }
 0x780   : > { %23507 = vmatmul.mubr.msk.f32.gmra.mxu1 %vm15322_vm6, %v21845_v50  ;;  %v23444_v6 = vpop.f32.mrf.mxu0  ;;  %v13606_v18 = vadd.f32 %v31226_v62, %v13353_v19  ;;  %v21933_v62 = vld [vmem:[%s31060_s5 + $0x278] sm:$0xff] }
 0x781   : > { %23509 = vmatprep.mubr.msk.f32.mxu1 %vm24755_vm0, %v31208_v53 }
 0x782   : > { %v28073_v25 = vpop.f32.mrf.mxu0 }
 0x784   : > { %23510 = vmatmul.mubr.msk.f32.gmra.mxu1 %vm15322_vm6, %v21846_v52  ;;  %v23447_v30 = vpop.f32.mrf.mxu0  ;;  %v13859_v52 = vadd.f32 %v31227_v35, %v13606_v18 }
 0x785   : > { %23512 = vmatprep.mubr.msk.f32.mxu1 %vm24755_vm0, %v31208_v53 }
 0x786   : > { %v28083_v63 = vpop.f32.mrf.mxu0  ;;  %v14109_v10 = vadd.f32 %v27465_v42, %v13859_v52  ;;  %v21904_v52 = vld [vmem:[%s31060_s5 + $0x208] sm:$0xff] }
 0x788   : > { %23513 = vmatmul.mubr.msk.f32.gmra.mxu1 %vm15322_vm6, %v21847_v55  ;;  %v23450_v58 = vpop.f32.mrf.mxu0  ;;  %v14364_v12 = vadd.f32 %v27493_v5, %v14109_v10  ;;  %v21853_v55 = vld [vmem:[%s31060_s5 + $0x160] sm:$0xff]  ;;  %v21935_v10 = vld [vmem:[%s31060_s5 + $0x288] sm:$0xff] }
 0x789   : > { %23515 = vmatprep.mubr.msk.f32.mxu1 %vm24755_vm0, %v31208_v53  ;;  %v21900_v58 = vld [vmem:[%s31060_s5 + $0x1e8] sm:$0xff] }
 0x78a   : > { %v28093_v32 = vpop.f32.mrf.mxu0  ;;  %v14619_v7 = vadd.f32 %v27514_v41, %v14364_v12  ;;  %v28147_v41 = vadd.f32 %v27560_v60, %v15134_v2  ;;  %v21906_v12 = vld [vmem:[%s31060_s5 + $0x218] sm:$0xff]  ;;  %v21908_v2 = vld [vmem:[%s31060_s5 + $0x228] sm:$0xff] }
 0x78c   : > { %23516 = vmatmul.mubr.msk.f32.gmra.mxu1 %vm15322_vm6, %v21848_v34  ;;  %v23453_v9 = vpop.f32.mrf.mxu0  ;;  %v14874_v45 = vadd.f32 %v27555_v27, %v14619_v7  ;;  %v21937_v7 = vld [vmem:[%s31060_s5 + $0x298] sm:$0xff] }
 0x78d   : > { %23518 = vmatprep.mubr.msk.f32.mxu1 %vm24755_vm0, %v31208_v53 }
 0x78e   : > { %v28103_v1 = vpop.f32.mrf.mxu0  ;;  %v15129_v4 = vadd.f32 %v28045_v59, %v14874_v45  ;;  %v15166_v59 = vmax.f32 %v28147_v41, 0.0  ;;  %v21938_v45 = vld [vmem:[%s31060_s5 + $0x2a0] sm:$0xff] }
 0x790   : > { %23519 = vmatmul.mubr.msk.f32.gmra.mxu1 %vm15322_vm6, %v21849_v38  ;;  %v23456_v50 = vpop.f32.mrf.mxu0 }
 0x791   : > { %23521 = vmatprep.mubr.msk.f32.mxu1 %vm24755_vm0, %v31208_v53  ;;  %v21903_v50 = vld [vmem:[%s31060_s5 + $0x200] sm:$0xff] }
 0x792   : > { %v28113_v28 = vpop.f32.mrf.mxu0 }
 0x794   : > { %23522 = vmatmul.mubr.msk.f32.gmra.mxu1 %vm15322_vm6, %v21850_v37  ;;  %v23459_v21 = vpop.f32.mrf.mxu0  ;;  %v21931_v37 = vld [vmem:[%s31060_s5 + $0x268] sm:$0xff] }
 0x795   : > { %23524 = vmatprep.mubr.msk.f32.mxu1 %vm24755_vm0, %v31208_v53  ;;  %v21905_v21 = vld [vmem:[%s31060_s5 + $0x210] sm:$0xff] }
 0x796   : > { %v28123_v11 = vpop.f32.mrf.mxu0 }
 0x798   : > { %23525 = vmatmul.mubr.msk.f32.gmra.mxu1 %vm15322_vm6, %v21851_v56  ;;  %v23462_v6 = vpop.f32.mrf.mxu0 }
 0x799   : > { %23527 = vmatprep.mubr.msk.f32.mxu1 %vm24755_vm0, %v31208_v53  ;;  %v21907_v6 = vld [vmem:[%s31060_s5 + $0x220] sm:$0xff] }
 0x79a   : > { %v28135_v42 = vpop.f32.mrf.mxu0 }
 0x79c   : > { %23528 = vmatmul.mubr.msk.f32.gmra.mxu1 %vm15322_vm6, %v21852_v51  ;;  %v23465_v34 = vpop.f32.mrf.mxu0  ;;  %v21934_v51 = vld [vmem:[%s31060_s5 + $0x280] sm:$0xff] }
 0x79d   : > { %23530 = vmatprep.mubr.msk.f32.mxu1 %vm24755_vm0, %v31208_v53  ;;  %v21939_v34 = vld [vmem:[%s31060_s5 + $0x2a8] sm:$0xff] }
 0x79e   : > { %v28151_v27 = vpop.f32.mrf.mxu0 }
 0x7a0   : > { %v28138_v5 = vpop.permute.xlu0 %15249  ;;  %23531 = vmatmul.mubr.msk.f32.gmra.mxu1 %vm15322_vm6, %v21853_v55  ;;  %v23468_v60 = vpop.f32.mrf.mxu0  ;;  %v21936_v55 = vld [vmem:[%s31060_s5 + $0x290] sm:$0xff] }
 0x7a1   : > { %v15260_v24 = vsel %vm3698_vm12, %v27657_v16, %v28138_v5  ;;  %23586 = vmatprep.mubr.msk.f32.mxu1 %vm24755_vm0, %v31208_v53  ;;  %v21912_v60 = vld [vmem:[%s31060_s5 + $0x248] sm:$0xff] }
 0x7a2   : > { %v15279_v61 = vmax.f32 %v27595_v26, %v15260_v24  ;;  %v28162_v26 = vadd.f32 %v27548_v13, %v15129_v4  ;;  %v28172_v23 = vpop.f32.mrf.mxu0  ;;  %v21909_v24 = vld [vmem:[%s31060_s5 + $0x230] sm:$0xff]  ;;  %v21910_v4 = vld [vmem:[%s31060_s5 + $0x238] sm:$0xff] }
 0x7a4   : > { %v28153_v30 = vpop.permute.xlu1 %15239  ;;  %16595 = vrot.lane.b32.xlu1 %v15279_v61, %s24758_s26  ;;  %v16156_v54 = vpop.permute.xlu0 %16155  ;;  %23632 = vmatpush3.msra.mxu0 %v15279_v61  ;;  %v15161_v38 = vmax.f32 %v28162_v26, 0.0 }
 0x7a5   : > { %v15256_v16 = vsel %vm3698_vm12, %v27671_v20, %v28153_v30  ;;  %23583 = vmatpush3.msra.mxu1 %v16156_v54  ;;  %23633 = vmatprep.subr.mxu0 %v31208_v53  ;;  %v21929_v20 = vld [vmem:[%s31060_s5 + $0x258] sm:$0xff]  ;;  %v21911_v54 = vld [vmem:[%s31060_s5 + $0x240] sm:$0xff] }
 0x7a6   : > { %v15274_v14 = vmax.f32 %v27606_v8, %v15256_v16  ;;  %23584 = vmatprep.subr.mxu1 %v31208_v53  ;;  %v23471_v8 = vpop.f32.mrf.mxu0  ;;  %v21941_v16 = vld [vmem:[%s31060_s5 + $0x2b8] sm:$0xff] }
 0x7a8   : > { %16593 = vrot.lane.b32.xlu0 %v15274_v14, %s24758_s26  ;;  %15195 = vrot.lane.b32.xlu1 %v15166_v59, %s24756_s24  ;;  %v16154_v13 = vpop.permute.xlu0 %16153  ;;  %v28191_v57 = vpop.f32.mrf.mxu0 }
 0x7a9   : > { %23634 = vmatpush3.msra.mxu0 %v15274_v14  ;;  %23585 = vmatpush3.msra.mxu1 %v16154_v13 }
 0x7aa   : > { %23587 = vmatmul.mubr.msk.f32.vlgmr.msra.gmra.mxu1 %vm15322_vm6, %v21899_v47  ;;  %23636 = vmatmul.mubr.msk.f32.vlgmr.msra.gmra.mxu0 %vm15322_vm6, %v21929_v20  ;;  %v23474_v31 = vpop.f32.mrf.mxu0  ;;  %v21913_v47 = vld [vmem:[%s31060_s5 + $0x250] sm:$0xff]  ;;  %v21943_v20 = vld [vmem:[%s31060_s5 + $0x2c8] sm:$0xff] }
 0x7ab   : > { %23589 = vmatprep.mubr.msk.f32.mxu1 %vm24755_vm0, %v31208_v53  ;;  %23638 = vmatprep.mubr.msk.f32.mxu0 %vm24755_vm0, %v31208_v53 }
 0x7ac   : > { %15185 = vrot.lane.b32.xlu0 %v15161_v38, %s24756_s24  ;;  %16817 = vrot.lane.b32.xlu1 %v15279_v61, %s24776_s27  ;;  %v28211_v9 = vpop.f32.mrf.mxu0 }
 0x7ad   : > { %23680 = vmatprep.subr.mxu1 %v31208_v53  ;;  %23729 = vmatprep.subr.mxu0 %v31208_v53 }
 0x7ae   : > { %23590 = vmatmul.mubr.msk.f32.gmra.mxu1 %vm15322_vm6, %v21900_v58  ;;  %23639 = vmatmul.mubr.msk.f32.gmra.mxu0 %vm15322_vm6, %v21930_v0  ;;  %v23477_v46 = vpop.f32.mrf.mxu0 }
 0x7af   : > { %23592 = vmatprep.mubr.msk.f32.mxu1 %vm24755_vm0, %v31208_v53  ;;  %23641 = vmatprep.mubr.msk.f32.mxu0 %vm24755_vm0, %v31208_v53 }
 0x7b0   : > { %16815 = vrot.lane.b32.xlu0 %v15274_v14, %s24776_s27  ;;  %17039 = vrot.lane.b32.xlu1 %v15279_v61, %s24779_s25  ;;  %v28227_v19 = vpop.f32.mrf.mxu0 }
 0x7b2   : > { %23593 = vmatmul.mubr.msk.f32.gmra.mxu1 %vm15322_vm6, %v21901_v48  ;;  %23642 = vmatmul.mubr.msk.f32.gmra.mxu0 %vm15322_vm6, %v21931_v37  ;;  %v23480_v56 = vpop.f32.mrf.mxu0 }
 0x7b3   : > { %23595 = vmatprep.mubr.msk.f32.mxu1 %vm24755_vm0, %v31208_v53  ;;  %23644 = vmatprep.mubr.msk.f32.mxu0 %vm24755_vm0, %v31208_v53 }
 0x7b4   : > { %17037 = vrot.lane.b32.xlu0 %v15274_v14, %s24779_s25  ;;  %v28242_v18 = vpop.f32.mrf.mxu0 }
 0x7b6   : > { %23596 = vmatmul.mubr.msk.f32.gmra.mxu1 %vm15322_vm6, %v21902_v22  ;;  %23645 = vmatmul.mubr.msk.f32.gmra.mxu0 %vm15322_vm6, %v21932_v3  ;;  %v23483_v35 = vpop.f32.mrf.mxu0 }
 0x7b7   : > { %23598 = vmatprep.mubr.msk.f32.mxu1 %vm24755_vm0, %v31208_v53  ;;  %23647 = vmatprep.mubr.msk.f32.mxu0 %vm24755_vm0, %v31208_v53 }
 0x7b8   : > { %17261 = vrot.lane.b32.xlu0 %v15279_v61, %s24780_s14  ;;  %v21940_v61 = vld [vmem:[%s31060_s5 + $0x2b0] sm:$0xff] }
 0x7ba   : > { %23599 = vmatmul.mubr.msk.f32.gmra.mxu1 %vm15322_vm6, %v21903_v50  ;;  %23648 = vmatmul.mubr.msk.f32.gmra.mxu0 %vm15322_vm6, %v21933_v62 }
 0x7bb   : > { %23601 = vmatprep.mubr.msk.f32.mxu1 %vm24755_vm0, %v31208_v53  ;;  %23650 = vmatprep.mubr.msk.f32.mxu0 %vm24755_vm0, %v31208_v53 }
 0x7bc   : > { %17259 = vrot.lane.b32.xlu0 %v15274_v14, %s24780_s14  ;;  %v21942_v14 = vld [vmem:[%s31060_s5 + $0x2c0] sm:$0xff] }
 0x7be   : > { %23602 = vmatmul.mubr.msk.f32.gmra.mxu1 %vm15322_vm6, %v21904_v52  ;;  %23651 = vmatmul.mubr.msk.f32.gmra.mxu0 %vm15322_vm6, %v21934_v51 }
 0x7bf   : > { %23604 = vmatprep.mubr.msk.f32.mxu1 %vm24755_vm0, %v31208_v53  ;;  %23653 = vmatprep.mubr.msk.f32.mxu0 %vm24755_vm0, %v31208_v53 }
 0x7c2   : > { %23605 = vmatmul.mubr.msk.f32.gmra.mxu1 %vm15322_vm6, %v21905_v21  ;;  %23654 = vmatmul.mubr.msk.f32.gmra.mxu0 %vm15322_vm6, %v21935_v10 }
 0x7c3   : > { %23607 = vmatprep.mubr.msk.f32.mxu1 %vm24755_vm0, %v31208_v53  ;;  %23656 = vmatprep.mubr.msk.f32.mxu0 %vm24755_vm0, %v31208_v53 }
 0x7c6   : > { %23608 = vmatmul.mubr.msk.f32.gmra.mxu1 %vm15322_vm6, %v21906_v12  ;;  %23657 = vmatmul.mubr.msk.f32.gmra.mxu0 %vm15322_vm6, %v21936_v55 }
 0x7c7   : > { %23610 = vmatprep.mubr.msk.f32.mxu1 %vm24755_vm0, %v31208_v53  ;;  %23659 = vmatprep.mubr.msk.f32.mxu0 %vm24755_vm0, %v31208_v53 }
 0x7ca   : > { %23611 = vmatmul.mubr.msk.f32.gmra.mxu1 %vm15322_vm6, %v21907_v6  ;;  %23660 = vmatmul.mubr.msk.f32.gmra.mxu0 %vm15322_vm6, %v21937_v7 }
 0x7cb   : > { %23613 = vmatprep.mubr.msk.f32.mxu1 %vm24755_vm0, %v31208_v53  ;;  %23662 = vmatprep.mubr.msk.f32.mxu0 %vm24755_vm0, %v31208_v53 }
 0x7ce   : > { %23614 = vmatmul.mubr.msk.f32.gmra.mxu1 %vm15322_vm6, %v21908_v2  ;;  %23663 = vmatmul.mubr.msk.f32.gmra.mxu0 %vm15322_vm6, %v21938_v45 }
 0x7cf   : > { %23616 = vmatprep.mubr.msk.f32.mxu1 %vm24755_vm0, %v31208_v53  ;;  %23665 = vmatprep.mubr.msk.f32.mxu0 %vm24755_vm0, %v31208_v53 }
 0x7d2   : > { %23617 = vmatmul.mubr.msk.f32.gmra.mxu1 %vm15322_vm6, %v21909_v24  ;;  %23666 = vmatmul.mubr.msk.f32.gmra.mxu0 %vm15322_vm6, %v21939_v34 }
 0x7d3   : > { %23619 = vmatprep.mubr.msk.f32.mxu1 %vm24755_vm0, %v31208_v53  ;;  %23668 = vmatprep.mubr.msk.f32.mxu0 %vm24755_vm0, %v31208_v53 }
 0x7d6   : > { %23620 = vmatmul.mubr.msk.f32.gmra.mxu1 %vm15322_vm6, %v21910_v4  ;;  %23669 = vmatmul.mubr.msk.f32.gmra.mxu0 %vm15322_vm6, %v21940_v61 }
 0x7d7   : > { %23622 = vmatprep.mubr.msk.f32.mxu1 %vm24755_vm0, %v31208_v53  ;;  %23671 = vmatprep.mubr.msk.f32.mxu0 %vm24755_vm0, %v31208_v53 }
 0x7da   : > { %23623 = vmatmul.mubr.msk.f32.gmra.mxu1 %vm15322_vm6, %v21911_v54  ;;  %23672 = vmatmul.mubr.msk.f32.gmra.mxu0 %vm15322_vm6, %v21941_v16 }
 0x7db   : > { %23625 = vmatprep.mubr.msk.f32.mxu1 %vm24755_vm0, %v31208_v53  ;;  %23674 = vmatprep.mubr.msk.f32.mxu0 %vm24755_vm0, %v31208_v53 }
 0x7de   : > { %23626 = vmatmul.mubr.msk.f32.gmra.mxu1 %vm15322_vm6, %v21912_v60  ;;  %23675 = vmatmul.mubr.msk.f32.gmra.mxu0 %vm15322_vm6, %v21942_v14 }
 0x7df   : > { %23628 = vmatprep.mubr.msk.f32.mxu1 %vm24755_vm0, %v31208_v53  ;;  %23677 = vmatprep.mubr.msk.f32.mxu0 %vm24755_vm0, %v31208_v53 }
 0x7e2   : > { %23629 = vmatmul.mubr.msk.f32.gmra.mxu1 %vm15322_vm6, %v21913_v47  ;;  %23678 = vmatmul.mubr.msk.f32.gmra.mxu0 %vm15322_vm6, %v21943_v20 }
 0x7e3   : > { %23684 = vmatprep.mubr.msk.f32.mxu1 %vm24755_vm0, %v31208_v53  ;;  %23733 = vmatprep.mubr.msk.f32.mxu0 %vm24755_vm0, %v31208_v53 }
 0x7ec   : > { %v28372_v13 = vpop.f32.mrf.mxu1 }
 0x7ee   : > { %v23392_v8 = vpop.f32.mrf.mxu1 }
 0x7f0   : > { %v28374_v58 = vpop.f32.mrf.mxu1 }
 0x7f2   : > { %v23395_v0 = vpop.f32.mrf.mxu1 }
 0x7f4   : > { %v28376_v31 = vpop.f32.mrf.mxu1 }
 0x7f6   : > { %v23398_v48 = vpop.f32.mrf.mxu1 }
 0x7f8   : > { %v28378_v37 = vpop.f32.mrf.mxu1 }
 0x7fa   : > { %v23401_v46 = vpop.f32.mrf.mxu1  ;;  %v28380_v22 = vpop.f32.mrf.mxu0 }
 0x7fc   : > { %v28382_v3 = vpop.f32.mrf.mxu1  ;;  %v23539_v56 = vpop.f32.mrf.mxu0 }
 0x7fe   : > { %v23404_v50 = vpop.f32.mrf.mxu1  ;;  %v28384_v62 = vpop.f32.mrf.mxu0 }
 0x7ff   : > { %v21959_v50 = vld [vmem:[%s31060_s5 + $0x2d0] sm:$0xff] }
 0x800   : > { %v28386_v35 = vpop.f32.mrf.mxu1  ;;  %v23542_v52 = vpop.f32.mrf.mxu0 }
 0x802   : > { %v23407_v51 = vpop.f32.mrf.mxu1  ;;  %v28388_v21 = vpop.f32.mrf.mxu0 }
 0x804   : > { %v28390_v10 = vpop.f32.mrf.mxu1  ;;  %v23545_v12 = vpop.f32.mrf.mxu0 }
 0x806   : > { %v23410_v55 = vpop.f32.mrf.mxu1  ;;  %v28392_v6 = vpop.f32.mrf.mxu0 }
 0x808   : > { %v28394_v7 = vpop.f32.mrf.mxu1  ;;  %v23548_v2 = vpop.f32.mrf.mxu0 }
 0x80a   : > { %v23413_v45 = vpop.f32.mrf.mxu1  ;;  %v28396_v24 = vpop.f32.mrf.mxu0 }
 0x80c   : > { %v28398_v34 = vpop.f32.mrf.mxu1  ;;  %v23551_v4 = vpop.f32.mrf.mxu0 }
 0x80e   : > { %v23416_v61 = vpop.f32.mrf.mxu1  ;;  %v28400_v54 = vpop.f32.mrf.mxu0 }
 0x80f   : > { %v21960_v61 = vld [vmem:[%s31060_s5 + $0x2d8] sm:$0xff] }
 0x810   : > { %v28402_v16 = vpop.f32.mrf.mxu1  ;;  %v23554_v60 = vpop.f32.mrf.mxu0 }
 0x812   : > { %v23419_v14 = vpop.f32.mrf.mxu1  ;;  %v28404_v47 = vpop.f32.mrf.mxu0 }
 0x814   : > { %v28406_v20 = vpop.f32.mrf.mxu1  ;;  %v23557_v8 = vpop.f32.mrf.mxu0 }
 0x816   : > { %v16596_v0 = vpop.permute.xlu1 %16595  ;;  %v23422_v48 = vpop.f32.mrf.mxu1 }
 0x817   : > { %23681 = vmatpush3.msra.mxu1 %v16596_v0  ;;  %v28408_v46 = vpop.f32.mrf.mxu0 }
 0x818   : > { %23682 = vmatprep.subr.mxu1 %v31208_v53  ;;  %v28411_v56 = vpop.f32.mrf.mxu1 }
 0x819   : > { %v23560_v52 = vpop.f32.mrf.mxu0 }
 0x81a   : > { %v28416_v51 = vpop.permute.xlu1 %15195  ;;  %v16594_v12 = vpop.permute.xlu0 %16593 }
 0x81b   : > { %v15204_v55 = vsel %vm1040_vm4, %v27796_v40, %v28416_v51  ;;  %23683 = vmatpush3.msra.mxu1 %v16594_v12  ;;  %v23425_v2 = vpop.f32.mrf.mxu1  ;;  %v28421_v45 = vpop.f32.mrf.mxu0 }
 0x81c   : > { %v28425_v4 = vmax.f32 %v15165_v15, %v15204_v55  ;;  %23685 = vmatmul.mubr.msk.f32.vlgmr.msra.gmra.mxu1 %vm15322_vm6, %v21959_v50  ;;  %23778 = vmatprep.subr.mxu1 %v31208_v53  ;;  %v21961_v50 = vld [vmem:[%s31060_s5 + $0x2e0] sm:$0xff] }
 0x81d   : > { %23687 = vmatprep.mubr.msk.f32.mxu1 %vm24755_vm0, %v31208_v53  ;;  %v28434_v40 = vpop.f32.mrf.mxu1  ;;  %v23563_v60 = vpop.f32.mrf.mxu0 }
 0x81e   : > { %15251 = vrot.lane.b32.xlu1 %v28425_v4, %s24764_s19  ;;  %v16818_v39 = vpop.permute.xlu1 %16817  ;;  %v28438_v15 = vpop.permute.xlu0 %15185  ;;  %v21990_v60 = vld [vmem:[%s31060_s5 + $0x350] sm:$0xff] }
 0x81f   : > { %v15200_v14 = vsel %vm1040_vm4, %v27814_v17, %v28438_v15  ;;  %23730 = vmatpush3.msra.mxu0 %v16818_v39  ;;  %v23428_v8 = vpop.f32.mrf.mxu1  ;;  %v28443_v0 = vpop.f32.mrf.mxu0  ;;  %v21989_v17 = vld [vmem:[%s31060_s5 + $0x348] sm:$0xff]  ;;  %vm21018_vm4 = vcmask 687104  }
 0x820   : > { %v28447_v48 = vmax.f32 %v15160_v29, %v15200_v14  ;;  %23688 = vmatmul.mubr.msk.f32.gmra.mxu1 %vm15322_vm6, %v21960_v61  ;;  %23731 = vmatprep.subr.mxu0 %v31208_v53  ;;  %v21962_v61 = vld [vmem:[%s31060_s5 + $0x2e8] sm:$0xff]  ;;  %v15620_v8 = vadd.f32 %v28053_v36, %v28372_v13  ;;  %v21963_v36 = vld [vmem:[%s31060_s5 + $0x2f0] sm:$0xff]  ;;  %v21991_v13 = vld [vmem:[%s31060_s5 + $0x358] sm:$0xff] }
 0x821   : > { %23690 = vmatprep.mubr.msk.f32.mxu1 %vm24755_vm0, %v31208_v53  ;;  %v28459_v52 = vpop.f32.mrf.mxu1  ;;  %v23566_v43 = vpop.f32.mrf.mxu0 }
 0x822   : > { %v17040_v29 = vpop.permute.xlu1 %17039  ;;  %15241 = vrot.lane.b32.xlu1 %v28447_v48, %s24764_s19  ;;  %v16816_v12 = vpop.permute.xlu0 %16815 }
 0x823   : > { %23732 = vmatpush3.msra.mxu0 %v16816_v12  ;;  %23779 = vmatpush3.msra.mxu1 %v17040_v29  ;;  %v23431_v55 = vpop.f32.mrf.mxu1  ;;  %v28463_v2 = vpop.f32.mrf.mxu0 }
 0x824   : > { %23691 = vmatmul.mubr.msk.f32.gmra.mxu1 %vm15322_vm6, %v21961_v50  ;;  %23734 = vmatmul.mubr.msk.f32.vlgmr.msra.gmra.mxu0 %vm15322_vm6, %v21989_v17  ;;  %v15625_v55 = vadd.f32 %v28063_v49, %v28374_v58  ;;  %v21964_v49 = vld [vmem:[%s31060_s5 + $0x2f8] sm:$0xff]  ;;  %v21992_v58 = vld [vmem:[%s31060_s5 + $0x360] sm:$0xff] }
 0x825   : > { %23780 = vmatprep.subr.mxu1 %v31208_v53  ;;  %23693 = vmatprep.mubr.msk.f32.mxu1 %vm24755_vm0, %v31208_v53  ;;  %v28476_v39 = vpop.f32.mrf.mxu1  ;;  %v23569_v14 = vpop.f32.mrf.mxu0 }
 0x826   : > { %v17038_v50 = vpop.permute.xlu0 %17037  ;;  %23736 = vmatprep.mubr.msk.f32.mxu0 %vm24755_vm0, %v31208_v53  ;;  %23827 = vmatprep.subr.mxu0 %v31208_v53 }
 0x827   : > { %23781 = vmatpush3.msra.mxu1 %v17038_v50  ;;  %v23434_v17 = vpop.f32.mrf.mxu1  ;;  %v28483_v43 = vpop.f32.mrf.mxu0 }
 0x828   : > { %23694 = vmatmul.mubr.msk.f32.gmra.mxu1 %vm15322_vm6, %v21962_v61  ;;  %23737 = vmatmul.mubr.msk.f32.gmra.mxu0 %vm15322_vm6, %v21990_v60 }
 0x829   : > { %23696 = vmatprep.mubr.msk.f32.mxu1 %vm24755_vm0, %v31208_v53  ;;  %23739 = vmatprep.mubr.msk.f32.mxu0 %vm24755_vm0, %v31208_v53  ;;  %v15826_v29 = vpop.f32.mrf.mxu1  ;;  %v23572_v12 = vpop.f32.mrf.mxu0 }
 0x82a   : > { %v17262_v61 = vpop.permute.xlu0 %17261  ;;  %v15900_v60 = vadd.f32 %v15826_v29, %v15620_v8  ;;  %23876 = vmatprep.subr.mxu1 %v31208_v53 }
 0x82b   : > { %23828 = vmatpush3.msra.mxu0 %v17262_v61  ;;  %v23490_v14 = vpop.f32.mrf.mxu1  ;;  %v28500_v50 = vpop.f32.mrf.mxu0 }
 0x82c   : > { %23697 = vmatmul.mubr.msk.f32.gmra.mxu1 %vm15322_vm6, %v21963_v36  ;;  %23740 = vmatmul.mubr.msk.f32.gmra.mxu0 %vm15322_vm6, %v21991_v13  ;;  %v28505_v17 = vadd.f32 %v28380_v22, %v15900_v60  ;;  %v15630_v13 = vadd.f32 %v28073_v25, %v28376_v31  ;;  %v21965_v25 = vld [vmem:[%s31060_s5 + $0x300] sm:$0xff]  ;;  %v21993_v31 = vld [vmem:[%s31060_s5 + $0x368] sm:$0xff] }
 0x82d   : > { %23829 = vmatprep.subr.mxu0 %v31208_v53  ;;  %23699 = vmatprep.mubr.msk.f32.mxu1 %vm24755_vm0, %v31208_v53  ;;  %v15831_v8 = vpop.f32.mrf.mxu1  ;;  %v23575_v36 = vpop.f32.mrf.mxu0 }
 0x82e   : > { %v17260_v22 = vpop.permute.xlu0 %17259  ;;  %23742 = vmatprep.mubr.msk.f32.mxu0 %vm24755_vm0, %v31208_v53  ;;  %v15901_v29 = vadd.f32 %v15831_v8, %v15625_v55 }
 0x82f   : > { %23830 = vmatpush3.msra.mxu0 %v17260_v22  ;;  %v23493_v12 = vpop.f32.mrf.mxu1  ;;  %v28520_v61 = vpop.f32.mrf.mxu0 }
 0x830   : > { %23700 = vmatmul.mubr.msk.f32.gmra.mxu1 %vm15322_vm6, %v21964_v49  ;;  %23743 = vmatmul.mubr.msk.f32.gmra.mxu0 %vm15322_vm6, %v21992_v58  ;;  %v28525_v60 = vadd.f32 %v28384_v62, %v15901_v29  ;;  %v15635_v62 = vadd.f32 %v28083_v63, %v28378_v37  ;;  %v21966_v63 = vld [vmem:[%s31060_s5 + $0x308] sm:$0xff]  ;;  %v21994_v37 = vld [vmem:[%s31060_s5 + $0x370] sm:$0xff] }
 0x831   : > { %23702 = vmatprep.mubr.msk.f32.mxu1 %vm24755_vm0, %v31208_v53  ;;  %23745 = vmatprep.mubr.msk.f32.mxu0 %vm24755_vm0, %v31208_v53  ;;  %v15836_v55 = vpop.f32.mrf.mxu1  ;;  %v23578_v14 = vpop.f32.mrf.mxu0 }
 0x832   : > { %v15902_v49 = vadd.f32 %v15836_v55, %v15630_v13  ;;  %23925 = vmatprep.subr.mxu0 %v31208_v53  ;;  %v15645_v55 = vadd.f32 %v28103_v1, %v28386_v35  ;;  %v21996_v1 = vld [vmem:[%s31060_s5 + $0x380] sm:$0xff] }
 0x833   : > { %v23496_v58 = vpop.f32.mrf.mxu1  ;;  %v28540_v8 = vpop.f32.mrf.mxu0 }
 0x834   : > { %23703 = vmatmul.mubr.msk.f32.gmra.mxu1 %vm15322_vm6, %v21965_v25  ;;  %23746 = vmatmul.mubr.msk.f32.gmra.mxu0 %vm15322_vm6, %v21993_v31  ;;  %v28545_v36 = vadd.f32 %v28388_v21, %v15902_v49  ;;  %v15640_v21 = vadd.f32 %v28093_v32, %v28382_v3  ;;  %v21967_v31 = vld [vmem:[%s31060_s5 + $0x310] sm:$0xff]  ;;  %v21995_v32 = vld [vmem:[%s31060_s5 + $0x378] sm:$0xff]  ;;  %v15650_v58 = vadd.f32 %v28113_v28, %v28390_v10  ;;  %v21997_v28 = vld [vmem:[%s31060_s5 + $0x388] sm:$0xff] }
 0x835   : > { %23705 = vmatprep.mubr.msk.f32.mxu1 %vm24755_vm0, %v31208_v53  ;;  %23748 = vmatprep.mubr.msk.f32.mxu0 %vm24755_vm0, %v31208_v53  ;;  %v15841_v13 = vpop.f32.mrf.mxu1  ;;  %v23581_v22 = vpop.f32.mrf.mxu0  ;;  %v21968_v49 = vld [vmem:[%s31060_s5 + $0x318] sm:$0xff] }
 0x836   : > { %v15903_v29 = vadd.f32 %v15841_v13, %v15635_v62  ;;  %v21969_v13 = vld [vmem:[%s31060_s5 + $0x320] sm:$0xff]  ;;  %v15655_v22 = vadd.f32 %v28123_v11, %v28394_v7  ;;  %v21998_v11 = vld [vmem:[%s31060_s5 + $0x390] sm:$0xff] }
 0x837   : > { %v23499_v12 = vpop.f32.mrf.mxu1 }
 0x838   : > { %23706 = vmatmul.mubr.msk.f32.gmra.mxu1 %vm15322_vm6, %v21966_v63  ;;  %23749 = vmatmul.mubr.msk.f32.gmra.mxu0 %vm15322_vm6, %v21994_v37  ;;  %v28562_v25 = vadd.f32 %v28392_v6, %v15903_v29  ;;  %v21970_v12 = vld [vmem:[%s31060_s5 + $0x328] sm:$0xff] }
 0x839   : > { %23708 = vmatprep.mubr.msk.f32.mxu1 %vm24755_vm0, %v31208_v53  ;;  %23751 = vmatprep.mubr.msk.f32.mxu0 %vm24755_vm0, %v31208_v53  ;;  %v15846_v3 = vpop.f32.mrf.mxu1 }
 0x83a   : > { %v15904_v6 = vadd.f32 %v15846_v3, %v15640_v21 }
 0x83b   : > { %v23502_v14 = vpop.f32.mrf.mxu1 }
 0x83c   : > { %23709 = vmatmul.mubr.msk.f32.gmra.mxu1 %vm15322_vm6, %v21967_v31  ;;  %23752 = vmatmul.mubr.msk.f32.gmra.mxu0 %vm15322_vm6, %v21995_v32  ;;  %v28579_v62 = vadd.f32 %v28396_v24, %v15904_v6  ;;  %v15660_v31 = vadd.f32 %v28135_v42, %v28398_v34  ;;  %v21999_v42 = vld [vmem:[%s31060_s5 + $0x398] sm:$0xff]  ;;  %v15665_v6 = vadd.f32 %v28151_v27, %v28402_v16  ;;  %v22000_v27 = vld [vmem:[%s31060_s5 + $0x3a0] sm:$0xff] }
 0x83d   : > { %23711 = vmatprep.mubr.msk.f32.mxu1 %vm24755_vm0, %v31208_v53  ;;  %23754 = vmatprep.mubr.msk.f32.mxu0 %vm24755_vm0, %v31208_v53  ;;  %v15851_v35 = vpop.f32.mrf.mxu1 }
 0x83e   : > { %v15905_v24 = vadd.f32 %v15851_v35, %v15645_v55  ;;  %v21971_v55 = vld [vmem:[%s31060_s5 + $0x330] sm:$0xff]  ;;  %v15670_v35 = vadd.f32 %v28172_v23, %v28406_v20  ;;  %v22001_v23 = vld [vmem:[%s31060_s5 + $0x3a8] sm:$0xff] }
 0x83f   : > { %v23505_v63 = vpop.f32.mrf.mxu1 }
 0x840   : > { %23712 = vmatmul.mubr.msk.f32.gmra.mxu1 %vm15322_vm6, %v21968_v49  ;;  %23755 = vmatmul.mubr.msk.f32.gmra.mxu0 %vm15322_vm6, %v21996_v1  ;;  %v28596_v37 = vadd.f32 %v28400_v54, %v15905_v24  ;;  %v21972_v1 = vld [vmem:[%s31060_s5 + $0x338] sm:$0xff]  ;;  %v21973_v63 = vld [vmem:[%s31060_s5 + $0x340] sm:$0xff] }
 0x841   : > { %23714 = vmatprep.mubr.msk.f32.mxu1 %vm24755_vm0, %v31208_v53  ;;  %23757 = vmatprep.mubr.msk.f32.mxu0 %vm24755_vm0, %v31208_v53  ;;  %v15856_v10 = vpop.f32.mrf.mxu1 }
 0x842   : > { %v15906_v54 = vadd.f32 %v15856_v10, %v15650_v58 }
 0x843   : > { %v23508_v21 = vpop.f32.mrf.mxu1 }
 0x844   : > { %23715 = vmatmul.mubr.msk.f32.gmra.mxu1 %vm15322_vm6, %v21969_v13  ;;  %23758 = vmatmul.mubr.msk.f32.gmra.mxu0 %vm15322_vm6, %v21997_v28  ;;  %v28613_v29 = vadd.f32 %v28404_v47, %v15906_v54  ;;  %v15675_v13 = vadd.f32 %v28191_v57, %v28411_v56  ;;  %v22019_v57 = vld [vmem:[%s31060_s5 + $0x3c0] sm:$0xff]  ;;  %v15680_v54 = vadd.f32 %v28211_v9, %v28434_v40  ;;  %v22020_v9 = vld [vmem:[%s31060_s5 + $0x3c8] sm:$0xff] }
 0x845   : > { %23717 = vmatprep.mubr.msk.f32.mxu1 %vm24755_vm0, %v31208_v53  ;;  %23760 = vmatprep.mubr.msk.f32.mxu0 %vm24755_vm0, %v31208_v53  ;;  %v15861_v7 = vpop.f32.mrf.mxu1 }
 0x846   : > { %v15907_v47 = vadd.f32 %v15861_v7, %v15655_v22  ;;  %v22002_v22 = vld [vmem:[%s31060_s5 + $0x3b0] sm:$0xff]  ;;  %v15685_v7 = vadd.f32 %v28227_v19, %v28459_v52  ;;  %v22049_v19 = vld [vmem:[%s31060_s5 + $0x438] sm:$0xff] }
 0x847   : > { %v23511_v32 = vpop.f32.mrf.mxu1 }
 0x848   : > { %23718 = vmatmul.mubr.msk.f32.gmra.mxu1 %vm15322_vm6, %v21970_v12  ;;  %23761 = vmatmul.mubr.msk.f32.gmra.mxu0 %vm15322_vm6, %v21998_v11  ;;  %v28630_v3 = vadd.f32 %v28408_v46, %v15907_v47  ;;  %v22003_v11 = vld [vmem:[%s31060_s5 + $0x3b8] sm:$0xff]  ;;  %v22021_v32 = vld [vmem:[%s31060_s5 + $0x3d0] sm:$0xff] }
 0x849   : > { %23720 = vmatprep.mubr.msk.f32.mxu1 %vm24755_vm0, %v31208_v53  ;;  %23763 = vmatprep.mubr.msk.f32.mxu0 %vm24755_vm0, %v31208_v53  ;;  %v15866_v34 = vpop.f32.mrf.mxu1 }
 0x84a   : > { %v15908_v46 = vadd.f32 %v15866_v34, %v15660_v31 }
 0x84b   : > { %v23514_v14 = vpop.f32.mrf.mxu1 }
 0x84c   : > { %23721 = vmatmul.mubr.msk.f32.gmra.mxu1 %vm15322_vm6, %v21971_v55  ;;  %23764 = vmatmul.mubr.msk.f32.gmra.mxu0 %vm15322_vm6, %v21999_v42  ;;  %v28647_v49 = vadd.f32 %v28421_v45, %v15908_v46  ;;  %v15690_v55 = vadd.f32 %v28242_v18, %v28476_v39  ;;  %v22050_v18 = vld [vmem:[%s31060_s5 + $0x440] sm:$0xff] }
 0x84d   : > { %23723 = vmatprep.mubr.msk.f32.mxu1 %vm24755_vm0, %v31208_v53  ;;  %23766 = vmatprep.mubr.msk.f32.mxu0 %vm24755_vm0, %v31208_v53  ;;  %v15871_v16 = vpop.f32.mrf.mxu1 }
 0x84e   : > { %v15909_v45 = vadd.f32 %v15871_v16, %v15665_v6  ;;  %v22022_v6 = vld [vmem:[%s31060_s5 + $0x3d8] sm:$0xff]  ;;  %v22052_v16 = vld [vmem:[%s31060_s5 + $0x450] sm:$0xff] }
 0x84f   : > { %v23517_v58 = vpop.f32.mrf.mxu1 }
 0x850   : > { %23724 = vmatmul.mubr.msk.f32.gmra.mxu1 %vm15322_vm6, %v21972_v1  ;;  %23767 = vmatmul.mubr.msk.f32.gmra.mxu0 %vm15322_vm6, %v22000_v27  ;;  %v28664_v24 = vadd.f32 %v28443_v0, %v15909_v45  ;;  %v22023_v1 = vld [vmem:[%s31060_s5 + $0x3e0] sm:$0xff]  ;;  %v22051_v27 = vld [vmem:[%s31060_s5 + $0x448] sm:$0xff] }
 0x851   : > { %23726 = vmatprep.mubr.msk.f32.mxu1 %vm24755_vm0, %v31208_v53  ;;  %23769 = vmatprep.mubr.msk.f32.mxu0 %vm24755_vm0, %v31208_v53  ;;  %v15876_v20 = vpop.f32.mrf.mxu1 }
 0x852   : > { %v15910_v0 = vadd.f32 %v15876_v20, %v15670_v35  ;;  %v22025_v20 = vld [vmem:[%s31060_s5 + $0x3f0] sm:$0xff] }
 0x853   : > { %v23520_v28 = vpop.f32.mrf.mxu1 }
 0x854   : > { %23727 = vmatmul.mubr.msk.f32.gmra.mxu1 %vm15322_vm6, %v21973_v63  ;;  %23770 = vmatmul.mubr.msk.f32.gmra.mxu0 %vm15322_vm6, %v22001_v23  ;;  %v28681_v10 = vadd.f32 %v28463_v2, %v15910_v0 }
 0x855   : > { %23772 = vmatprep.mubr.msk.f32.mxu0 %vm24755_vm0, %v31208_v53  ;;  %23782 = vmatprep.mubr.msk.f32.mxu1 %vm24755_vm0, %v31208_v53  ;;  %v15881_v56 = vpop.f32.mrf.mxu1 }
 0x856   : > { %v15911_v2 = vadd.f32 %v15881_v56, %v15675_v13 }
 0x857   : > { %v23523_v21 = vpop.f32.mrf.mxu1 }
 0x858   : > { %23773 = vmatmul.mubr.msk.f32.gmra.mxu0 %vm15322_vm6, %v22002_v22  ;;  %23783 = vmatmul.mubr.msk.f32.vlgmr.msra.gmra.mxu1 %vm15322_vm6, %v22019_v57  ;;  %v28698_v12 = vadd.f32 %v28483_v43, %v15911_v2 }
 0x859   : > { %23775 = vmatprep.mubr.msk.f32.mxu0 %vm24755_vm0, %v31208_v53  ;;  %23785 = vmatprep.mubr.msk.f32.mxu1 %vm24755_vm0, %v31208_v53  ;;  %v15886_v40 = vpop.f32.mrf.mxu1 }
 0x85a   : > { %v15912_v43 = vadd.f32 %v15886_v40, %v15680_v54  ;;  %v22026_v54 = vld [vmem:[%s31060_s5 + $0x3f8] sm:$0xff] }
 0x85b   : > { %v23526_v31 = vpop.f32.mrf.mxu1 }
 0x85c   : > { %23776 = vmatmul.mubr.msk.f32.gmra.mxu0 %vm15322_vm6, %v22003_v11  ;;  %23786 = vmatmul.mubr.msk.f32.gmra.mxu1 %vm15322_vm6, %v22020_v9  ;;  %v28715_v47 = vadd.f32 %v28500_v50, %v15912_v43  ;;  %v22027_v43 = vld [vmem:[%s31060_s5 + $0x400] sm:$0xff] }
 0x85d   : > { %23788 = vmatprep.mubr.msk.f32.mxu1 %vm24755_vm0, %v31208_v53  ;;  %23831 = vmatprep.mubr.msk.f32.mxu0 %vm24755_vm0, %v31208_v53  ;;  %v15891_v52 = vpop.f32.mrf.mxu1 }
 0x85e   : > { %v15913_v50 = vadd.f32 %v15891_v52, %v15685_v7 }
 0x85f   : > { %v23529_v42 = vpop.f32.mrf.mxu1 }
 0x860   : > { %23789 = vmatmul.mubr.msk.f32.gmra.mxu1 %vm15322_vm6, %v22021_v32  ;;  %23832 = vmatmul.mubr.msk.f32.vlgmr.msra.gmra.mxu0 %vm15322_vm6, %v22049_v19  ;;  %v28732_v34 = vadd.f32 %v28520_v61, %v15913_v50  ;;  %v22028_v42 = vld [vmem:[%s31060_s5 + $0x408] sm:$0xff] }
 0x861   : > { %23791 = vmatprep.mubr.msk.f32.mxu1 %vm24755_vm0, %v31208_v53  ;;  %23834 = vmatprep.mubr.msk.f32.mxu0 %vm24755_vm0, %v31208_v53  ;;  %v15896_v39 = vpop.f32.mrf.mxu1 }
 0x862   : > { %v15914_v46 = vadd.f32 %v15896_v39, %v15690_v55 }
 0x863   : > { %v23532_v14 = vpop.f32.mrf.mxu1 }
 0x864   : > { %23792 = vmatmul.mubr.msk.f32.gmra.mxu1 %vm15322_vm6, %v22022_v6  ;;  %23835 = vmatmul.mubr.msk.f32.gmra.mxu0 %vm15322_vm6, %v22050_v18  ;;  %v28747_v61 = vadd.f32 %v28540_v8, %v15914_v46  ;;  %v22024_v8 = vld [vmem:[%s31060_s5 + $0x3e8] sm:$0xff] }
 0x865   : > { %23794 = vmatprep.mubr.msk.f32.mxu1 %vm24755_vm0, %v31208_v53  ;;  %23837 = vmatprep.mubr.msk.f32.mxu0 %vm24755_vm0, %v31208_v53 }
 0x868   : > { %23795 = vmatmul.mubr.msk.f32.gmra.mxu1 %vm15322_vm6, %v22023_v1  ;;  %23838 = vmatmul.mubr.msk.f32.gmra.mxu0 %vm15322_vm6, %v22051_v27  ;;  %v22029_v27 = vld [vmem:[%s31060_s5 + $0x410] sm:$0xff] }
 0x869   : > { %23797 = vmatprep.mubr.msk.f32.mxu1 %vm24755_vm0, %v31208_v53  ;;  %23840 = vmatprep.mubr.msk.f32.mxu0 %vm24755_vm0, %v31208_v53 }
 0x86a   : > { %v16270_v35 = vpop.f32.mrf.mxu1  ;;  %v16486_v45 = vpop.f32.mrf.mxu0 }
 0x86b   : > { %v16344_v58 = vadd.f32 %v16270_v35, %v28505_v17  ;;  %v22053_v17 = vld [vmem:[%s31060_s5 + $0x458] sm:$0xff] }
 0x86c   : > { %23798 = vmatmul.mubr.msk.f32.gmra.mxu1 %vm15322_vm6, %v22024_v8  ;;  %23841 = vmatmul.mubr.msk.f32.gmra.mxu0 %vm15322_vm6, %v22052_v16  ;;  %v23588_v63 = vpop.f32.mrf.mxu1  ;;  %v23637_v23 = vpop.f32.mrf.mxu0 }
 0x86d   : > { %23800 = vmatprep.mubr.msk.f32.mxu1 %vm24755_vm0, %v31208_v53  ;;  %23843 = vmatprep.mubr.msk.f32.mxu0 %vm24755_vm0, %v31208_v53  ;;  %v28784_v13 = vadd.f32 %v16486_v45, %v16344_v58  ;;  %v22030_v23 = vld [vmem:[%s31060_s5 + $0x418] sm:$0xff] }
 0x86e   : > { %v16275_v0 = vpop.f32.mrf.mxu1  ;;  %v16491_v28 = vpop.f32.mrf.mxu0 }
 0x86f   : > { %v16345_v22 = vadd.f32 %v16275_v0, %v28525_v60  ;;  %v22054_v60 = vld [vmem:[%s31060_s5 + $0x460] sm:$0xff] }
 0x870   : > { %23801 = vmatmul.mubr.msk.f32.gmra.mxu1 %vm15322_vm6, %v22025_v20  ;;  %23844 = vmatmul.mubr.msk.f32.gmra.mxu0 %vm15322_vm6, %v22053_v17  ;;  %v23591_v57 = vpop.f32.mrf.mxu1  ;;  %v23640_v56 = vpop.f32.mrf.mxu0 }
 0x871   : > { %23803 = vmatprep.mubr.msk.f32.mxu1 %vm24755_vm0, %v31208_v53  ;;  %23846 = vmatprep.mubr.msk.f32.mxu0 %vm24755_vm0, %v31208_v53  ;;  %v28799_v2 = vadd.f32 %v16491_v28, %v16345_v22  ;;  %v22031_v56 = vld [vmem:[%s31060_s5 + $0x420] sm:$0xff] }
 0x872   : > { %v16280_v21 = vpop.f32.mrf.mxu1  ;;  %v16496_v11 = vpop.f32.mrf.mxu0 }
 0x873   : > { %v16346_v9 = vadd.f32 %v16280_v21, %v28545_v36  ;;  %v22055_v36 = vld [vmem:[%s31060_s5 + $0x468] sm:$0xff] }
 0x874   : > { %23804 = vmatmul.mubr.msk.f32.gmra.mxu1 %vm15322_vm6, %v22026_v54  ;;  %23847 = vmatmul.mubr.msk.f32.gmra.mxu0 %vm15322_vm6, %v22054_v60  ;;  %v23594_v40 = vpop.f32.mrf.mxu1  ;;  %v23643_v7 = vpop.f32.mrf.mxu0 }
 0x875   : > { %23806 = vmatprep.mubr.msk.f32.mxu1 %vm24755_vm0, %v31208_v53  ;;  %23849 = vmatprep.mubr.msk.f32.mxu0 %vm24755_vm0, %v31208_v53  ;;  %v28814_v31 = vadd.f32 %v16496_v11, %v16346_v9  ;;  %v22032_v7 = vld [vmem:[%s31060_s5 + $0x428] sm:$0xff] }
 0x876   : > { %v16285_v32 = vpop.f32.mrf.mxu1  ;;  %v16501_v19 = vpop.f32.mrf.mxu0 }
 0x877   : > { %v16347_v52 = vadd.f32 %v16285_v32, %v28562_v25  ;;  %v22056_v25 = vld [vmem:[%s31060_s5 + $0x470] sm:$0xff] }
 0x878   : > { %23807 = vmatmul.mubr.msk.f32.gmra.mxu1 %vm15322_vm6, %v22027_v43  ;;  %23850 = vmatmul.mubr.msk.f32.gmra.mxu0 %vm15322_vm6, %v22055_v36  ;;  %v23597_v55 = vpop.f32.mrf.mxu1  ;;  %v23646_v50 = vpop.f32.mrf.mxu0 }
 0x879   : > { %23809 = vmatprep.mubr.msk.f32.mxu1 %vm24755_vm0, %v31208_v53  ;;  %23852 = vmatprep.mubr.msk.f32.mxu0 %vm24755_vm0, %v31208_v53  ;;  %v28829_v6 = vadd.f32 %v16501_v19, %v16347_v52  ;;  %v22033_v50 = vld [vmem:[%s31060_s5 + $0x430] sm:$0xff] }
 0x87a   : > { %v16290_v18 = vpop.f32.mrf.mxu1  ;;  %v16506_v39 = vpop.f32.mrf.mxu0 }
 0x87b   : > { %v16348_v46 = vadd.f32 %v16290_v18, %v28579_v62  ;;  %v22057_v62 = vld [vmem:[%s31060_s5 + $0x478] sm:$0xff] }
 0x87c   : > { %23810 = vmatmul.mubr.msk.f32.gmra.mxu1 %vm15322_vm6, %v22028_v42  ;;  %23853 = vmatmul.mubr.msk.f32.gmra.mxu0 %vm15322_vm6, %v22056_v25  ;;  %v23600_v14 = vpop.f32.mrf.mxu1  ;;  %v23649_v1 = vpop.f32.mrf.mxu0 }
 0x87d   : > { %23812 = vmatprep.mubr.msk.f32.mxu1 %vm24755_vm0, %v31208_v53  ;;  %23855 = vmatprep.mubr.msk.f32.mxu0 %vm24755_vm0, %v31208_v53  ;;  %v28844_v8 = vadd.f32 %v16506_v39, %v16348_v46 }
 0x87e   : > { %v16295_v16 = vpop.f32.mrf.mxu1  ;;  %v16511_v35 = vpop.f32.mrf.mxu0 }
 0x87f   : > { %v16349_v45 = vadd.f32 %v16295_v16, %v28596_v37  ;;  %v22058_v37 = vld [vmem:[%s31060_s5 + $0x480] sm:$0xff] }
 0x880   : > { %23813 = vmatmul.mubr.msk.f32.gmra.mxu1 %vm15322_vm6, %v22029_v27  ;;  %23856 = vmatmul.mubr.msk.f32.gmra.mxu0 %vm15322_vm6, %v22057_v62  ;;  %v23603_v58 = vpop.f32.mrf.mxu1  ;;  %v23652_v63 = vpop.f32.mrf.mxu0  ;;  %v22062_v27 = vld [vmem:[%s31060_s5 + $0x4a0] sm:$0xff] }
 0x881   : > { %23815 = vmatprep.mubr.msk.f32.mxu1 %vm24755_vm0, %v31208_v53  ;;  %23858 = vmatprep.mubr.msk.f32.mxu0 %vm24755_vm0, %v31208_v53  ;;  %v28859_v20 = vadd.f32 %v16511_v35, %v16349_v45 }
 0x882   : > { %v16300_v17 = vpop.f32.mrf.mxu1  ;;  %v16516_v0 = vpop.f32.mrf.mxu0 }
 0x883   : > { %v16350_v28 = vadd.f32 %v16300_v17, %v28613_v29  ;;  %v22059_v29 = vld [vmem:[%s31060_s5 + $0x488] sm:$0xff] }
 0x884   : > { %23816 = vmatmul.mubr.msk.f32.gmra.mxu1 %vm15322_vm6, %v22030_v23  ;;  %23859 = vmatmul.mubr.msk.f32.gmra.mxu0 %vm15322_vm6, %v22058_v37  ;;  %v23606_v22 = vpop.f32.mrf.mxu1  ;;  %v23655_v57 = vpop.f32.mrf.mxu0  ;;  %v22063_v17 = vld [vmem:[%s31060_s5 + $0x4a8] sm:$0xff] }
 0x885   : > { %23818 = vmatprep.mubr.msk.f32.mxu1 %vm24755_vm0, %v31208_v53  ;;  %23861 = vmatprep.mubr.msk.f32.mxu0 %vm24755_vm0, %v31208_v53  ;;  %v28874_v54 = vadd.f32 %v16516_v0, %v16350_v28 }
 0x886   : > { %v16305_v60 = vpop.f32.mrf.mxu1  ;;  %v16521_v21 = vpop.f32.mrf.mxu0 }
 0x887   : > { %v16351_v11 = vadd.f32 %v16305_v60, %v28630_v3  ;;  %v22060_v3 = vld [vmem:[%s31060_s5 + $0x490] sm:$0xff] }
 0x888   : > { %23819 = vmatmul.mubr.msk.f32.gmra.mxu1 %vm15322_vm6, %v22031_v56  ;;  %23862 = vmatmul.mubr.msk.f32.gmra.mxu0 %vm15322_vm6, %v22059_v29  ;;  %v23609_v9 = vpop.f32.mrf.mxu1  ;;  %v23658_v40 = vpop.f32.mrf.mxu0 }
 0x889   : > { %23821 = vmatprep.mubr.msk.f32.mxu1 %vm24755_vm0, %v31208_v53  ;;  %23864 = vmatprep.mubr.msk.f32.mxu0 %vm24755_vm0, %v31208_v53  ;;  %v28889_v43 = vadd.f32 %v16521_v21, %v16351_v11 }
 0x88a   : > { %v16310_v36 = vpop.f32.mrf.mxu1  ;;  %v16526_v32 = vpop.f32.mrf.mxu0 }
 0x88b   : > { %v16352_v19 = vadd.f32 %v16310_v36, %v28647_v49  ;;  %v22061_v49 = vld [vmem:[%s31060_s5 + $0x498] sm:$0xff] }
 0x88c   : > { %23822 = vmatmul.mubr.msk.f32.gmra.mxu1 %vm15322_vm6, %v22032_v7  ;;  %23865 = vmatmul.mubr.msk.f32.gmra.mxu0 %vm15322_vm6, %v22060_v3  ;;  %v23612_v52 = vpop.f32.mrf.mxu1  ;;  %v23661_v55 = vpop.f32.mrf.mxu0  ;;  %v28967_v7 = vmax.f32 %v15166_v59, %v28416_v51  ;;  %v22081_v3 = vld [vmem:[%s31060_s5 + $0x4c0] sm:$0xff] }
 0x88d   : > { %23824 = vmatprep.mubr.msk.f32.mxu1 %vm24755_vm0, %v31208_v53  ;;  %23867 = vmatprep.mubr.msk.f32.mxu0 %vm24755_vm0, %v31208_v53  ;;  %v28904_v42 = vadd.f32 %v16526_v32, %v16352_v19  ;;  %v28984_v19 = vmax.f32 %v15161_v38, %v28438_v15 }
 0x88e   : > { %v16315_v25 = vpop.f32.mrf.mxu1  ;;  %v16531_v18 = vpop.f32.mrf.mxu0 }
 0x88f   : > { %v16353_v39 = vadd.f32 %v16315_v25, %v28664_v24  ;;  %v22085_v25 = vld [vmem:[%s31060_s5 + $0x4e0] sm:$0xff] }
 0x890   : > { %v28907_v46 = vpop.permute.xlu1 %15251  ;;  %23825 = vmatmul.mubr.msk.f32.gmra.mxu1 %vm15322_vm6, %v22033_v50  ;;  %23868 = vmatmul.mubr.msk.f32.gmra.mxu0 %vm15322_vm6, %v22061_v49  ;;  %v23615_v14 = vpop.f32.mrf.mxu1  ;;  %v22083_v49 = vld [vmem:[%s31060_s5 + $0x4d0] sm:$0xff] }
 0x891   : > { %v15261_v1 = vsel %vm3698_vm12, %v28138_v5, %v28907_v46  ;;  %23870 = vmatprep.mubr.msk.f32.mxu0 %vm24755_vm0, %v31208_v53  ;;  %23880 = vmatprep.mubr.msk.f32.mxu1 %vm24755_vm0, %v31208_v53  ;;  %v28921_v24 = vadd.f32 %v16531_v18, %v16353_v39  ;;  %v23664_v62 = vpop.f32.mrf.mxu0  ;;  %v22086_v18 = vld [vmem:[%s31060_s5 + $0x4e8] sm:$0xff]  ;;  %v22087_v39 = vld [vmem:[%s31060_s5 + $0x4f0] sm:$0xff]  ;;  %v22088_v14 = vld [vmem:[%s31060_s5 + $0x4f8] sm:$0xff] }
 0x892   : > { %v15280_v16 = vmax.f32 %v27803_v44, %v15261_v1  ;;  %v16320_v35 = vpop.f32.mrf.mxu1  ;;  %v22089_v1 = vld [vmem:[%s31060_s5 + $0x500] sm:$0xff]  ;;  %v22091_v62 = vld [vmem:[%s31060_s5 + $0x510] sm:$0xff] }
 0x893   : > { %v16354_v45 = vadd.f32 %v16320_v35, %v28681_v10  ;;  %v16536_v58 = vpop.f32.mrf.mxu0  ;;  %v22093_v35 = vld [vmem:[%s31060_s5 + $0x520] sm:$0xff] }
 0x894   : > { %17701 = vrot.lane.b32.xlu1 %v15280_v16, %s24758_s26  ;;  %v28926_v5 = vpop.permute.xlu1 %15241  ;;  %23871 = vmatmul.mubr.msk.f32.gmra.mxu0 %vm15322_vm6, %v22062_v27  ;;  %v23618_v63 = vpop.f32.mrf.mxu1  ;;  %v22090_v27 = vld [vmem:[%s31060_s5 + $0x508] sm:$0xff] }
 0x895   : > { %v15257_v23 = vsel %vm3698_vm12, %v28153_v30, %v28926_v5  ;;  %23877 = vmatpush3.msra.mxu1 %v15280_v16  ;;  %23873 = vmatprep.mubr.msk.f32.mxu0 %vm24755_vm0, %v31208_v53  ;;  %v28934_v44 = vadd.f32 %v16536_v58, %v16354_v45  ;;  %v23667_v37 = vpop.f32.mrf.mxu0  ;;  %v22079_v30 = vld [vmem:[%s31060_s5 + $0x4b0] sm:$0xff] }
 0x896   : > { %v15275_v10 = vmax.f32 %v27821_v33, %v15257_v23  ;;  %23878 = vmatprep.subr.mxu1 %v31208_v53  ;;  %v16325_v0 = vpop.f32.mrf.mxu1 }
 0x897   : > { %v16355_v28 = vadd.f32 %v16325_v0, %v28698_v12  ;;  %v16541_v22 = vpop.f32.mrf.mxu0  ;;  %v22080_v12 = vld [vmem:[%s31060_s5 + $0x4b8] sm:$0xff] }
 0x898   : > { %17923 = vrot.lane.b32.xlu1 %v15280_v16, %s24776_s27  ;;  %17699 = vrot.lane.b32.xlu0 %v15275_v10, %s24758_s26  ;;  %v23621_v57 = vpop.f32.mrf.mxu1 }
 0x899   : > { %23874 = vmatmul.mubr.msk.f32.gmra.mxu0 %vm15322_vm6, %v22063_v17  ;;  %23879 = vmatpush3.msra.mxu1 %v15275_v10  ;;  %v28948_v33 = vadd.f32 %v16541_v22, %v16355_v28  ;;  %v23670_v56 = vpop.f32.mrf.mxu0 }
 0x89a   : > { %23881 = vmatmul.mubr.msk.f32.vlgmr.msra.gmra.mxu1 %vm15322_vm6, %v22079_v30  ;;  %v16330_v29 = vpop.f32.mrf.mxu1  ;;  %23974 = vmatprep.subr.mxu1 %v31208_v53 }
 0x89b   : > { %23883 = vmatprep.mubr.msk.f32.mxu1 %vm24755_vm0, %v31208_v53  ;;  %v16356_v60 = vadd.f32 %v16330_v29, %v28715_v47  ;;  %v16546_v21 = vpop.f32.mrf.mxu0  ;;  %23929 = vmatprep.mubr.msk.f32.mxu0 %vm24755_vm0, %v31208_v53 }
 0x89c   : > { %18145 = vrot.lane.b32.xlu1 %v15280_v16, %s24779_s25  ;;  %17921 = vrot.lane.b32.xlu0 %v15275_v10, %s24776_s27  ;;  %v23624_v11 = vpop.f32.mrf.mxu1 }
 0x89d   : > { %v28962_v9 = vadd.f32 %v16546_v21, %v16356_v60  ;;  %v23673_v40 = vpop.f32.mrf.mxu0 }
 0x89e   : > { %23884 = vmatmul.mubr.msk.f32.gmra.mxu1 %vm15322_vm6, %v22080_v12  ;;  %v16335_v47 = vpop.f32.mrf.mxu1 }
 0x89f   : > { %23886 = vmatprep.mubr.msk.f32.mxu1 %vm24755_vm0, %v31208_v53  ;;  %v16357_v36 = vadd.f32 %v16335_v47, %v28732_v34  ;;  %v16551_v32 = vpop.f32.mrf.mxu0  ;;  %v22082_v34 = vld [vmem:[%s31060_s5 + $0x4c8] sm:$0xff] }
 0x8a0   : > { %18143 = vrot.lane.b32.xlu1 %v15275_v10, %s24779_s25  ;;  %15253 = vrot.lane.b32.xlu0 %v28967_v7, %s24764_s19  ;;  %v23627_v41 = vpop.f32.mrf.mxu1 }
 0x8a1   : > { %v28979_v59 = vadd.f32 %v16551_v32, %v16357_v36  ;;  %v23676_v51 = vpop.f32.mrf.mxu0 }
 0x8a2   : > { %23887 = vmatmul.mubr.msk.f32.gmra.mxu1 %vm15322_vm6, %v22081_v3  ;;  %v16340_v52 = vpop.f32.mrf.mxu1 }
 0x8a3   : > { %23889 = vmatprep.mubr.msk.f32.mxu1 %vm24755_vm0, %v31208_v53  ;;  %v16358_v55 = vadd.f32 %v16340_v52, %v28747_v61  ;;  %v16556_v50 = vpop.f32.mrf.mxu0  ;;  %v22084_v61 = vld [vmem:[%s31060_s5 + $0x4d8] sm:$0xff] }
 0x8a4   : > { %15243 = vrot.lane.b32.xlu1 %v28984_v19, %s24764_s19  ;;  %18367 = vrot.lane.b32.xlu0 %v15280_v16, %s24780_s14  ;;  %v23630_v26 = vpop.f32.mrf.mxu1  ;;  %v22092_v16 = vld [vmem:[%s31060_s5 + $0x518] sm:$0xff] }
 0x8a5   : > { %v28996_v38 = vadd.f32 %v16556_v50, %v16358_v55  ;;  %v23679_v15 = vpop.f32.mrf.mxu0 }
 0x8a6   : > { %23890 = vmatmul.mubr.msk.f32.gmra.mxu1 %vm15322_vm6, %v22082_v34 }
 0x8a7   : > { %23892 = vmatprep.mubr.msk.f32.mxu1 %vm24755_vm0, %v31208_v53 }
 0x8a8   : > { %18365 = vrot.lane.b32.xlu0 %v15275_v10, %s24780_s14 }
 0x8aa   : > { %23893 = vmatmul.mubr.msk.f32.gmra.mxu1 %vm15322_vm6, %v22083_v49 }
 0x8ab   : > { %23895 = vmatprep.mubr.msk.f32.mxu1 %vm24755_vm0, %v31208_v53 }
 0x8ae   : > { %23896 = vmatmul.mubr.msk.f32.gmra.mxu1 %vm15322_vm6, %v22084_v61 }
 0x8af   : > { %23898 = vmatprep.mubr.msk.f32.mxu1 %vm24755_vm0, %v31208_v53 }
 0x8b2   : > { %23899 = vmatmul.mubr.msk.f32.gmra.mxu1 %vm15322_vm6, %v22085_v25 }
 0x8b3   : > { %23901 = vmatprep.mubr.msk.f32.mxu1 %vm24755_vm0, %v31208_v53 }
 0x8b6   : > { %23902 = vmatmul.mubr.msk.f32.gmra.mxu1 %vm15322_vm6, %v22086_v18 }
 0x8b7   : > { %23904 = vmatprep.mubr.msk.f32.mxu1 %vm24755_vm0, %v31208_v53 }
 0x8ba   : > { %23905 = vmatmul.mubr.msk.f32.gmra.mxu1 %vm15322_vm6, %v22087_v39 }
 0x8bb   : > { %23907 = vmatprep.mubr.msk.f32.mxu1 %vm24755_vm0, %v31208_v53 }
 0x8be   : > { %23908 = vmatmul.mubr.msk.f32.gmra.mxu1 %vm15322_vm6, %v22088_v14 }
 0x8bf   : > { %23910 = vmatprep.mubr.msk.f32.mxu1 %vm24755_vm0, %v31208_v53 }
 0x8c2   : > { %23911 = vmatmul.mubr.msk.f32.gmra.mxu1 %vm15322_vm6, %v22089_v1 }
 0x8c3   : > { %23913 = vmatprep.mubr.msk.f32.mxu1 %vm24755_vm0, %v31208_v53 }
 0x8c6   : > { %23914 = vmatmul.mubr.msk.f32.gmra.mxu1 %vm15322_vm6, %v22090_v27 }
 0x8c7   : > { %23916 = vmatprep.mubr.msk.f32.mxu1 %vm24755_vm0, %v31208_v53 }
 0x8ca   : > { %23917 = vmatmul.mubr.msk.f32.gmra.mxu1 %vm15322_vm6, %v22091_v62 }
 0x8cb   : > { %23919 = vmatprep.mubr.msk.f32.mxu1 %vm24755_vm0, %v31208_v53 }
 0x8ce   : > { %23920 = vmatmul.mubr.msk.f32.gmra.mxu1 %vm15322_vm6, %v22092_v16 }
 0x8cf   : > { %23922 = vmatprep.mubr.msk.f32.mxu1 %vm24755_vm0, %v31208_v53 }
 0x8d2   : > { %23923 = vmatmul.mubr.msk.f32.gmra.mxu1 %vm15322_vm6, %v22093_v35 }
 0x8d3   : > { %23978 = vmatprep.mubr.msk.f32.mxu1 %vm24755_vm0, %v31208_v53 }
 0x8dc   : > { %v16710_v45 = vpop.f32.mrf.mxu1 }
 0x8dd   : > { %v16784_v58 = vadd.f32 %v16710_v45, %v28784_v13 }
 0x8de   : > { %v23686_v63 = vpop.f32.mrf.mxu1 }
 0x8e0   : > { %v16715_v23 = vpop.f32.mrf.mxu1 }
 0x8e1   : > { %v16785_v37 = vadd.f32 %v16715_v23, %v28799_v2 }
 0x8e2   : > { %v23689_v10 = vpop.f32.mrf.mxu1 }
 0x8e4   : > { %v16720_v17 = vpop.f32.mrf.mxu1  ;;  %v16932_v0 = vpop.f32.mrf.mxu0 }
 0x8e5   : > { %v16786_v30 = vadd.f32 %v16720_v17, %v28814_v31  ;;  %v29071_v28 = vadd.f32 %v16932_v0, %v16784_v58 }
 0x8e6   : > { %v23692_v22 = vpop.f32.mrf.mxu1  ;;  %v23735_v57 = vpop.f32.mrf.mxu0 }
 0x8e8   : > { %v16725_v56 = vpop.f32.mrf.mxu1  ;;  %v16937_v29 = vpop.f32.mrf.mxu0 }
 0x8e9   : > { %v16787_v12 = vadd.f32 %v16725_v56, %v28829_v6  ;;  %v29074_v60 = vadd.f32 %v16937_v29, %v16785_v37 }
 0x8ea   : > { %v23695_v13 = vpop.f32.mrf.mxu1  ;;  %v23738_v21 = vpop.f32.mrf.mxu0 }
 0x8ec   : > { %v16730_v11 = vpop.f32.mrf.mxu1  ;;  %v16942_v40 = vpop.f32.mrf.mxu0 }
 0x8ed   : > { %v16788_v2 = vadd.f32 %v16730_v11, %v28844_v8  ;;  %v29077_v47 = vadd.f32 %v16942_v40, %v16786_v30 }
 0x8ee   : > { %v23698_v3 = vpop.f32.mrf.mxu1  ;;  %v23741_v31 = vpop.f32.mrf.mxu0 }
 0x8f0   : > { %v16735_v36 = vpop.f32.mrf.mxu1  ;;  %v16947_v32 = vpop.f32.mrf.mxu0 }
 0x8f1   : > { %v16789_v41 = vadd.f32 %v16735_v36, %v28859_v20  ;;  %v29080_v51 = vadd.f32 %v16947_v32, %v16787_v12  ;;  %v22110_v32 = vld [vmem:[%s31060_s5 + $0x530] sm:$0xff] }
 0x8f2   : > { %v23701_v52 = vpop.f32.mrf.mxu1  ;;  %v23744_v6 = vpop.f32.mrf.mxu0 }
 0x8f4   : > { %v16740_v34 = vpop.f32.mrf.mxu1  ;;  %v16952_v55 = vpop.f32.mrf.mxu0 }
 0x8f5   : > { %v16790_v50 = vadd.f32 %v16740_v34, %v28874_v54  ;;  %v29083_v26 = vadd.f32 %v16952_v55, %v16788_v2 }
 0x8f6   : > { %v23704_v15 = vpop.f32.mrf.mxu1  ;;  %v23747_v8 = vpop.f32.mrf.mxu0 }
 0x8f8   : > { %v16745_v49 = vpop.f32.mrf.mxu1  ;;  %v16957_v61 = vpop.f32.mrf.mxu0 }
 0x8f9   : > { %v16791_v25 = vadd.f32 %v16745_v49, %v28889_v43  ;;  %v29086_v18 = vadd.f32 %v16957_v61, %v16789_v41  ;;  %v22111_v49 = vld [vmem:[%s31060_s5 + $0x538] sm:$0xff] }
 0x8fa   : > { %v23707_v39 = vpop.f32.mrf.mxu1  ;;  %v23750_v20 = vpop.f32.mrf.mxu0 }
 0x8fc   : > { %v16750_v14 = vpop.f32.mrf.mxu1  ;;  %v16962_v1 = vpop.f32.mrf.mxu0 }
 0x8fd   : > { %v16792_v27 = vadd.f32 %v16750_v14, %v28904_v42  ;;  %v29089_v62 = vadd.f32 %v16962_v1, %v16790_v50 }
 0x8fe   : > { %v23710_v16 = vpop.f32.mrf.mxu1  ;;  %v23753_v54 = vpop.f32.mrf.mxu0 }
 0x900   : > { %v16755_v35 = vpop.f32.mrf.mxu1  ;;  %v16967_v45 = vpop.f32.mrf.mxu0 }
 0x901   : > { %v16793_v58 = vadd.f32 %v16755_v35, %v28921_v24  ;;  %v29092_v63 = vadd.f32 %v16967_v45, %v16791_v25 }
 0x902   : > { %v23713_v23 = vpop.f32.mrf.mxu1  ;;  %v23756_v43 = vpop.f32.mrf.mxu0 }
 0x904   : > { %v16760_v37 = vpop.f32.mrf.mxu1  ;;  %v16972_v10 = vpop.f32.mrf.mxu0 }
 0x905   : > { %v16794_v17 = vadd.f32 %v16760_v37, %v28934_v44  ;;  %v29095_v0 = vadd.f32 %v16972_v10, %v16792_v27  ;;  %v22109_v44 = vld [vmem:[%s31060_s5 + $0x528] sm:$0xff] }
 0x906   : > { %v23716_v30 = vpop.f32.mrf.mxu1  ;;  %v17702_v42 = vpop.permute.xlu1 %17701 }
 0x907   : > { %v23759_v22 = vpop.f32.mrf.mxu0  ;;  %23926 = vmatpush3.msra.mxu0 %v17702_v42 }
 0x908   : > { %v16765_v57 = vpop.f32.mrf.mxu1  ;;  %23927 = vmatprep.subr.mxu0 %v31208_v53 }
 0x909   : > { %v16795_v56 = vadd.f32 %v16765_v57, %v28948_v33  ;;  %v16977_v24 = vpop.f32.mrf.mxu0 }
 0x90a   : > { %v29099_v29 = vadd.f32 %v16977_v24, %v16793_v58  ;;  %v23719_v12 = vpop.f32.mrf.mxu1  ;;  %v17924_v13 = vpop.permute.xlu1 %17923 }
 0x90b   : > { %v17700_v21 = vpop.permute.xlu0 %17699  ;;  %v23762_v11 = vpop.f32.mrf.mxu0  ;;  %23975 = vmatpush3.msra.mxu1 %v17924_v13  ;;  %v22114_v13 = vld [vmem:[%s31060_s5 + $0x550] sm:$0xff] }
 0x90c   : > { %23928 = vmatpush3.msra.mxu0 %v17700_v21  ;;  %v16770_v40 = vpop.f32.mrf.mxu1  ;;  %23976 = vmatprep.subr.mxu1 %v31208_v53 }
 0x90d   : > { %v16796_v2 = vadd.f32 %v16770_v40, %v28962_v9  ;;  %v16982_v3 = vpop.f32.mrf.mxu0  ;;  %23930 = vmatmul.mubr.msk.f32.vlgmr.msra.gmra.mxu0 %vm15322_vm6, %v22109_v44  ;;  %24023 = vmatprep.subr.mxu0 %v31208_v53  ;;  %v22139_v9 = vld [vmem:[%s31060_s5 + $0x5a0] sm:$0xff] }
 0x90e   : > { %v29108_v33 = vadd.f32 %v16982_v3, %v16794_v17  ;;  %v23722_v31 = vpop.f32.mrf.mxu1  ;;  %v18146_v36 = vpop.permute.xlu1 %18145  ;;  %23932 = vmatprep.mubr.msk.f32.mxu0 %vm24755_vm0, %v31208_v53 }
 0x90f   : > { %v17922_v41 = vpop.permute.xlu0 %17921  ;;  %v23765_v52 = vpop.f32.mrf.mxu0  ;;  %24024 = vmatpush3.msra.mxu0 %v18146_v36  ;;  %v22115_v31 = vld [vmem:[%s31060_s5 + $0x558] sm:$0xff] }
 0x910   : > { %23977 = vmatpush3.msra.mxu1 %v17922_v41  ;;  %v16775_v6 = vpop.f32.mrf.mxu1  ;;  %24025 = vmatprep.subr.mxu0 %v31208_v53 }
 0x911   : > { %v16797_v34 = vadd.f32 %v16775_v6, %v28979_v59  ;;  %v16987_v55 = vpop.f32.mrf.mxu0  ;;  %23933 = vmatmul.mubr.msk.f32.gmra.mxu0 %vm15322_vm6, %v22110_v32  ;;  %23979 = vmatmul.mubr.msk.f32.vlgmr.msra.gmra.mxu1 %vm15322_vm6, %v22139_v9  ;;  %v22140_v59 = vld [vmem:[%s31060_s5 + $0x5a8] sm:$0xff] }
 0x912   : > { %v29122_v50 = vadd.f32 %v16987_v55, %v16795_v56  ;;  %v23725_v15 = vpop.f32.mrf.mxu1  ;;  %v18144_v8 = vpop.permute.xlu1 %18143  ;;  %23935 = vmatprep.mubr.msk.f32.mxu0 %vm24755_vm0, %v31208_v53  ;;  %23981 = vmatprep.mubr.msk.f32.mxu1 %vm24755_vm0, %v31208_v53 }
 0x913   : > { %v29134_v61 = vpop.permute.xlu0 %15253  ;;  %v23768_v25 = vpop.f32.mrf.mxu0  ;;  %24026 = vmatpush3.msra.mxu0 %v18144_v8  ;;  %24072 = vmatprep.subr.mxu1 %v31208_v53 }
 0x914   : > { %v15262_v39 = vsel %vm3698_vm12, %v28907_v46, %v29134_v61  ;;  %v16780_v20 = vpop.f32.mrf.mxu1  ;;  %24121 = vmatprep.subr.mxu0 %v31208_v53  ;;  %v22141_v46 = vld [vmem:[%s31060_s5 + $0x5b0] sm:$0xff]  ;;  %v29230_v9 = vmax.f32 %v28967_v7, %v29134_v61  ;;  %v22116_v7 = vld [vmem:[%s31060_s5 + $0x560] sm:$0xff] }
 0x915   : > { %v29142_v14 = vmax.f32 %v28425_v4, %v15262_v39  ;;  %v16798_v1 = vadd.f32 %v16780_v20, %v28996_v38  ;;  %v16992_v27 = vpop.f32.mrf.mxu0  ;;  %23936 = vmatmul.mubr.msk.f32.gmra.mxu0 %vm15322_vm6, %v22111_v49  ;;  %23982 = vmatmul.mubr.msk.f32.gmra.mxu1 %vm15322_vm6, %v22140_v59  ;;  %v22112_v4 = vld [vmem:[%s31060_s5 + $0x540] sm:$0xff] }
 0x916   : > { %v29147_v16 = vadd.f32 %v16992_v27, %v16796_v2  ;;  %v23728_v54 = vpop.f32.mrf.mxu1  ;;  %v29149_v35 = vpop.permute.xlu1 %15243  ;;  %23938 = vmatprep.mubr.msk.f32.mxu0 %vm24755_vm0, %v31208_v53  ;;  %23984 = vmatprep.mubr.msk.f32.mxu1 %vm24755_vm0, %v31208_v53 }
 0x917   : > { %v15258_v38 = vsel %vm3698_vm12, %v28926_v5, %v29149_v35  ;;  %18807 = vrot.lane.b32.xlu1 %v29142_v14, %s24758_s26  ;;  %v18368_v45 = vpop.permute.xlu0 %18367  ;;  %v23771_v58 = vpop.f32.mrf.mxu0  ;;  %v29253_v15 = vmax.f32 %v28984_v19, %v29149_v35  ;;  %v22117_v19 = vld [vmem:[%s31060_s5 + $0x568] sm:$0xff]  ;;  %vm21106_vm12 = vcmask 1024  }
 0x918   : > { %v29167_v23 = vmax.f32 %v28447_v48, %v15258_v38  ;;  %24073 = vmatpush3.msra.mxu1 %v18368_v45  ;;  %v17154_v43 = vpop.f32.mrf.mxu1  ;;  %v22113_v48 = vld [vmem:[%s31060_s5 + $0x548] sm:$0xff] }
 0x919   : > { %v16997_v37 = vpop.f32.mrf.mxu0  ;;  %v17228_v10 = vadd.f32 %v17154_v43, %v29071_v28  ;;  %23939 = vmatmul.mubr.msk.f32.gmra.mxu0 %vm15322_vm6, %v22112_v4  ;;  %23985 = vmatmul.mubr.msk.f32.gmra.mxu1 %vm15322_vm6, %v22141_v46  ;;  %v22142_v28 = vld [vmem:[%s31060_s5 + $0x5b8] sm:$0xff]  ;;  %v22118_v4 = vld [vmem:[%s31060_s5 + $0x570] sm:$0xff] }
 0x91a   : > { %v29172_v17 = vadd.f32 %v16997_v37, %v16797_v34  ;;  %18805 = vrot.lane.b32.xlu0 %v29167_v23, %s24758_s26  ;;  %v23784_v5 = vpop.f32.mrf.mxu1  ;;  %24074 = vmatprep.subr.mxu1 %v31208_v53 }
 0x91b   : > { %19029 = vrot.lane.b32.xlu1 %v29142_v14, %s24776_s27  ;;  %v18366_v30 = vpop.permute.xlu0 %18365  ;;  %v23774_v42 = vpop.f32.mrf.mxu0  ;;  %23941 = vmatprep.mubr.msk.f32.mxu0 %vm24755_vm0, %v31208_v53 }
 0x91c   : > { %23987 = vmatprep.mubr.msk.f32.mxu1 %vm24755_vm0, %v31208_v53  ;;  %24075 = vmatpush3.msra.mxu1 %v18366_v30  ;;  %v17159_v22 = vpop.f32.mrf.mxu1 }
 0x91d   : > { %v17002_v57 = vpop.f32.mrf.mxu0  ;;  %v17229_v56 = vadd.f32 %v17159_v22, %v29074_v60  ;;  %23942 = vmatmul.mubr.msk.f32.gmra.mxu0 %vm15322_vm6, %v22113_v48  ;;  %23988 = vmatmul.mubr.msk.f32.gmra.mxu1 %vm15322_vm6, %v22142_v28  ;;  %v22143_v60 = vld [vmem:[%s31060_s5 + $0x5c0] sm:$0xff] }
 0x91e   : > { %v29192_v24 = vadd.f32 %v17002_v57, %v16798_v1  ;;  %19027 = vrot.lane.b32.xlu0 %v29167_v23, %s24776_s27  ;;  %v23787_v12 = vpop.f32.mrf.mxu1  ;;  %23944 = vmatprep.mubr.msk.f32.mxu0 %vm24755_vm0, %v31208_v53  ;;  %v22120_v57 = vld [vmem:[%s31060_s5 + $0x580] sm:$0xff] }
 0x91f   : > { %19251 = vrot.lane.b32.xlu1 %v29142_v14, %s24779_s25  ;;  %v23777_v44 = vpop.f32.mrf.mxu0  ;;  %23990 = vmatprep.mubr.msk.f32.mxu1 %vm24755_vm0, %v31208_v53 }
 0x920   : > { %v17164_v21 = vpop.f32.mrf.mxu1  ;;  %24170 = vmatprep.subr.mxu1 %v31208_v53 }
 0x921   : > { %v17230_v11 = vadd.f32 %v17164_v21, %v29077_v47  ;;  %v17376_v40 = vpop.f32.mrf.mxu0  ;;  %23945 = vmatmul.mubr.msk.f32.gmra.mxu0 %vm15322_vm6, %v22114_v13  ;;  %23991 = vmatmul.mubr.msk.f32.gmra.mxu1 %vm15322_vm6, %v22143_v60  ;;  %v22144_v47 = vld [vmem:[%s31060_s5 + $0x5c8] sm:$0xff] }
 0x922   : > { %v29212_v2 = vadd.f32 %v17376_v40, %v17228_v10  ;;  %19249 = vrot.lane.b32.xlu0 %v29167_v23, %s24779_s25  ;;  %v23790_v3 = vpop.f32.mrf.mxu1  ;;  %23947 = vmatprep.mubr.msk.f32.mxu0 %vm24755_vm0, %v31208_v53  ;;  %v22119_v10 = vld [vmem:[%s31060_s5 + $0x578] sm:$0xff] }
 0x923   : > { %19473 = vrot.lane.b32.xlu1 %v29142_v14, %s24780_s14  ;;  %v23833_v36 = vpop.f32.mrf.mxu0  ;;  %23993 = vmatprep.mubr.msk.f32.mxu1 %vm24755_vm0, %v31208_v53 }
 0x924   : > { %v17169_v32 = vpop.f32.mrf.mxu1 }
 0x925   : > { %v17231_v41 = vadd.f32 %v17169_v32, %v29080_v51  ;;  %v17381_v52 = vpop.f32.mrf.mxu0  ;;  %23948 = vmatmul.mubr.msk.f32.gmra.mxu0 %vm15322_vm6, %v22115_v31  ;;  %23994 = vmatmul.mubr.msk.f32.gmra.mxu1 %vm15322_vm6, %v22144_v47  ;;  %v22145_v51 = vld [vmem:[%s31060_s5 + $0x5d0] sm:$0xff] }
 0x926   : > { %v29235_v6 = vadd.f32 %v17381_v52, %v17229_v56  ;;  %19471 = vrot.lane.b32.xlu0 %v29167_v23, %s24780_s14  ;;  %v23793_v34 = vpop.f32.mrf.mxu1  ;;  %23950 = vmatprep.mubr.msk.f32.mxu0 %vm24755_vm0, %v31208_v53 }
 0x927   : > { %19913 = vrot.lane.b32.xlu1 %v29230_v9, %s24758_s26  ;;  %v23836_v55 = vpop.f32.mrf.mxu0  ;;  %23996 = vmatprep.mubr.msk.f32.mxu1 %vm24755_vm0, %v31208_v53 }
 0x928   : > { %v17174_v8 = vpop.f32.mrf.mxu1 }
 0x929   : > { %v17232_v49 = vadd.f32 %v17174_v8, %v29083_v26  ;;  %v17386_v59 = vpop.f32.mrf.mxu0  ;;  %23951 = vmatmul.mubr.msk.f32.gmra.mxu0 %vm15322_vm6, %v22116_v7  ;;  %23997 = vmatmul.mubr.msk.f32.gmra.mxu1 %vm15322_vm6, %v22145_v51  ;;  %v22146_v26 = vld [vmem:[%s31060_s5 + $0x5d8] sm:$0xff] }
 0x92a   : > { %v29258_v61 = vadd.f32 %v17386_v59, %v17230_v11  ;;  %19911 = vrot.lane.b32.xlu0 %v29253_v15, %s24758_s26  ;;  %v23796_v25 = vpop.f32.mrf.mxu1  ;;  %23953 = vmatprep.mubr.msk.f32.mxu0 %vm24755_vm0, %v31208_v53  ;;  %v22121_v11 = vld [vmem:[%s31060_s5 + $0x588] sm:$0xff] }
 0x92b   : > { %20135 = vrot.lane.b32.xlu1 %v29230_v9, %s24776_s27  ;;  %v23839_v39 = vpop.f32.mrf.mxu0  ;;  %23999 = vmatprep.mubr.msk.f32.mxu1 %vm24755_vm0, %v31208_v53 }
 0x92c   : > { %v17179_v20 = vpop.f32.mrf.mxu1 }
 0x92d   : > { %v17233_v1 = vadd.f32 %v17179_v20, %v29086_v18  ;;  %v17391_v27 = vpop.f32.mrf.mxu0  ;;  %23954 = vmatmul.mubr.msk.f32.gmra.mxu0 %vm15322_vm6, %v22117_v19  ;;  %24000 = vmatmul.mubr.msk.f32.gmra.mxu1 %vm15322_vm6, %v22146_v26  ;;  %v22147_v18 = vld [vmem:[%s31060_s5 + $0x5e0] sm:$0xff] }
 0x92e   : > { %v29277_v54 = vadd.f32 %v17391_v27, %v17231_v41  ;;  %20133 = vrot.lane.b32.xlu0 %v29253_v15, %s24776_s27  ;;  %v23799_v35 = vpop.f32.mrf.mxu1  ;;  %23956 = vmatprep.mubr.msk.f32.mxu0 %vm24755_vm0, %v31208_v53  ;;  %v22122_v41 = vld [vmem:[%s31060_s5 + $0x590] sm:$0xff] }
 0x92f   : > { %20357 = vrot.lane.b32.xlu1 %v29230_v9, %s24779_s25  ;;  %v23842_v46 = vpop.f32.mrf.mxu0  ;;  %24002 = vmatprep.mubr.msk.f32.mxu1 %vm24755_vm0, %v31208_v53 }
 0x930   : > { %v17184_v38 = vpop.f32.mrf.mxu1 }
 0x931   : > { %v17234_v45 = vadd.f32 %v17184_v38, %v29089_v62  ;;  %v17396_v58 = vpop.f32.mrf.mxu0  ;;  %23957 = vmatmul.mubr.msk.f32.gmra.mxu0 %vm15322_vm6, %v22118_v4  ;;  %24003 = vmatmul.mubr.msk.f32.gmra.mxu1 %vm15322_vm6, %v22147_v18  ;;  %v22148_v62 = vld [vmem:[%s31060_s5 + $0x5e8] sm:$0xff] }
 0x932   : > { %v29296_v43 = vadd.f32 %v17396_v58, %v17232_v49  ;;  %20355 = vrot.lane.b32.xlu0 %v29253_v15, %s24779_s25  ;;  %v23802_v37 = vpop.f32.mrf.mxu1  ;;  %23959 = vmatprep.mubr.msk.f32.mxu0 %vm24755_vm0, %v31208_v53  ;;  %v22123_v49 = vld [vmem:[%s31060_s5 + $0x598] sm:$0xff] }
 0x933   : > { %20579 = vrot.lane.b32.xlu1 %v29230_v9, %s24780_s14  ;;  %v23845_v5 = vpop.f32.mrf.mxu0  ;;  %24005 = vmatprep.mubr.msk.f32.mxu1 %vm24755_vm0, %v31208_v53 }
 0x934   : > { %v17189_v48 = vpop.f32.mrf.mxu1 }
 0x935   : > { %v17235_v28 = vadd.f32 %v17189_v48, %v29092_v63  ;;  %v17401_v30 = vpop.f32.mrf.mxu0  ;;  %23960 = vmatmul.mubr.msk.f32.gmra.mxu0 %vm15322_vm6, %v22119_v10  ;;  %24006 = vmatmul.mubr.msk.f32.gmra.mxu1 %vm15322_vm6, %v22148_v62  ;;  %v22149_v63 = vld [vmem:[%s31060_s5 + $0x5f0] sm:$0xff] }
 0x936   : > { %v29315_v42 = vadd.f32 %v17401_v30, %v17233_v1  ;;  %20577 = vrot.lane.b32.xlu0 %v29253_v15, %s24780_s14  ;;  %v23805_v22 = vpop.f32.mrf.mxu1  ;;  %23962 = vmatprep.mubr.msk.f32.mxu0 %vm24755_vm0, %v31208_v53  ;;  %v22153_v1 = vld [vmem:[%s31060_s5 + $0x610] sm:$0xff] }
 0x937   : > { %v23848_v56 = vpop.f32.mrf.mxu0  ;;  %24008 = vmatprep.mubr.msk.f32.mxu1 %vm24755_vm0, %v31208_v53 }
 0x938   : > { %v17194_v12 = vpop.f32.mrf.mxu1 }
 0x939   : > { %v17236_v13 = vadd.f32 %v17194_v12, %v29095_v0  ;;  %v17406_v60 = vpop.f32.mrf.mxu0  ;;  %23963 = vmatmul.mubr.msk.f32.gmra.mxu0 %vm15322_vm6, %v22120_v57  ;;  %24009 = vmatmul.mubr.msk.f32.gmra.mxu1 %vm15322_vm6, %v22149_v63  ;;  %v22150_v0 = vld [vmem:[%s31060_s5 + $0x5f8] sm:$0xff]  ;;  %v22172_v63 = vld [vmem:[%s31060_s5 + $0x630] sm:$0xff] }
 0x93a   : > { %v29332_v44 = vadd.f32 %v17406_v60, %v17234_v45  ;;  %v23808_v21 = vpop.f32.mrf.mxu1  ;;  %23965 = vmatprep.mubr.msk.f32.mxu0 %vm24755_vm0, %v31208_v53  ;;  %24011 = vmatprep.mubr.msk.f32.mxu1 %vm24755_vm0, %v31208_v53  ;;  %v22170_v45 = vld [vmem:[%s31060_s5 + $0x620] sm:$0xff] }
 0x93b   : > { %v23851_v40 = vpop.f32.mrf.mxu0  ;;  %v22173_v21 = vld [vmem:[%s31060_s5 + $0x638] sm:$0xff] }
 0x93c   : > { %v17199_v3 = vpop.f32.mrf.mxu1 }
 0x93d   : > { %v17237_v31 = vadd.f32 %v17199_v3, %v29099_v29  ;;  %v17411_v47 = vpop.f32.mrf.mxu0  ;;  %23966 = vmatmul.mubr.msk.f32.gmra.mxu0 %vm15322_vm6, %v22121_v11  ;;  %24012 = vmatmul.mubr.msk.f32.gmra.mxu1 %vm15322_vm6, %v22150_v0  ;;  %v22151_v29 = vld [vmem:[%s31060_s5 + $0x600] sm:$0xff]  ;;  %v22202_v11 = vld [vmem:[%s31060_s5 + $0x6a8] sm:$0xff] }
 0x93e   : > { %v29347_v36 = vadd.f32 %v17411_v47, %v17235_v28  ;;  %v23811_v32 = vpop.f32.mrf.mxu1  ;;  %23968 = vmatprep.mubr.msk.f32.mxu0 %vm24755_vm0, %v31208_v53  ;;  %24014 = vmatprep.mubr.msk.f32.mxu1 %vm24755_vm0, %v31208_v53  ;;  %v22174_v47 = vld [vmem:[%s31060_s5 + $0x640] sm:$0xff] }
 0x93f   : > { %v23854_v52 = vpop.f32.mrf.mxu0  ;;  %v22203_v32 = vld [vmem:[%s31060_s5 + $0x6b0] sm:$0xff] }
 0x940   : > { %v17204_v34 = vpop.f32.mrf.mxu1 }
 0x941   : > { %v17238_v7 = vadd.f32 %v17204_v34, %v29108_v33  ;;  %v17416_v51 = vpop.f32.mrf.mxu0  ;;  %23969 = vmatmul.mubr.msk.f32.gmra.mxu0 %vm15322_vm6, %v22122_v41  ;;  %24015 = vmatmul.mubr.msk.f32.gmra.mxu1 %vm15322_vm6, %v22151_v29  ;;  %v22152_v33 = vld [vmem:[%s31060_s5 + $0x608] sm:$0xff] }
 0x942   : > { %v29362_v55 = vadd.f32 %v17416_v51, %v17236_v13  ;;  %v23814_v8 = vpop.f32.mrf.mxu1  ;;  %23971 = vmatprep.mubr.msk.f32.mxu0 %vm24755_vm0, %v31208_v53  ;;  %24017 = vmatprep.mubr.msk.f32.mxu1 %vm24755_vm0, %v31208_v53 }
 0x943   : > { %v23857_v59 = vpop.f32.mrf.mxu0 }
 0x944   : > { %v17209_v25 = vpop.f32.mrf.mxu1 }
 0x945   : > { %v17239_v19 = vadd.f32 %v17209_v25, %v29122_v50  ;;  %v17421_v26 = vpop.f32.mrf.mxu0  ;;  %23972 = vmatmul.mubr.msk.f32.gmra.mxu0 %vm15322_vm6, %v22123_v49  ;;  %24018 = vmatmul.mubr.msk.f32.gmra.mxu1 %vm15322_vm6, %v22152_v33  ;;  %v22169_v50 = vld [vmem:[%s31060_s5 + $0x618] sm:$0xff]  ;;  %v22176_v33 = vld [vmem:[%s31060_s5 + $0x650] sm:$0xff] }
 0x946   : > { %v29377_v39 = vadd.f32 %v17421_v26, %v17237_v31  ;;  %v23817_v20 = vpop.f32.mrf.mxu1  ;;  %24020 = vmatprep.mubr.msk.f32.mxu1 %vm24755_vm0, %v31208_v53  ;;  %24027 = vmatprep.mubr.msk.f32.mxu0 %vm24755_vm0, %v31208_v53  ;;  %v22177_v26 = vld [vmem:[%s31060_s5 + $0x658] sm:$0xff] }
 0x947   : > { %v23860_v27 = vpop.f32.mrf.mxu0 }
 0x948   : > { %v17214_v35 = vpop.f32.mrf.mxu1  ;;  %v22178_v27 = vld [vmem:[%s31060_s5 + $0x660] sm:$0xff] }
 0x949   : > { %v17240_v4 = vadd.f32 %v17214_v35, %v29147_v16  ;;  %v17426_v18 = vpop.f32.mrf.mxu0  ;;  %24021 = vmatmul.mubr.msk.f32.gmra.mxu1 %vm15322_vm6, %v22153_v1  ;;  %24028 = vmatmul.mubr.msk.f32.vlgmr.msra.gmra.mxu0 %vm15322_vm6, %v22169_v50  ;;  %v22199_v16 = vld [vmem:[%s31060_s5 + $0x690] sm:$0xff] }
 0x94a   : > { %v29392_v46 = vadd.f32 %v17426_v18, %v17238_v7  ;;  %24122 = vmatpush3.msra.mxu0 %v29142_v14  ;;  %v23820_v38 = vpop.f32.mrf.mxu1  ;;  %24030 = vmatprep.mubr.msk.f32.mxu0 %vm24755_vm0, %v31208_v53  ;;  %v22175_v7 = vld [vmem:[%s31060_s5 + $0x648] sm:$0xff] }
 0x94b   : > { %24123 = vmatprep.subr.mxu0 %v31208_v53  ;;  %v23863_v58 = vpop.f32.mrf.mxu0  ;;  %24076 = vmatprep.mubr.msk.f32.mxu1 %vm24755_vm0, %v31208_v53  ;;  %v22179_v38 = vld [vmem:[%s31060_s5 + $0x668] sm:$0xff] }
 0x94c   : > { %24124 = vmatpush3.msra.mxu0 %v29167_v23  ;;  %v17219_v14 = vpop.f32.mrf.mxu1  ;;  %v22171_v23 = vld [vmem:[%s31060_s5 + $0x628] sm:$0xff] }
 0x94d   : > { %v17241_v37 = vadd.f32 %v17219_v14, %v29172_v17  ;;  %v17431_v10 = vpop.f32.mrf.mxu0  ;;  %24031 = vmatmul.mubr.msk.f32.gmra.mxu0 %vm15322_vm6, %v22170_v45  ;;  %24077 = vmatmul.mubr.msk.f32.vlgmr.msra.gmra.mxu1 %vm15322_vm6, %v22199_v16  ;;  %v22200_v17 = vld [vmem:[%s31060_s5 + $0x698] sm:$0xff]  ;;  %v22180_v14 = vld [vmem:[%s31060_s5 + $0x670] sm:$0xff] }
 0x94e   : > { %v29410_v62 = vadd.f32 %v17431_v10, %v17239_v19  ;;  %v23823_v5 = vpop.f32.mrf.mxu1  ;;  %24033 = vmatprep.mubr.msk.f32.mxu0 %vm24755_vm0, %v31208_v53  ;;  %24079 = vmatprep.mubr.msk.f32.mxu1 %vm24755_vm0, %v31208_v53 }
 0x94f   : > { %v23866_v48 = vpop.f32.mrf.mxu0  ;;  %24219 = vmatprep.subr.mxu0 %v31208_v53 }
 0x950   : > { %v17224_v28 = vpop.f32.mrf.mxu1 }
 0x951   : > { %v17242_v30 = vadd.f32 %v17224_v28, %v29192_v24  ;;  %v17436_v22 = vpop.f32.mrf.mxu0  ;;  %24034 = vmatmul.mubr.msk.f32.gmra.mxu0 %vm15322_vm6, %v22171_v23  ;;  %24080 = vmatmul.mubr.msk.f32.gmra.mxu1 %vm15322_vm6, %v22200_v17  ;;  %v22201_v24 = vld [vmem:[%s31060_s5 + $0x6a0] sm:$0xff]  ;;  %v22181_v23 = vld [vmem:[%s31060_s5 + $0x678] sm:$0xff] }
 0x952   : > { %v29426_v57 = vadd.f32 %v17436_v22, %v17240_v4  ;;  %24036 = vmatprep.mubr.msk.f32.mxu0 %vm24755_vm0, %v31208_v53  ;;  %24082 = vmatprep.mubr.msk.f32.mxu1 %vm24755_vm0, %v31208_v53  ;;  %v23826_v56 = vpop.f32.mrf.mxu1 }
 0x953   : > { %v23869_v12 = vpop.f32.mrf.mxu0  ;;  %v22183_v56 = vld [vmem:[%s31060_s5 + $0x688] sm:$0xff] }
 0x955   : > { %v17441_v13 = vpop.f32.mrf.mxu0  ;;  %24037 = vmatmul.mubr.msk.f32.gmra.mxu0 %vm15322_vm6, %v22172_v63  ;;  %24083 = vmatmul.mubr.msk.f32.gmra.mxu1 %vm15322_vm6, %v22201_v24 }
 0x956   : > { %v29440_v60 = vadd.f32 %v17441_v13, %v17241_v37  ;;  %24039 = vmatprep.mubr.msk.f32.mxu0 %vm24755_vm0, %v31208_v53  ;;  %24085 = vmatprep.mubr.msk.f32.mxu1 %vm24755_vm0, %v31208_v53 }
 0x957   : > { %v23872_v0 = vpop.f32.mrf.mxu0 }
 0x959   : > { %v17446_v40 = vpop.f32.mrf.mxu0  ;;  %24040 = vmatmul.mubr.msk.f32.gmra.mxu0 %vm15322_vm6, %v22173_v21  ;;  %24086 = vmatmul.mubr.msk.f32.gmra.mxu1 %vm15322_vm6, %v22202_v11  ;;  %v22213_v11 = vld [vmem:[%s31060_s5 + $0x700] sm:$0xff] }
 0x95a   : > { %v29454_v3 = vadd.f32 %v17446_v40, %v17242_v30  ;;  %v17592_v31 = vpop.f32.mrf.mxu1  ;;  %24042 = vmatprep.mubr.msk.f32.mxu0 %vm24755_vm0, %v31208_v53  ;;  %24088 = vmatprep.mubr.msk.f32.mxu1 %vm24755_vm0, %v31208_v53  ;;  %v22182_v30 = vld [vmem:[%s31060_s5 + $0x680] sm:$0xff] }
 0x95b   : > { %v29467_v41 = vadd.f32 %v17592_v31, %v29212_v2  ;;  %v23875_v29 = vpop.f32.mrf.mxu0  ;;  %v22204_v2 = vld [vmem:[%s31060_s5 + $0x6b8] sm:$0xff] }
 0x95c   : > { %v23882_v52 = vpop.f32.mrf.mxu1 }
 0x95d   : > { %24043 = vmatmul.mubr.msk.f32.gmra.mxu0 %vm15322_vm6, %v22174_v47  ;;  %24089 = vmatmul.mubr.msk.f32.gmra.mxu1 %vm15322_vm6, %v22203_v32  ;;  %v22230_v47 = vld [vmem:[%s31060_s5 + $0x710] sm:$0xff] }
 0x95e   : > { %v17597_v34 = vpop.f32.mrf.mxu1  ;;  %24045 = vmatprep.mubr.msk.f32.mxu0 %vm24755_vm0, %v31208_v53  ;;  %24091 = vmatprep.mubr.msk.f32.mxu1 %vm24755_vm0, %v31208_v53 }
 0x95f   : > { %v29482_v51 = vadd.f32 %v17597_v34, %v29235_v6  ;;  %v22205_v6 = vld [vmem:[%s31060_s5 + $0x6c0] sm:$0xff]  ;;  %v22231_v34 = vld [vmem:[%s31060_s5 + $0x718] sm:$0xff] }
 0x960   : > { %v23885_v8 = vpop.f32.mrf.mxu1 }
 0x961   : > { %24046 = vmatmul.mubr.msk.f32.gmra.mxu0 %vm15322_vm6, %v22175_v7  ;;  %24092 = vmatmul.mubr.msk.f32.gmra.mxu1 %vm15322_vm6, %v22204_v2 }
 0x962   : > { %v17602_v49 = vpop.f32.mrf.mxu1  ;;  %24048 = vmatprep.mubr.msk.f32.mxu0 %vm24755_vm0, %v31208_v53  ;;  %24094 = vmatprep.mubr.msk.f32.mxu1 %vm24755_vm0, %v31208_v53 }
 0x963   : > { %v29497_v59 = vadd.f32 %v17602_v49, %v29258_v61  ;;  %v22206_v61 = vld [vmem:[%s31060_s5 + $0x6c8] sm:$0xff] }
 0x964   : > { %v23888_v25 = vpop.f32.mrf.mxu1 }
 0x965   : > { %24049 = vmatmul.mubr.msk.f32.gmra.mxu0 %vm15322_vm6, %v22176_v33  ;;  %24095 = vmatmul.mubr.msk.f32.gmra.mxu1 %vm15322_vm6, %v22205_v6 }
 0x966   : > { %v17607_v19 = vpop.f32.mrf.mxu1  ;;  %24051 = vmatprep.mubr.msk.f32.mxu0 %vm24755_vm0, %v31208_v53  ;;  %24097 = vmatprep.mubr.msk.f32.mxu1 %vm24755_vm0, %v31208_v53 }
 0x967   : > { %v29512_v20 = vadd.f32 %v17607_v19, %v29277_v54  ;;  %v22207_v54 = vld [vmem:[%s31060_s5 + $0x6d0] sm:$0xff] }
 0x968   : > { %v23891_v1 = vpop.f32.mrf.mxu1 }
 0x969   : > { %24052 = vmatmul.mubr.msk.f32.gmra.mxu0 %vm15322_vm6, %v22177_v26  ;;  %24098 = vmatmul.mubr.msk.f32.gmra.mxu1 %vm15322_vm6, %v22206_v61  ;;  %v22260_v26 = vld [vmem:[%s31060_s5 + $0x788] sm:$0xff] }
 0x96a   : > { %v17612_v50 = vpop.f32.mrf.mxu1  ;;  %24054 = vmatprep.mubr.msk.f32.mxu0 %vm24755_vm0, %v31208_v53  ;;  %24100 = vmatprep.mubr.msk.f32.mxu1 %vm24755_vm0, %v31208_v53  ;;  %v22233_v1 = vld [vmem:[%s31060_s5 + $0x728] sm:$0xff] }
 0x96b   : > { %v29527_v35 = vadd.f32 %v17612_v50, %v29296_v43  ;;  %v22208_v43 = vld [vmem:[%s31060_s5 + $0x6d8] sm:$0xff] }
 0x96c   : > { %v23894_v4 = vpop.f32.mrf.mxu1 }
 0x96d   : > { %24055 = vmatmul.mubr.msk.f32.gmra.mxu0 %vm15322_vm6, %v22178_v27  ;;  %24101 = vmatmul.mubr.msk.f32.gmra.mxu1 %vm15322_vm6, %v22207_v54  ;;  %v22261_v54 = vld [vmem:[%s31060_s5 + $0x790] sm:$0xff] }
 0x96e   : > { %v17617_v18 = vpop.f32.mrf.mxu1  ;;  %24057 = vmatprep.mubr.msk.f32.mxu0 %vm24755_vm0, %v31208_v53  ;;  %24103 = vmatprep.mubr.msk.f32.mxu1 %vm24755_vm0, %v31208_v53 }
 0x96f   : > { %v29542_v45 = vadd.f32 %v17617_v18, %v29315_v42  ;;  %v22209_v42 = vld [vmem:[%s31060_s5 + $0x6e0] sm:$0xff]  ;;  %v22262_v18 = vld [vmem:[%s31060_s5 + $0x798] sm:$0xff] }
 0x970   : > { %v23897_v16 = vpop.f32.mrf.mxu1 }
 0x971   : > { %24058 = vmatmul.mubr.msk.f32.gmra.mxu0 %vm15322_vm6, %v22179_v38  ;;  %24104 = vmatmul.mubr.msk.f32.gmra.mxu1 %vm15322_vm6, %v22208_v43  ;;  %v22235_v38 = vld [vmem:[%s31060_s5 + $0x738] sm:$0xff]  ;;  %v22263_v43 = vld [vmem:[%s31060_s5 + $0x7a0] sm:$0xff] }
 0x972   : > { %v17622_v58 = vpop.f32.mrf.mxu1  ;;  %24060 = vmatprep.mubr.msk.f32.mxu0 %vm24755_vm0, %v31208_v53  ;;  %24106 = vmatprep.mubr.msk.f32.mxu1 %vm24755_vm0, %v31208_v53  ;;  %v22236_v16 = vld [vmem:[%s31060_s5 + $0x740] sm:$0xff] }
 0x973   : > { %v29557_v37 = vadd.f32 %v17622_v58, %v29332_v44  ;;  %v22210_v44 = vld [vmem:[%s31060_s5 + $0x6e8] sm:$0xff] }
 0x974   : > { %v23900_v10 = vpop.f32.mrf.mxu1  ;;  %v22264_v58 = vld [vmem:[%s31060_s5 + $0x7a8] sm:$0xff] }
 0x975   : > { %24061 = vmatmul.mubr.msk.f32.gmra.mxu0 %vm15322_vm6, %v22180_v14  ;;  %24107 = vmatmul.mubr.msk.f32.gmra.mxu1 %vm15322_vm6, %v22209_v42  ;;  %v22237_v14 = vld [vmem:[%s31060_s5 + $0x748] sm:$0xff]  ;;  %v22265_v42 = vld [vmem:[%s31060_s5 + $0x7b0] sm:$0xff] }
 0x976   : > { %v17627_v5 = vpop.f32.mrf.mxu1  ;;  %24063 = vmatprep.mubr.msk.f32.mxu0 %vm24755_vm0, %v31208_v53  ;;  %24109 = vmatprep.mubr.msk.f32.mxu1 %vm24755_vm0, %v31208_v53  ;;  %v22238_v10 = vld [vmem:[%s31060_s5 + $0x750] sm:$0xff] }
 0x977   : > { %v29572_v17 = vadd.f32 %v17627_v5, %v29347_v36  ;;  %v22211_v36 = vld [vmem:[%s31060_s5 + $0x6f0] sm:$0xff]  ;;  %v22266_v5 = vld [vmem:[%s31060_s5 + $0x7b8] sm:$0xff] }
 0x978   : > { %v23903_v48 = vpop.f32.mrf.mxu1 }
 0x979   : > { %24064 = vmatmul.mubr.msk.f32.gmra.mxu0 %vm15322_vm6, %v22181_v23  ;;  %24110 = vmatmul.mubr.msk.f32.gmra.mxu1 %vm15322_vm6, %v22210_v44  ;;  %v22239_v23 = vld [vmem:[%s31060_s5 + $0x758] sm:$0xff]  ;;  %v22267_v44 = vld [vmem:[%s31060_s5 + $0x7c0] sm:$0xff] }
 0x97a   : > { %v17632_v28 = vpop.f32.mrf.mxu1  ;;  %24066 = vmatprep.mubr.msk.f32.mxu0 %vm24755_vm0, %v31208_v53  ;;  %24112 = vmatprep.mubr.msk.f32.mxu1 %vm24755_vm0, %v31208_v53  ;;  %v22240_v48 = vld [vmem:[%s31060_s5 + $0x760] sm:$0xff] }
 0x97b   : > { %v29587_v22 = vadd.f32 %v17632_v28, %v29362_v55  ;;  %v22212_v55 = vld [vmem:[%s31060_s5 + $0x6f8] sm:$0xff]  ;;  %v22268_v28 = vld [vmem:[%s31060_s5 + $0x7c8] sm:$0xff] }
 0x97c   : > { %v23906_v63 = vpop.f32.mrf.mxu1 }
 0x97d   : > { %24067 = vmatmul.mubr.msk.f32.gmra.mxu0 %vm15322_vm6, %v22182_v30  ;;  %24113 = vmatmul.mubr.msk.f32.gmra.mxu1 %vm15322_vm6, %v22211_v36  ;;  %v22241_v30 = vld [vmem:[%s31060_s5 + $0x768] sm:$0xff]  ;;  %v22269_v36 = vld [vmem:[%s31060_s5 + $0x7d0] sm:$0xff] }
 0x97e   : > { %v17637_v24 = vpop.f32.mrf.mxu1  ;;  %24069 = vmatprep.mubr.msk.f32.mxu0 %vm24755_vm0, %v31208_v53  ;;  %24115 = vmatprep.mubr.msk.f32.mxu1 %vm24755_vm0, %v31208_v53  ;;  %v22242_v63 = vld [vmem:[%s31060_s5 + $0x770] sm:$0xff] }
 0x97f   : > { %v29602_v12 = vadd.f32 %v17637_v24, %v29377_v39  ;;  %v22229_v39 = vld [vmem:[%s31060_s5 + $0x708] sm:$0xff]  ;;  %v22270_v24 = vld [vmem:[%s31060_s5 + $0x7d8] sm:$0xff] }
 0x980   : > { %v23909_v13 = vpop.f32.mrf.mxu1 }
 0x981   : > { %24070 = vmatmul.mubr.msk.f32.gmra.mxu0 %vm15322_vm6, %v22183_v56  ;;  %24116 = vmatmul.mubr.msk.f32.gmra.mxu1 %vm15322_vm6, %v22212_v55  ;;  %v22243_v56 = vld [vmem:[%s31060_s5 + $0x778] sm:$0xff]  ;;  %v22271_v55 = vld [vmem:[%s31060_s5 + $0x7e0] sm:$0xff] }
 0x982   : > { %v17642_v21 = vpop.f32.mrf.mxu1  ;;  %24118 = vmatprep.mubr.msk.f32.mxu1 %vm24755_vm0, %v31208_v53  ;;  %24125 = vmatprep.mubr.msk.f32.mxu0 %vm24755_vm0, %v31208_v53  ;;  %v22289_v13 = vld [vmem:[%s31060_s5 + $0x7f8] sm:$0xff] }
 0x983   : > { %v29617_v0 = vadd.f32 %v17642_v21, %v29392_v46  ;;  %v22272_v21 = vld [vmem:[%s31060_s5 + $0x7e8] sm:$0xff] }
 0x984   : > { %v23912_v40 = vpop.f32.mrf.mxu1 }
 0x985   : > { %24119 = vmatmul.mubr.msk.f32.gmra.mxu1 %vm15322_vm6, %v22213_v11  ;;  %24126 = vmatmul.mubr.msk.f32.vlgmr.msra.gmra.mxu0 %vm15322_vm6, %v22229_v39  ;;  %v22290_v39 = vld [vmem:[%s31060_s5 + $0x800] sm:$0xff] }
 0x986   : > { %v17647_v31 = vpop.f32.mrf.mxu1  ;;  %24128 = vmatprep.mubr.msk.f32.mxu0 %vm24755_vm0, %v31208_v53  ;;  %24174 = vmatprep.mubr.msk.f32.mxu1 %vm24755_vm0, %v31208_v53 }
 0x987   : > { %v29629_v32 = vadd.f32 %v17647_v31, %v29410_v62  ;;  %v22259_v62 = vld [vmem:[%s31060_s5 + $0x780] sm:$0xff]  ;;  %v22273_v31 = vld [vmem:[%s31060_s5 + $0x7f0] sm:$0xff] }
 0x988   : > { %v23915_v46 = vpop.f32.mrf.mxu1 }
 0x989   : > { %v18808_v29 = vpop.permute.xlu1 %18807  ;;  %24129 = vmatmul.mubr.msk.f32.gmra.mxu0 %vm15322_vm6, %v22230_v47  ;;  %v22291_v47 = vld [vmem:[%s31060_s5 + $0x808] sm:$0xff]  ;;  %v22319_v46 = vld [vmem:[%s31060_s5 + $0x870] sm:$0xff] }
 0x98a   : > { %v17652_v52 = vpop.f32.mrf.mxu1  ;;  %24171 = vmatpush3.msra.mxu1 %v18808_v29  ;;  %24131 = vmatprep.mubr.msk.f32.mxu0 %vm24755_vm0, %v31208_v53  ;;  %v22292_v29 = vld [vmem:[%s31060_s5 + $0x810] sm:$0xff] }
 0x98b   : > { %v29638_v7 = vadd.f32 %v17652_v52, %v29426_v57  ;;  %24172 = vmatprep.subr.mxu1 %v31208_v53  ;;  %v22232_v57 = vld [vmem:[%s31060_s5 + $0x720] sm:$0xff]  ;;  %v22320_v52 = vld [vmem:[%s31060_s5 + $0x878] sm:$0xff] }
 0x98c   : > { %v23918_v2 = vpop.f32.mrf.mxu1  ;;  %v18806_v8 = vpop.permute.xlu0 %18805 }
 0x98d   : > { %v19030_v49 = vpop.permute.xlu1 %19029  ;;  %24132 = vmatmul.mubr.msk.f32.gmra.mxu0 %vm15322_vm6, %v22231_v34  ;;  %24173 = vmatpush3.msra.mxu1 %v18806_v8 }
 0x98e   : > { %v17657_v33 = vpop.f32.mrf.mxu1  ;;  %24220 = vmatpush3.msra.mxu0 %v19030_v49  ;;  %24175 = vmatmul.mubr.msk.f32.vlgmr.msra.gmra.mxu1 %vm15322_vm6, %v22259_v62 }
 0x98f   : > { %v29650_v6 = vadd.f32 %v17657_v33, %v29440_v60  ;;  %24134 = vmatprep.mubr.msk.f32.mxu0 %vm24755_vm0, %v31208_v53  ;;  %24268 = vmatprep.subr.mxu1 %v31208_v53 }
 0x990   : > { %v23921_v25 = vpop.f32.mrf.mxu1  ;;  %v19028_v19 = vpop.permute.xlu0 %19027  ;;  %24221 = vmatprep.subr.mxu0 %v31208_v53  ;;  %24177 = vmatprep.mubr.msk.f32.mxu1 %vm24755_vm0, %v31208_v53 }
 0x991   : > { %v19252_v61 = vpop.permute.xlu1 %19251  ;;  %24135 = vmatmul.mubr.msk.f32.gmra.mxu0 %vm15322_vm6, %v22232_v57  ;;  %v22294_v57 = vld [vmem:[%s31060_s5 + $0x820] sm:$0xff] }
 0x992   : > { %v17662_v60 = vpop.f32.mrf.mxu1  ;;  %24222 = vmatpush3.msra.mxu0 %v19028_v19  ;;  %24269 = vmatpush3.msra.mxu1 %v19252_v61 }
 0x993   : > { %v29666_v50 = vadd.f32 %v17662_v60, %v29454_v3  ;;  %24178 = vmatmul.mubr.msk.f32.gmra.mxu1 %vm15322_vm6, %v22260_v26  ;;  %24137 = vmatprep.mubr.msk.f32.mxu0 %vm24755_vm0, %v31208_v53  ;;  %v22234_v3 = vld [vmem:[%s31060_s5 + $0x730] sm:$0xff] }
 0x994   : > { %24270 = vmatprep.subr.mxu1 %v31208_v53  ;;  %v19250_v27 = vpop.permute.xlu0 %19249  ;;  %24180 = vmatprep.mubr.msk.f32.mxu1 %vm24755_vm0, %v31208_v53  ;;  %v23924_v4 = vpop.f32.mrf.mxu1 }
 0x995   : > { %24138 = vmatmul.mubr.msk.f32.gmra.mxu0 %vm15322_vm6, %v22233_v1  ;;  %24271 = vmatpush3.msra.mxu1 %v19250_v27  ;;  %v19474_v11 = vpop.permute.xlu1 %19473  ;;  %v22295_v27 = vld [vmem:[%s31060_s5 + $0x828] sm:$0xff] }
 0x996   : > { %24140 = vmatprep.mubr.msk.f32.mxu0 %vm24755_vm0, %v31208_v53  ;;  %24317 = vmatprep.subr.mxu0 %v31208_v53 }
 0x997   : > { %24181 = vmatmul.mubr.msk.f32.gmra.mxu1 %vm15322_vm6, %v22261_v54  ;;  %24366 = vmatprep.subr.mxu1 %v31208_v53 }
 0x998   : > { %24183 = vmatprep.mubr.msk.f32.mxu1 %vm24755_vm0, %v31208_v53  ;;  %v19472_v40 = vpop.permute.xlu0 %19471 }
 0x999   : > { %24141 = vmatmul.mubr.msk.f32.gmra.mxu0 %vm15322_vm6, %v22234_v3 }
 0x99a   : > { %24143 = vmatprep.mubr.msk.f32.mxu0 %vm24755_vm0, %v31208_v53 }
 0x99b   : > { %24184 = vmatmul.mubr.msk.f32.gmra.mxu1 %vm15322_vm6, %v22262_v18 }
 0x99c   : > { %24186 = vmatprep.mubr.msk.f32.mxu1 %vm24755_vm0, %v31208_v53 }
 0x99d   : > { %24144 = vmatmul.mubr.msk.f32.gmra.mxu0 %vm15322_vm6, %v22235_v38 }
 0x99e   : > { %24146 = vmatprep.mubr.msk.f32.mxu0 %vm24755_vm0, %v31208_v53 }
 0x99f   : > { %24187 = vmatmul.mubr.msk.f32.gmra.mxu1 %vm15322_vm6, %v22263_v43 }
 0x9a0   : > { %24189 = vmatprep.mubr.msk.f32.mxu1 %vm24755_vm0, %v31208_v53 }
 0x9a1   : > { %24147 = vmatmul.mubr.msk.f32.gmra.mxu0 %vm15322_vm6, %v22236_v16  ;;  %v22296_v16 = vld [vmem:[%s31060_s5 + $0x830] sm:$0xff] }
 0x9a2   : > { %24149 = vmatprep.mubr.msk.f32.mxu0 %vm24755_vm0, %v31208_v53 }
 0x9a3   : > { %24190 = vmatmul.mubr.msk.f32.gmra.mxu1 %vm15322_vm6, %v22264_v58 }
 0x9a4   : > { %24192 = vmatprep.mubr.msk.f32.mxu1 %vm24755_vm0, %v31208_v53 }
 0x9a5   : > { %24150 = vmatmul.mubr.msk.f32.gmra.mxu0 %vm15322_vm6, %v22237_v14 }
 0x9a6   : > { %24152 = vmatprep.mubr.msk.f32.mxu0 %vm24755_vm0, %v31208_v53 }
 0x9a7   : > { %24193 = vmatmul.mubr.msk.f32.gmra.mxu1 %vm15322_vm6, %v22265_v42 }
 0x9a8   : > { %24195 = vmatprep.mubr.msk.f32.mxu1 %vm24755_vm0, %v31208_v53 }
 0x9a9   : > { %24153 = vmatmul.mubr.msk.f32.gmra.mxu0 %vm15322_vm6, %v22238_v10 }
 0x9aa   : > { %24155 = vmatprep.mubr.msk.f32.mxu0 %vm24755_vm0, %v31208_v53 }
 0x9ab   : > { %24196 = vmatmul.mubr.msk.f32.gmra.mxu1 %vm15322_vm6, %v22266_v5 }
 0x9ac   : > { %24198 = vmatprep.mubr.msk.f32.mxu1 %vm24755_vm0, %v31208_v53 }
 0x9ad   : > { %24156 = vmatmul.mubr.msk.f32.gmra.mxu0 %vm15322_vm6, %v22239_v23 }
 0x9ae   : > { %24158 = vmatprep.mubr.msk.f32.mxu0 %vm24755_vm0, %v31208_v53 }
 0x9af   : > { %24199 = vmatmul.mubr.msk.f32.gmra.mxu1 %vm15322_vm6, %v22267_v44  ;;  %v22297_v44 = vld [vmem:[%s31060_s5 + $0x838] sm:$0xff] }
 0x9b0   : > { %24201 = vmatprep.mubr.msk.f32.mxu1 %vm24755_vm0, %v31208_v53 }
 0x9b1   : > { %24159 = vmatmul.mubr.msk.f32.gmra.mxu0 %vm15322_vm6, %v22240_v48 }
 0x9b2   : > { %24161 = vmatprep.mubr.msk.f32.mxu0 %vm24755_vm0, %v31208_v53 }
 0x9b3   : > { %24202 = vmatmul.mubr.msk.f32.gmra.mxu1 %vm15322_vm6, %v22268_v28 }
 0x9b4   : > { %24204 = vmatprep.mubr.msk.f32.mxu1 %vm24755_vm0, %v31208_v53 }
 0x9b5   : > { %24162 = vmatmul.mubr.msk.f32.gmra.mxu0 %vm15322_vm6, %v22241_v30 }
 0x9b6   : > { %24164 = vmatprep.mubr.msk.f32.mxu0 %vm24755_vm0, %v31208_v53 }
 0x9b7   : > { %24205 = vmatmul.mubr.msk.f32.gmra.mxu1 %vm15322_vm6, %v22269_v36 }
 0x9b8   : > { %24207 = vmatprep.mubr.msk.f32.mxu1 %vm24755_vm0, %v31208_v53 }
 0x9b9   : > { %24165 = vmatmul.mubr.msk.f32.gmra.mxu0 %vm15322_vm6, %v22242_v63 }
 0x9ba   : > { %24167 = vmatprep.mubr.msk.f32.mxu0 %vm24755_vm0, %v31208_v53 }
 0x9bb   : > { %24208 = vmatmul.mubr.msk.f32.gmra.mxu1 %vm15322_vm6, %v22270_v24 }
 0x9bc   : > { %24210 = vmatprep.mubr.msk.f32.mxu1 %vm24755_vm0, %v31208_v53 }
 0x9bd   : > { %24168 = vmatmul.mubr.msk.f32.gmra.mxu0 %vm15322_vm6, %v22243_v56  ;;  %v22298_v56 = vld [vmem:[%s31060_s5 + $0x840] sm:$0xff] }
 0x9be   : > { %24223 = vmatprep.mubr.msk.f32.mxu0 %vm24755_vm0, %v31208_v53 }
 0x9bf   : > { %24211 = vmatmul.mubr.msk.f32.gmra.mxu1 %vm15322_vm6, %v22271_v55 }
 0x9c0   : > { %24213 = vmatprep.mubr.msk.f32.mxu1 %vm24755_vm0, %v31208_v53 }
 0x9c1   : > { %24224 = vmatmul.mubr.msk.f32.vlgmr.msra.gmra.mxu0 %vm15322_vm6, %v22289_v13 }
 0x9c2   : > { %24318 = vmatpush3.msra.mxu0 %v19474_v11  ;;  %24226 = vmatprep.mubr.msk.f32.mxu0 %vm24755_vm0, %v31208_v53 }
 0x9c3   : > { %24319 = vmatprep.subr.mxu0 %v31208_v53  ;;  %24214 = vmatmul.mubr.msk.f32.gmra.mxu1 %vm15322_vm6, %v22272_v21 }
 0x9c4   : > { %24320 = vmatpush3.msra.mxu0 %v19472_v40  ;;  %24216 = vmatprep.mubr.msk.f32.mxu1 %vm24755_vm0, %v31208_v53 }
 0x9c5   : > { %24227 = vmatmul.mubr.msk.f32.gmra.mxu0 %vm15322_vm6, %v22290_v39  ;;  %24415 = vmatprep.subr.mxu0 %v31208_v53 }
 0x9c6   : > { %24229 = vmatprep.mubr.msk.f32.mxu0 %vm24755_vm0, %v31208_v53 }
 0x9c7   : > { %24217 = vmatmul.mubr.msk.f32.gmra.mxu1 %vm15322_vm6, %v22273_v31  ;;  %v22299_v31 = vld [vmem:[%s31060_s5 + $0x848] sm:$0xff] }
 0x9c8   : > { %24272 = vmatprep.mubr.msk.f32.mxu1 %vm24755_vm0, %v31208_v53 }
 0x9c9   : > { %24230 = vmatmul.mubr.msk.f32.gmra.mxu0 %vm15322_vm6, %v22291_v47 }
 0x9ca   : > { %24232 = vmatprep.mubr.msk.f32.mxu0 %vm24755_vm0, %v31208_v53 }
 0x9cb   : > { %24273 = vmatmul.mubr.msk.f32.vlgmr.msra.gmra.mxu1 %vm15322_vm6, %v22319_v46 }
 0x9cc   : > { %24367 = vmatpush3.msra.mxu1 %v29230_v9  ;;  %24275 = vmatprep.mubr.msk.f32.mxu1 %vm24755_vm0, %v31208_v53  ;;  %v22293_v9 = vld [vmem:[%s31060_s5 + $0x818] sm:$0xff] }
 0x9cd   : > { %24368 = vmatprep.subr.mxu1 %v31208_v53  ;;  %v17816_v34 = vpop.f32.mrf.mxu0  ;;  %24233 = vmatmul.mubr.msk.f32.gmra.mxu0 %vm15322_vm6, %v22292_v29 }
 0x9ce   : > { %v17890_v62 = vadd.f32 %v17816_v34, %v29467_v41  ;;  %24369 = vmatpush3.msra.mxu1 %v29253_v15  ;;  %24235 = vmatprep.mubr.msk.f32.mxu0 %vm24755_vm0, %v31208_v53  ;;  %v22321_v41 = vld [vmem:[%s31060_s5 + $0x880] sm:$0xff] }
 0x9cf   : > { %v23931_v2 = vpop.f32.mrf.mxu0  ;;  %24276 = vmatmul.mubr.msk.f32.gmra.mxu1 %vm15322_vm6, %v22320_v52  ;;  %24464 = vmatprep.subr.mxu1 %v31208_v53 }
 0x9d0   : > { %24278 = vmatprep.mubr.msk.f32.mxu1 %vm24755_vm0, %v31208_v53 }
 0x9d1   : > { %v17821_v15 = vpop.f32.mrf.mxu0  ;;  %v18038_v8 = vpop.f32.mrf.mxu1  ;;  %24236 = vmatmul.mubr.msk.f32.gmra.mxu0 %vm15322_vm6, %v22293_v9  ;;  %v22300_v9 = vld [vmem:[%s31060_s5 + $0x850] sm:$0xff] }
 0x9d2   : > { %v17891_v49 = vadd.f32 %v17821_v15, %v29482_v51  ;;  %v29868_v33 = vadd.f32 %v18038_v8, %v17890_v62  ;;  %24238 = vmatprep.mubr.msk.f32.mxu0 %vm24755_vm0, %v31208_v53  ;;  %v22322_v51 = vld [vmem:[%s31060_s5 + $0x888] sm:$0xff] }
 0x9d3   : > { %v23934_v25 = vpop.f32.mrf.mxu0  ;;  %v23980_v19 = vpop.f32.mrf.mxu1  ;;  %24279 = vmatmul.mubr.msk.f32.gmra.mxu1 %vm15322_vm6, %v22321_v41 }
 0x9d4   : > { %24281 = vmatprep.mubr.msk.f32.mxu1 %vm24755_vm0, %v31208_v53  ;;  %v22301_v25 = vld [vmem:[%s31060_s5 + $0x858] sm:$0xff] }
 0x9d5   : > { %v17826_v26 = vpop.f32.mrf.mxu0  ;;  %v18043_v61 = vpop.f32.mrf.mxu1  ;;  %24239 = vmatmul.mubr.msk.f32.gmra.mxu0 %vm15322_vm6, %v22294_v57 }
 0x9d6   : > { %v17892_v60 = vadd.f32 %v17826_v26, %v29497_v59  ;;  %v29883_v1 = vadd.f32 %v18043_v61, %v17891_v49  ;;  %24241 = vmatprep.mubr.msk.f32.mxu0 %vm24755_vm0, %v31208_v53  ;;  %v22323_v59 = vld [vmem:[%s31060_s5 + $0x890] sm:$0xff] }
 0x9d7   : > { %v23937_v54 = vpop.f32.mrf.mxu0  ;;  %v23983_v4 = vpop.f32.mrf.mxu1  ;;  %24282 = vmatmul.mubr.msk.f32.gmra.mxu1 %vm15322_vm6, %v22322_v51 }
 0x9d8   : > { %24284 = vmatprep.mubr.msk.f32.mxu1 %vm24755_vm0, %v31208_v53  ;;  %v22302_v54 = vld [vmem:[%s31060_s5 + $0x860] sm:$0xff] }
 0x9d9   : > { %v17831_v3 = vpop.f32.mrf.mxu0  ;;  %v18048_v18 = vpop.f32.mrf.mxu1  ;;  %24242 = vmatmul.mubr.msk.f32.gmra.mxu0 %vm15322_vm6, %v22295_v27 }
 0x9da   : > { %v17893_v38 = vadd.f32 %v17831_v3, %v29512_v20  ;;  %v29898_v43 = vadd.f32 %v18048_v18, %v17892_v60  ;;  %24244 = vmatprep.mubr.msk.f32.mxu0 %vm24755_vm0, %v31208_v53  ;;  %v22324_v20 = vld [vmem:[%s31060_s5 + $0x898] sm:$0xff] }
 0x9db   : > { %v23940_v58 = vpop.f32.mrf.mxu0  ;;  %v23986_v14 = vpop.f32.mrf.mxu1  ;;  %24285 = vmatmul.mubr.msk.f32.gmra.mxu1 %vm15322_vm6, %v22323_v59 }
 0x9dc   : > { %24287 = vmatprep.mubr.msk.f32.mxu1 %vm24755_vm0, %v31208_v53  ;;  %v22303_v58 = vld [vmem:[%s31060_s5 + $0x868] sm:$0xff] }
 0x9dd   : > { %v17836_v42 = vpop.f32.mrf.mxu0  ;;  %v18053_v10 = vpop.f32.mrf.mxu1  ;;  %24245 = vmatmul.mubr.msk.f32.gmra.mxu0 %vm15322_vm6, %v22296_v16 }
 0x9de   : > { %v17894_v5 = vadd.f32 %v17836_v42, %v29527_v35  ;;  %v29913_v23 = vadd.f32 %v18053_v10, %v17893_v38  ;;  %24247 = vmatprep.mubr.msk.f32.mxu0 %vm24755_vm0, %v31208_v53  ;;  %v22325_v35 = vld [vmem:[%s31060_s5 + $0x8a0] sm:$0xff] }
 0x9df   : > { %v23943_v48 = vpop.f32.mrf.mxu0  ;;  %v23989_v28 = vpop.f32.mrf.mxu1  ;;  %24288 = vmatmul.mubr.msk.f32.gmra.mxu1 %vm15322_vm6, %v22324_v20 }
 0x9e0   : > { %24290 = vmatprep.mubr.msk.f32.mxu1 %vm24755_vm0, %v31208_v53  ;;  %v22349_v48 = vld [vmem:[%s31060_s5 + $0x8e8] sm:$0xff] }
 0x9e1   : > { %v17841_v30 = vpop.f32.mrf.mxu0  ;;  %v18058_v36 = vpop.f32.mrf.mxu1  ;;  %24248 = vmatmul.mubr.msk.f32.gmra.mxu0 %vm15322_vm6, %v22297_v44 }
 0x9e2   : > { %v17895_v63 = vadd.f32 %v17841_v30, %v29542_v45  ;;  %v29928_v24 = vadd.f32 %v18058_v36, %v17894_v5  ;;  %24250 = vmatprep.mubr.msk.f32.mxu0 %vm24755_vm0, %v31208_v53  ;;  %v22326_v45 = vld [vmem:[%s31060_s5 + $0x8a8] sm:$0xff]  ;;  %v19914_v30 = vpop.permute.xlu1 %19913 }
 0x9e3   : > { %v23946_v55 = vpop.f32.mrf.mxu0  ;;  %v23992_v13 = vpop.f32.mrf.mxu1  ;;  %24291 = vmatmul.mubr.msk.f32.gmra.mxu1 %vm15322_vm6, %v22325_v35 }
 0x9e4   : > { %24293 = vmatprep.mubr.msk.f32.mxu1 %vm24755_vm0, %v31208_v53 }
 0x9e5   : > { %v17846_v21 = vpop.f32.mrf.mxu0  ;;  %v18063_v11 = vpop.f32.mrf.mxu1  ;;  %24251 = vmatmul.mubr.msk.f32.gmra.mxu0 %vm15322_vm6, %v22298_v56 }
 0x9e6   : > { %v17896_v39 = vadd.f32 %v17846_v21, %v29557_v37  ;;  %v29943_v40 = vadd.f32 %v18063_v11, %v17895_v63  ;;  %24253 = vmatprep.mubr.msk.f32.mxu0 %vm24755_vm0, %v31208_v53  ;;  %v22327_v37 = vld [vmem:[%s31060_s5 + $0x8b0] sm:$0xff]  ;;  %v19912_v56 = vpop.permute.xlu0 %19911 }
 0x9e7   : > { %v23949_v47 = vpop.f32.mrf.mxu0  ;;  %v23995_v46 = vpop.f32.mrf.mxu1  ;;  %24294 = vmatmul.mubr.msk.f32.gmra.mxu1 %vm15322_vm6, %v22326_v45  ;;  %v22350_v45 = vld [vmem:[%s31060_s5 + $0x8f0] sm:$0xff] }
 0x9e8   : > { %24296 = vmatprep.mubr.msk.f32.mxu1 %vm24755_vm0, %v31208_v53 }
 0x9e9   : > { %v17851_v29 = vpop.f32.mrf.mxu0  ;;  %v18068_v52 = vpop.f32.mrf.mxu1  ;;  %24254 = vmatmul.mubr.msk.f32.gmra.mxu0 %vm15322_vm6, %v22299_v31 }
 0x9ea   : > { %v17897_v34 = vadd.f32 %v17851_v29, %v29572_v17  ;;  %v29958_v62 = vadd.f32 %v18068_v52, %v17896_v39  ;;  %24256 = vmatprep.mubr.msk.f32.mxu0 %vm24755_vm0, %v31208_v53  ;;  %v22328_v17 = vld [vmem:[%s31060_s5 + $0x8b8] sm:$0xff] }
 0x9eb   : > { %v23952_v2 = vpop.f32.mrf.mxu0  ;;  %v23998_v41 = vpop.f32.mrf.mxu1  ;;  %24297 = vmatmul.mubr.msk.f32.gmra.mxu1 %vm15322_vm6, %v22327_v37  ;;  %v22351_v37 = vld [vmem:[%s31060_s5 + $0x8f8] sm:$0xff] }
 0x9ec   : > { %24299 = vmatprep.mubr.msk.f32.mxu1 %vm24755_vm0, %v31208_v53  ;;  %v20136_v2 = vpop.permute.xlu1 %20135 }
 0x9ed   : > { %v17856_v15 = vpop.f32.mrf.mxu0  ;;  %v18073_v8 = vpop.f32.mrf.mxu1  ;;  %24257 = vmatmul.mubr.msk.f32.gmra.mxu0 %vm15322_vm6, %v22300_v9 }
 0x9ee   : > { %v17898_v49 = vadd.f32 %v17856_v15, %v29587_v22  ;;  %v29973_v57 = vadd.f32 %v18073_v8, %v17897_v34  ;;  %24259 = vmatprep.mubr.msk.f32.mxu0 %vm24755_vm0, %v31208_v53  ;;  %v22329_v22 = vld [vmem:[%s31060_s5 + $0x8c0] sm:$0xff] }
 0x9ef   : > { %v23955_v19 = vpop.f32.mrf.mxu0  ;;  %v24001_v51 = vpop.f32.mrf.mxu1  ;;  %24300 = vmatmul.mubr.msk.f32.gmra.mxu1 %vm15322_vm6, %v22328_v17  ;;  %v22352_v15 = vld [vmem:[%s31060_s5 + $0x900] sm:$0xff] }
 0x9f0   : > { %24302 = vmatprep.mubr.msk.f32.mxu1 %vm24755_vm0, %v31208_v53 }
 0x9f1   : > { %v17861_v26 = vpop.f32.mrf.mxu0  ;;  %v18078_v61 = vpop.f32.mrf.mxu1  ;;  %24260 = vmatmul.mubr.msk.f32.gmra.mxu0 %vm15322_vm6, %v22301_v25 }
 0x9f2   : > { %v17899_v60 = vadd.f32 %v17861_v26, %v29602_v12  ;;  %v29988_v27 = vadd.f32 %v18078_v61, %v17898_v49  ;;  %24262 = vmatprep.mubr.msk.f32.mxu0 %vm24755_vm0, %v31208_v53  ;;  %v22330_v12 = vld [vmem:[%s31060_s5 + $0x8c8] sm:$0xff]  ;;  %v20134_v25 = vpop.permute.xlu0 %20133 }
 0x9f3   : > { %v23958_v4 = vpop.f32.mrf.mxu0  ;;  %v24004_v59 = vpop.f32.mrf.mxu1  ;;  %24303 = vmatmul.mubr.msk.f32.gmra.mxu1 %vm15322_vm6, %v22329_v22  ;;  %v22353_v61 = vld [vmem:[%s31060_s5 + $0x908] sm:$0xff] }
 0x9f4   : > { %24305 = vmatprep.mubr.msk.f32.mxu1 %vm24755_vm0, %v31208_v53 }
 0x9f5   : > { %v17866_v3 = vpop.f32.mrf.mxu0  ;;  %v18083_v18 = vpop.f32.mrf.mxu1  ;;  %24263 = vmatmul.mubr.msk.f32.gmra.mxu0 %vm15322_vm6, %v22302_v54 }
 0x9f6   : > { %v17900_v38 = vadd.f32 %v17866_v3, %v29617_v0  ;;  %v30003_v16 = vadd.f32 %v18083_v18, %v17899_v60  ;;  %24265 = vmatprep.mubr.msk.f32.mxu0 %vm24755_vm0, %v31208_v53  ;;  %v22331_v0 = vld [vmem:[%s31060_s5 + $0x8d0] sm:$0xff] }
 0x9f7   : > { %v23961_v14 = vpop.f32.mrf.mxu0  ;;  %v24007_v20 = vpop.f32.mrf.mxu1  ;;  %24306 = vmatmul.mubr.msk.f32.gmra.mxu1 %vm15322_vm6, %v22330_v12  ;;  %v22354_v18 = vld [vmem:[%s31060_s5 + $0x910] sm:$0xff] }
 0x9f8   : > { %24308 = vmatprep.mubr.msk.f32.mxu1 %vm24755_vm0, %v31208_v53 }
 0x9f9   : > { %v17871_v42 = vpop.f32.mrf.mxu0  ;;  %v18088_v10 = vpop.f32.mrf.mxu1  ;;  %24266 = vmatmul.mubr.msk.f32.gmra.mxu0 %vm15322_vm6, %v22303_v58 }
 0x9fa   : > { %v17901_v5 = vadd.f32 %v17871_v42, %v29629_v32  ;;  %v30018_v44 = vadd.f32 %v18088_v10, %v17900_v38  ;;  %24321 = vmatprep.mubr.msk.f32.mxu0 %vm24755_vm0, %v31208_v53  ;;  %v22332_v32 = vld [vmem:[%s31060_s5 + $0x8d8] sm:$0xff] }
 0x9fb   : > { %v23964_v28 = vpop.f32.mrf.mxu0  ;;  %v24010_v35 = vpop.f32.mrf.mxu1  ;;  %24309 = vmatmul.mubr.msk.f32.gmra.mxu1 %vm15322_vm6, %v22331_v0  ;;  %v22355_v10 = vld [vmem:[%s31060_s5 + $0x918] sm:$0xff] }
 0x9fc   : > { %24311 = vmatprep.mubr.msk.f32.mxu1 %vm24755_vm0, %v31208_v53 }
 0x9fd   : > { %v17876_v36 = vpop.f32.mrf.mxu0  ;;  %v18093_v63 = vpop.f32.mrf.mxu1  ;;  %24322 = vmatmul.mubr.msk.f32.vlgmr.msra.gmra.mxu0 %vm15322_vm6, %v22349_v48 }
 0x9fe   : > { %v17902_v55 = vadd.f32 %v17876_v36, %v29638_v7  ;;  %v30033_v13 = vadd.f32 %v18093_v63, %v17901_v5  ;;  %24416 = vmatpush3.msra.mxu0 %v19914_v30  ;;  %24324 = vmatprep.mubr.msk.f32.mxu0 %vm24755_vm0, %v31208_v53  ;;  %v22333_v7 = vld [vmem:[%s31060_s5 + $0x8e0] sm:$0xff] }
 0x9ff   : > { %24417 = vmatprep.subr.mxu0 %v31208_v53  ;;  %v23967_v21 = vpop.f32.mrf.mxu0  ;;  %v24013_v11 = vpop.f32.mrf.mxu1  ;;  %24312 = vmatmul.mubr.msk.f32.gmra.mxu1 %vm15322_vm6, %v22332_v32  ;;  %v22356_v36 = vld [vmem:[%s31060_s5 + $0x920] sm:$0xff] }
 0xa00   : > { %24418 = vmatpush3.msra.mxu0 %v19912_v56  ;;  %24314 = vmatprep.mubr.msk.f32.mxu1 %vm24755_vm0, %v31208_v53 }
 0xa01   : > { %v17881_v39 = vpop.f32.mrf.mxu0  ;;  %v18098_v31 = vpop.f32.mrf.mxu1  ;;  %24325 = vmatmul.mubr.msk.f32.gmra.mxu0 %vm15322_vm6, %v22350_v45  ;;  %24513 = vmatprep.subr.mxu0 %v31208_v53 }
 0xa02   : > { %v17903_v47 = vadd.f32 %v17881_v39, %v29650_v6  ;;  %v30050_v46 = vadd.f32 %v18098_v31, %v17902_v55  ;;  %24327 = vmatprep.mubr.msk.f32.mxu0 %vm24755_vm0, %v31208_v53  ;;  %v22379_v6 = vld [vmem:[%s31060_s5 + $0x960] sm:$0xff] }
 0xa03   : > { %v23970_v29 = vpop.f32.mrf.mxu0  ;;  %v24016_v52 = vpop.f32.mrf.mxu1  ;;  %24315 = vmatmul.mubr.msk.f32.gmra.mxu1 %vm15322_vm6, %v22333_v7  ;;  %v22357_v7 = vld [vmem:[%s31060_s5 + $0x928] sm:$0xff] }
 0xa04   : > { %24370 = vmatprep.mubr.msk.f32.mxu1 %vm24755_vm0, %v31208_v53 }
 0xa05   : > { %v17886_v34 = vpop.f32.mrf.mxu0  ;;  %v18103_v9 = vpop.f32.mrf.mxu1  ;;  %24328 = vmatmul.mubr.msk.f32.gmra.mxu0 %vm15322_vm6, %v22351_v37 }
 0xa06   : > { %v17904_v41 = vadd.f32 %v17886_v34, %v29666_v50  ;;  %v30065_v17 = vadd.f32 %v18103_v9, %v17903_v47  ;;  %24330 = vmatprep.mubr.msk.f32.mxu0 %vm24755_vm0, %v31208_v53  ;;  %v22380_v50 = vld [vmem:[%s31060_s5 + $0x968] sm:$0xff] }
 0xa07   : > { %v23973_v8 = vpop.f32.mrf.mxu0  ;;  %v24019_v49 = vpop.f32.mrf.mxu1  ;;  %24371 = vmatmul.mubr.msk.f32.vlgmr.msra.gmra.mxu1 %vm15322_vm6, %v22379_v6  ;;  %v22358_v6 = vld [vmem:[%s31060_s5 + $0x930] sm:$0xff] }
 0xa08   : > { %24465 = vmatpush3.msra.mxu1 %v20136_v2  ;;  %24373 = vmatprep.mubr.msk.f32.mxu1 %vm24755_vm0, %v31208_v53  ;;  %v22359_v49 = vld [vmem:[%s31060_s5 + $0x938] sm:$0xff] }
 0xa09   : > { %24466 = vmatprep.subr.mxu1 %v31208_v53  ;;  %v18108_v19 = vpop.f32.mrf.mxu1  ;;  %v18260_v51 = vpop.f32.mrf.mxu0  ;;  %24331 = vmatmul.mubr.msk.f32.gmra.mxu0 %vm15322_vm6, %v22352_v15 }
 0xa0a   : > { %v30080_v22 = vadd.f32 %v18108_v19, %v17904_v41  ;;  %v18334_v26 = vadd.f32 %v18260_v51, %v29868_v33  ;;  %24467 = vmatpush3.msra.mxu1 %v20134_v25  ;;  %24333 = vmatprep.mubr.msk.f32.mxu0 %vm24755_vm0, %v31208_v53  ;;  %v22381_v33 = vld [vmem:[%s31060_s5 + $0x970] sm:$0xff] }
 0xa0b   : > { %v24022_v60 = vpop.f32.mrf.mxu1  ;;  %v24029_v54 = vpop.f32.mrf.mxu0  ;;  %24374 = vmatmul.mubr.msk.f32.gmra.mxu1 %vm15322_vm6, %v22380_v50  ;;  %24562 = vmatprep.subr.mxu1 %v31208_v53 }
 0xa0c   : > { %24376 = vmatprep.mubr.msk.f32.mxu1 %vm24755_vm0, %v31208_v53  ;;  %v22360_v60 = vld [vmem:[%s31060_s5 + $0x940] sm:$0xff] }
 0xa0d   : > { %v18265_v4 = vpop.f32.mrf.mxu0  ;;  %v18482_v59 = vpop.f32.mrf.mxu1  ;;  %24334 = vmatmul.mubr.msk.f32.gmra.mxu0 %vm15322_vm6, %v22353_v61 }
 0xa0e   : > { %v18335_v12 = vadd.f32 %v18265_v4, %v29883_v1  ;;  %v30097_v3 = vadd.f32 %v18482_v59, %v18334_v26  ;;  %24336 = vmatprep.mubr.msk.f32.mxu0 %vm24755_vm0, %v31208_v53  ;;  %v22382_v1 = vld [vmem:[%s31060_s5 + $0x978] sm:$0xff] }
 0xa0f   : > { %v24032_v38 = vpop.f32.mrf.mxu0  ;;  %v24078_v58 = vpop.f32.mrf.mxu1  ;;  %24377 = vmatmul.mubr.msk.f32.gmra.mxu1 %vm15322_vm6, %v22381_v33 }
 0xa10   : > { %24379 = vmatprep.mubr.msk.f32.mxu1 %vm24755_vm0, %v31208_v53  ;;  %v22361_v38 = vld [vmem:[%s31060_s5 + $0x948] sm:$0xff] }
 0xa11   : > { %v18270_v14 = vpop.f32.mrf.mxu0  ;;  %v18487_v20 = vpop.f32.mrf.mxu1  ;;  %24337 = vmatmul.mubr.msk.f32.gmra.mxu0 %vm15322_vm6, %v22354_v18 }
 0xa12   : > { %v18336_v0 = vadd.f32 %v18270_v14, %v29898_v43  ;;  %v30112_v42 = vadd.f32 %v18487_v20, %v18335_v12  ;;  %24339 = vmatprep.mubr.msk.f32.mxu0 %vm24755_vm0, %v31208_v53  ;;  %v22383_v43 = vld [vmem:[%s31060_s5 + $0x980] sm:$0xff] }
 0xa13   : > { %v24035_v5 = vpop.f32.mrf.mxu0  ;;  %v24081_v48 = vpop.f32.mrf.mxu1  ;;  %24380 = vmatmul.mubr.msk.f32.gmra.mxu1 %vm15322_vm6, %v22382_v1 }
 0xa14   : > { %24382 = vmatprep.mubr.msk.f32.mxu1 %vm24755_vm0, %v31208_v53  ;;  %v22362_v5 = vld [vmem:[%s31060_s5 + $0x950] sm:$0xff] }
 0xa15   : > { %v18275_v28 = vpop.f32.mrf.mxu0  ;;  %v18492_v35 = vpop.f32.mrf.mxu1  ;;  %24340 = vmatmul.mubr.msk.f32.gmra.mxu0 %vm15322_vm6, %v22355_v10 }
 0xa16   : > { %v18337_v30 = vadd.f32 %v18275_v28, %v29913_v23  ;;  %v30127_v32 = vadd.f32 %v18492_v35, %v18336_v0  ;;  %24342 = vmatprep.mubr.msk.f32.mxu0 %vm24755_vm0, %v31208_v53  ;;  %v22384_v23 = vld [vmem:[%s31060_s5 + $0x988] sm:$0xff] }
 0xa17   : > { %v24038_v63 = vpop.f32.mrf.mxu0  ;;  %v24084_v56 = vpop.f32.mrf.mxu1  ;;  %24383 = vmatmul.mubr.msk.f32.gmra.mxu1 %vm15322_vm6, %v22383_v43 }
 0xa18   : > { %24385 = vmatprep.mubr.msk.f32.mxu1 %vm24755_vm0, %v31208_v53  ;;  %v22363_v63 = vld [vmem:[%s31060_s5 + $0x958] sm:$0xff] }
 0xa19   : > { %v18280_v55 = vpop.f32.mrf.mxu0  ;;  %v18497_v45 = vpop.f32.mrf.mxu1  ;;  %24343 = vmatmul.mubr.msk.f32.gmra.mxu0 %vm15322_vm6, %v22356_v36 }
 0xa1a   : > { %v18338_v21 = vadd.f32 %v18280_v55, %v29928_v24  ;;  %v30142_v11 = vadd.f32 %v18497_v45, %v18337_v30  ;;  %24345 = vmatprep.mubr.msk.f32.mxu0 %vm24755_vm0, %v31208_v53  ;;  %v22385_v24 = vld [vmem:[%s31060_s5 + $0x990] sm:$0xff] }
 0xa1b   : > { %v24041_v39 = vpop.f32.mrf.mxu0  ;;  %v24087_v31 = vpop.f32.mrf.mxu1  ;;  %24386 = vmatmul.mubr.msk.f32.gmra.mxu1 %vm15322_vm6, %v22384_v23 }
 0xa1c   : > { %24388 = vmatprep.mubr.msk.f32.mxu1 %vm24755_vm0, %v31208_v53  ;;  %v22409_v39 = vld [vmem:[%s31060_s5 + $0x9d8] sm:$0xff] }
 0xa1d   : > { %v18285_v47 = vpop.f32.mrf.mxu0  ;;  %v18502_v37 = vpop.f32.mrf.mxu1  ;;  %24346 = vmatmul.mubr.msk.f32.gmra.mxu0 %vm15322_vm6, %v22357_v7 }
 0xa1e   : > { %v18339_v29 = vadd.f32 %v18285_v47, %v29943_v40  ;;  %v30157_v52 = vadd.f32 %v18502_v37, %v18338_v21  ;;  %24348 = vmatprep.mubr.msk.f32.mxu0 %vm24755_vm0, %v31208_v53  ;;  %v22386_v40 = vld [vmem:[%s31060_s5 + $0x998] sm:$0xff]  ;;  %v20358_v47 = vpop.permute.xlu1 %20357 }
 0xa1f   : > { %v24044_v34 = vpop.f32.mrf.mxu0  ;;  %v24090_v9 = vpop.f32.mrf.mxu1  ;;  %24389 = vmatmul.mubr.msk.f32.gmra.mxu1 %vm15322_vm6, %v22385_v24 }
 0xa20   : > { %24391 = vmatprep.mubr.msk.f32.mxu1 %vm24755_vm0, %v31208_v53 }
 0xa21   : > { %v18290_v2 = vpop.f32.mrf.mxu0  ;;  %v18507_v41 = vpop.f32.mrf.mxu1  ;;  %24349 = vmatmul.mubr.msk.f32.gmra.mxu0 %vm15322_vm6, %v22358_v6 }
 0xa22   : > { %v18340_v15 = vadd.f32 %v18290_v2, %v29958_v62  ;;  %v30172_v8 = vadd.f32 %v18507_v41, %v18339_v29  ;;  %24351 = vmatprep.mubr.msk.f32.mxu0 %vm24755_vm0, %v31208_v53  ;;  %v22387_v62 = vld [vmem:[%s31060_s5 + $0x9a0] sm:$0xff]  ;;  %v20356_v6 = vpop.permute.xlu0 %20355 }
 0xa23   : > { %v24047_v25 = vpop.f32.mrf.mxu0  ;;  %v24093_v50 = vpop.f32.mrf.mxu1  ;;  %24392 = vmatmul.mubr.msk.f32.gmra.mxu1 %vm15322_vm6, %v22386_v40  ;;  %v22410_v40 = vld [vmem:[%s31060_s5 + $0x9e0] sm:$0xff] }
 0xa24   : > { %24394 = vmatprep.mubr.msk.f32.mxu1 %vm24755_vm0, %v31208_v53 }
 0xa25   : > { %v18295_v19 = vpop.f32.mrf.mxu0  ;;  %v18512_v51 = vpop.f32.mrf.mxu1  ;;  %24352 = vmatmul.mubr.msk.f32.gmra.mxu0 %vm15322_vm6, %v22359_v49 }
 0xa26   : > { %v18341_v26 = vadd.f32 %v18295_v19, %v29973_v57  ;;  %v30187_v61 = vadd.f32 %v18512_v51, %v18340_v15  ;;  %24354 = vmatprep.mubr.msk.f32.mxu0 %vm24755_vm0, %v31208_v53  ;;  %v22388_v57 = vld [vmem:[%s31060_s5 + $0x9a8] sm:$0xff] }
 0xa27   : > { %v24050_v54 = vpop.f32.mrf.mxu0  ;;  %v24096_v33 = vpop.f32.mrf.mxu1  ;;  %24395 = vmatmul.mubr.msk.f32.gmra.mxu1 %vm15322_vm6, %v22387_v62  ;;  %v22411_v62 = vld [vmem:[%s31060_s5 + $0x9e8] sm:$0xff] }
 0xa28   : > { %24397 = vmatprep.mubr.msk.f32.mxu1 %vm24755_vm0, %v31208_v53  ;;  %v20580_v54 = vpop.permute.xlu1 %20579 }
 0xa29   : > { %v18300_v4 = vpop.f32.mrf.mxu0  ;;  %v18517_v59 = vpop.f32.mrf.mxu1  ;;  %24355 = vmatmul.mubr.msk.f32.gmra.mxu0 %vm15322_vm6, %v22360_v60 }
 0xa2a   : > { %v18342_v12 = vadd.f32 %v18300_v4, %v29988_v27  ;;  %v30202_v18 = vadd.f32 %v18517_v59, %v18341_v26  ;;  %24357 = vmatprep.mubr.msk.f32.mxu0 %vm24755_vm0, %v31208_v53  ;;  %v22389_v27 = vld [vmem:[%s31060_s5 + $0x9b0] sm:$0xff] }
 0xa2b   : > { %v24053_v58 = vpop.f32.mrf.mxu0  ;;  %v24099_v1 = vpop.f32.mrf.mxu1  ;;  %24398 = vmatmul.mubr.msk.f32.gmra.mxu1 %vm15322_vm6, %v22388_v57  ;;  %v22412_v4 = vld [vmem:[%s31060_s5 + $0x9f0] sm:$0xff] }
 0xa2c   : > { %24400 = vmatprep.mubr.msk.f32.mxu1 %vm24755_vm0, %v31208_v53 }
 0xa2d   : > { %v18305_v14 = vpop.f32.mrf.mxu0  ;;  %v18522_v20 = vpop.f32.mrf.mxu1  ;;  %24358 = vmatmul.mubr.msk.f32.gmra.mxu0 %vm15322_vm6, %v22361_v38 }
 0xa2e   : > { %v18343_v0 = vadd.f32 %v18305_v14, %v30003_v16  ;;  %v30217_v10 = vadd.f32 %v18522_v20, %v18342_v12  ;;  %24360 = vmatprep.mubr.msk.f32.mxu0 %vm24755_vm0, %v31208_v53  ;;  %v22390_v16 = vld [vmem:[%s31060_s5 + $0x9b8] sm:$0xff]  ;;  %v20578_v38 = vpop.permute.xlu0 %20577 }
 0xa2f   : > { %v24056_v48 = vpop.f32.mrf.mxu0  ;;  %v24102_v43 = vpop.f32.mrf.mxu1  ;;  %24401 = vmatmul.mubr.msk.f32.gmra.mxu1 %vm15322_vm6, %v22389_v27  ;;  %v22413_v20 = vld [vmem:[%s31060_s5 + $0x9f8] sm:$0xff] }
 0xa30   : > { %24403 = vmatprep.mubr.msk.f32.mxu1 %vm24755_vm0, %v31208_v53  ;;  %v22441_v48 = vld [vmem:[%s31060_s5 + $0xa60] sm:$0xff] }
 0xa31   : > { %v18310_v28 = vpop.f32.mrf.mxu0  ;;  %v18527_v35 = vpop.f32.mrf.mxu1  ;;  %24361 = vmatmul.mubr.msk.f32.gmra.mxu0 %vm15322_vm6, %v22362_v5 }
 0xa32   : > { %v18344_v30 = vadd.f32 %v18310_v28, %v30018_v44  ;;  %v30232_v36 = vadd.f32 %v18527_v35, %v18343_v0  ;;  %24363 = vmatprep.mubr.msk.f32.mxu0 %vm24755_vm0, %v31208_v53  ;;  %v22391_v44 = vld [vmem:[%s31060_s5 + $0x9c0] sm:$0xff]  ;;  %v22442_v35 = vld [vmem:[%s31060_s5 + $0xa68] sm:$0xff] }
 0xa33   : > { %v24059_v56 = vpop.f32.mrf.mxu0  ;;  %v24105_v23 = vpop.f32.mrf.mxu1  ;;  %24404 = vmatmul.mubr.msk.f32.gmra.mxu1 %vm15322_vm6, %v22390_v16  ;;  %v22414_v16 = vld [vmem:[%s31060_s5 + $0xa00] sm:$0xff] }
 0xa34   : > { %24406 = vmatprep.mubr.msk.f32.mxu1 %vm24755_vm0, %v31208_v53  ;;  %v22415_v56 = vld [vmem:[%s31060_s5 + $0xa08] sm:$0xff] }
 0xa35   : > { %v18315_v55 = vpop.f32.mrf.mxu0  ;;  %v18532_v45 = vpop.f32.mrf.mxu1  ;;  %24364 = vmatmul.mubr.msk.f32.gmra.mxu0 %vm15322_vm6, %v22363_v63 }
 0xa36   : > { %v18345_v21 = vadd.f32 %v18315_v55, %v30033_v13  ;;  %v30247_v7 = vadd.f32 %v18532_v45, %v18344_v30  ;;  %24419 = vmatprep.mubr.msk.f32.mxu0 %vm24755_vm0, %v31208_v53  ;;  %v22392_v13 = vld [vmem:[%s31060_s5 + $0x9c8] sm:$0xff] }
 0xa37   : > { %v24062_v31 = vpop.f32.mrf.mxu0  ;;  %v24108_v24 = vpop.f32.mrf.mxu1  ;;  %24407 = vmatmul.mubr.msk.f32.gmra.mxu1 %vm15322_vm6, %v22391_v44 }
 0xa38   : > { %24409 = vmatprep.mubr.msk.f32.mxu1 %vm24755_vm0, %v31208_v53 }
 0xa39   : > { %v18320_v37 = vpop.f32.mrf.mxu0  ;;  %v18537_v29 = vpop.f32.mrf.mxu1  ;;  %24420 = vmatmul.mubr.msk.f32.vlgmr.msra.gmra.mxu0 %vm15322_vm6, %v22409_v39  ;;  %v22416_v39 = vld [vmem:[%s31060_s5 + $0xa10] sm:$0xff] }
 0xa3a   : > { %v18346_v34 = vadd.f32 %v18320_v37, %v30050_v46  ;;  %v30262_v9 = vadd.f32 %v18537_v29, %v18345_v21  ;;  %24514 = vmatpush3.msra.mxu0 %v20358_v47  ;;  %24422 = vmatprep.mubr.msk.f32.mxu0 %vm24755_vm0, %v31208_v53  ;;  %v22393_v46 = vld [vmem:[%s31060_s5 + $0x9d0] sm:$0xff] }
 0xa3b   : > { %24515 = vmatprep.subr.mxu0 %v31208_v53  ;;  %v24065_v2 = vpop.f32.mrf.mxu0  ;;  %v24111_v41 = vpop.f32.mrf.mxu1  ;;  %24410 = vmatmul.mubr.msk.f32.gmra.mxu1 %vm15322_vm6, %v22392_v13 }
 0xa3c   : > { %24516 = vmatpush3.msra.mxu0 %v20356_v6  ;;  %24412 = vmatprep.mubr.msk.f32.mxu1 %vm24755_vm0, %v31208_v53  ;;  %v22417_v6 = vld [vmem:[%s31060_s5 + $0xa18] sm:$0xff] }
 0xa3d   : > { %v18325_v15 = vpop.f32.mrf.mxu0  ;;  %v18542_v49 = vpop.f32.mrf.mxu1  ;;  %24423 = vmatmul.mubr.msk.f32.gmra.mxu0 %vm15322_vm6, %v22410_v40  ;;  %24611 = vmatprep.subr.mxu0 %v31208_v53 }
 0xa3e   : > { %v18347_v25 = vadd.f32 %v18325_v15, %v30065_v17  ;;  %v30279_v50 = vadd.f32 %v18542_v49, %v18346_v34  ;;  %24425 = vmatprep.mubr.msk.f32.mxu0 %vm24755_vm0, %v31208_v53  ;;  %v22439_v17 = vld [vmem:[%s31060_s5 + $0xa50] sm:$0xff]  ;;  %v22418_v49 = vld [vmem:[%s31060_s5 + $0xa20] sm:$0xff] }
 0xa3f   : > { %v24068_v19 = vpop.f32.mrf.mxu0  ;;  %v24114_v51 = vpop.f32.mrf.mxu1  ;;  %24413 = vmatmul.mubr.msk.f32.gmra.mxu1 %vm15322_vm6, %v22393_v46 }
 0xa40   : > { %24468 = vmatprep.mubr.msk.f32.mxu1 %vm24755_vm0, %v31208_v53 }
 0xa41   : > { %v18330_v26 = vpop.f32.mrf.mxu0  ;;  %v18547_v60 = vpop.f32.mrf.mxu1  ;;  %24426 = vmatmul.mubr.msk.f32.gmra.mxu0 %vm15322_vm6, %v22411_v62 }
 0xa42   : > { %v18348_v33 = vadd.f32 %v18330_v26, %v30080_v22  ;;  %v30294_v57 = vadd.f32 %v18547_v60, %v18347_v25  ;;  %24428 = vmatprep.mubr.msk.f32.mxu0 %vm24755_vm0, %v31208_v53  ;;  %v22440_v22 = vld [vmem:[%s31060_s5 + $0xa58] sm:$0xff]  ;;  %v22419_v60 = vld [vmem:[%s31060_s5 + $0xa28] sm:$0xff] }
 0xa43   : > { %v24071_v59 = vpop.f32.mrf.mxu0  ;;  %v24117_v12 = vpop.f32.mrf.mxu1  ;;  %24469 = vmatmul.mubr.msk.f32.vlgmr.msra.gmra.mxu1 %vm15322_vm6, %v22439_v17 }
 0xa44   : > { %24563 = vmatpush3.msra.mxu1 %v20580_v54  ;;  %24471 = vmatprep.mubr.msk.f32.mxu1 %vm24755_vm0, %v31208_v53 }
 0xa45   : > { %24564 = vmatprep.subr.mxu1 %v31208_v53  ;;  %v18552_v58 = vpop.f32.mrf.mxu1  ;;  %v18698_v1 = vpop.f32.mrf.mxu0  ;;  %24429 = vmatmul.mubr.msk.f32.gmra.mxu0 %vm15322_vm6, %v22412_v4 }
 0xa46   : > { %v30309_v27 = vadd.f32 %v18552_v58, %v18348_v33  ;;  %v18772_v14 = vadd.f32 %v18698_v1, %v30097_v3  ;;  %24565 = vmatpush3.msra.mxu1 %v20578_v38  ;;  %24431 = vmatprep.mubr.msk.f32.mxu0 %vm24755_vm0, %v31208_v53 }
 0xa47   : > { %v24127_v0 = vpop.f32.mrf.mxu0  ;;  %24472 = vmatmul.mubr.msk.f32.gmra.mxu1 %vm15322_vm6, %v22440_v22  ;;  %v24120_v5 = vpop.f32.mrf.mxu1  ;;  %v22420_v22 = vld [vmem:[%s31060_s5 + $0xa30] sm:$0xff] }
 0xa48   : > { %24474 = vmatprep.mubr.msk.f32.mxu1 %vm24755_vm0, %v31208_v53 }
 0xa49   : > { %v18703_v3 = vpop.f32.mrf.mxu0  ;;  %24432 = vmatmul.mubr.msk.f32.gmra.mxu0 %vm15322_vm6, %v22413_v20 }
 0xa4a   : > { %v18773_v43 = vadd.f32 %v18703_v3, %v30112_v42  ;;  %24434 = vmatprep.mubr.msk.f32.mxu0 %vm24755_vm0, %v31208_v53 }
 0xa4b   : > { %v24130_v28 = vpop.f32.mrf.mxu0  ;;  %24475 = vmatmul.mubr.msk.f32.gmra.mxu1 %vm15322_vm6, %v22441_v48  ;;  %v22421_v48 = vld [vmem:[%s31060_s5 + $0xa38] sm:$0xff] }
 0xa4c   : > { %24477 = vmatprep.mubr.msk.f32.mxu1 %vm24755_vm0, %v31208_v53 }
 0xa4d   : > { %v18708_v30 = vpop.f32.mrf.mxu0  ;;  %24435 = vmatmul.mubr.msk.f32.gmra.mxu0 %vm15322_vm6, %v22414_v16 }
 0xa4e   : > { %v18774_v42 = vadd.f32 %v18708_v30, %v30127_v32  ;;  %v18922_v63 = vpop.f32.mrf.mxu1  ;;  %24437 = vmatprep.mubr.msk.f32.mxu0 %vm24755_vm0, %v31208_v53  ;;  %v22443_v32 = vld [vmem:[%s31060_s5 + $0xa70] sm:$0xff] }
 0xa4f   : > { %v24133_v23 = vpop.f32.mrf.mxu0  ;;  %v30343_v44 = vadd.f32 %v18922_v63, %v18772_v14  ;;  %24478 = vmatmul.mubr.msk.f32.gmra.mxu1 %vm15322_vm6, %v22442_v35 }
 0xa50   : > { %v24176_v55 = vpop.f32.mrf.mxu1  ;;  %24480 = vmatprep.mubr.msk.f32.mxu1 %vm24755_vm0, %v31208_v53 }
 0xa51   : > { %v18713_v45 = vpop.f32.mrf.mxu0  ;;  %24438 = vmatmul.mubr.msk.f32.gmra.mxu0 %vm15322_vm6, %v22415_v56 }
 0xa52   : > { %v18775_v21 = vadd.f32 %v18713_v45, %v30142_v11  ;;  %24440 = vmatprep.mubr.msk.f32.mxu0 %vm24755_vm0, %v31208_v53  ;;  %v22444_v11 = vld [vmem:[%s31060_s5 + $0xa78] sm:$0xff] }
 0xa53   : > { %v24136_v31 = vpop.f32.mrf.mxu0  ;;  %v18927_v24 = vpop.f32.mrf.mxu1  ;;  %24481 = vmatmul.mubr.msk.f32.gmra.mxu1 %vm15322_vm6, %v22443_v32 }
 0xa54   : > { %v30359_v47 = vadd.f32 %v18927_v24, %v18773_v43  ;;  %24483 = vmatprep.mubr.msk.f32.mxu1 %vm24755_vm0, %v31208_v53 }
 0xa55   : > { %v18718_v13 = vpop.f32.mrf.mxu0  ;;  %v24179_v37 = vpop.f32.mrf.mxu1  ;;  %24441 = vmatmul.mubr.msk.f32.gmra.mxu0 %vm15322_vm6, %v22416_v39 }
 0xa56   : > { %v18776_v29 = vadd.f32 %v18718_v13, %v30157_v52  ;;  %24443 = vmatprep.mubr.msk.f32.mxu0 %vm24755_vm0, %v31208_v53  ;;  %v22445_v52 = vld [vmem:[%s31060_s5 + $0xa80] sm:$0xff] }
 0xa57   : > { %v24139_v34 = vpop.f32.mrf.mxu0  ;;  %v18932_v40 = vpop.f32.mrf.mxu1  ;;  %24484 = vmatmul.mubr.msk.f32.gmra.mxu1 %vm15322_vm6, %v22444_v11 }
 0xa58   : > { %v30374_v2 = vadd.f32 %v18932_v40, %v18774_v42  ;;  %24486 = vmatprep.mubr.msk.f32.mxu1 %vm24755_vm0, %v31208_v53  ;;  %v22422_v42 = vld [vmem:[%s31060_s5 + $0xa40] sm:$0xff] }
 0xa59   : > { %v18723_v41 = vpop.f32.mrf.mxu0  ;;  %v24182_v46 = vpop.f32.mrf.mxu1  ;;  %24444 = vmatmul.mubr.msk.f32.gmra.mxu0 %vm15322_vm6, %v22417_v6 }
 0xa5a   : > { %v18777_v15 = vadd.f32 %v18723_v41, %v30172_v8  ;;  %24446 = vmatprep.mubr.msk.f32.mxu0 %vm24755_vm0, %v31208_v53  ;;  %v22446_v8 = vld [vmem:[%s31060_s5 + $0xa88] sm:$0xff] }
 0xa5b   : > { %v24142_v25 = vpop.f32.mrf.mxu0  ;;  %v18937_v62 = vpop.f32.mrf.mxu1  ;;  %24487 = vmatmul.mubr.msk.f32.gmra.mxu1 %vm15322_vm6, %v22445_v52 }
 0xa5c   : > { %v30389_v19 = vadd.f32 %v18937_v62, %v18775_v21  ;;  %24489 = vmatprep.mubr.msk.f32.mxu1 %vm24755_vm0, %v31208_v53  ;;  %v22423_v21 = vld [vmem:[%s31060_s5 + $0xa48] sm:$0xff] }
 0xa5d   : > { %v18728_v51 = vpop.f32.mrf.mxu0  ;;  %v24185_v17 = vpop.f32.mrf.mxu1  ;;  %24447 = vmatmul.mubr.msk.f32.gmra.mxu0 %vm15322_vm6, %v22418_v49 }
 0xa5e   : > { %v18778_v26 = vadd.f32 %v18728_v51, %v30187_v61  ;;  %24449 = vmatprep.mubr.msk.f32.mxu0 %vm24755_vm0, %v31208_v53  ;;  %v22447_v61 = vld [vmem:[%s31060_s5 + $0xa90] sm:$0xff] }
 0xa5f   : > { %v24145_v54 = vpop.f32.mrf.mxu0  ;;  %v18942_v33 = vpop.f32.mrf.mxu1  ;;  %24490 = vmatmul.mubr.msk.f32.gmra.mxu1 %vm15322_vm6, %v22446_v8 }
 0xa60   : > { %v30404_v4 = vadd.f32 %v18942_v33, %v18776_v29  ;;  %24492 = vmatprep.mubr.msk.f32.mxu1 %vm24755_vm0, %v31208_v53  ;;  %v22469_v29 = vld [vmem:[%s31060_s5 + $0xac8] sm:$0xff] }
 0xa61   : > { %v18733_v59 = vpop.f32.mrf.mxu0  ;;  %v24188_v12 = vpop.f32.mrf.mxu1  ;;  %24450 = vmatmul.mubr.msk.f32.gmra.mxu0 %vm15322_vm6, %v22419_v60 }
 0xa62   : > { %v18779_v38 = vadd.f32 %v18733_v59, %v30202_v18  ;;  %24452 = vmatprep.mubr.msk.f32.mxu0 %vm24755_vm0, %v31208_v53  ;;  %v22448_v18 = vld [vmem:[%s31060_s5 + $0xa98] sm:$0xff] }
 0xa63   : > { %v24148_v58 = vpop.f32.mrf.mxu0  ;;  %v18947_v1 = vpop.f32.mrf.mxu1  ;;  %24493 = vmatmul.mubr.msk.f32.gmra.mxu1 %vm15322_vm6, %v22447_v61 }
 0xa64   : > { %v30419_v14 = vadd.f32 %v18947_v1, %v18777_v15  ;;  %24495 = vmatprep.mubr.msk.f32.mxu1 %vm24755_vm0, %v31208_v53  ;;  %v22470_v15 = vld [vmem:[%s31060_s5 + $0xad0] sm:$0xff] }
 0xa65   : > { %v18738_v20 = vpop.f32.mrf.mxu0  ;;  %v24191_v0 = vpop.f32.mrf.mxu1  ;;  %24453 = vmatmul.mubr.msk.f32.gmra.mxu0 %vm15322_vm6, %v22420_v22 }
 0xa66   : > { %v18780_v5 = vadd.f32 %v18738_v20, %v30217_v10  ;;  %24455 = vmatprep.mubr.msk.f32.mxu0 %vm24755_vm0, %v31208_v53  ;;  %v22449_v10 = vld [vmem:[%s31060_s5 + $0xaa0] sm:$0xff] }
 0xa67   : > { %v24151_v3 = vpop.f32.mrf.mxu0  ;;  %v18952_v43 = vpop.f32.mrf.mxu1  ;;  %24496 = vmatmul.mubr.msk.f32.gmra.mxu1 %vm15322_vm6, %v22448_v18 }
 0xa68   : > { %v30434_v16 = vadd.f32 %v18952_v43, %v18778_v26  ;;  %24498 = vmatprep.mubr.msk.f32.mxu1 %vm24755_vm0, %v31208_v53  ;;  %v22471_v26 = vld [vmem:[%s31060_s5 + $0xad8] sm:$0xff] }
 0xa69   : > { %v18743_v28 = vpop.f32.mrf.mxu0  ;;  %v24194_v35 = vpop.f32.mrf.mxu1  ;;  %24456 = vmatmul.mubr.msk.f32.gmra.mxu0 %vm15322_vm6, %v22421_v48 }
 0xa6a   : > { %v18781_v30 = vadd.f32 %v18743_v28, %v30232_v36  ;;  %24458 = vmatprep.mubr.msk.f32.mxu0 %vm24755_vm0, %v31208_v53  ;;  %v22450_v36 = vld [vmem:[%s31060_s5 + $0xaa8] sm:$0xff] }
 0xa6b   : > { %v24154_v63 = vpop.f32.mrf.mxu0  ;;  %v18957_v56 = vpop.f32.mrf.mxu1  ;;  %24499 = vmatmul.mubr.msk.f32.gmra.mxu1 %vm15322_vm6, %v22449_v10 }
 0xa6c   : > { %v30449_v23 = vadd.f32 %v18957_v56, %v18779_v38  ;;  %24501 = vmatprep.mubr.msk.f32.mxu1 %vm24755_vm0, %v31208_v53  ;;  %v22472_v38 = vld [vmem:[%s31060_s5 + $0xae0] sm:$0xff] }
 0xa6d   : > { %v18748_v55 = vpop.f32.mrf.mxu0  ;;  %v24197_v32 = vpop.f32.mrf.mxu1  ;;  %24459 = vmatmul.mubr.msk.f32.gmra.mxu0 %vm15322_vm6, %v22422_v42 }
 0xa6e   : > { %v18782_v45 = vadd.f32 %v18748_v55, %v30247_v7  ;;  %24461 = vmatprep.mubr.msk.f32.mxu0 %vm24755_vm0, %v31208_v53  ;;  %v22451_v7 = vld [vmem:[%s31060_s5 + $0xab0] sm:$0xff] }
 0xa6f   : > { %v24157_v39 = vpop.f32.mrf.mxu0  ;;  %v18962_v31 = vpop.f32.mrf.mxu1  ;;  %24502 = vmatmul.mubr.msk.f32.gmra.mxu1 %vm15322_vm6, %v22450_v36 }
 0xa70   : > { %v30464_v24 = vadd.f32 %v18962_v31, %v18780_v5  ;;  %24504 = vmatprep.mubr.msk.f32.mxu1 %vm24755_vm0, %v31208_v53  ;;  %v22473_v5 = vld [vmem:[%s31060_s5 + $0xae8] sm:$0xff] }
 0xa71   : > { %v18753_v11 = vpop.f32.mrf.mxu0  ;;  %v24200_v13 = vpop.f32.mrf.mxu1  ;;  %24462 = vmatmul.mubr.msk.f32.gmra.mxu0 %vm15322_vm6, %v22423_v21 }
 0xa72   : > { %v18783_v37 = vadd.f32 %v18753_v11, %v30262_v9  ;;  %24517 = vmatprep.mubr.msk.f32.mxu0 %vm24755_vm0, %v31208_v53  ;;  %v22452_v9 = vld [vmem:[%s31060_s5 + $0xab8] sm:$0xff] }
 0xa73   : > { %v24160_v6 = vpop.f32.mrf.mxu0  ;;  %v18967_v34 = vpop.f32.mrf.mxu1  ;;  %24505 = vmatmul.mubr.msk.f32.gmra.mxu1 %vm15322_vm6, %v22451_v7 }
 0xa74   : > { %v30479_v40 = vadd.f32 %v18967_v34, %v18781_v30  ;;  %24507 = vmatprep.mubr.msk.f32.mxu1 %vm24755_vm0, %v31208_v53  ;;  %v22474_v30 = vld [vmem:[%s31060_s5 + $0xaf0] sm:$0xff] }
 0xa75   : > { %v18758_v52 = vpop.f32.mrf.mxu0  ;;  %v24203_v41 = vpop.f32.mrf.mxu1  ;;  %24518 = vmatmul.mubr.msk.f32.vlgmr.msra.gmra.mxu0 %vm15322_vm6, %v22469_v29 }
 0xa76   : > { %v18784_v46 = vadd.f32 %v18758_v52, %v30279_v50  ;;  %24520 = vmatprep.mubr.msk.f32.mxu0 %vm24755_vm0, %v31208_v53  ;;  %v22453_v50 = vld [vmem:[%s31060_s5 + $0xac0] sm:$0xff] }
 0xa77   : > { %v24163_v49 = vpop.f32.mrf.mxu0  ;;  %v18972_v25 = vpop.f32.mrf.mxu1  ;;  %24508 = vmatmul.mubr.msk.f32.gmra.mxu1 %vm15322_vm6, %v22452_v9 }
 0xa78   : > { %v30494_v62 = vadd.f32 %v18972_v25, %v18782_v45  ;;  %24510 = vmatprep.mubr.msk.f32.mxu1 %vm24755_vm0, %v31208_v53  ;;  %v22475_v45 = vld [vmem:[%s31060_s5 + $0xaf8] sm:$0xff] }
 0xa79   : > { %v18763_v8 = vpop.f32.mrf.mxu0  ;;  %v24206_v51 = vpop.f32.mrf.mxu1  ;;  %24521 = vmatmul.mubr.msk.f32.gmra.mxu0 %vm15322_vm6, %v22470_v15 }
 0xa7a   : > { %v18785_v17 = vadd.f32 %v18763_v8, %v30294_v57  ;;  %24523 = vmatprep.mubr.msk.f32.mxu0 %vm24755_vm0, %v31208_v53  ;;  %v22499_v57 = vld [vmem:[%s31060_s5 + $0xb40] sm:$0xff] }
 0xa7b   : > { %v24166_v60 = vpop.f32.mrf.mxu0  ;;  %v18977_v54 = vpop.f32.mrf.mxu1  ;;  %24511 = vmatmul.mubr.msk.f32.gmra.mxu1 %vm15322_vm6, %v22453_v50 }
 0xa7c   : > { %v30509_v33 = vadd.f32 %v18977_v54, %v18783_v37  ;;  %24566 = vmatprep.mubr.msk.f32.mxu1 %vm24755_vm0, %v31208_v53  ;;  %v22476_v37 = vld [vmem:[%s31060_s5 + $0xb00] sm:$0xff] }
 0xa7d   : > { %v18768_v61 = vpop.f32.mrf.mxu0  ;;  %v24209_v59 = vpop.f32.mrf.mxu1  ;;  %24524 = vmatmul.mubr.msk.f32.gmra.mxu0 %vm15322_vm6, %v22471_v26 }
 0xa7e   : > { %v18786_v12 = vadd.f32 %v18768_v61, %v30309_v27  ;;  %24526 = vmatprep.mubr.msk.f32.mxu0 %vm24755_vm0, %v31208_v53  ;;  %v22500_v27 = vld [vmem:[%s31060_s5 + $0xb48] sm:$0xff] }
 0xa7f   : > { %v24169_v22 = vpop.f32.mrf.mxu0  ;;  %v18982_v58 = vpop.f32.mrf.mxu1  ;;  %24567 = vmatmul.mubr.msk.f32.vlgmr.msra.gmra.mxu1 %vm15322_vm6, %v22499_v57 }
 0xa80   : > { %v30524_v1 = vadd.f32 %v18982_v58, %v18784_v46  ;;  %24569 = vmatprep.mubr.msk.f32.mxu1 %vm24755_vm0, %v31208_v53  ;;  %v22477_v46 = vld [vmem:[%s31060_s5 + $0xb08] sm:$0xff] }
 0xa81   : > { %v24212_v18 = vpop.f32.mrf.mxu1  ;;  %v19144_v20 = vpop.f32.mrf.mxu0  ;;  %24527 = vmatmul.mubr.msk.f32.gmra.mxu0 %vm15322_vm6, %v22472_v38 }
 0xa82   : > { %v19218_v0 = vadd.f32 %v19144_v20, %v30343_v44  ;;  %24529 = vmatprep.mubr.msk.f32.mxu0 %vm24755_vm0, %v31208_v53  ;;  %v22501_v44 = vld [vmem:[%s31060_s5 + $0xb50] sm:$0xff] }
 0xa83   : > { %v18987_v48 = vpop.f32.mrf.mxu1  ;;  %v24225_v3 = vpop.f32.mrf.mxu0  ;;  %24570 = vmatmul.mubr.msk.f32.gmra.mxu1 %vm15322_vm6, %v22500_v27 }
 0xa84   : > { %v30539_v43 = vadd.f32 %v18987_v48, %v18785_v17  ;;  %24572 = vmatprep.mubr.msk.f32.mxu1 %vm24755_vm0, %v31208_v53  ;;  %v22478_v17 = vld [vmem:[%s31060_s5 + $0xb10] sm:$0xff] }
 0xa85   : > { %v24215_v10 = vpop.f32.mrf.mxu1  ;;  %v19149_v28 = vpop.f32.mrf.mxu0  ;;  %24530 = vmatmul.mubr.msk.f32.gmra.mxu0 %vm15322_vm6, %v22473_v5 }
 0xa86   : > { %v19219_v35 = vadd.f32 %v19149_v28, %v30359_v47  ;;  %24532 = vmatprep.mubr.msk.f32.mxu0 %vm24755_vm0, %v31208_v53  ;;  %v22502_v47 = vld [vmem:[%s31060_s5 + $0xb58] sm:$0xff] }
 0xa87   : > { %v18992_v42 = vpop.f32.mrf.mxu1  ;;  %v24228_v63 = vpop.f32.mrf.mxu0  ;;  %24573 = vmatmul.mubr.msk.f32.gmra.mxu1 %vm15322_vm6, %v22501_v44 }
 0xa88   : > { %v30554_v56 = vadd.f32 %v18992_v42, %v18786_v12  ;;  %24575 = vmatprep.mubr.msk.f32.mxu1 %vm24755_vm0, %v31208_v53  ;;  %v22479_v12 = vld [vmem:[%s31060_s5 + $0xb18] sm:$0xff] }
 0xa89   : > { %v24218_v36 = vpop.f32.mrf.mxu1  ;;  %v19154_v55 = vpop.f32.mrf.mxu0  ;;  %24533 = vmatmul.mubr.msk.f32.gmra.mxu0 %vm15322_vm6, %v22474_v30 }
 0xa8a   : > { %v19220_v32 = vadd.f32 %v19154_v55, %v30374_v2  ;;  %24535 = vmatprep.mubr.msk.f32.mxu0 %vm24755_vm0, %v31208_v53  ;;  %v22503_v2 = vld [vmem:[%s31060_s5 + $0xb60] sm:$0xff] }
 0xa8b   : > { %v24231_v21 = vpop.f32.mrf.mxu0  ;;  %v19366_v39 = vpop.f32.mrf.mxu1  ;;  %24576 = vmatmul.mubr.msk.f32.gmra.mxu1 %vm15322_vm6, %v22502_v47 }
 0xa8c   : > { %v30569_v31 = vadd.f32 %v19366_v39, %v19218_v0  ;;  %24578 = vmatprep.mubr.msk.f32.mxu1 %vm24755_vm0, %v31208_v53  ;;  %v22480_v0 = vld [vmem:[%s31060_s5 + $0xb20] sm:$0xff] }
 0xa8d   : > { %v19159_v7 = vpop.f32.mrf.mxu0  ;;  %v24274_v11 = vpop.f32.mrf.mxu1  ;;  %24536 = vmatmul.mubr.msk.f32.gmra.mxu0 %vm15322_vm6, %v22475_v45 }
 0xa8e   : > { %v19221_v13 = vadd.f32 %v19159_v7, %v30389_v19  ;;  %24538 = vmatprep.mubr.msk.f32.mxu0 %vm24755_vm0, %v31208_v53  ;;  %v22504_v19 = vld [vmem:[%s31060_s5 + $0xb68] sm:$0xff] }
 0xa8f   : > { %v24234_v29 = vpop.f32.mrf.mxu0  ;;  %v19371_v6 = vpop.f32.mrf.mxu1  ;;  %24579 = vmatmul.mubr.msk.f32.gmra.mxu1 %vm15322_vm6, %v22503_v2 }
 0xa90   : > { %v30584_v34 = vadd.f32 %v19371_v6, %v19219_v35  ;;  %24581 = vmatprep.mubr.msk.f32.mxu1 %vm24755_vm0, %v31208_v53  ;;  %v22481_v35 = vld [vmem:[%s31060_s5 + $0xb28] sm:$0xff] }
 0xa91   : > { %v19164_v9 = vpop.f32.mrf.mxu0  ;;  %v24277_v52 = vpop.f32.mrf.mxu1  ;;  %24539 = vmatmul.mubr.msk.f32.gmra.mxu0 %vm15322_vm6, %v22476_v37 }
 0xa92   : > { %v19222_v41 = vadd.f32 %v19164_v9, %v30404_v4  ;;  %24541 = vmatprep.mubr.msk.f32.mxu0 %vm24755_vm0, %v31208_v53  ;;  %v22505_v4 = vld [vmem:[%s31060_s5 + $0xb70] sm:$0xff] }
 0xa93   : > { %v24237_v15 = vpop.f32.mrf.mxu0  ;;  %v19376_v49 = vpop.f32.mrf.mxu1  ;;  %24582 = vmatmul.mubr.msk.f32.gmra.mxu1 %vm15322_vm6, %v22504_v19 }
 0xa94   : > { %v30599_v25 = vadd.f32 %v19376_v49, %v19220_v32  ;;  %24584 = vmatprep.mubr.msk.f32.mxu1 %vm24755_vm0, %v31208_v53  ;;  %v22482_v32 = vld [vmem:[%s31060_s5 + $0xb30] sm:$0xff]  ;;  %v22512_v49 = vld [vmem:[%s31060_s5 + $0xba8] sm:$0xff] }
 0xa95   : > { %v19169_v50 = vpop.f32.mrf.mxu0  ;;  %v24280_v8 = vpop.f32.mrf.mxu1  ;;  %24542 = vmatmul.mubr.msk.f32.gmra.mxu0 %vm15322_vm6, %v22477_v46 }
 0xa96   : > { %v19223_v51 = vadd.f32 %v19169_v50, %v30419_v14  ;;  %24544 = vmatprep.mubr.msk.f32.mxu0 %vm24755_vm0, %v31208_v53  ;;  %v22506_v14 = vld [vmem:[%s31060_s5 + $0xb78] sm:$0xff] }
 0xa97   : > { %v24240_v26 = vpop.f32.mrf.mxu0  ;;  %v19381_v60 = vpop.f32.mrf.mxu1  ;;  %24585 = vmatmul.mubr.msk.f32.gmra.mxu1 %vm15322_vm6, %v22505_v4 }
 0xa98   : > { %v30614_v54 = vadd.f32 %v19381_v60, %v19221_v13  ;;  %24587 = vmatprep.mubr.msk.f32.mxu1 %vm24755_vm0, %v31208_v53  ;;  %v22483_v13 = vld [vmem:[%s31060_s5 + $0xb38] sm:$0xff]  ;;  %v22513_v26 = vld [vmem:[%s31060_s5 + $0xbb0] sm:$0xff] }
 0xa99   : > { %v19174_v57 = vpop.f32.mrf.mxu0  ;;  %v24283_v61 = vpop.f32.mrf.mxu1  ;;  %24545 = vmatmul.mubr.msk.f32.gmra.mxu0 %vm15322_vm6, %v22478_v17 }
 0xa9a   : > { %v19224_v59 = vadd.f32 %v19174_v57, %v30434_v16  ;;  %24547 = vmatprep.mubr.msk.f32.mxu0 %vm24755_vm0, %v31208_v53  ;;  %v22507_v16 = vld [vmem:[%s31060_s5 + $0xb80] sm:$0xff] }
 0xa9b   : > { %v24243_v38 = vpop.f32.mrf.mxu0  ;;  %v19386_v22 = vpop.f32.mrf.mxu1  ;;  %24588 = vmatmul.mubr.msk.f32.gmra.mxu1 %vm15322_vm6, %v22506_v14 }
 0xa9c   : > { %v30629_v58 = vadd.f32 %v19386_v22, %v19222_v41  ;;  %24590 = vmatprep.mubr.msk.f32.mxu1 %vm24755_vm0, %v31208_v53 }
 0xa9d   : > { %v19179_v27 = vpop.f32.mrf.mxu0  ;;  %v24286_v18 = vpop.f32.mrf.mxu1  ;;  %24548 = vmatmul.mubr.msk.f32.gmra.mxu0 %vm15322_vm6, %v22479_v12 }
 0xa9e   : > { %v19225_v20 = vadd.f32 %v19179_v27, %v30449_v23  ;;  %24550 = vmatprep.mubr.msk.f32.mxu0 %vm24755_vm0, %v31208_v53  ;;  %v22508_v23 = vld [vmem:[%s31060_s5 + $0xb88] sm:$0xff] }
 0xa9f   : > { %v24246_v5 = vpop.f32.mrf.mxu0  ;;  %v19391_v48 = vpop.f32.mrf.mxu1  ;;  %24591 = vmatmul.mubr.msk.f32.gmra.mxu1 %vm15322_vm6, %v22507_v16 }
 0xaa0   : > { %v30644_v3 = vadd.f32 %v19391_v48, %v19223_v51  ;;  %24593 = vmatprep.mubr.msk.f32.mxu1 %vm24755_vm0, %v31208_v53 }
 0xaa1   : > { %v19184_v44 = vpop.f32.mrf.mxu0  ;;  %v24289_v10 = vpop.f32.mrf.mxu1  ;;  %24551 = vmatmul.mubr.msk.f32.gmra.mxu0 %vm15322_vm6, %v22480_v0 }
 0xaa2   : > { %v19226_v28 = vadd.f32 %v19184_v44, %v30464_v24  ;;  %24553 = vmatprep.mubr.msk.f32.mxu0 %vm24755_vm0, %v31208_v53  ;;  %v22509_v24 = vld [vmem:[%s31060_s5 + $0xb90] sm:$0xff] }
 0xaa3   : > { %v24249_v30 = vpop.f32.mrf.mxu0  ;;  %v19396_v42 = vpop.f32.mrf.mxu1  ;;  %24594 = vmatmul.mubr.msk.f32.gmra.mxu1 %vm15322_vm6, %v22508_v23 }
 0xaa4   : > { %v30659_v63 = vadd.f32 %v19396_v42, %v19224_v59  ;;  %24596 = vmatprep.mubr.msk.f32.mxu1 %vm24755_vm0, %v31208_v53 }
 0xaa5   : > { %v19189_v47 = vpop.f32.mrf.mxu0  ;;  %v24292_v36 = vpop.f32.mrf.mxu1  ;;  %24554 = vmatmul.mubr.msk.f32.gmra.mxu0 %vm15322_vm6, %v22481_v35 }
 0xaa6   : > { %v19227_v55 = vadd.f32 %v19189_v47, %v30479_v40  ;;  %24556 = vmatprep.mubr.msk.f32.mxu0 %vm24755_vm0, %v31208_v53  ;;  %v22510_v40 = vld [vmem:[%s31060_s5 + $0xb98] sm:$0xff] }
 0xaa7   : > { %v24252_v45 = vpop.f32.mrf.mxu0  ;;  %v19401_v21 = vpop.f32.mrf.mxu1  ;;  %24597 = vmatmul.mubr.msk.f32.gmra.mxu1 %vm15322_vm6, %v22509_v24 }
 0xaa8   : > { %v30674_v39 = vadd.f32 %v19401_v21, %v19225_v20  ;;  %24599 = vmatprep.mubr.msk.f32.mxu1 %vm24755_vm0, %v31208_v53 }
 0xaa9   : > { %v19194_v2 = vpop.f32.mrf.mxu0  ;;  %v24295_v7 = vpop.f32.mrf.mxu1  ;;  %24557 = vmatmul.mubr.msk.f32.gmra.mxu0 %vm15322_vm6, %v22482_v32 }
 0xaaa   : > { %v19228_v11 = vadd.f32 %v19194_v2, %v30494_v62  ;;  %24559 = vmatprep.mubr.msk.f32.mxu0 %vm24755_vm0, %v31208_v53  ;;  %v22511_v62 = vld [vmem:[%s31060_s5 + $0xba0] sm:$0xff] }
 0xaab   : > { %v24255_v37 = vpop.f32.mrf.mxu0  ;;  %v19406_v29 = vpop.f32.mrf.mxu1  ;;  %24600 = vmatmul.mubr.msk.f32.gmra.mxu1 %vm15322_vm6, %v22510_v40 }
 0xaac   : > { %v30689_v6 = vadd.f32 %v19406_v29, %v19226_v28  ;;  %24602 = vmatprep.mubr.msk.f32.mxu1 %vm24755_vm0, %v31208_v53 }
 0xaad   : > { %v19199_v19 = vpop.f32.mrf.mxu0  ;;  %v24298_v9 = vpop.f32.mrf.mxu1  ;;  %24560 = vmatmul.mubr.msk.f32.gmra.mxu0 %vm15322_vm6, %v22483_v13 }
 0xaae   : > { %v19229_v52 = vadd.f32 %v19199_v19, %v30509_v33  ;;  %24641 = vmatprep.mubr.msk.f32.mxu0 %vm24755_vm0, %v31208_v53 }
 0xaaf   : > { %v24258_v41 = vpop.f32.mrf.mxu0  ;;  %v19411_v46 = vpop.f32.mrf.mxu1  ;;  %24603 = vmatmul.mubr.msk.f32.gmra.mxu1 %vm15322_vm6, %v22511_v62 }
 0xab0   : > { %v30701_v15 = vadd.f32 %v19411_v46, %v19227_v55  ;;  %24605 = vmatprep.mubr.msk.f32.mxu1 %vm24755_vm0, %v31208_v53 }
 0xab1   : > { %v19204_v4 = vpop.f32.mrf.mxu0  ;;  %v24301_v50 = vpop.f32.mrf.mxu1 }
 0xab2   : > { %v19230_v33 = vadd.f32 %v19204_v4, %v30524_v1 }
 0xab3   : > { %v24261_v8 = vpop.f32.mrf.mxu0  ;;  %v19416_v51 = vpop.f32.mrf.mxu1  ;;  %24606 = vmatmul.mubr.msk.f32.gmra.mxu1 %vm15322_vm6, %v22512_v49 }
 0xab4   : > { %v30710_v17 = vadd.f32 %v19416_v51, %v19228_v11  ;;  %24608 = vmatprep.mubr.msk.f32.mxu1 %vm24755_vm0, %v31208_v53 }
 0xab5   : > { %v19209_v60 = vpop.f32.mrf.mxu0  ;;  %v24304_v14 = vpop.f32.mrf.mxu1 }
 0xab6   : > { %v19231_v57 = vadd.f32 %v19209_v60, %v30539_v43 }
 0xab7   : > { %v24264_v61 = vpop.f32.mrf.mxu0  ;;  %v19421_v59 = vpop.f32.mrf.mxu1  ;;  %24609 = vmatmul.mubr.msk.f32.gmra.mxu1 %vm15322_vm6, %v22513_v26 }
 0xab8   : > { %v30719_v1 = vadd.f32 %v19421_v59, %v19229_v52 }
 0xab9   : > { %v19214_v12 = vpop.f32.mrf.mxu0  ;;  %v24307_v38 = vpop.f32.mrf.mxu1 }
 0xaba   : > { %v19232_v22 = vadd.f32 %v19214_v12, %v30554_v56 }
 0xabb   : > { %v24267_v16 = vpop.f32.mrf.mxu0  ;;  %v19426_v27 = vpop.f32.mrf.mxu1 }
 0xabc   : > { %v30722_v18 = vadd.f32 %v19426_v27, %v19230_v33 }
 0xabd   : > { %v24310_v20 = vpop.f32.mrf.mxu1  ;;  %v19588_v0 = vpop.f32.mrf.mxu0 }
 0xabe   : > { %v19662_v5 = vadd.f32 %v19588_v0, %v30569_v31 }
 0xabf   : > { %v19431_v48 = vpop.f32.mrf.mxu1  ;;  %v24323_v43 = vpop.f32.mrf.mxu0 }
 0xac0   : > { %v30725_v23 = vadd.f32 %v19431_v48, %v19231_v57 }
 0xac1   : > { %v24313_v44 = vpop.f32.mrf.mxu1  ;;  %v19593_v10 = vpop.f32.mrf.mxu0 }
 0xac2   : > { %v19663_v28 = vadd.f32 %v19593_v10, %v30584_v34 }
 0xac3   : > { %v19436_v35 = vpop.f32.mrf.mxu1  ;;  %v24326_v30 = vpop.f32.mrf.mxu0 }
 0xac4   : > { %v30728_v42 = vadd.f32 %v19436_v35, %v19232_v22 }
 0xac5   : > { %v24316_v56 = vpop.f32.mrf.mxu1  ;;  %v19598_v24 = vpop.f32.mrf.mxu0 }
 0xac6   : > { %v19664_v47 = vadd.f32 %v19598_v24, %v30599_v25 }
 0xac7   : > { %v24329_v36 = vpop.f32.mrf.mxu0  ;;  %v19804_v55 = vpop.f32.mrf.mxu1 }
 0xac8   : > { %v30731_v32 = vadd.f32 %v19804_v55, %v19662_v5 }
 0xac9   : > { %v19603_v31 = vpop.f32.mrf.mxu0  ;;  %v24372_v45 = vpop.f32.mrf.mxu1 }
 0xaca   : > { %v19665_v21 = vadd.f32 %v19603_v31, %v30614_v54 }
 0xacb   : > { %v24332_v40 = vpop.f32.mrf.mxu0  ;;  %v19809_v2 = vpop.f32.mrf.mxu1 }
 0xacc   : > { %v30734_v7 = vadd.f32 %v19809_v2, %v19663_v28 }
 0xacd   : > { %v19608_v34 = vpop.f32.mrf.mxu0  ;;  %v24375_v11 = vpop.f32.mrf.mxu1 }
 0xace   : > { %v19666_v13 = vadd.f32 %v19608_v34, %v30629_v58 }
 0xacf   : > { %v24335_v37 = vpop.f32.mrf.mxu0  ;;  %v19814_v29 = vpop.f32.mrf.mxu1 }
 0xad0   : > { %v30737_v62 = vadd.f32 %v19814_v29, %v19664_v47 }
 0xad1   : > { %v19613_v25 = vpop.f32.mrf.mxu0  ;;  %v24378_v19 = vpop.f32.mrf.mxu1 }
 0xad2   : > { %v19667_v9 = vadd.f32 %v19613_v25, %v30644_v3 }
 0xad3   : > { %v24338_v52 = vpop.f32.mrf.mxu0  ;;  %v19819_v41 = vpop.f32.mrf.mxu1 }
 0xad4   : > { %v30740_v46 = vadd.f32 %v19819_v41, %v19665_v21 }
 0xad5   : > { %v19618_v54 = vpop.f32.mrf.mxu0  ;;  %v24381_v49 = vpop.f32.mrf.mxu1 }
 0xad6   : > { %v19668_v4 = vadd.f32 %v19618_v54, %v30659_v63 }
 0xad7   : > { %v24341_v50 = vpop.f32.mrf.mxu0  ;;  %v19824_v33 = vpop.f32.mrf.mxu1 }
 0xad8   : > { %v30743_v8 = vadd.f32 %v19824_v33, %v19666_v13 }
 0xad9   : > { %v19623_v58 = vpop.f32.mrf.mxu0  ;;  %v24384_v51 = vpop.f32.mrf.mxu1 }
 0xada   : > { %v19669_v26 = vadd.f32 %v19623_v58, %v30674_v39 }
 0xadb   : > { %v24344_v60 = vpop.f32.mrf.mxu0  ;;  %v19829_v14 = vpop.f32.mrf.mxu1 }
 0xadc   : > { %v30746_v57 = vadd.f32 %v19829_v14, %v19667_v9 }
 0xadd   : > { %v19628_v3 = vpop.f32.mrf.mxu0  ;;  %v24387_v61 = vpop.f32.mrf.mxu1 }
 0xade   : > { %v19670_v59 = vadd.f32 %v19628_v3, %v30689_v6 }
 0xadf   : > { %v24347_v12 = vpop.f32.mrf.mxu0  ;;  %v19834_v38 = vpop.f32.mrf.mxu1 }
 0xae0   : > { %v30749_v22 = vadd.f32 %v19834_v38, %v19668_v4 }
 0xae1   : > { %v19633_v63 = vpop.f32.mrf.mxu0  ;;  %v24390_v16 = vpop.f32.mrf.mxu1 }
 0xae2   : > { %v19671_v27 = vadd.f32 %v19633_v63, %v30701_v15 }
 0xae3   : > { %v24350_v20 = vpop.f32.mrf.mxu0  ;;  %v19839_v0 = vpop.f32.mrf.mxu1 }
 0xae4   : > { %v30752_v5 = vadd.f32 %v19839_v0, %v19669_v26 }
 0xae5   : > { %v19638_v39 = vpop.f32.mrf.mxu0  ;;  %v24393_v48 = vpop.f32.mrf.mxu1 }
 0xae6   : > { %v19672_v43 = vadd.f32 %v19638_v39, %v30710_v17 }
 0xae7   : > { %v24353_v44 = vpop.f32.mrf.mxu0  ;;  %v19844_v10 = vpop.f32.mrf.mxu1 }
 0xae8   : > { %v30755_v28 = vadd.f32 %v19844_v10, %v19670_v59 }
 0xae9   : > { %v19643_v6 = vpop.f32.mrf.mxu0  ;;  %v24396_v35 = vpop.f32.mrf.mxu1 }
 0xaea   : > { %v19673_v30 = vadd.f32 %v19643_v6, %v30719_v1 }
 0xaeb   : > { %v24356_v56 = vpop.f32.mrf.mxu0  ;;  %v19849_v24 = vpop.f32.mrf.mxu1 }
 0xaec   : > { %v30758_v47 = vadd.f32 %v19849_v24, %v19671_v27 }
 0xaed   : > { %v19648_v15 = vpop.f32.mrf.mxu0  ;;  %v24399_v36 = vpop.f32.mrf.mxu1 }
 0xaee   : > { %v19674_v55 = vadd.f32 %v19648_v15, %v30722_v18 }
 0xaef   : > { %v24359_v31 = vpop.f32.mrf.mxu0  ;;  %v19854_v45 = vpop.f32.mrf.mxu1 }
 0xaf0   : > { %v30761_v21 = vadd.f32 %v19854_v45, %v19672_v43 }
 0xaf1   : > { %v19653_v17 = vpop.f32.mrf.mxu0  ;;  %v24402_v40 = vpop.f32.mrf.mxu1 }
 0xaf2   : > { %v19675_v2 = vadd.f32 %v19653_v17, %v30725_v23 }
 0xaf3   : > { %v24362_v34 = vpop.f32.mrf.mxu0  ;;  %v19859_v11 = vpop.f32.mrf.mxu1 }
 0xaf4   : > { %v30764_v13 = vadd.f32 %v19859_v11, %v19673_v30 }
 0xaf5   : > { %v19658_v1 = vpop.f32.mrf.mxu0  ;;  %v24405_v37 = vpop.f32.mrf.mxu1 }
 0xaf6   : > { %v19676_v29 = vadd.f32 %v19658_v1, %v30728_v42 }
 0xaf7   : > { %v24365_v25 = vpop.f32.mrf.mxu0  ;;  %v19864_v19 = vpop.f32.mrf.mxu1 }
 0xaf8   : > { %v30767_v9 = vadd.f32 %v19864_v19, %v19674_v55 }
 0xaf9   : > { %v24408_v18 = vpop.f32.mrf.mxu1  ;;  %v20028_v52 = vpop.f32.mrf.mxu0 }
 0xafa   : > { %v20102_v41 = vadd.f32 %v20028_v52, %v30731_v32 }
 0xafb   : > { %v19869_v54 = vpop.f32.mrf.mxu1  ;;  %v24421_v49 = vpop.f32.mrf.mxu0 }
 0xafc   : > { %v30770_v4 = vadd.f32 %v19869_v54, %v19675_v2 }
 0xafd   : > { %v24411_v23 = vpop.f32.mrf.mxu1  ;;  %v20033_v50 = vpop.f32.mrf.mxu0 }
 0xafe   : > { %v20103_v33 = vadd.f32 %v20033_v50, %v30734_v7 }
 0xaff   : > { %v19874_v58 = vpop.f32.mrf.mxu1  ;;  %v24424_v51 = vpop.f32.mrf.mxu0 }
 0xb00   : > { %v30773_v26 = vadd.f32 %v19874_v58, %v19676_v29 }
 0xb01   : > { %v24414_v42 = vpop.f32.mrf.mxu1  ;;  %v20038_v60 = vpop.f32.mrf.mxu0 }
 0xb02   : > { %v20104_v14 = vadd.f32 %v20038_v60, %v30737_v62 }
 0xb03   : > { %v24427_v3 = vpop.f32.mrf.mxu0  ;;  %v20250_v61 = vpop.f32.mrf.mxu1 }
 0xb04   : > { %v30776_v59 = vadd.f32 %v20250_v61, %v20102_v41 }
 0xb05   : > { %v20043_v32 = vpop.f32.mrf.mxu0  ;;  %v24470_v12 = vpop.f32.mrf.mxu1 }
 0xb06   : > { %v20105_v38 = vadd.f32 %v20043_v32, %v30740_v46 }
 0xb07   : > { %v24430_v63 = vpop.f32.mrf.mxu0  ;;  %v20255_v16 = vpop.f32.mrf.mxu1 }
 0xb08   : > { %v30779_v27 = vadd.f32 %v20255_v16, %v20103_v33 }
 0xb09   : > { %v20048_v7 = vpop.f32.mrf.mxu0  ;;  %v24473_v20 = vpop.f32.mrf.mxu1 }
 0xb0a   : > { %v20106_v0 = vadd.f32 %v20048_v7, %v30743_v8 }
 0xb0b   : > { %v24433_v39 = vpop.f32.mrf.mxu0  ;;  %v20260_v48 = vpop.f32.mrf.mxu1 }
 0xb0c   : > { %v30782_v43 = vadd.f32 %v20260_v48, %v20104_v14 }
 0xb0d   : > { %v20053_v62 = vpop.f32.mrf.mxu0  ;;  %v24476_v44 = vpop.f32.mrf.mxu1 }
 0xb0e   : > { %v20107_v10 = vadd.f32 %v20053_v62, %v30746_v57 }
 0xb0f   : > { %v24436_v6 = vpop.f32.mrf.mxu0  ;;  %v20265_v35 = vpop.f32.mrf.mxu1 }
 0xb10   : > { %v30785_v30 = vadd.f32 %v20265_v35, %v20105_v38 }
 0xb11   : > { %v20058_v46 = vpop.f32.mrf.mxu0  ;;  %v24479_v56 = vpop.f32.mrf.mxu1 }
 0xb12   : > { %v20108_v24 = vadd.f32 %v20058_v46, %v30749_v22 }
 0xb13   : > { %v24439_v15 = vpop.f32.mrf.mxu0  ;;  %v20270_v36 = vpop.f32.mrf.mxu1 }
 0xb14   : > { %v30788_v55 = vadd.f32 %v20270_v36, %v20106_v0 }
 0xb15   : > { %v20063_v8 = vpop.f32.mrf.mxu0  ;;  %v24482_v31 = vpop.f32.mrf.mxu1 }
 0xb16   : > { %v20109_v45 = vadd.f32 %v20063_v8, %v30752_v5 }
 0xb17   : > { %v24442_v17 = vpop.f32.mrf.mxu0  ;;  %v20275_v40 = vpop.f32.mrf.mxu1 }
 0xb18   : > { %v30791_v2 = vadd.f32 %v20275_v40, %v20107_v10 }
 0xb19   : > { %v20068_v57 = vpop.f32.mrf.mxu0  ;;  %v24485_v34 = vpop.f32.mrf.mxu1 }
 0xb1a   : > { %v20110_v11 = vadd.f32 %v20068_v57, %v30755_v28 }
 0xb1b   : > { %v24445_v1 = vpop.f32.mrf.mxu0  ;;  %v20280_v37 = vpop.f32.mrf.mxu1 }
 0xb1c   : > { %v30794_v29 = vadd.f32 %v20280_v37, %v20108_v24 }
 0xb1d   : > { %v20073_v22 = vpop.f32.mrf.mxu0  ;;  %v24488_v25 = vpop.f32.mrf.mxu1 }
 0xb1e   : > { %v20111_v19 = vadd.f32 %v20073_v22, %v30758_v47 }
 0xb1f   : > { %v24448_v18 = vpop.f32.mrf.mxu0  ;;  %v20285_v52 = vpop.f32.mrf.mxu1 }
 0xb20   : > { %v30797_v41 = vadd.f32 %v20285_v52, %v20109_v45 }
 0xb21   : > { %v20078_v5 = vpop.f32.mrf.mxu0  ;;  %v24491_v54 = vpop.f32.mrf.mxu1 }
 0xb22   : > { %v20112_v49 = vadd.f32 %v20078_v5, %v30761_v21 }
 0xb23   : > { %v24451_v23 = vpop.f32.mrf.mxu0  ;;  %v20290_v50 = vpop.f32.mrf.mxu1 }
 0xb24   : > { %v30800_v33 = vadd.f32 %v20290_v50, %v20110_v11 }
 0xb25   : > { %v20083_v28 = vpop.f32.mrf.mxu0  ;;  %v24494_v58 = vpop.f32.mrf.mxu1 }
 0xb26   : > { %v20113_v51 = vadd.f32 %v20083_v28, %v30764_v13 }
 0xb27   : > { %v24454_v42 = vpop.f32.mrf.mxu0  ;;  %v20295_v60 = vpop.f32.mrf.mxu1 }
 0xb28   : > { %v30803_v14 = vadd.f32 %v20295_v60, %v20111_v19 }
 0xb29   : > { %v20088_v47 = vpop.f32.mrf.mxu0  ;;  %v24497_v3 = vpop.f32.mrf.mxu1 }
 0xb2a   : > { %v20114_v61 = vadd.f32 %v20088_v47, %v30767_v9 }
 0xb2b   : > { %v24457_v32 = vpop.f32.mrf.mxu0  ;;  %v20300_v12 = vpop.f32.mrf.mxu1 }
 0xb2c   : > { %v30806_v38 = vadd.f32 %v20300_v12, %v20112_v49 }
 0xb2d   : > { %v20093_v21 = vpop.f32.mrf.mxu0  ;;  %v24500_v63 = vpop.f32.mrf.mxu1 }
 0xb2e   : > { %v30809_v16 = vadd.f32 %v20093_v21, %v30770_v4 }
 0xb2f   : > { %v24460_v7 = vpop.f32.mrf.mxu0  ;;  %v20305_v20 = vpop.f32.mrf.mxu1 }
 0xb30   : > { %v30811_v13 = vadd.f32 %v20305_v20, %v20113_v51 }
 0xb31   : > { %v20098_v0 = vpop.f32.mrf.mxu0  ;;  %v24503_v39 = vpop.f32.mrf.mxu1 }
 0xb32   : > { %v30814_v48 = vadd.f32 %v20098_v0, %v30773_v26 }
 0xb33   : > { %v24463_v62 = vpop.f32.mrf.mxu0  ;;  %v20310_v9 = vpop.f32.mrf.mxu1 }
 0xb34   : > { %v30816_v44 = vadd.f32 %v20310_v9, %v20114_v61 }
 0xb35   : > { %v24506_v10 = vpop.f32.mrf.mxu1  ;;  %v20472_v6 = vpop.f32.mrf.mxu0 }
 0xb36   : > { %v20546_v35 = vadd.f32 %v20472_v6, %v30776_v59 }
 0xb37   : > { %v30819_v46 = vpop.f32.mrf.mxu1  ;;  %v24519_v4 = vpop.f32.mrf.mxu0 }
 0xb39   : > { %v24509_v56 = vpop.f32.mrf.mxu1  ;;  %v20477_v24 = vpop.f32.mrf.mxu0 }
 0xb3a   : > { %v20547_v15 = vadd.f32 %v20477_v24, %v30779_v27 }
 0xb3b   : > { %v30822_v36 = vpop.f32.mrf.mxu1  ;;  %v24522_v8 = vpop.f32.mrf.mxu0 }
 0xb3d   : > { %v24512_v26 = vpop.f32.mrf.mxu1  ;;  %v20482_v31 = vpop.f32.mrf.mxu0 }
 0xb3e   : > { %v20548_v45 = vadd.f32 %v20482_v31, %v30782_v43 }
 0xb3f   : > { %v24525_v17 = vpop.f32.mrf.mxu0  ;;  %v20694_v40 = vpop.f32.mrf.mxu1 }
 0xb40   : > { %v30825_v57 = vadd.f32 %v20694_v40, %v20546_v35 }
 0xb41   : > { %v20487_v34 = vpop.f32.mrf.mxu0  ;;  %v24568_v59 = vpop.f32.mrf.mxu1 }
 0xb42   : > { %v20549_v11 = vadd.f32 %v20487_v34, %v30785_v30 }
 0xb43   : > { %v24528_v1 = vpop.f32.mrf.mxu0  ;;  %v20699_v37 = vpop.f32.mrf.mxu1 }
 0xb44   : > { %v30828_v22 = vadd.f32 %v20699_v37, %v20547_v15  ;;  %v20337_v37 = vadd.f32 %v30819_v46, %v30809_v16 }
 0xb45   : > { %v20492_v27 = vpop.f32.mrf.mxu0  ;;  %v24571_v25 = vpop.f32.mrf.mxu1 }
 0xb46   : > { %v30831_v19 = vadd.f32 %v20492_v27, %v30788_v55  ;;  %v20338_v25 = vadd.f32 %v30822_v36, %v30814_v48  ;;  %v20795_v48 = vld [vmem:[%s31061_s6 + $0x60] sm:$0xff] }
 0xb47   : > { %v24531_v18 = vpop.f32.mrf.mxu0  ;;  %v20704_v52 = vpop.f32.mrf.mxu1 }
 0xb48   : > { %v30833_v43 = vadd.f32 %v20704_v52, %v20548_v45 }
 0xb49   : > { %v30835_v5 = vpop.f32.mrf.mxu0  ;;  %v24574_v54 = vpop.f32.mrf.mxu1 }
 0xb4b   : > { %v24534_v49 = vpop.f32.mrf.mxu0  ;;  %v20709_v23 = vpop.f32.mrf.mxu1 }
 0xb4c   : > { %v30837_v50 = vadd.f32 %v20709_v23, %v20549_v11 }
 0xb4d   : > { %v30839_v30 = vpop.f32.mrf.mxu0  ;;  %v24577_v28 = vpop.f32.mrf.mxu1 }
 0xb4e   : > { %v20796_v28 = vld [vmem:[%s31061_s6 + $0x68] sm:$0xff] }
 0xb4f   : > { %v24537_v58 = vpop.f32.mrf.mxu0  ;;  %v30841_v51 = vpop.f32.mrf.mxu1 }
 0xb51   : > { %v30843_v42 = vpop.f32.mrf.mxu0  ;;  %v24580_v55 = vpop.f32.mrf.mxu1 }
 0xb52   : > { %v20797_v55 = vld [vmem:[%s31061_s6 + $0x70] sm:$0xff] }
 0xb53   : > { %v24540_v60 = vpop.f32.mrf.mxu0  ;;  %v30845_v47 = vpop.f32.mrf.mxu1 }
 0xb55   : > { %v20512_v3 = vpop.f32.mrf.mxu0  ;;  %v24583_v61 = vpop.f32.mrf.mxu1 }
 0xb57   : > { %v24543_v32 = vpop.f32.mrf.mxu0  ;;  %v30847_v12 = vpop.f32.mrf.mxu1 }
 0xb59   : > { %v20517_v21 = vpop.f32.mrf.mxu0  ;;  %v24586_v63 = vpop.f32.mrf.mxu1 }
 0xb5b   : > { %v24546_v7 = vpop.f32.mrf.mxu0  ;;  %v30849_v20 = vpop.f32.mrf.mxu1 }
 0xb5c   : > { %v20794_v7 = vld [vmem:[%s31061_s6 + $0x58] sm:$0xff] }
 0xb5d   : > { %v20522_v0 = vpop.f32.mrf.mxu0  ;;  %v24589_v39 = vpop.f32.mrf.mxu1 }
 0xb5e   : > { %v20556_v36 = vadd.f32 %v20522_v0, %v30806_v38  ;;  %v20555_v39 = vadd.f32 %v20517_v21, %v30803_v14  ;;  %v20553_v14 = vadd.f32 %v30843_v42, %v30797_v41  ;;  %v20790_v41 = vld [vmem:[%s31061_s6 + $0x38] sm:$0xff]  ;;  %v20551_v42 = vadd.f32 %v30835_v5, %v30791_v2  ;;  %v20788_v2 = vld [vmem:[%s31061_s6 + $0x28] sm:$0xff] }
 0xb5f   : > { %v24549_v62 = vpop.f32.mrf.mxu0  ;;  %v20734_v9 = vpop.f32.mrf.mxu1  ;;  %v20772_v5 = vadd.f32 %v30841_v51, %v30831_v19  ;;  %v20785_v51 = vld [vmem:[%s31061_s6 + $0x10] sm:$0xff] }
 0xb61   : > { %v20527_v10 = vpop.f32.mrf.mxu0  ;;  %v24592_v6 = vpop.f32.mrf.mxu1 }
 0xb62   : > { %v20557_v16 = vadd.f32 %v20527_v10, %v30811_v13  ;;  %v20793_v6 = vld [vmem:[%s31061_s6 + $0x50] sm:$0xff] }
 0xb63   : > { %v24552_v35 = vpop.f32.mrf.mxu0  ;;  %v20739_v4 = vpop.f32.mrf.mxu1 }
 0xb64   : > { %v20554_v35 = vadd.f32 %v20512_v3, %v30800_v33  ;;  %v20791_v33 = vld [vmem:[%s31061_s6 + $0x40] sm:$0xff]  ;;  %v20552_v3 = vadd.f32 %v30839_v30, %v30794_v29  ;;  %v20789_v29 = vld [vmem:[%s31061_s6 + $0x30] sm:$0xff]  ;;  %v20773_v30 = vadd.f32 %v30845_v47, %v20551_v42 }
 0xb65   : > { %v20532_v56 = vpop.f32.mrf.mxu0  ;;  %v24595_v24 = vpop.f32.mrf.mxu1  ;;  %v20849_v42 = vld [vmem:[%s31063_s8 + $0x50] sm:$0xf] }
 0xb66   : > { %v20558_v54 = vadd.f32 %v20532_v56, %v30816_v44  ;;  %v20777_v56 = vadd.f32 %v20739_v4, %v20555_v39  ;;  %v20792_v24 = vld [vmem:[%s31061_s6 + $0x48] sm:$0xff]  ;;  %v20776_v21 = vadd.f32 %v20734_v9, %v20554_v35  ;;  %v20775_v4 = vadd.f32 %v30849_v20, %v20553_v14 }
 0xb67   : > { %v24555_v15 = vpop.f32.mrf.mxu0  ;;  %v20744_v8 = vpop.f32.mrf.mxu1  ;;  %v20774_v9 = vadd.f32 %v30847_v12, %v20552_v3  ;;  %v20803_v47 = vadd.f32 %v20788_v2, %v20773_v30  ;;  %v20846_v30 = vld [vmem:[%s31063_s8 + $0x38] sm:$0xff] }
 0xb68   : > { %v20778_v62 = vadd.f32 %v20744_v8, %v20556_v36  ;;  %v20805_v20 = vadd.f32 %v20790_v41, %v20775_v4  ;;  %v20835_v36 = vld [vmem:[%s31062_s7 + $0x38] sm:$0xff] }
 0xb69   : > { %v20537_v26 = vpop.f32.mrf.mxu0  ;;  %v24598_v31 = vpop.f32.mrf.mxu1  ;;  %v20804_v12 = vadd.f32 %v20789_v29, %v20774_v9  ;;  %v20847_v9 = vld [vmem:[%s31063_s8 + $0x40] sm:$0xff] }
 0xb6a   : > { %v20559_v18 = vadd.f32 %v20537_v26, %v20337_v37  ;;  %v20808_v15 = vadd.f32 %v20793_v6, %v20778_v62  ;;  %v20807_v26 = vadd.f32 %v20792_v24, %v20777_v56 }
 0xb6b   : > { %v24558_v45 = vpop.f32.mrf.mxu0  ;;  %v20749_v17 = vpop.f32.mrf.mxu1  ;;  %v20819_v19 = vmax.f32 %v20804_v12, 0.0 }
 0xb6c   : > { %v20779_v61 = vadd.f32 %v20749_v17, %v20557_v16  ;;  %v20806_v45 = vadd.f32 %v20791_v33, %v20776_v21  ;;  %v20823_v17 = vmax.f32 %v20808_v15, 0.0  ;;  %v20830_v16 = vld [vmem:[%s31062_s7 + $0x10] sm:$0xff] }
 0xb6d   : > { %v20542_v40 = vpop.f32.mrf.mxu0  ;;  %v24601_v34 = vpop.f32.mrf.mxu1 }
 0xb6e   : > { %v20560_v49 = vadd.f32 %v20542_v40, %v20338_v25  ;;  %v20809_v38 = vadd.f32 %v20794_v7, %v20779_v61  ;;  %v20822_v40 = vmax.f32 %v20807_v26, 0.0  ;;  %v20821_v34 = vmax.f32 %v20806_v45, 0.0  ;;  %v20836_v61 = vld [vmem:[%s31062_s7 + $0x40] sm:$0xff] }
 0xb6f   : > { %v20754_v59 = vpop.f32.mrf.mxu1  ;;  %v24561_v11 = vpop.f32.mrf.mxu0  ;;  %v20818_v25 = vmax.f32 %v20803_v47, 0.0  ;;  %v21014_v7 = vld [vmem:[%s31064_s9] sm:$0xff] }
 0xb70   : > { %v20780_v46 = vadd.f32 %v20754_v59, %v20558_v54  ;;  %v20824_v31 = vmax.f32 %v20809_v38, 0.0  ;;  %v20787_v59 = vld [vmem:[%s31061_s6 + $0x20] sm:$0xff]  ;;  %v20820_v11 = vmax.f32 %v20805_v20, 0.0 }
 0xb71   : > { %v24604_v1 = vpop.f32.mrf.mxu1  ;;  %v20802_v37 = vadd.f32 %v20787_v59, %v20772_v5  ;;  %v20845_v5 = vld [vmem:[%s31063_s8 + $0x30] sm:$0xff]  ;;  %v20844_v59 = vld [vmem:[%s31063_s8 + $0x28] sm:$0xff] }
 0xb72   : > { %v20810_v13 = vadd.f32 %v20795_v48, %v20780_v46  ;;  %v20786_v1 = vld [vmem:[%s31061_s6 + $0x18] sm:$0xff]  ;;  %v20833_v48 = vld [vmem:[%s31062_s7 + $0x28] sm:$0xff] }
 0xb73   : > { %v20759_v27 = vpop.f32.mrf.mxu1  ;;  %v20817_v54 = vmax.f32 %v20802_v37, 0.0  ;;  %v20831_v46 = vld [vmem:[%s31062_s7 + $0x18] sm:$0xff] }
 0xb74   : > { %v20781_v23 = vadd.f32 %v20759_v27, %v20559_v18  ;;  %v20825_v8 = vmax.f32 %v20810_v13, 0.0  ;;  %v20801_v27 = vadd.f32 %v20786_v1, %v30837_v50  ;;  %v20784_v18 = vld [vmem:[%s31061_s6 + $0x8] sm:$0xff]  ;;  %v20843_v1 = vld [vmem:[%s31063_s8 + $0x20] sm:$0xff] }
 0xb75   : > { %v24607_v52 = vpop.f32.mrf.mxu1  ;;  %v20799_v50 = vadd.f32 %v20784_v18, %v30828_v22  ;;  %v20828_v22 = vld [vmem:[%s31062_s7] sm:$0xff]  ;;  %v20841_v18 = vld [vmem:[%s31063_s8 + $0x10] sm:$0xff] }
 0xb76   : > { %v20811_v32 = vadd.f32 %v20796_v28, %v20781_v23  ;;  %v20800_v52 = vadd.f32 %v20785_v51, %v30833_v43  ;;  %v20816_v23 = vmax.f32 %v20801_v27, 0.0  ;;  %v20842_v51 = vld [vmem:[%s31063_s8 + $0x18] sm:$0xff] }
 0xb77   : > { %v20764_v58 = vpop.f32.mrf.mxu1  ;;  %v20814_v43 = vmax.f32 %v20799_v50, 0.0 }
 0xb78   : > { %v20782_v60 = vadd.f32 %v20764_v58, %v20560_v49  ;;  %v20826_v0 = vmax.f32 %v20811_v32, 0.0  ;;  %v20783_v49 = vld [vmem:[%s31061_s6] sm:$0xff]  ;;  %v20815_v58 = vmax.f32 %v20800_v52, 0.0  ;;  %v20837_v32 = vld [vmem:[%s31062_s7 + $0x48] sm:$0xff] }
 0xb79   : > { %v24610_v44 = vpop.f32.mrf.mxu1  ;;  %v20798_v28 = vadd.f32 %v20783_v49, %v30825_v57  ;;  %v20829_v57 = vld [vmem:[%s31062_s7 + $0x8] sm:$0xff] }
 0xb7a   : > { %v20812_v63 = vadd.f32 %v20797_v55, %v20782_v60  ;;  %v20832_v60 = vld [vmem:[%s31062_s7 + $0x20] sm:$0xff]  ;;  %v20834_v44 = vld [vmem:[%s31062_s7 + $0x30] sm:$0xff]  ;;  %v20840_v49 = vld [vmem:[%s31063_s8 + $0x8] sm:$0xff] }
 0xb7b   : > { %v20813_v55 = vmax.f32 %v20798_v28, 0.0  ;;  %v20839_v28 = vld [vmem:[%s31063_s8] sm:$0xff] }
 0xb7c   : > { %v20827_v10 = vmax.f32 %v20812_v63, 0.0  ;;  %v20838_v63 = vld [vmem:[%s31062_s7 + $0x50] sm:$0xf] }
 0xb7e   : > { %24612 = vmatpush3.msra.mxu0 %v20827_v10 }
 0xb7f   : > { %24613 = vmatprep.subr.mxu0 %v31208_v53 }
 0xb80   : > { %24614 = vmatpush3.msra.mxu0 %v20826_v0 }
 0xb81   : > { %24615 = vmatprep.subr.mxu0 %v31208_v53 }
 0xb82   : > { %24616 = vmatpush3.msra.mxu0 %v20825_v8 }
 0xb83   : > { %24617 = vmatprep.subr.mxu0 %v31208_v53 }
 0xb84   : > { %24618 = vmatpush3.msra.mxu0 %v20824_v31  ;;  %v20848_v31 = vld [vmem:[%s31063_s8 + $0x48] sm:$0xff] }
 0xb85   : > { %24619 = vmatprep.subr.mxu0 %v31208_v53 }
 0xb86   : > { %24620 = vmatpush3.msra.mxu0 %v20823_v17 }
 0xb87   : > { %24621 = vmatprep.subr.mxu0 %v31208_v53 }
 0xb88   : > { %24622 = vmatpush3.msra.mxu0 %v20822_v40 }
 0xb89   : > { %24623 = vmatprep.subr.mxu0 %v31208_v53 }
 0xb8a   : > { %24624 = vmatpush3.msra.mxu0 %v20821_v34 }
 0xb8b   : > { %24625 = vmatprep.subr.mxu0 %v31208_v53 }
 0xb8c   : > { %24626 = vmatpush3.msra.mxu0 %v20820_v11 }
 0xb8d   : > { %24627 = vmatprep.subr.mxu0 %v31208_v53 }
 0xb8e   : > { %24628 = vmatpush3.msra.mxu0 %v20819_v19 }
 0xb8f   : > { %24629 = vmatprep.subr.mxu0 %v31208_v53 }
 0xb90   : > { %24630 = vmatpush3.msra.mxu0 %v20818_v25 }
 0xb91   : > { %24631 = vmatprep.subr.mxu0 %v31208_v53 }
 0xb92   : > { %24632 = vmatpush3.msra.mxu0 %v20817_v54 }
 0xb93   : > { %24633 = vmatprep.subr.mxu0 %v31208_v53 }
 0xb94   : > { %24634 = vmatpush3.msra.mxu0 %v20816_v23 }
 0xb95   : > { %24635 = vmatprep.subr.mxu0 %v31208_v53 }
 0xb96   : > { %24636 = vmatpush3.msra.mxu0 %v20815_v58 }
 0xb97   : > { %24637 = vmatprep.subr.mxu0 %v31208_v53 }
 0xb98   : > { %24638 = vmatpush3.msra.mxu0 %v20814_v43 }
 0xb99   : > { %24639 = vmatprep.subr.mxu0 %v31208_v53 }
 0xb9a   : > { %24640 = vmatpush3.msra.mxu0 %v20813_v55 }
 0xb9b   : > { %24642 = vmatmul.mubr.msk.f32.vlgmr.msra.gmra.mxu0 %vm9691_vm5, %v20828_v22 }
 0xb9c   : > { %24644 = vmatprep.mubr.msk.f32.mxu0 %vm24755_vm0, %v31208_v53 }
 0xb9f   : > { %24645 = vmatmul.mubr.msk.f32.gmra.mxu0 %vm9691_vm5, %v20829_v57 }
 0xba0   : > { %24647 = vmatprep.mubr.msk.f32.mxu0 %vm24755_vm0, %v31208_v53 }
 0xba3   : > { %24648 = vmatmul.mubr.msk.f32.gmra.mxu0 %vm9691_vm5, %v20830_v16 }
 0xba4   : > { %24650 = vmatprep.mubr.msk.f32.mxu0 %vm24755_vm0, %v31208_v53 }
 0xba7   : > { %24651 = vmatmul.mubr.msk.f32.gmra.mxu0 %vm9691_vm5, %v20831_v46  ;;  %v21015_v46 = vld [vmem:[%s31064_s9 + $0x8] sm:$0x3] }
 0xba8   : > { %24653 = vmatprep.mubr.msk.f32.mxu0 %vm24755_vm0, %v31208_v53 }
 0xbab   : > { %24654 = vmatmul.mubr.msk.f32.gmra.mxu0 %vm9691_vm5, %v20832_v60  ;;  %v21017_v60 = vld [vmem:[%s31065_s10 + $0x8] sm:$0x3] }
 0xbac   : > { %24656 = vmatprep.mubr.msk.f32.mxu0 %vm24755_vm0, %v31208_v53 }
 0xbaf   : > { %24657 = vmatmul.mubr.msk.f32.gmra.mxu0 %vm9691_vm5, %v20833_v48 }
 0xbb0   : > { %24659 = vmatprep.mubr.msk.f32.mxu0 %vm24755_vm0, %v31208_v53 }
 0xbb3   : > { %24660 = vmatmul.mubr.msk.f32.gmra.mxu0 %vm9691_vm5, %v20834_v44  ;;  %v21016_v44 = vld [vmem:[%s31065_s10] sm:$0xff] }
 0xbb4   : > { %24662 = vmatprep.mubr.msk.f32.mxu0 %vm24755_vm0, %v31208_v53 }
 0xbb7   : > { %24663 = vmatmul.mubr.msk.f32.gmra.mxu0 %vm9691_vm5, %v20835_v36 }
 0xbb8   : > { %24665 = vmatprep.mubr.msk.f32.mxu0 %vm24755_vm0, %v31208_v53 }
 0xbbb   : > { %24666 = vmatmul.mubr.msk.f32.gmra.mxu0 %vm9691_vm5, %v20836_v61 }
 0xbbc   : > { %24668 = vmatprep.mubr.msk.f32.mxu0 %vm24755_vm0, %v31208_v53 }
 0xbbf   : > { %24669 = vmatmul.mubr.msk.f32.gmra.mxu0 %vm9691_vm5, %v20837_v32 }
 0xbc0   : > { %24671 = vmatprep.mubr.msk.f32.mxu0 %vm24755_vm0, %v31208_v53  ;;  %vm21025_vm0 = vcmask 1043456  }
 0xbc3   : > { %24672 = vmatmul.mubr.msk.f32.gmra.mxu0 %vm9691_vm5, %v20838_v63 }
 0xbc4   : > { %24696 = vmatprep.mubr.msk.f32.mxu0 %vm21018_vm4, %v21014_v7 }
 0xc5b   : > { %v31002_v39 = vpop.f32.mrf.mxu0 }
 0xc5c   : > { %v20950_v55 = vadd.f32 %v31002_v39, %v20839_v28 }
 0xc5d   : > { %v24643_v62 = vpop.f32.mrf.mxu0 }
 0xc5e   : > { %v21003_v16 = vmax.f32 %v20950_v55, 0.0 }
 0xc5f   : > { %v20954_v13 = vpop.f32.mrf.mxu0 }
 0xc60   : > { %v20955_v58 = vadd.f32 %v20954_v13, %v20840_v49 }
 0xc61   : > { %v24646_v10 = vpop.f32.mrf.mxu0 }
 0xc62   : > { %v21004_v57 = vmax.f32 %v20955_v58, 0.0 }
 0xc63   : > { %v20959_v6 = vpop.f32.mrf.mxu0 }
 0xc64   : > { %v20960_v50 = vadd.f32 %v20959_v6, %v20841_v18 }
 0xc65   : > { %v24649_v53 = vpop.f32.mrf.mxu0 }
 0xc66   : > { %v21005_v22 = vmax.f32 %v20960_v50, 0.0 }
 0xc67   : > { %v20964_v35 = vpop.f32.mrf.mxu0 }
 0xc68   : > { %v20965_v52 = vadd.f32 %v20964_v35, %v20842_v51 }
 0xc69   : > { %v24652_v56 = vpop.f32.mrf.mxu0 }
 0xc6a   : > { %v21006_v43 = vmax.f32 %v20965_v52, 0.0 }
 0xc6b   : > { %v20969_v38 = vpop.f32.mrf.mxu0 }
 0xc6c   : > { %v20970_v27 = vadd.f32 %v20969_v38, %v20843_v1 }
 0xc6d   : > { %v24655_v0 = vpop.f32.mrf.mxu0 }
 0xc6e   : > { %v21007_v23 = vmax.f32 %v20970_v27, 0.0 }
 0xc6f   : > { %v20974_v24 = vpop.f32.mrf.mxu0 }
 0xc70   : > { %v20975_v37 = vadd.f32 %v20974_v24, %v20844_v59 }
 0xc71   : > { %v24658_v14 = vpop.f32.mrf.mxu0 }
 0xc72   : > { %v21008_v54 = vmax.f32 %v20975_v37, 0.0 }
 0xc73   : > { %v20979_v21 = vpop.f32.mrf.mxu0 }
 0xc74   : > { %v20980_v47 = vadd.f32 %v20979_v21, %v20845_v5 }
 0xc75   : > { %v24661_v15 = vpop.f32.mrf.mxu0 }
 0xc76   : > { %v21009_v25 = vmax.f32 %v20980_v47, 0.0 }
 0xc77   : > { %v20984_v8 = vpop.f32.mrf.mxu0 }
 0xc78   : > { %v20985_v12 = vadd.f32 %v20984_v8, %v20846_v30 }
 0xc79   : > { %v24664_v33 = vpop.f32.mrf.mxu0 }
 0xc7a   : > { %v21010_v19 = vmax.f32 %v20985_v12, 0.0 }
 0xc7b   : > { %v20989_v3 = vpop.f32.mrf.mxu0 }
 0xc7c   : > { %v20990_v40 = vadd.f32 %v20989_v3, %v20847_v9 }
 0xc7d   : > { %v24667_v4 = vpop.f32.mrf.mxu0 }
 0xc7e   : > { %v21011_v11 = vmax.f32 %v20990_v40, 0.0 }
 0xc7f   : > { %v20994_v26 = vpop.f32.mrf.mxu0 }
 0xc80   : > { %v20995_v17 = vadd.f32 %v20994_v26, %v20848_v31 }
 0xc81   : > { %v24670_v41 = vpop.f32.mrf.mxu0 }
 0xc82   : > { %v21012_v34 = vmax.f32 %v20995_v17, 0.0 }
 0xc83   : > { %v20999_v45 = vpop.f32.mrf.mxu0 }
 0xc84   : > { %v21000_v29 = vadd.f32 %v20999_v45, %v20849_v42 }
 0xc85   : > { %v24673_v20 = vpop.f32.mrf.mxu0 }
 0xc86   : > { %v21013_v2 = vmax.f32 %v21000_v29, 0.0 }
 0xc88   : > { %24674 = vmatprep.subr.msk.mxu0 %vm21025_vm0, %v21013_v2 }
 0xc89   : > { %24675 = vmatpush3.msk.msra.mxu0 %vm21025_vm0, %v21013_v2 }
 0xc8a   : > { %24676 = vmatprep.subr.mxu0 %v21012_v34 }
 0xc8b   : > { %24677 = vmatpush3.msra.mxu0 %v21012_v34 }
 0xc8c   : > { %24678 = vmatprep.subr.mxu0 %v21011_v11 }
 0xc8d   : > { %24679 = vmatpush3.msra.mxu0 %v21011_v11 }
 0xc8e   : > { %24680 = vmatprep.subr.mxu0 %v21010_v19 }
 0xc8f   : > { %24681 = vmatpush3.msra.mxu0 %v21010_v19 }
 0xc90   : > { %24682 = vmatprep.subr.mxu0 %v21009_v25 }
 0xc91   : > { %24683 = vmatpush3.msra.mxu0 %v21009_v25 }
 0xc92   : > { %24684 = vmatprep.subr.mxu0 %v21008_v54 }
 0xc93   : > { %24685 = vmatpush3.msra.mxu0 %v21008_v54 }
 0xc94   : > { %24686 = vmatprep.subr.mxu0 %v21007_v23 }
 0xc95   : > { %24687 = vmatpush3.msra.mxu0 %v21007_v23 }
 0xc96   : > { %24688 = vmatprep.subr.mxu0 %v21006_v43 }
 0xc97   : > { %24689 = vmatpush3.msra.mxu0 %v21006_v43 }
 0xc98   : > { %24690 = vmatprep.subr.mxu0 %v21005_v22 }
 0xc99   : > { %24691 = vmatpush3.msra.mxu0 %v21005_v22 }
 0xc9a   : > { %24692 = vmatprep.subr.mxu0 %v21004_v57 }
 0xc9b   : > { %24693 = vmatpush3.msra.mxu0 %v21004_v57 }
 0xc9c   : > { %24694 = vmatprep.subr.mxu0 %v21003_v16 }
 0xc9d   : > { %24695 = vmatpush3.msra.mxu0 %v21003_v16 }
 0xc9e   : > { %24697 = vmatmul.mubr.msk.f32.vlgmr.msra.gmra.mxu0 %vm21018_vm4, %v21015_v46 }
 0xd5e   : > { %v24698_v48 = vpop.f32.mrf.mxu0 }
 0xd5f   : > { %v21101_v36 = vadd.f32 %v24698_v48, %v21017_v60 }
 0xd60   : > { %v21095_v61 = vpop.f32.mrf.mxu0 }
 0xd61   : > { %21107 = vst.msk [vmem:[%s386_s30 + $0x8] sm:$0x3] %vm21106_vm12, %v21101_v36  ;;  %v21096_v32 = vadd.f32 %v21095_v61, %v21016_v44 }
 0xd63   : > { %21105 = vst.msk [vmem:[%s386_s30] sm:$0xff] %vm21104_vm14, %v21096_v32 }
 0xd64 PF: > { %s21_s17 = sadd.s32 1, %s24751_s17  }
 0xd65   : > { %p18_p4 = scmp.ge.s32.totalorder %s21_s17, 4  }
 0xd67   :  { %20 = sbr.rel (!%p18_p4) target bundleno = 1 (0x1), region = 166 }

</bundles_post_ra>
